<compile_context>
chip_gen: v7x
topology: tpu7x:2x2x1
jax: 0.10.0
libtpu: 0.0.40
codegen_flags: <defaults>
</compile_context>

<pallas_src>
import jax
import jax.numpy as jnp
from jax.experimental import pallas as pl
from jax.experimental.pallas import tpu as pltpu


FC_FEAT = 32 * 23 * 23                              # 16928 classifier features
FC_KSTEPS = 2                                       # K-reduction grid steps
FC_TK = pl.cdiv(FC_FEAT, FC_KSTEPS * 128) * 128     # 8576  (= 67 * 128)
FC_KPAD = FC_KSTEPS * FC_TK                         # 17152 (224 padded elems)


def _num_hidden_splits():
    """2 hidden-column blocks on v7x (2 TensorCores/chip); 1 on v5e/v6e."""
    try:
        kind = jax.devices()[0].device_kind.lower()
    except Exception:
        return 1
    return 2 if ("v7" in kind or "7x" in kind) else 1


# ----------------------------- Pallas kernels -----------------------------

def _conv_relu_pool_kernel(p0_ref, p1_ref, p2_ref, p3_ref, w_ref, b_ref, o_ref):
    """Fused Conv2d(stride=1) + ReLU + MaxPool2d(2) for one image.

    p*_ref: (1, K, P) bf16 im2col patches of the 4 pooling quadrants
            (even/odd out-row x even/odd out-col); K = Cin*kh*kw, P = Hp*Wp.
    w_ref : (Cout, K) bf16   b_ref: (Cout, 1) f32   o_ref: (1, Cout, P) bf16
    max(relu(conv)) == relu(max(pre-act) + b) since relu and +b are monotone.
    """
    w = w_ref[...]
    m = jnp.dot(w, p0_ref[0], preferred_element_type=jnp.float32)
    m = jnp.maximum(m, jnp.dot(w, p1_ref[0], preferred_element_type=jnp.float32))
    m = jnp.maximum(m, jnp.dot(w, p2_ref[0], preferred_element_type=jnp.float32))
    m = jnp.maximum(m, jnp.dot(w, p3_ref[0], preferred_element_type=jnp.float32))
    o_ref[0] = jnp.maximum(m + b_ref[...], 0.0).astype(o_ref.dtype)


def _mlp_kernel(x_ref, w1_ref, b1_ref, w2_ref, o_ref, h_acc):
    """Linear(K,256) + ReLU + Linear(256,nc); grid = (hidden blocks, K tiles).

    x_ref: (N, TK) bf16   w1_ref: (TK, hh) bf16   b1_ref: (1, hh) f32
    w2_ref: (hh, nc) f32  o_ref: (1, N, nc) f32 partial logits (summed outside)
    """
    k = pl.program_id(1)

    @pl.when(k == 0)
    def _():
        h_acc[...] = jnp.zeros_like(h_acc)

    h_acc[...] += jnp.dot(x_ref[...], w1_ref[...],
                          preferred_element_type=jnp.float32)

    @pl.when(k == pl.num_programs(1) - 1)
    def _():
        h = jnp.maximum(h_acc[...] + b1_ref[...], 0.0)
        o_ref[0] = jnp.dot(h, w2_ref[...], preferred_element_type=jnp.float32)


# ----------------------------- wrappers ------------------------------------

def _quadrant_patches(x_nchw, kh, kw, pad):
    """Channel-major bf16 im2col split by 2x2-pool quadrant (plain-JAX glue).

    x_nchw: (N, C, H, W).  Returns ([4 x (N, C*kh*kw, Hp*Wp)] bf16, Hp, Wp)
    where quadrant (ry, rx) holds the patches of conv-output pixels
    (2i+ry, 2j+rx).  K order is (ci, dy, dx), matching OIHW weights reshaped
    to (Cout, -1).
    """
    x_nchw = x_nchw.astype(jnp.bfloat16)
    n, c, h, w = x_nchw.shape
    if pad:
        x_nchw = jnp.pad(x_nchw, ((0, 0), (0, 0), (pad, pad), (pad, pad)))
    ho = h + 2 * pad - kh + 1
    wo = w + 2 * pad - kw + 1
    hp, wp = ho // 2, wo // 2
    quads = []
    for ry in range(2):
        for rx in range(2):
            slabs = []
            for dy in range(kh):
                for dx in range(kw):
                    ys, xs = ry + dy, rx + dx
                    slabs.append(
                        x_nchw[:, :, ys:ys + 2 * hp - 1:2,
                               xs:xs + 2 * wp - 1:2])        # (N, C, Hp, Wp)
            p = jnp.stack(slabs, axis=2).reshape(n, c * kh * kw, hp * wp)
            quads.append(p)
    return quads, hp, wp


def conv_relu_pool(quads, w, b):
    """nn.Conv2d(stride=1) + ReLU + nn.MaxPool2d(2); one image per grid step."""
    n, k, npix = quads[0].shape
    cout = w.shape[0]
    patch_spec = pl.BlockSpec((1, k, npix), lambda i: (i, 0, 0))
    return pl.pallas_call(
        _conv_relu_pool_kernel,
        out_shape=jax.ShapeDtypeStruct((n, cout, npix), jnp.bfloat16),
        grid=(n,),
        in_specs=[patch_spec] * 4 + [
            pl.BlockSpec((cout, k), lambda i: (0, 0)),
            pl.BlockSpec((cout, 1), lambda i: (0, 0)),
        ],
        out_specs=pl.BlockSpec((1, cout, npix), lambda i: (i, 0, 0)),
        compiler_params=pltpu.CompilerParams(
            dimension_semantics=("parallel",)),
    )(*quads, w, b)


def classifier(x_flat, kp):
    """Linear(16928,256) + ReLU + Linear(256,nc)."""
    n, kdim = x_flat.shape
    w1, b1, w2, b2 = kp["fc1_w"], kp["fc1_b"], kp["fc2_w"], kp["fc2_b"]
    k_pad, hid = w1.shape          # fc1_w pre-padded + bf16 at prepare time
    nc = w2.shape[1]
    nsplit = _num_hidden_splits()  # 2 on v7x (per-TC w1 halves), 1 on v5e/v6e
    hh = hid // nsplit
    if k_pad != kdim:              # pad only the tiny bf16 activations here
        x_flat = jnp.pad(x_flat, ((0, 0), (0, k_pad - kdim)))
    partial = pl.pallas_call(
        _mlp_kernel,
        out_shape=jax.ShapeDtypeStruct((nsplit, n, nc), jnp.float32),
        grid=(nsplit, k_pad // FC_TK),
        in_specs=[
            pl.BlockSpec((n, FC_TK), lambda h, kk: (0, kk)),
            pl.BlockSpec((FC_TK, hh), lambda h, kk: (kk, h)),
            pl.BlockSpec((1, hh), lambda h, kk: (0, h)),
            pl.BlockSpec((hh, nc), lambda h, kk: (h, 0)),
        ],
        out_specs=pl.BlockSpec((1, n, nc), lambda h, kk: (h, 0, 0)),
        scratch_shapes=[pltpu.VMEM((n, hh), jnp.float32)],
        compiler_params=pltpu.CompilerParams(
            dimension_semantics=("parallel", "arbitrary")),
    )(x_flat, w1, b1, w2)
    return jnp.sum(partial, axis=0) + b2


def simple_cnn_forward(x_nchw, kp):
    n = x_nchw.shape[0]
    quads, hp, wp = _quadrant_patches(x_nchw, 3, 3, pad=1)
    y = conv_relu_pool(quads, kp["conv1_w"], kp["conv1_b"])   # (N,16,48*48) bf16
    y = y.reshape(n, 16, hp, wp)
    quads, hp, wp = _quadrant_patches(y, 3, 3, pad=0)
    y = conv_relu_pool(quads, kp["conv2_w"], kp["conv2_b"])   # (N,32,23*23) bf16
    # channel-major layout => this reshape IS PyTorch's x.view(N, -1)
    x_flat = y.reshape(n, -1)
    return classifier(x_flat, kp)


# ----------------------------- parameters ----------------------------------

def init_params(key, num_classes):
    """Synthetic weights in PyTorch layouts (Conv OIHW, Linear (out, in))."""
    ks = jax.random.split(key, 8)

    def u(k, shape, fan_in):
        bound = 1.0 / (fan_in ** 0.5)
        return jax.random.uniform(k, shape, jnp.float32, -bound, bound)

    feat = FC_FEAT
    return {
        "conv1_w": u(ks[0], (16, 3, 3, 3), 27),
        "conv1_b": u(ks[1], (16,), 27),
        "conv2_w": u(ks[2], (32, 16, 3, 3), 144),
        "conv2_b": u(ks[3], (32,), 144),
        "fc1_w": u(ks[4], (256, feat), feat),
        "fc1_b": u(ks[5], (256,), feat),
        "fc2_w": u(ks[6], (num_classes, 256), 256),
        "fc2_b": u(ks[7], (num_classes,), 256),
    }


def prepare_params(p):
    """One-time conversion to kernel layouts (hoisted out of the forward)."""
    feat = p["fc1_w"].shape[1]
    w1 = jnp.transpose(p["fc1_w"])                              # (K, 256)
    w1 = jnp.pad(w1, ((0, FC_KPAD - feat), (0, 0))).astype(jnp.bfloat16)
    return {
        "conv1_w": p["conv1_w"].reshape(16, -1).astype(jnp.bfloat16),
        "conv1_b": p["conv1_b"].reshape(16, 1),                 # f32 bias
        "conv2_w": p["conv2_w"].reshape(32, -1).astype(jnp.bfloat16),
        "conv2_b": p["conv2_b"].reshape(32, 1),
        "fc1_w": w1,                                            # (17152,256) bf16
        "fc1_b": p["fc1_b"].reshape(1, -1),
        "fc2_w": jnp.transpose(p["fc2_w"]),                     # (256, nc) f32
        "fc2_b": p["fc2_b"].reshape(1, -1),
    }


if __name__ == "__main__":
    num_classes = 10
    key = jax.random.PRNGKey(0)
    pkey, xkey = jax.random.split(key)
    params = prepare_params(init_params(pkey, num_classes))
    # classifier dims (32*23*23) force a 96x96 spatial input; batch=2, NCHW
    x = jax.random.normal(xkey, (2, 3, 96, 96), jnp.float32)
    fwd = jax.jit(simple_cnn_forward)
    out = jax.block_until_ready(fwd(x, params))
    assert out.shape == (2, num_classes) and out.dtype == jnp.float32
    print("KERNEL_OK")
</pallas_src>

<mosaic_0001>
module attributes {stable_mosaic.version = 11 : i64} {
  func.func @_conv_relu_pool_kernel(%arg0: i32, %arg1: memref<1x27x2304xbf16, #tpu.memory_space<vmem>>, %arg2: memref<1x27x2304xbf16, #tpu.memory_space<vmem>>, %arg3: memref<1x27x2304xbf16, #tpu.memory_space<vmem>>, %arg4: memref<1x27x2304xbf16, #tpu.memory_space<vmem>>, %arg5: memref<16x27xbf16, #tpu.memory_space<vmem>>, %arg6: memref<16x1xf32, #tpu.memory_space<vmem>>, %arg7: memref<1x16x2304xbf16, #tpu.memory_space<vmem>>) attributes {dimension_semantics = [#tpu.dimension_semantics<parallel>], iteration_bounds = array<i64: 2>, scalar_prefetch = 0 : i64, scratch_operands = 0 : i64, tpu.core_type = #tpu.core_type<tc>, window_params = [{transform_indices = @transform_0, window_bounds = array<i64: 1, 27, 2304>}, {transform_indices = @transform_1, window_bounds = array<i64: 1, 27, 2304>}, {transform_indices = @transform_2, window_bounds = array<i64: 1, 27, 2304>}, {transform_indices = @transform_3, window_bounds = array<i64: 1, 27, 2304>}, {pipeline_mode = #tpu.pipeline_mode<synchronous>, transform_indices = @transform_4, window_bounds = array<i64: 16, 27>}, {pipeline_mode = #tpu.pipeline_mode<synchronous>, transform_indices = @transform_5, window_bounds = array<i64: 16, 1>}, {transform_indices = @transform_6, window_bounds = array<i64: 1, 16, 2304>}]} {
    %c0 = arith.constant 0 : index
    %c0_0 = arith.constant 0 : index
    %0 = vector.load %arg5[%c0, %c0_0] : memref<16x27xbf16, #tpu.memory_space<vmem>>, vector<16x27xbf16>
    %c0_1 = arith.constant 0 : index
    %c0_2 = arith.constant 0 : index
    %c0_3 = arith.constant 0 : index
    %1 = vector.load %arg1[%c0_1, %c0_2, %c0_3] : memref<1x27x2304xbf16, #tpu.memory_space<vmem>>, vector<1x27x2304xbf16>
    %2 = vector.shape_cast %1 : vector<1x27x2304xbf16> to vector<27x2304xbf16>
    %cst = arith.constant dense<0.000000e+00> : vector<16x2304xf32>
    %3 = tpu.matmul %0, %2, %cst {dimension_numbers = #tpu.dot_dimension_numbers<[1], [0], [0], [1], [0, 0, 1, 1], [], []>} : vector<16x27xbf16>, vector<27x2304xbf16>, vector<16x2304xf32> -> vector<16x2304xf32>
    %c0_4 = arith.constant 0 : index
    %c0_5 = arith.constant 0 : index
    %c0_6 = arith.constant 0 : index
    %4 = vector.load %arg2[%c0_4, %c0_5, %c0_6] : memref<1x27x2304xbf16, #tpu.memory_space<vmem>>, vector<1x27x2304xbf16>
    %5 = vector.shape_cast %4 : vector<1x27x2304xbf16> to vector<27x2304xbf16>
    %cst_7 = arith.constant dense<0.000000e+00> : vector<16x2304xf32>
    %6 = tpu.matmul %0, %5, %cst_7 {dimension_numbers = #tpu.dot_dimension_numbers<[1], [0], [0], [1], [0, 0, 1, 1], [], []>} : vector<16x27xbf16>, vector<27x2304xbf16>, vector<16x2304xf32> -> vector<16x2304xf32>
    %7 = arith.maximumf %3, %6 : vector<16x2304xf32>
    %c0_8 = arith.constant 0 : index
    %c0_9 = arith.constant 0 : index
    %c0_10 = arith.constant 0 : index
    %8 = vector.load %arg3[%c0_8, %c0_9, %c0_10] : memref<1x27x2304xbf16, #tpu.memory_space<vmem>>, vector<1x27x2304xbf16>
    %9 = vector.shape_cast %8 : vector<1x27x2304xbf16> to vector<27x2304xbf16>
    %cst_11 = arith.constant dense<0.000000e+00> : vector<16x2304xf32>
    %10 = tpu.matmul %0, %9, %cst_11 {dimension_numbers = #tpu.dot_dimension_numbers<[1], [0], [0], [1], [0, 0, 1, 1], [], []>} : vector<16x27xbf16>, vector<27x2304xbf16>, vector<16x2304xf32> -> vector<16x2304xf32>
    %11 = arith.maximumf %7, %10 : vector<16x2304xf32>
    %c0_12 = arith.constant 0 : index
    %c0_13 = arith.constant 0 : index
    %c0_14 = arith.constant 0 : index
    %12 = vector.load %arg4[%c0_12, %c0_13, %c0_14] : memref<1x27x2304xbf16, #tpu.memory_space<vmem>>, vector<1x27x2304xbf16>
    %13 = vector.shape_cast %12 : vector<1x27x2304xbf16> to vector<27x2304xbf16>
    %cst_15 = arith.constant dense<0.000000e+00> : vector<16x2304xf32>
    %14 = tpu.matmul %0, %13, %cst_15 {dimension_numbers = #tpu.dot_dimension_numbers<[1], [0], [0], [1], [0, 0, 1, 1], [], []>} : vector<16x27xbf16>, vector<27x2304xbf16>, vector<16x2304xf32> -> vector<16x2304xf32>
    %15 = arith.maximumf %11, %14 : vector<16x2304xf32>
    %c0_16 = arith.constant 0 : index
    %c0_17 = arith.constant 0 : index
    %16 = vector.load %arg6[%c0_16, %c0_17] : memref<16x1xf32, #tpu.memory_space<vmem>>, vector<16x1xf32>
    %17 = vector.broadcast %16 : vector<16x1xf32> to vector<16x2304xf32>
    %18 = arith.addf %15, %17 : vector<16x2304xf32>
    %cst_18 = arith.constant 0.000000e+00 : f32
    %19 = vector.broadcast %cst_18 : f32 to vector<16x2304xf32>
    %20 = arith.maximumf %18, %19 : vector<16x2304xf32>
    %21 = arith.truncf %20 : vector<16x2304xf32> to vector<16x2304xbf16>
    %c0_19 = arith.constant 0 : index
    %c0_20 = arith.constant 0 : index
    %c0_21 = arith.constant 0 : index
    %22 = vector.load %arg7[%c0_19, %c0_20, %c0_21] : memref<1x16x2304xbf16, #tpu.memory_space<vmem>>, vector<1x16x2304xbf16>
    %23 = vector.shape_cast %22 : vector<1x16x2304xbf16> to vector<16x2304xbf16>
    %24 = vector.shape_cast %21 : vector<16x2304xbf16> to vector<1x16x2304xbf16>
    tpu.vector_store %arg7[%c0_19, %c0_20, %c0_21], %24 {strides = array<i32>} : memref<1x16x2304xbf16, #tpu.memory_space<vmem>>, vector<1x16x2304xbf16>,
    return
  }
  func.func @transform_0(%arg0: i32) -> (i32, i32, i32) {
    %c0_i32 = arith.constant 0 : i32
    %c0_i32_0 = arith.constant 0 : i32
    %c0_i32_1 = arith.constant 0 : i32
    return %arg0, %c0_i32, %c0_i32_0 : i32, i32, i32
  }
  func.func @transform_1(%arg0: i32) -> (i32, i32, i32) {
    %c0_i32 = arith.constant 0 : i32
    %c0_i32_0 = arith.constant 0 : i32
    %c0_i32_1 = arith.constant 0 : i32
    return %arg0, %c0_i32, %c0_i32_0 : i32, i32, i32
  }
  func.func @transform_2(%arg0: i32) -> (i32, i32, i32) {
    %c0_i32 = arith.constant 0 : i32
    %c0_i32_0 = arith.constant 0 : i32
    %c0_i32_1 = arith.constant 0 : i32
    return %arg0, %c0_i32, %c0_i32_0 : i32, i32, i32
  }
  func.func @transform_3(%arg0: i32) -> (i32, i32, i32) {
    %c0_i32 = arith.constant 0 : i32
    %c0_i32_0 = arith.constant 0 : i32
    %c0_i32_1 = arith.constant 0 : i32
    return %arg0, %c0_i32, %c0_i32_0 : i32, i32, i32
  }
  func.func @transform_4(%arg0: i32) -> (i32, i32) {
    %c0_i32 = arith.constant 0 : i32
    %c0_i32_0 = arith.constant 0 : i32
    %c0_i32_1 = arith.constant 0 : i32
    return %c0_i32, %c0_i32_0 : i32, i32
  }
  func.func @transform_5(%arg0: i32) -> (i32, i32) {
    %c0_i32 = arith.constant 0 : i32
    %c0_i32_0 = arith.constant 0 : i32
    %c0_i32_1 = arith.constant 0 : i32
    return %c0_i32, %c0_i32_0 : i32, i32
  }
  func.func @transform_6(%arg0: i32) -> (i32, i32, i32) {
    %c0_i32 = arith.constant 0 : i32
    %c0_i32_0 = arith.constant 0 : i32
    %c0_i32_1 = arith.constant 0 : i32
    return %arg0, %c0_i32, %c0_i32_0 : i32, i32, i32
  }
}

module attributes {stable_mosaic.version = 11 : i64} {
  func.func @_conv_relu_pool_kernel(%arg0: i32, %arg1: memref<1x144x529xbf16, #tpu.memory_space<vmem>>, %arg2: memref<1x144x529xbf16, #tpu.memory_space<vmem>>, %arg3: memref<1x144x529xbf16, #tpu.memory_space<vmem>>, %arg4: memref<1x144x529xbf16, #tpu.memory_space<vmem>>, %arg5: memref<32x144xbf16, #tpu.memory_space<vmem>>, %arg6: memref<32x1xf32, #tpu.memory_space<vmem>>, %arg7: memref<1x32x529xbf16, #tpu.memory_space<vmem>>) attributes {dimension_semantics = [#tpu.dimension_semantics<parallel>], iteration_bounds = array<i64: 2>, scalar_prefetch = 0 : i64, scratch_operands = 0 : i64, tpu.core_type = #tpu.core_type<tc>, window_params = [{transform_indices = @transform_0, window_bounds = array<i64: 1, 144, 529>}, {transform_indices = @transform_1, window_bounds = array<i64: 1, 144, 529>}, {transform_indices = @transform_2, window_bounds = array<i64: 1, 144, 529>}, {transform_indices = @transform_3, window_bounds = array<i64: 1, 144, 529>}, {pipeline_mode = #tpu.pipeline_mode<synchronous>, transform_indices = @transform_4, window_bounds = array<i64: 32, 144>}, {pipeline_mode = #tpu.pipeline_mode<synchronous>, transform_indices = @transform_5, window_bounds = array<i64: 32, 1>}, {transform_indices = @transform_6, window_bounds = array<i64: 1, 32, 529>}]} {
    %c0 = arith.constant 0 : index
    %c0_0 = arith.constant 0 : index
    %0 = vector.load %arg5[%c0, %c0_0] : memref<32x144xbf16, #tpu.memory_space<vmem>>, vector<32x144xbf16>
    %c0_1 = arith.constant 0 : index
    %c0_2 = arith.constant 0 : index
    %c0_3 = arith.constant 0 : index
    %1 = vector.load %arg1[%c0_1, %c0_2, %c0_3] : memref<1x144x529xbf16, #tpu.memory_space<vmem>>, vector<1x144x529xbf16>
    %2 = vector.shape_cast %1 : vector<1x144x529xbf16> to vector<144x529xbf16>
    %cst = arith.constant dense<0.000000e+00> : vector<32x529xf32>
    %3 = tpu.matmul %0, %2, %cst {dimension_numbers = #tpu.dot_dimension_numbers<[1], [0], [0], [1], [0, 0, 1, 1], [], []>} : vector<32x144xbf16>, vector<144x529xbf16>, vector<32x529xf32> -> vector<32x529xf32>
    %c0_4 = arith.constant 0 : index
    %c0_5 = arith.constant 0 : index
    %c0_6 = arith.constant 0 : index
    %4 = vector.load %arg2[%c0_4, %c0_5, %c0_6] : memref<1x144x529xbf16, #tpu.memory_space<vmem>>, vector<1x144x529xbf16>
    %5 = vector.shape_cast %4 : vector<1x144x529xbf16> to vector<144x529xbf16>
    %cst_7 = arith.constant dense<0.000000e+00> : vector<32x529xf32>
    %6 = tpu.matmul %0, %5, %cst_7 {dimension_numbers = #tpu.dot_dimension_numbers<[1], [0], [0], [1], [0, 0, 1, 1], [], []>} : vector<32x144xbf16>, vector<144x529xbf16>, vector<32x529xf32> -> vector<32x529xf32>
    %7 = arith.maximumf %3, %6 : vector<32x529xf32>
    %c0_8 = arith.constant 0 : index
    %c0_9 = arith.constant 0 : index
    %c0_10 = arith.constant 0 : index
    %8 = vector.load %arg3[%c0_8, %c0_9, %c0_10] : memref<1x144x529xbf16, #tpu.memory_space<vmem>>, vector<1x144x529xbf16>
    %9 = vector.shape_cast %8 : vector<1x144x529xbf16> to vector<144x529xbf16>
    %cst_11 = arith.constant dense<0.000000e+00> : vector<32x529xf32>
    %10 = tpu.matmul %0, %9, %cst_11 {dimension_numbers = #tpu.dot_dimension_numbers<[1], [0], [0], [1], [0, 0, 1, 1], [], []>} : vector<32x144xbf16>, vector<144x529xbf16>, vector<32x529xf32> -> vector<32x529xf32>
    %11 = arith.maximumf %7, %10 : vector<32x529xf32>
    %c0_12 = arith.constant 0 : index
    %c0_13 = arith.constant 0 : index
    %c0_14 = arith.constant 0 : index
    %12 = vector.load %arg4[%c0_12, %c0_13, %c0_14] : memref<1x144x529xbf16, #tpu.memory_space<vmem>>, vector<1x144x529xbf16>
    %13 = vector.shape_cast %12 : vector<1x144x529xbf16> to vector<144x529xbf16>
    %cst_15 = arith.constant dense<0.000000e+00> : vector<32x529xf32>
    %14 = tpu.matmul %0, %13, %cst_15 {dimension_numbers = #tpu.dot_dimension_numbers<[1], [0], [0], [1], [0, 0, 1, 1], [], []>} : vector<32x144xbf16>, vector<144x529xbf16>, vector<32x529xf32> -> vector<32x529xf32>
    %15 = arith.maximumf %11, %14 : vector<32x529xf32>
    %c0_16 = arith.constant 0 : index
    %c0_17 = arith.constant 0 : index
    %16 = vector.load %arg6[%c0_16, %c0_17] : memref<32x1xf32, #tpu.memory_space<vmem>>, vector<32x1xf32>
    %17 = vector.broadcast %16 : vector<32x1xf32> to vector<32x529xf32>
    %18 = arith.addf %15, %17 : vector<32x529xf32>
    %cst_18 = arith.constant 0.000000e+00 : f32
    %19 = vector.broadcast %cst_18 : f32 to vector<32x529xf32>
    %20 = arith.maximumf %18, %19 : vector<32x529xf32>
    %21 = arith.truncf %20 : vector<32x529xf32> to vector<32x529xbf16>
    %c0_19 = arith.constant 0 : index
    %c0_20 = arith.constant 0 : index
    %c0_21 = arith.constant 0 : index
    %22 = vector.load %arg7[%c0_19, %c0_20, %c0_21] : memref<1x32x529xbf16, #tpu.memory_space<vmem>>, vector<1x32x529xbf16>
    %23 = vector.shape_cast %22 : vector<1x32x529xbf16> to vector<32x529xbf16>
    %24 = vector.shape_cast %21 : vector<32x529xbf16> to vector<1x32x529xbf16>
    tpu.vector_store %arg7[%c0_19, %c0_20, %c0_21], %24 {strides = array<i32>} : memref<1x32x529xbf16, #tpu.memory_space<vmem>>, vector<1x32x529xbf16>,
    return
  }
  func.func @transform_0(%arg0: i32) -> (i32, i32, i32) {
    %c0_i32 = arith.constant 0 : i32
    %c0_i32_0 = arith.constant 0 : i32
    %c0_i32_1 = arith.constant 0 : i32
    return %arg0, %c0_i32, %c0_i32_0 : i32, i32, i32
  }
  func.func @transform_1(%arg0: i32) -> (i32, i32, i32) {
    %c0_i32 = arith.constant 0 : i32
    %c0_i32_0 = arith.constant 0 : i32
    %c0_i32_1 = arith.constant 0 : i32
    return %arg0, %c0_i32, %c0_i32_0 : i32, i32, i32
  }
  func.func @transform_2(%arg0: i32) -> (i32, i32, i32) {
    %c0_i32 = arith.constant 0 : i32
    %c0_i32_0 = arith.constant 0 : i32
    %c0_i32_1 = arith.constant 0 : i32
    return %arg0, %c0_i32, %c0_i32_0 : i32, i32, i32
  }
  func.func @transform_3(%arg0: i32) -> (i32, i32, i32) {
    %c0_i32 = arith.constant 0 : i32
    %c0_i32_0 = arith.constant 0 : i32
    %c0_i32_1 = arith.constant 0 : i32
    return %arg0, %c0_i32, %c0_i32_0 : i32, i32, i32
  }
  func.func @transform_4(%arg0: i32) -> (i32, i32) {
    %c0_i32 = arith.constant 0 : i32
    %c0_i32_0 = arith.constant 0 : i32
    %c0_i32_1 = arith.constant 0 : i32
    return %c0_i32, %c0_i32_0 : i32, i32
  }
  func.func @transform_5(%arg0: i32) -> (i32, i32) {
    %c0_i32 = arith.constant 0 : i32
    %c0_i32_0 = arith.constant 0 : i32
    %c0_i32_1 = arith.constant 0 : i32
    return %c0_i32, %c0_i32_0 : i32, i32
  }
  func.func @transform_6(%arg0: i32) -> (i32, i32, i32) {
    %c0_i32 = arith.constant 0 : i32
    %c0_i32_0 = arith.constant 0 : i32
    %c0_i32_1 = arith.constant 0 : i32
    return %arg0, %c0_i32, %c0_i32_0 : i32, i32, i32
  }
}

module attributes {stable_mosaic.version = 11 : i64} {
  func.func @_mlp_kernel(%arg0: i32, %arg1: i32, %arg2: memref<2x8576xbf16, #tpu.memory_space<vmem>>, %arg3: memref<8576x256xbf16, #tpu.memory_space<vmem>>, %arg4: memref<1x256xf32, #tpu.memory_space<vmem>>, %arg5: memref<256x10xf32, #tpu.memory_space<vmem>>, %arg6: memref<1x2x10xf32, #tpu.memory_space<vmem>>, %arg7: memref<2x256xf32, #tpu.memory_space<vmem>>) attributes {dimension_semantics = [#tpu.dimension_semantics<parallel>, #tpu.dimension_semantics<arbitrary>], iteration_bounds = array<i64: 1, 2>, scalar_prefetch = 0 : i64, scratch_operands = 1 : i64, tpu.core_type = #tpu.core_type<tc>, window_params = [{transform_indices = @transform_0, window_bounds = array<i64: 2, 8576>}, {transform_indices = @transform_1, window_bounds = array<i64: 8576, 256>}, {transform_indices = @transform_2, window_bounds = array<i64: 1, 256>}, {transform_indices = @transform_3, window_bounds = array<i64: 256, 10>}, {transform_indices = @transform_4, window_bounds = array<i64: 1, 2, 10>}]} {
    %c0_i32 = arith.constant 0 : i32
    %0 = arith.cmpi eq, %arg1, %c0_i32 : i32
    %1 = arith.extui %0 : i1 to i32
    %c0_i32_0 = arith.constant 0 : i32
    %2 = arith.cmpi ne, %1, %c0_i32_0 : i32
    scf.if %2 {
      %cst_9 = arith.constant 0.000000e+00 : f32
      %12 = vector.broadcast %cst_9 : f32 to vector<2x256xf32>
      %c0_10 = arith.constant 0 : index
      %c0_11 = arith.constant 0 : index
      %13 = vector.load %arg7[%c0_10, %c0_11] : memref<2x256xf32, #tpu.memory_space<vmem>>, vector<2x256xf32>
      tpu.vector_store %arg7[%c0_10, %c0_11], %12 {strides = array<i32>} : memref<2x256xf32, #tpu.memory_space<vmem>>, vector<2x256xf32>,
    } else {
    }
    %c0 = arith.constant 0 : index
    %c0_1 = arith.constant 0 : index
    %3 = vector.load %arg7[%c0, %c0_1] : memref<2x256xf32, #tpu.memory_space<vmem>>, vector<2x256xf32>
    %c0_2 = arith.constant 0 : index
    %c0_3 = arith.constant 0 : index
    %4 = vector.load %arg2[%c0_2, %c0_3] : memref<2x8576xbf16, #tpu.memory_space<vmem>>, vector<2x8576xbf16>
    %c0_4 = arith.constant 0 : index
    %c0_5 = arith.constant 0 : index
    %5 = vector.load %arg3[%c0_4, %c0_5] : memref<8576x256xbf16, #tpu.memory_space<vmem>>, vector<8576x256xbf16>
    %cst = arith.constant dense<0.000000e+00> : vector<2x256xf32>
    %6 = tpu.matmul %4, %5, %cst {dimension_numbers = #tpu.dot_dimension_numbers<[1], [0], [0], [1], [0, 0, 1, 1], [], []>} : vector<2x8576xbf16>, vector<8576x256xbf16>, vector<2x256xf32> -> vector<2x256xf32>
    %7 = arith.addf %3, %6 : vector<2x256xf32>
    %c0_6 = arith.constant 0 : index
    %c0_7 = arith.constant 0 : index
    %8 = vector.load %arg7[%c0_6, %c0_7] : memref<2x256xf32, #tpu.memory_space<vmem>>, vector<2x256xf32>
    tpu.vector_store %arg7[%c0_6, %c0_7], %7 {strides = array<i32>} : memref<2x256xf32, #tpu.memory_space<vmem>>, vector<2x256xf32>,
    %c1_i32 = arith.constant 1 : i32
    %9 = arith.cmpi eq, %arg1, %c1_i32 : i32
    %10 = arith.extui %9 : i1 to i32
    %c0_i32_8 = arith.constant 0 : i32
    %11 = arith.cmpi ne, %10, %c0_i32_8 : i32
    scf.if %11 {
      %c0_9 = arith.constant 0 : index
      %c0_10 = arith.constant 0 : index
      %12 = vector.load %arg7[%c0_9, %c0_10] : memref<2x256xf32, #tpu.memory_space<vmem>>, vector<2x256xf32>
      %c0_11 = arith.constant 0 : index
      %c0_12 = arith.constant 0 : index
      %13 = vector.load %arg4[%c0_11, %c0_12] : memref<1x256xf32, #tpu.memory_space<vmem>>, vector<1x256xf32>
      %14 = vector.broadcast %13 : vector<1x256xf32> to vector<2x256xf32>
      %15 = arith.addf %12, %14 : vector<2x256xf32>
      %cst_13 = arith.constant 0.000000e+00 : f32
      %16 = vector.broadcast %cst_13 : f32 to vector<2x256xf32>
      %17 = arith.maximumf %15, %16 : vector<2x256xf32>
      %c0_14 = arith.constant 0 : index
      %c0_15 = arith.constant 0 : index
      %18 = vector.load %arg5[%c0_14, %c0_15] : memref<256x10xf32, #tpu.memory_space<vmem>>, vector<256x10xf32>
      %cst_16 = arith.constant dense<0.000000e+00> : vector<2x10xf32>
      %19 = tpu.matmul %17, %18, %cst_16 {dimension_numbers = #tpu.dot_dimension_numbers<[1], [0], [0], [1], [0, 0, 1, 1], [], []>} : vector<2x256xf32>, vector<256x10xf32>, vector<2x10xf32> -> vector<2x10xf32>
      %c0_17 = arith.constant 0 : index
      %c0_18 = arith.constant 0 : index
      %c0_19 = arith.constant 0 : index
      %20 = vector.load %arg6[%c0_17, %c0_18, %c0_19] : memref<1x2x10xf32, #tpu.memory_space<vmem>>, vector<1x2x10xf32>
      %21 = vector.shape_cast %20 : vector<1x2x10xf32> to vector<2x10xf32>
      %22 = vector.shape_cast %19 : vector<2x10xf32> to vector<1x2x10xf32>
      tpu.vector_store %arg6[%c0_17, %c0_18, %c0_19], %22 {strides = array<i32>} : memref<1x2x10xf32, #tpu.memory_space<vmem>>, vector<1x2x10xf32>,
    } else {
    }
    return
  }
  func.func @transform_0(%arg0: i32, %arg1: i32) -> (i32, i32) {
    %c0_i32 = arith.constant 0 : i32
    %c0_i32_0 = arith.constant 0 : i32
    return %c0_i32, %arg1 : i32, i32
  }
  func.func @transform_1(%arg0: i32, %arg1: i32) -> (i32, i32) {
    %c0_i32 = arith.constant 0 : i32
    return %arg1, %arg0 : i32, i32
  }
  func.func @transform_2(%arg0: i32, %arg1: i32) -> (i32, i32) {
    %c0_i32 = arith.constant 0 : i32
    %c0_i32_0 = arith.constant 0 : i32
    return %c0_i32, %arg0 : i32, i32
  }
  func.func @transform_3(%arg0: i32, %arg1: i32) -> (i32, i32) {
    %c0_i32 = arith.constant 0 : i32
    %c0_i32_0 = arith.constant 0 : i32
    return %arg0, %c0_i32 : i32, i32
  }
  func.func @transform_4(%arg0: i32, %arg1: i32) -> (i32, i32, i32) {
    %c0_i32 = arith.constant 0 : i32
    %c0_i32_0 = arith.constant 0 : i32
    %c0_i32_1 = arith.constant 0 : i32
    return %arg0, %c0_i32, %c0_i32_0 : i32, i32, i32
  }
}

</mosaic_0001>

<bundles_post_ra>
// kernel: simple_cnn_forward.3
= control target key start
LH: loop header
LB: loop body
LE: loop exit
PB: predicated region body
PF: predicated region fallthrough
CT: control target
= control target key end

     0   :  { %s3798_s21 = smov 0   ;;  %s4669_s0 = inlined_call_operand.vmem [shape: bf16[2,27,2304], index: 0, kind: input, shape index: {}]   ;;  %s4670_s1 = inlined_call_operand.vmem [shape: bf16[2,27,2304], index: 1, kind: input, shape index: {}]   ;;  %s4671_s2 = inlined_call_operand.vmem [shape: bf16[2,27,2304], index: 2, kind: input, shape index: {}]   ;;  %s4672_s3 = inlined_call_operand.vmem [shape: bf16[2,27,2304], index: 3, kind: input, shape index: {}]   ;;  %s4673_s4 = inlined_call_operand.vmem [shape: bf16[16,27], index: 4, kind: input, shape index: {}]   ;;  %s4674_s5 = inlined_call_operand.vmem [shape: f32[16,1], index: 5, kind: input, shape index: {}]   ;;  %s4675_s6 = inlined_call_operand.vmem [shape: bf16[2,16,2304], index: 6, kind: output, shape index: {}]  }
   0x1 LB: > { %s3293_s22 = sadd.s32 4294967295, %s3759_s21   ;;  %p3297_p0 = scmp.ge.s32.totalorder %s3759_s21, 1  ;;  %s3759_s21 = sphi %s3798_s21, %s16_s21  }
   0x2   : > { %p242_p1 = scmp.lt.s32.totalorder %s3759_s21, 3 }
   0x4   : > { %p243_p2 = pnand %p3297_p0, %p242_p1 }
   0x6   : > { %246 = sbr.rel (%p243_p2) target bundleno = 389 (0x185), region = 44 }
   0xd   : > { %p287_p3 = scmp.lt.s32.totalorder %s3293_s22, 1  ;;  %v3761_v0 = vmov 0   ;;  %vm522_vm0 = vcmask 1044480   ;;  %vm523_vm1 = vcmask 1045504   ;;  %v3762_v1 = vmov 65535   ;;  %v3835_v14 = vld [vmem:[%s4673_s4] sm:$0xff]  }
   0xe   : > { %612 = vmatprep.mubr.bf16.mxu0 %v3761_v0  ;;  %655 = vmatprep.mubr.bf16.mxu1 %v3761_v0  ;;  %v524_v2 = vsel %vm522_vm0, 4294967295, %v3762_v1  ;;  %vm518_vm2 = vcmask 220160  }
   0xf   : > { %s4773_s22 = smov (!%p287_p3, %s3293_s22), 1  ;;  %3534 = vset.pattern.permute.xlu0 %v3761_v0  ;;  %v3824_v7 = vsel %vm523_vm1, %v524_v2, 0 }
  0x10   : > { %s3812_s23 = smul.u32 288, %s4773_s22 }
  0x11   : > { %s3523_s20 = smul.u32 144, %s4773_s22 }
  0x12   : > { %s3818_s26 = scalar_lea.vmem %s4669_s0, %s3812_s23  ;;  %s3885_s7 = scalar_lea.vmem %s4670_s1, %s3812_s23 }
  0x13   : > { %v3535_v3 = vld [vmem:[%s3818_s26 + $0x4] ss:$72 sps:$4 sm:$0xff]   ;;  %v3539_v5 = vld [vmem:[%s3818_s26] ss:$72 sps:$4 sm:$0xff]   ;;  %v3550_v15 = vld [vmem:[%s3818_s26 + $0x14] ss:$72 sps:$4 sm:$0xff]   ;;  %s3949_s10 = scalar_lea.vmem %s4671_s2, %s3812_s23  ;;  %s4009_s13 = scalar_lea.vmem %s4672_s3, %s3812_s23 }
  0x14   : > { %v3537_v4 = vld [vmem:[%s3818_s26 + $0xc] ss:$72 sps:$4 sm:$0xff]   ;;  %580 = vmatprep.subr.bf16.mxu0 %v3535_v3  ;;  %v3540_v6 = vld [vmem:[%s3818_s26 + $0x8] ss:$72 sps:$4 sm:$0xff]   ;;  %v3551_v19 = vld [vmem:[%s3818_s26 + $0x18] ss:$72 sps:$4 sm:$0xff]   ;;  %s4582_s24 = scalar_lea.vmem %s4675_s6, %s3523_s20 }
  0x15   : > { %623 = vmatprep.subr.bf16.mxu1 %v3537_v4  ;;  %v3541_v8 = vld [vmem:[%s3818_s26 + $0x94] ss:$72 sps:$4 sm:$0x3f]   ;;  %581 = vmatpush1.bf16.msra.mxu0 %v3539_v5  ;;  %v3545_v11 = vld [vmem:[%s3818_s26 + $0x90] ss:$72 sps:$4 sm:$0x3f]  }
  0x16   : > { %624 = vmatpush1.bf16.msra.mxu1 %v3540_v6  ;;  %v3543_v9 = vld [vmem:[%s3818_s26 + $0x9c] ss:$72 sps:$4 sm:$0x3f]   ;;  %v530_v10 = vand.u32 %v3541_v8, %v3824_v7  ;;  %v3546_v12 = vld [vmem:[%s3818_s26 + $0x98] ss:$72 sps:$4 sm:$0x3f]   ;;  %v527_v16 = vand.u32 %v3545_v11, %v3824_v7 }
  0x17   : > { %v536_v13 = vand.u32 %v3543_v9, %v3824_v7  ;;  %v533_v17 = vand.u32 %v3546_v12, %v3824_v7  ;;  %v3548_v18 = vld [vmem:[%s3818_s26 + $0x10] ss:$72 sps:$4 sm:$0xff]   ;;  %v3553_v20 = vld [vmem:[%s3818_s26 + $0x1c] ss:$72 sps:$4 sm:$0xff]   ;;  %v3565_v30 = vld [vmem:[%s3818_s26 + $0x2c] ss:$72 sps:$4 sm:$0xff]  }
  0x18   : > { %582 = vmatprep.subr.bf16.mxu0 %v530_v10  ;;  %v3554_v21 = vld [vmem:[%s3818_s26 + $0xa0] ss:$72 sps:$4 sm:$0x3f]   ;;  %v3556_v22 = vld [vmem:[%s3818_s26 + $0xa4] ss:$72 sps:$4 sm:$0x3f]  }
  0x19   : > { %625 = vmatprep.subr.bf16.mxu1 %v536_v13  ;;  %583 = vmatpush1.bf16.msra.mxu0 %v527_v16  ;;  %v3557_v23 = vld [vmem:[%s3818_s26 + $0xa8] ss:$72 sps:$4 sm:$0x3f]   ;;  %v542_v24 = vand.u32 %v3556_v22, %v3824_v7  ;;  %v3559_v25 = vld [vmem:[%s3818_s26 + $0xac] ss:$72 sps:$4 sm:$0x3f]   ;;  %v539_v27 = vand.u32 %v3554_v21, %v3824_v7 }
  0x1a   : > { %626 = vmatpush1.bf16.msra.mxu1 %v533_v17  ;;  %666 = vmatprep.subr.bf16.mxu0 %v3550_v15  ;;  %v548_v26 = vand.u32 %v3559_v25, %v3824_v7  ;;  %v545_v28 = vand.u32 %v3557_v23, %v3824_v7  ;;  %v3562_v29 = vld [vmem:[%s3818_s26 + $0x24] ss:$72 sps:$4 sm:$0xff]   ;;  %v3560_v31 = vld [vmem:[%s3818_s26 + $0x20] ss:$72 sps:$4 sm:$0xff]   ;;  %v3574_v39 = vld [vmem:[%s3818_s26 + $0x34] ss:$72 sps:$4 sm:$0xff]  }
  0x1b   : > { %709 = vmatprep.subr.bf16.mxu1 %v3553_v20  ;;  %v3563_v32 = vld [vmem:[%s3818_s26 + $0x28] ss:$72 sps:$4 sm:$0xff]   ;;  %v3568_v33 = vld [vmem:[%s3818_s26 + $0xb4] ss:$72 sps:$4 sm:$0x3f]  }
  0x1c   : > { %3340 = vmatmul.mubr.msk.bf16.vlgmr.msra.gmra.mrb[0].mxu0 %vm518_vm2, %v3835_v14  ;;  %v3566_v34 = vld [vmem:[%s3818_s26 + $0xb0] ss:$72 sps:$4 sm:$0x3f]   ;;  %v3571_v35 = vld [vmem:[%s3818_s26 + $0xbc] ss:$72 sps:$4 sm:$0x3f]   ;;  %v554_v37 = vand.u32 %v3568_v33, %v3824_v7 }
  0x1d   : > { %3341 = vmatmul.mubr.msk.bf16.vlgmr.msra.gmra.mrb[0].mxu1 %vm518_vm2, %v3835_v14  ;;  %667 = vmatpush1.bf16.msra.mxu0 %v3548_v18  ;;  %v3569_v36 = vld [vmem:[%s3818_s26 + $0xb8] ss:$72 sps:$4 sm:$0x3f]   ;;  %v560_v38 = vand.u32 %v3571_v35, %v3824_v7  ;;  %v551_v40 = vand.u32 %v3566_v34, %v3824_v7  ;;  %v3577_v42 = vld [vmem:[%s3818_s26 + $0x3c] ss:$72 sps:$4 sm:$0xff]  }
  0x1e   : > { %710 = vmatpush1.bf16.msra.mxu1 %v3551_v19  ;;  %668 = vmatprep.subr.bf16.mxu0 %v542_v24  ;;  %v557_v41 = vand.u32 %v3569_v36, %v3824_v7  ;;  %v3580_v43 = vld [vmem:[%s3818_s26 + $0xc4] ss:$72 sps:$4 sm:$0x3f]   ;;  %v3572_v45 = vld [vmem:[%s3818_s26 + $0x30] ss:$72 sps:$4 sm:$0xff]  }
  0x1f   : > { %698 = vmatprep.mubr.bf16.mxu0 %v3761_v0  ;;  %711 = vmatprep.subr.bf16.mxu1 %v548_v26  ;;  %v3583_v44 = vld [vmem:[%s3818_s26 + $0xcc] ss:$72 sps:$4 sm:$0x3f]   ;;  %v3575_v46 = vld [vmem:[%s3818_s26 + $0x38] ss:$72 sps:$4 sm:$0xff]   ;;  %v566_v49 = vand.u32 %v3580_v43, %v3824_v7 }
  0x20   : > { %741 = vmatprep.mubr.bf16.mxu1 %v3761_v0  ;;  %v3578_v47 = vld [vmem:[%s3818_s26 + $0xc0] ss:$72 sps:$4 sm:$0x3f]   ;;  %v572_v50 = vand.u32 %v3583_v44, %v3824_v7  ;;  %v3586_v53 = vld [vmem:[%s3818_s26 + $0x44] ss:$72 sps:$4 sm:$0xff]  }
  0x21   : > { %669 = vmatpush1.bf16.msra.mxu0 %v539_v27  ;;  %v3581_v48 = vld [vmem:[%s3818_s26 + $0xc8] ss:$72 sps:$4 sm:$0x3f]   ;;  %v563_v51 = vand.u32 %v3578_v47, %v3824_v7  ;;  %v3592_v54 = vld [vmem:[%s3818_s26 + $0xd4] ss:$72 sps:$4 sm:$0x3f]  }
  0x22   : > { %712 = vmatpush1.bf16.msra.mxu1 %v545_v28  ;;  %752 = vmatprep.subr.bf16.mxu0 %v3562_v29  ;;  %v569_v52 = vand.u32 %v3581_v48, %v3824_v7  ;;  %v3589_v55 = vld [vmem:[%s3885_s7 + $0x4] ss:$72 sps:$4 sm:$0xff]   ;;  %v3595_v56 = vld [vmem:[%s3885_s7 + $0x94] ss:$72 sps:$4 sm:$0x3f]   ;;  %v578_v61 = vand.u32 %v3592_v54, %v3824_v7 }
  0x23   : > { %795 = vmatprep.subr.bf16.mxu1 %v3565_v30  ;;  %v3584_v57 = vld [vmem:[%s3818_s26 + $0x40] ss:$72 sps:$4 sm:$0xff]   ;;  %v3590_v59 = vld [vmem:[%s3818_s26 + $0xd0] ss:$72 sps:$4 sm:$0x3f]   ;;  %v1169_v62 = vand.u32 %v3595_v56, %v3824_v7 }
  0x24   : > { %3342 = vmatmul.mubr.msk.bf16.vlgmr.msra.gmra.mrb[4].mxu0 %vm518_vm2, %v3835_v14  ;;  %v3587_v58 = vld [vmem:[%s3885_s7] ss:$72 sps:$4 sm:$0xff]   ;;  %v3593_v60 = vld [vmem:[%s3885_s7 + $0x90] ss:$72 sps:$4 sm:$0x3f]   ;;  %v575_v2 = vand.u32 %v3590_v59, %v3824_v7 }
  0x25   : > { %3343 = vmatmul.mubr.msk.bf16.vlgmr.msra.gmra.mrb[4].mxu1 %vm518_vm2, %v3835_v14  ;;  %753 = vmatpush1.bf16.msra.mxu0 %v3560_v31  ;;  %v3598_v63 = vld [vmem:[%s3885_s7 + $0xc] ss:$72 sps:$4 sm:$0xff]   ;;  %v1166_v3 = vand.u32 %v3593_v60, %v3824_v7  ;;  %v3604_v4 = vld [vmem:[%s3885_s7 + $0x9c] ss:$72 sps:$4 sm:$0x3f]  }
  0x26   : > { %796 = vmatpush1.bf16.msra.mxu1 %v3563_v32  ;;  %754 = vmatprep.subr.bf16.mxu0 %v554_v37  ;;  %v3601_v1 = vld [vmem:[%s3885_s7 + $0x14] ss:$72 sps:$4 sm:$0xff]   ;;  %v3607_v5 = vld [vmem:[%s3885_s7 + $0xa4] ss:$72 sps:$4 sm:$0x3f]   ;;  %v1175_v11 = vand.u32 %v3604_v4, %v3824_v7 }
  0x27   : > { %797 = vmatprep.subr.bf16.mxu1 %v560_v38  ;;  %784 = vmatprep.mubr.bf16.mxu0 %v3761_v0  ;;  %v3596_v6 = vld [vmem:[%s3885_s7 + $0x8] ss:$72 sps:$4 sm:$0xff]   ;;  %v3602_v9 = vld [vmem:[%s3885_s7 + $0x98] ss:$72 sps:$4 sm:$0x3f]   ;;  %v1181_v12 = vand.u32 %v3607_v5, %v3824_v7 }
  0x28   : > { %827 = vmatprep.mubr.bf16.mxu1 %v3761_v0  ;;  %v3599_v8 = vld [vmem:[%s3885_s7 + $0x10] ss:$72 sps:$4 sm:$0xff]   ;;  %v3605_v10 = vld [vmem:[%s3885_s7 + $0xa0] ss:$72 sps:$4 sm:$0x3f]   ;;  %v1172_v15 = vand.u32 %v3602_v9, %v3824_v7 }
  0x29   : > { %755 = vmatpush1.bf16.msra.mxu0 %v551_v40  ;;  %v3610_v13 = vld [vmem:[%s3885_s7 + $0x1c] ss:$72 sps:$4 sm:$0xff]   ;;  %v1178_v16 = vand.u32 %v3605_v10, %v3824_v7  ;;  %v3616_v17 = vld [vmem:[%s3885_s7 + $0xac] ss:$72 sps:$4 sm:$0x3f]  }
  0x2a   : > { %798 = vmatpush1.bf16.msra.mxu1 %v557_v41  ;;  %838 = vmatprep.subr.bf16.mxu0 %v3574_v39  ;;  %v3613_v18 = vld [vmem:[%s3885_s7 + $0x24] ss:$72 sps:$4 sm:$0xff]   ;;  %v3619_v19 = vld [vmem:[%s3885_s7 + $0xb4] ss:$72 sps:$4 sm:$0x3f]   ;;  %v1187_v24 = vand.u32 %v3616_v17, %v3824_v7 }
  0x2b   : > { %881 = vmatprep.subr.bf16.mxu1 %v3577_v42  ;;  %v3608_v20 = vld [vmem:[%s3885_s7 + $0x18] ss:$72 sps:$4 sm:$0xff]   ;;  %v3614_v22 = vld [vmem:[%s3885_s7 + $0xa8] ss:$72 sps:$4 sm:$0x3f]   ;;  %v1193_v25 = vand.u32 %v3619_v19, %v3824_v7 }
  0x2c   : > { %3344 = vmatmul.mubr.msk.bf16.vlgmr.msra.gmra.mrb[8].mxu0 %vm518_vm2, %v3835_v14  ;;  %v3611_v21 = vld [vmem:[%s3885_s7 + $0x20] ss:$72 sps:$4 sm:$0xff]   ;;  %v3617_v23 = vld [vmem:[%s3885_s7 + $0xb0] ss:$72 sps:$4 sm:$0x3f]   ;;  %v1184_v27 = vand.u32 %v3614_v22, %v3824_v7 }
  0x2d   : > { %3345 = vmatmul.mubr.msk.bf16.vlgmr.msra.gmra.mrb[8].mxu1 %vm518_vm2, %v3835_v14  ;;  %839 = vmatpush1.bf16.msra.mxu0 %v3572_v45  ;;  %v3622_v26 = vld [vmem:[%s3885_s7 + $0x2c] ss:$72 sps:$4 sm:$0xff]   ;;  %v1190_v28 = vand.u32 %v3617_v23, %v3824_v7  ;;  %v3628_v30 = vld [vmem:[%s3885_s7 + $0xbc] ss:$72 sps:$4 sm:$0x3f]  }
  0x2e   : > { %882 = vmatpush1.bf16.msra.mxu1 %v3575_v46  ;;  %840 = vmatprep.subr.bf16.mxu0 %v566_v49  ;;  %v3625_v29 = vld [vmem:[%s3885_s7 + $0x34] ss:$72 sps:$4 sm:$0xff]   ;;  %v3631_v31 = vld [vmem:[%s3885_s7 + $0xc4] ss:$72 sps:$4 sm:$0x3f]   ;;  %v1199_v36 = vand.u32 %v3628_v30, %v3824_v7 }
  0x2f   : > { %883 = vmatprep.subr.bf16.mxu1 %v572_v50  ;;  %870 = vmatprep.mubr.bf16.mxu0 %v3761_v0  ;;  %v3620_v32 = vld [vmem:[%s3885_s7 + $0x28] ss:$72 sps:$4 sm:$0xff]   ;;  %v3626_v33 = vld [vmem:[%s3885_s7 + $0xb8] ss:$72 sps:$4 sm:$0x3f]   ;;  %v1205_v37 = vand.u32 %v3631_v31, %v3824_v7 }
  0x30   : > { %913 = vmatprep.mubr.bf16.mxu1 %v3761_v0  ;;  %v3623_v34 = vld [vmem:[%s3885_s7 + $0x30] ss:$72 sps:$4 sm:$0xff]   ;;  %v3629_v35 = vld [vmem:[%s3885_s7 + $0xc0] ss:$72 sps:$4 sm:$0x3f]   ;;  %v1196_v40 = vand.u32 %v3626_v33, %v3824_v7 }
  0x31   : > { %841 = vmatpush1.bf16.msra.mxu0 %v563_v51  ;;  %v3634_v38 = vld [vmem:[%s3885_s7 + $0x3c] ss:$72 sps:$4 sm:$0xff]   ;;  %v1202_v41 = vand.u32 %v3629_v35, %v3824_v7  ;;  %v3640_v42 = vld [vmem:[%s3885_s7 + $0xcc] ss:$72 sps:$4 sm:$0x3f]  }
  0x32   : > { %884 = vmatpush1.bf16.msra.mxu1 %v569_v52  ;;  %924 = vmatprep.subr.bf16.mxu0 %v3586_v53  ;;  %v3637_v39 = vld [vmem:[%s3885_s7 + $0x44] ss:$72 sps:$4 sm:$0xff]   ;;  %v3643_v43 = vld [vmem:[%s3885_s7 + $0xd4] ss:$72 sps:$4 sm:$0x3f]   ;;  %v1211_v48 = vand.u32 %v3640_v42, %v3824_v7 }
  0x33   : > { %1219 = vmatprep.subr.bf16.mxu1 %v3589_v55  ;;  %v3632_v44 = vld [vmem:[%s3885_s7 + $0x38] ss:$72 sps:$4 sm:$0xff]   ;;  %v3638_v46 = vld [vmem:[%s3885_s7 + $0xc8] ss:$72 sps:$4 sm:$0x3f]   ;;  %v1217_v49 = vand.u32 %v3643_v43, %v3824_v7 }
  0x34   : > { %3346 = vmatmul.mubr.msk.bf16.vlgmr.msra.gmra.mrb[12].mxu0 %vm518_vm2, %v3835_v14  ;;  %v3635_v45 = vld [vmem:[%s3885_s7 + $0x40] ss:$72 sps:$4 sm:$0xff]   ;;  %v3641_v47 = vld [vmem:[%s3885_s7 + $0xd0] ss:$72 sps:$4 sm:$0x3f]   ;;  %v1208_v51 = vand.u32 %v3638_v46, %v3824_v7 }
  0x35   : > { %3347 = vmatmul.mubr.msk.bf16.vlgmr.msra.gmra.mrb[12].mxu1 %vm518_vm2, %v3835_v14  ;;  %925 = vmatpush1.bf16.msra.mxu0 %v3584_v57  ;;  %v3646_v50 = vld [vmem:[%s3949_s10 + $0x4] ss:$72 sps:$4 sm:$0xff]   ;;  %v1214_v52 = vand.u32 %v3641_v47, %v3824_v7  ;;  %v3652_v53 = vld [vmem:[%s3949_s10 + $0x94] ss:$72 sps:$4 sm:$0x3f]  }
  0x36   : > { %1220 = vmatpush1.bf16.msra.mxu1 %v3587_v58  ;;  %926 = vmatprep.subr.bf16.mxu0 %v578_v61  ;;  %v3649_v54 = vld [vmem:[%s3949_s10 + $0xc] ss:$72 sps:$4 sm:$0xff]   ;;  %v3655_v55 = vld [vmem:[%s3949_s10 + $0x9c] ss:$72 sps:$4 sm:$0x3f]   ;;  %v1844_v60 = vand.u32 %v3652_v53, %v3824_v7 }
  0x37   : > { %1221 = vmatprep.subr.bf16.mxu1 %v1169_v62  ;;  %956 = vmatprep.mubr.bf16.mxu0 %v3761_v0  ;;  %v3644_v56 = vld [vmem:[%s3949_s10] ss:$72 sps:$4 sm:$0xff]   ;;  %v3650_v58 = vld [vmem:[%s3949_s10 + $0x90] ss:$72 sps:$4 sm:$0x3f]   ;;  %v1850_v61 = vand.u32 %v3655_v55, %v3824_v7 }
  0x38   : > { %1251 = vmatprep.mubr.bf16.mxu1 %v3761_v0  ;;  %v3647_v57 = vld [vmem:[%s3949_s10 + $0x8] ss:$72 sps:$4 sm:$0xff]   ;;  %v3653_v59 = vld [vmem:[%s3949_s10 + $0x98] ss:$72 sps:$4 sm:$0x3f]  }
  0x39   : > { %927 = vmatpush1.bf16.msra.mxu0 %v575_v2  ;;  %v3658_v62 = vld [vmem:[%s3949_s10 + $0x14] ss:$72 sps:$4 sm:$0xff]   ;;  %v3656_v5 = vld [vmem:[%s3949_s10 + $0x10] ss:$72 sps:$4 sm:$0xff]   ;;  %v3668_v19 = vld [vmem:[%s3949_s10 + $0x20] ss:$72 sps:$4 sm:$0xff]  }
  0x3a   : > { %1222 = vmatpush1.bf16.msra.mxu1 %v1166_v3  ;;  %1262 = vmatprep.subr.bf16.mxu0 %v3598_v63  ;;  %v1841_v63 = vand.u32 %v3650_v58, %v3824_v7  ;;  %v3661_v2 = vld [vmem:[%s3949_s10 + $0x1c] ss:$72 sps:$4 sm:$0xff]   ;;  %v3667_v4 = vld [vmem:[%s3949_s10 + $0xac] ss:$72 sps:$4 sm:$0x3f]  }
  0x3b   : > { %1305 = vmatprep.subr.bf16.mxu1 %v3601_v1  ;;  %v1847_v1 = vand.u32 %v3653_v59, %v3824_v7  ;;  %v3664_v3 = vld [vmem:[%s3949_s10 + $0xa4] ss:$72 sps:$4 sm:$0x3f]   ;;  %v3665_v9 = vld [vmem:[%s3949_s10 + $0xa8] ss:$72 sps:$4 sm:$0x3f]  }
  0x3c   : > { %3348 = vmatmul.mubr.msk.bf16.vlgmr.msra.gmra.mrb[16].mxu0 %vm518_vm2, %v3835_v14  ;;  %v1856_v10 = vand.u32 %v3664_v3, %v3824_v7  ;;  %v3676_v17 = vld [vmem:[%s3949_s10 + $0xb4] ss:$72 sps:$4 sm:$0x3f]   ;;  %v3677_v22 = vld [vmem:[%s3949_s10 + $0xb8] ss:$72 sps:$4 sm:$0x3f]  }
  0x3d   : > { %3385 = vmatmul.mubr.msk.bf16.vlgmr.msra.gmra.mrb[16].mxu1 %vm518_vm2, %v3835_v14  ;;  %1263 = vmatpush1.bf16.msra.mxu0 %v3596_v6  ;;  %v3662_v6 = vld [vmem:[%s3949_s10 + $0xa0] ss:$72 sps:$4 sm:$0x3f]   ;;  %v1868_v23 = vand.u32 %v3676_v17, %v3824_v7  ;;  %v3691_v30 = vld [vmem:[%s3949_s10 + $0xcc] ss:$72 sps:$4 sm:$0x3f]  }
  0x3e   : > { %1306 = vmatpush1.bf16.msra.mxu1 %v3599_v8  ;;  %1264 = vmatprep.subr.bf16.mxu0 %v1175_v11  ;;  %v3659_v8 = vld [vmem:[%s3949_s10 + $0x18] ss:$72 sps:$4 sm:$0xff]   ;;  %v1862_v11 = vand.u32 %v3667_v4, %v3824_v7  ;;  %v3703_v42 = vld [vmem:[%s4009_s13 + $0x94] ss:$72 sps:$4 sm:$0x3f]  }
  0x3f   : > { %1307 = vmatprep.subr.bf16.mxu1 %v1181_v12  ;;  %1294 = vmatprep.mubr.bf16.mxu0 %v3761_v0  ;;  %v3670_v12 = vld [vmem:[%s3949_s10 + $0x24] ss:$72 sps:$4 sm:$0xff]   ;;  %v3680_v31 = vld [vmem:[%s3949_s10 + $0x30] ss:$72 sps:$4 sm:$0xff]   ;;  %v3709_v53 = vld [vmem:[%s4009_s13 + $0x14] ss:$72 sps:$4 sm:$0xff]  }
  0x40   : > { %1337 = vmatprep.mubr.bf16.mxu1 %v3761_v0  ;;  %v3683_v33 = vld [vmem:[%s3949_s10 + $0x38] ss:$72 sps:$4 sm:$0xff]   ;;  %v3712_v55 = vld [vmem:[%s4009_s13 + $0x9c] ss:$72 sps:$4 sm:$0x3f]  }
  0x41   : > { %1265 = vmatpush1.bf16.msra.mxu0 %v1172_v15  ;;  %v1853_v15 = vand.u32 %v3662_v6, %v3824_v7  ;;  %v2992_v43 = vld [vmem:[%s4674_s5] sm:$0xff]  ;;  %v3698_v46 = vld [vmem:[%s3949_s10 + $0xd0] ss:$72 sps:$4 sm:$0x3f]   ;;  %v3733_v17 = vld [vmem:[%s4009_s13 + $0x34] ss:$72 sps:$4 sm:$0xff]  }
  0x42   : > { %1308 = vmatpush1.bf16.msra.mxu1 %v1178_v16  ;;  %1348 = vmatprep.subr.bf16.mxu0 %v3610_v13  ;;  %v3673_v13 = vld [vmem:[%s3949_s10 + $0x2c] ss:$72 sps:$4 sm:$0xff]   ;;  %v1859_v16 = vand.u32 %v3665_v9, %v3824_v7  ;;  %v3701_v47 = vld [vmem:[%s4009_s13 + $0x90] ss:$72 sps:$4 sm:$0x3f]  }
  0x43   : > { %1391 = vmatprep.subr.bf16.mxu1 %v3613_v18  ;;  %v3679_v18 = vld [vmem:[%s3949_s10 + $0xbc] ss:$72 sps:$4 sm:$0x3f]   ;;  %2996 = vperm.xlu0 %3534, %v2992_v43   ;;  %v3707_v58 = vld [vmem:[%s4009_s13 + $0x10] ss:$72 sps:$4 sm:$0xff]  }
  0x44   : > { %3386 = vmatmul.mubr.msk.bf16.vlgmr.msra.gmra.mrb[20].mxu0 %vm518_vm2, %v3835_v14  ;;  %v3710_v59 = vld [vmem:[%s4009_s13 + $0x98] ss:$72 sps:$4 sm:$0x3f]   ;;  %v3721_v3 = vld [vmem:[%s4009_s13 + $0x24] ss:$72 sps:$4 sm:$0xff]  }
  0x45   : > { %3387 = vmatmul.mubr.msk.bf16.vlgmr.msra.gmra.mrb[20].mxu1 %vm518_vm2, %v3835_v14  ;;  %1349 = vmatpush1.bf16.msra.mxu0 %v3608_v20  ;;  %v3671_v20 = vld [vmem:[%s3949_s10 + $0x28] ss:$72 sps:$4 sm:$0xff]   ;;  %v3724_v4 = vld [vmem:[%s4009_s13 + $0xac] ss:$72 sps:$4 sm:$0x3f]  }
  0x46   : > { %1392 = vmatpush1.bf16.msra.mxu1 %v3611_v21  ;;  %1350 = vmatprep.subr.bf16.mxu0 %v1187_v24  ;;  %v3674_v21 = vld [vmem:[%s3949_s10 + $0xb0] ss:$72 sps:$4 sm:$0x3f]   ;;  %v1874_v24 = vand.u32 %v3679_v18, %v3824_v7  ;;  %v3736_v18 = vld [vmem:[%s4009_s13 + $0xbc] ss:$72 sps:$4 sm:$0x3f]  }
  0x47   : > { %1393 = vmatprep.subr.bf16.mxu1 %v1193_v25  ;;  %1380 = vmatprep.mubr.bf16.mxu0 %v3761_v0  ;;  %v3682_v25 = vld [vmem:[%s3949_s10 + $0x34] ss:$72 sps:$4 sm:$0xff]   ;;  %v3716_v6 = vld [vmem:[%s4009_s13 + $0x18] ss:$72 sps:$4 sm:$0xff]  }
  0x48   : > { %1423 = vmatprep.mubr.bf16.mxu1 %v3761_v0  ;;  %v3722_v9 = vld [vmem:[%s4009_s13 + $0xa8] ss:$72 sps:$4 sm:$0x3f]  }
  0x49   : > { %1351 = vmatpush1.bf16.msra.mxu0 %v1184_v27  ;;  %v1871_v27 = vand.u32 %v3677_v22, %v3824_v7  ;;  %v3737_v22 = vld [vmem:[%s4009_s13 + $0xc0] ss:$72 sps:$4 sm:$0x3f]  }
  0x4a   : > { %1394 = vmatpush1.bf16.msra.mxu1 %v1190_v28  ;;  %1434 = vmatprep.subr.bf16.mxu0 %v3622_v26  ;;  %v1865_v26 = vand.u32 %v3674_v21, %v3824_v7  ;;  %v3685_v28 = vld [vmem:[%s3949_s10 + $0x3c] ss:$72 sps:$4 sm:$0xff]   ;;  %v3734_v21 = vld [vmem:[%s4009_s13 + $0xb8] ss:$72 sps:$4 sm:$0x3f]  }
  0x4b   : > { %1477 = vmatprep.subr.bf16.mxu1 %v3625_v29  ;;  %v3688_v29 = vld [vmem:[%s3949_s10 + $0xc4] ss:$72 sps:$4 sm:$0x3f]  }
  0x4c   : > { %3388 = vmatmul.mubr.msk.bf16.vlgmr.msra.gmra.mrb[24].mxu0 %vm518_vm2, %v3835_v14  ;;  %v1880_v35 = vand.u32 %v3688_v29, %v3824_v7  ;;  %v3745_v29 = vld [vmem:[%s4009_s13 + $0x44] ss:$72 sps:$4 sm:$0xff]  }
  0x4d   : > { %3389 = vmatmul.mubr.msk.bf16.vlgmr.msra.gmra.mrb[24].mxu1 %vm518_vm2, %v3835_v14  ;;  %1435 = vmatpush1.bf16.msra.mxu0 %v3620_v32  ;;  %v3686_v32 = vld [vmem:[%s3949_s10 + $0xc0] ss:$72 sps:$4 sm:$0x3f]  }
  0x4e   : > { %1478 = vmatpush1.bf16.msra.mxu1 %v3623_v34  ;;  %1436 = vmatprep.subr.bf16.mxu0 %v1199_v36  ;;  %v3689_v34 = vld [vmem:[%s3949_s10 + $0xc8] ss:$72 sps:$4 sm:$0x3f]   ;;  %v1886_v36 = vand.u32 %v3691_v30, %v3824_v7  ;;  %v3748_v30 = vld [vmem:[%s4009_s13 + $0xcc] ss:$72 sps:$4 sm:$0x3f]  }
  0x4f   : > { %1479 = vmatprep.subr.bf16.mxu1 %v1205_v37  ;;  %1466 = vmatprep.mubr.bf16.mxu0 %v3761_v0  ;;  %v1877_v37 = vand.u32 %v3686_v32, %v3824_v7  ;;  %v3740_v32 = vld [vmem:[%s4009_s13 + $0x38] ss:$72 sps:$4 sm:$0xff]  }
  0x50   : > { %1509 = vmatprep.mubr.bf16.mxu1 %v3761_v0 }
  0x51   : > { %1437 = vmatpush1.bf16.msra.mxu0 %v1196_v40  ;;  %v3700_v40 = vld [vmem:[%s3949_s10 + $0xd4] ss:$72 sps:$4 sm:$0x3f]  }
  0x52   : > { %1480 = vmatpush1.bf16.msra.mxu1 %v1202_v41  ;;  %1520 = vmatprep.subr.bf16.mxu0 %v3634_v38  ;;  %v1883_v38 = vand.u32 %v3689_v34, %v3824_v7  ;;  %v3697_v41 = vld [vmem:[%s4009_s13 + $0x4] ss:$72 sps:$4 sm:$0xff]   ;;  %v3746_v34 = vld [vmem:[%s4009_s13 + $0xc8] ss:$72 sps:$4 sm:$0x3f]  }
  0x53   : > { %1563 = vmatprep.subr.bf16.mxu1 %v3637_v39  ;;  %v3694_v39 = vld [vmem:[%s3949_s10 + $0x44] ss:$72 sps:$4 sm:$0xff]  }
  0x54   : > { %3390 = vmatmul.mubr.msk.bf16.vlgmr.msra.gmra.mrb[28].mxu0 %vm518_vm2, %v3835_v14 }
  0x55   : > { %3391 = vmatmul.mubr.msk.bf16.vlgmr.msra.gmra.mrb[28].mxu1 %vm518_vm2, %v3835_v14  ;;  %1521 = vmatpush1.bf16.msra.mxu0 %v3632_v44  ;;  %v3692_v44 = vld [vmem:[%s3949_s10 + $0x40] ss:$72 sps:$4 sm:$0xff]  }
  0x56   : > { %1564 = vmatpush1.bf16.msra.mxu1 %v3635_v45  ;;  %1522 = vmatprep.subr.bf16.mxu0 %v1211_v48  ;;  %v3695_v45 = vld [vmem:[%s4009_s13] ss:$72 sps:$4 sm:$0xff]   ;;  %v1892_v48 = vand.u32 %v3700_v40, %v3824_v7 }
  0x57   : > { %1565 = vmatprep.subr.bf16.mxu1 %v1217_v49  ;;  %1552 = vmatprep.mubr.bf16.mxu0 %v3761_v0  ;;  %v2519_v49 = vand.u32 %v3703_v42, %v3824_v7 }
  0x58   : > { %1595 = vmatprep.mubr.bf16.mxu1 %v3761_v0 }
  0x59   : > { %1523 = vmatpush1.bf16.msra.mxu0 %v1208_v51  ;;  %v2516_v51 = vand.u32 %v3701_v47, %v3824_v7 }
  0x5a   : > { %1566 = vmatpush1.bf16.msra.mxu1 %v1214_v52  ;;  %1894 = vmatprep.subr.bf16.mxu0 %v3646_v50  ;;  %v1889_v50 = vand.u32 %v3698_v46, %v3824_v7  ;;  %v3706_v52 = vld [vmem:[%s4009_s13 + $0xc] ss:$72 sps:$4 sm:$0xff]  }
  0x5b   : > { %1937 = vmatprep.subr.bf16.mxu1 %v3649_v54  ;;  %v2993_v54 = vld [vmem:[%s4674_s5 + $0x8] sm:$0xff] }
  0x5c   : > { %3392 = vmatmul.mubr.msk.bf16.vlgmr.msra.gmra.mrb[32].mxu0 %vm518_vm2, %v3835_v14  ;;  %3001 = vperm.xlu0 %3534, %v2993_v54  }
  0x5d   : > { %3393 = vmatmul.mubr.msk.bf16.vlgmr.msra.gmra.mrb[32].mxu1 %vm518_vm2, %v3835_v14  ;;  %1895 = vmatpush1.bf16.msra.mxu0 %v3644_v56  ;;  %v3715_v56 = vld [vmem:[%s4009_s13 + $0xa4] ss:$72 sps:$4 sm:$0x3f]  }
  0x5e   : > { %1938 = vmatpush1.bf16.msra.mxu1 %v3647_v57  ;;  %1896 = vmatprep.subr.bf16.mxu0 %v1844_v60  ;;  %v3704_v57 = vld [vmem:[%s4009_s13 + $0x8] ss:$72 sps:$4 sm:$0xff]  }
  0x5f   : > { %1939 = vmatprep.subr.bf16.mxu1 %v1850_v61  ;;  %1926 = vmatprep.mubr.bf16.mxu0 %v3761_v0  ;;  %v3713_v60 = vld [vmem:[%s4009_s13 + $0xa0] ss:$72 sps:$4 sm:$0x3f]   ;;  %v2525_v61 = vand.u32 %v3712_v55, %v3824_v7 }
  0x60   : > { %1969 = vmatprep.mubr.bf16.mxu1 %v3761_v0 }
  0x61   : > { %1897 = vmatpush1.bf16.msra.mxu0 %v1841_v63  ;;  %v2522_v63 = vand.u32 %v3710_v59, %v3824_v7 }
  0x62   : > { %1940 = vmatpush1.bf16.msra.mxu1 %v1847_v1  ;;  %1980 = vmatprep.subr.bf16.mxu0 %v3658_v62  ;;  %v2531_v62 = vand.u32 %v3715_v56, %v3824_v7  ;;  %v2528_v1 = vand.u32 %v3713_v60, %v3824_v7 }
  0x63   : > { %2023 = vmatprep.subr.bf16.mxu1 %v3661_v2  ;;  %v3718_v2 = vld [vmem:[%s4009_s13 + $0x1c] ss:$72 sps:$4 sm:$0xff]  }
  0x64   : > { %3430 = vmatmul.mubr.msk.bf16.vlgmr.msra.gmra.mrb[36].mxu0 %vm518_vm2, %v3835_v14 }
  0x65   : > { %3431 = vmatmul.mubr.msk.bf16.vlgmr.msra.gmra.mrb[36].mxu1 %vm518_vm2, %v3835_v14  ;;  %1981 = vmatpush1.bf16.msra.mxu0 %v3656_v5  ;;  %v3727_v5 = vld [vmem:[%s4009_s13 + $0xb4] ss:$72 sps:$4 sm:$0x3f]  }
  0x66   : > { %2024 = vmatpush1.bf16.msra.mxu1 %v3659_v8  ;;  %1982 = vmatprep.subr.bf16.mxu0 %v1856_v10  ;;  %v3719_v8 = vld [vmem:[%s4009_s13 + $0x20] ss:$72 sps:$4 sm:$0xff]   ;;  %v3725_v10 = vld [vmem:[%s4009_s13 + $0xb0] ss:$72 sps:$4 sm:$0x3f]  }
  0x67   : > { %2025 = vmatprep.subr.bf16.mxu1 %v1862_v11  ;;  %2012 = vmatprep.mubr.bf16.mxu0 %v3761_v0  ;;  %v2537_v11 = vand.u32 %v3724_v4, %v3824_v7 }
  0x68   : > { %2055 = vmatprep.mubr.bf16.mxu1 %v3761_v0 }
  0x69   : > { %1983 = vmatpush1.bf16.msra.mxu0 %v1853_v15  ;;  %v2540_v15 = vand.u32 %v3725_v10, %v3824_v7 }
  0x6a   : > { %2026 = vmatpush1.bf16.msra.mxu1 %v1859_v16  ;;  %2066 = vmatprep.subr.bf16.mxu0 %v3670_v12  ;;  %v2543_v12 = vand.u32 %v3727_v5, %v3824_v7  ;;  %v3730_v16 = vld [vmem:[%s4009_s13 + $0x2c] ss:$72 sps:$4 sm:$0xff]  }
  0x6b   : > { %2109 = vmatprep.subr.bf16.mxu1 %v3673_v13  ;;  %v2534_v13 = vand.u32 %v3722_v9, %v3824_v7 }
  0x6c   : > { %3432 = vmatmul.mubr.msk.bf16.vlgmr.msra.gmra.mrb[40].mxu0 %vm518_vm2, %v3835_v14 }
  0x6d   : > { %3433 = vmatmul.mubr.msk.bf16.vlgmr.msra.gmra.mrb[40].mxu1 %vm518_vm2, %v3835_v14  ;;  %2067 = vmatpush1.bf16.msra.mxu0 %v3668_v19  ;;  %v3739_v19 = vld [vmem:[%s4009_s13 + $0xc4] ss:$72 sps:$4 sm:$0x3f]  }
  0x6e   : > { %2110 = vmatpush1.bf16.msra.mxu1 %v3671_v20  ;;  %2068 = vmatprep.subr.bf16.mxu0 %v1868_v23  ;;  %v3728_v20 = vld [vmem:[%s4009_s13 + $0x28] ss:$72 sps:$4 sm:$0xff]   ;;  %v2549_v23 = vand.u32 %v3736_v18, %v3824_v7 }
  0x6f   : > { %2111 = vmatprep.subr.bf16.mxu1 %v1874_v24  ;;  %2098 = vmatprep.mubr.bf16.mxu0 %v3761_v0  ;;  %v2555_v24 = vand.u32 %v3739_v19, %v3824_v7 }
  0x70   : > { %2141 = vmatprep.mubr.bf16.mxu1 %v3761_v0 }
  0x71   : > { %2069 = vmatpush1.bf16.msra.mxu0 %v1865_v26  ;;  %v2546_v26 = vand.u32 %v3734_v21, %v3824_v7 }
  0x72   : > { %2112 = vmatpush1.bf16.msra.mxu1 %v1871_v27  ;;  %2152 = vmatprep.subr.bf16.mxu0 %v3682_v25  ;;  %v3752_v25 = vld [vmem:[%s4673_s4] sm:$0xff]   ;;  %v2552_v27 = vand.u32 %v3737_v22, %v3824_v7 }
  0x73   : > { %2195 = vmatprep.subr.bf16.mxu1 %v3685_v28  ;;  %v3742_v28 = vld [vmem:[%s4009_s13 + $0x3c] ss:$72 sps:$4 sm:$0xff]  }
  0x74   : > { %3434 = vmatmul.mubr.msk.bf16.vlgmr.msra.gmra.mrb[44].mxu0 %vm518_vm2, %v3835_v14 }
  0x75   : > { %3435 = vmatmul.mubr.msk.bf16.vlgmr.msra.gmra.mrb[44].mxu1 %vm518_vm2, %v3835_v14  ;;  %2153 = vmatpush1.bf16.msra.mxu0 %v3680_v31  ;;  %v3751_v31 = vld [vmem:[%s4009_s13 + $0xd4] ss:$72 sps:$4 sm:$0x3f]  }
  0x76   : > { %2196 = vmatpush1.bf16.msra.mxu1 %v3683_v33  ;;  %2154 = vmatprep.subr.bf16.mxu0 %v1880_v35  ;;  %v3743_v33 = vld [vmem:[%s4009_s13 + $0x40] ss:$72 sps:$4 sm:$0xff]   ;;  %v3749_v35 = vld [vmem:[%s4009_s13 + $0xd0] ss:$72 sps:$4 sm:$0x3f]  }
  0x77   : > { %2197 = vmatprep.subr.bf16.mxu1 %v1886_v36  ;;  %2184 = vmatprep.mubr.bf16.mxu0 %v3761_v0  ;;  %v2561_v36 = vand.u32 %v3748_v30, %v3824_v7 }
  0x78   : > { %2227 = vmatprep.mubr.bf16.mxu1 %v3761_v0 }
  0x79   : > { %2155 = vmatpush1.bf16.msra.mxu0 %v1877_v37  ;;  %v2567_v37 = vand.u32 %v3751_v31, %v3824_v7 }
  0x7a   : > { %2198 = vmatpush1.bf16.msra.mxu1 %v1883_v38  ;;  %2238 = vmatprep.subr.bf16.mxu0 %v3694_v39  ;;  %v2558_v38 = vand.u32 %v3746_v34, %v3824_v7  ;;  %v2564_v39 = vand.u32 %v3749_v35, %v3824_v7 }
  0x7b   : > { %2569 = vmatprep.subr.bf16.mxu1 %v3697_v41 }
  0x7c   : > { %3436 = vmatmul.mubr.msk.bf16.vlgmr.msra.gmra.mrb[48].mxu0 %vm518_vm2, %v3835_v14 }
  0x7d   : > { %3437 = vmatmul.mubr.msk.bf16.vlgmr.msra.gmra.mrb[48].mxu1 %vm518_vm2, %v3835_v14  ;;  %2239 = vmatpush1.bf16.msra.mxu0 %v3692_v44 }
  0x7e   : > { %2570 = vmatpush1.bf16.msra.mxu1 %v3695_v45  ;;  %2240 = vmatprep.subr.bf16.mxu0 %v1892_v48 }
  0x7f   : > { %2571 = vmatprep.subr.bf16.mxu1 %v2519_v49  ;;  %2270 = vmatprep.mubr.bf16.mxu0 %v3761_v0 }
  0x80   : > { %2601 = vmatprep.mubr.bf16.mxu1 %v3761_v0 }
  0x81   : > { %2241 = vmatpush1.bf16.msra.mxu0 %v1889_v50 }
  0x82   : > { %2572 = vmatpush1.bf16.msra.mxu1 %v2516_v51  ;;  %2612 = vmatprep.subr.bf16.mxu0 %v3706_v52 }
  0x83   : > { %2655 = vmatprep.subr.bf16.mxu1 %v3709_v53 }
  0x84   : > { %3438 = vmatmul.mubr.msk.bf16.vlgmr.msra.gmra.mrb[52].mxu0 %vm518_vm2, %v3835_v14 }
  0x85   : > { %3475 = vmatmul.mubr.msk.bf16.vlgmr.msra.gmra.mrb[52].mxu1 %vm518_vm2, %v3835_v14  ;;  %2613 = vmatpush1.bf16.msra.mxu0 %v3704_v57 }
  0x86   : > { %2656 = vmatpush1.bf16.msra.mxu1 %v3707_v58  ;;  %2614 = vmatprep.subr.bf16.mxu0 %v2525_v61 }
  0x87   : > { %2657 = vmatprep.subr.bf16.mxu1 %v2531_v62  ;;  %2644 = vmatprep.mubr.bf16.mxu0 %v3761_v0 }
  0x88   : > { %2687 = vmatprep.mubr.bf16.mxu1 %v3761_v0 }
  0x89   : > { %2615 = vmatpush1.bf16.msra.mxu0 %v2522_v63 }
  0x8a   : > { %2658 = vmatpush1.bf16.msra.mxu1 %v2528_v1  ;;  %2698 = vmatprep.subr.bf16.mxu0 %v3718_v2 }
  0x8b   : > { %2741 = vmatprep.subr.bf16.mxu1 %v3721_v3 }
  0x8c   : > { %3476 = vmatmul.mubr.msk.bf16.vlgmr.msra.gmra.mrb[56].mxu0 %vm518_vm2, %v3835_v14 }
  0x8d   : > { %3477 = vmatmul.mubr.msk.bf16.vlgmr.msra.gmra.mrb[56].mxu1 %vm518_vm2, %v3835_v14  ;;  %2699 = vmatpush1.bf16.msra.mxu0 %v3716_v6  ;;  %v3731_v14 = vld [vmem:[%s4009_s13 + $0x30] ss:$72 sps:$4 sm:$0xff]  }
  0x8e   : > { %2742 = vmatpush1.bf16.msra.mxu1 %v3719_v8  ;;  %2700 = vmatprep.subr.bf16.mxu0 %v2537_v11 }
  0x8f   : > { %2743 = vmatprep.subr.bf16.mxu1 %v2543_v12  ;;  %2730 = vmatprep.mubr.bf16.mxu0 %v3761_v0 }
  0x90   : > { %2773 = vmatprep.mubr.bf16.mxu1 %v3761_v0 }
  0x91   : > { %2701 = vmatpush1.bf16.msra.mxu0 %v2534_v13 }
  0x92   : > { %2744 = vmatpush1.bf16.msra.mxu1 %v2540_v15  ;;  %2784 = vmatprep.subr.bf16.mxu0 %v3730_v16 }
  0x93   : > { %2827 = vmatprep.subr.bf16.mxu1 %v3733_v17 }
  0x94   : > { %3478 = vmatmul.mubr.msk.bf16.vlgmr.msra.gmra.mrb[60].mxu0 %vm518_vm2, %v3752_v25 }
  0x95   : > { %3479 = vmatmul.mubr.msk.bf16.vlgmr.msra.gmra.mrb[60].mxu1 %vm518_vm2, %v3752_v25  ;;  %2785 = vmatpush1.bf16.msra.mxu0 %v3728_v20 }
  0x96   : > { %2828 = vmatpush1.bf16.msra.mxu1 %v3731_v14  ;;  %2786 = vmatprep.subr.bf16.mxu0 %v2549_v23 }
  0x97   : > { %2829 = vmatprep.subr.bf16.mxu1 %v2555_v24  ;;  %2816 = vmatprep.mubr.bf16.mxu0 %v3761_v0 }
  0x98   : > { %2859 = vmatprep.mubr.bf16.mxu1 %v3761_v0 }
  0x99   : > { %2787 = vmatpush1.bf16.msra.mxu0 %v2546_v26 }
  0x9a   : > { %2830 = vmatpush1.bf16.msra.mxu1 %v2552_v27  ;;  %2870 = vmatprep.subr.bf16.mxu0 %v3742_v28 }
  0x9b   : > { %2913 = vmatprep.subr.bf16.mxu1 %v3745_v29 }
  0x9c   : > { %3480 = vmatmul.mubr.msk.bf16.vlgmr.msra.gmra.mrb[64].mxu0 %vm518_vm2, %v3752_v25 }
  0x9d   : > { %3481 = vmatmul.mubr.msk.bf16.vlgmr.msra.gmra.mrb[64].mxu1 %vm518_vm2, %v3752_v25  ;;  %2871 = vmatpush1.bf16.msra.mxu0 %v3740_v32 }
  0x9e   : > { %2914 = vmatpush1.bf16.msra.mxu1 %v3743_v33  ;;  %2872 = vmatprep.subr.bf16.mxu0 %v2561_v36 }
  0x9f   : > { %2915 = vmatprep.subr.bf16.mxu1 %v2567_v37  ;;  %2902 = vmatprep.mubr.bf16.mxu0 %v3761_v0 }
  0xa0   : > { %2945 = vmatprep.mubr.bf16.mxu1 %v3761_v0 }
  0xa1   : > { %2873 = vmatpush1.bf16.msra.mxu0 %v2558_v38 }
  0xa2   : > { %2916 = vmatpush1.bf16.msra.mxu1 %v2564_v39 }
  0xa4   : > { %3482 = vmatmul.mubr.msk.bf16.vlgmr.msra.gmra.mrb[68].mxu0 %vm518_vm2, %v3752_v25 }
  0xa5   : > { %3483 = vmatmul.mubr.msk.bf16.vlgmr.msra.gmra.mrb[68].mxu1 %vm518_vm2, %v3752_v25 }
  0xef   : > { %v4170_v40 = vpop.f32.mrb[0].mxu0 }
  0xf0   : > { %v4172_v41 = vpop.f32.mrb[0].mxu1  ;;  %v4174_v42 = vpop.f32.mrb[1].mxu0 }
  0xf1   : > { %v4176_v43 = vpop.f32.mrb[1].mxu1  ;;  %v4178_v7 = vpop.f32.mrb[2].mxu0 }
  0xf2   : > { %v4180_v44 = vpop.f32.mrb[2].mxu1  ;;  %v4182_v45 = vpop.f32.mrb[3].mxu0 }
  0xf3   : > { %v4184_v0 = vpop.f32.mrb[3].mxu1 }
  0xf7   : > { %v4186_v46 = vpop.f32.mrb[4].mxu0 }
  0xf8   : > { %v4188_v47 = vpop.f32.mrb[4].mxu1  ;;  %v4190_v48 = vpop.f32.mrb[5].mxu0 }
  0xf9   : > { %v4192_v49 = vpop.f32.mrb[5].mxu1  ;;  %v4194_v50 = vpop.f32.mrb[6].mxu0 }
  0xfa   : > { %v4196_v51 = vpop.f32.mrb[6].mxu1  ;;  %v4198_v52 = vpop.f32.mrb[7].mxu0 }
  0xfb   : > { %v4200_v53 = vpop.f32.mrb[7].mxu1 }
  0xff   : > { %v4202_v54 = vpop.f32.mrb[8].mxu0 }
 0x100   : > { %v4204_v55 = vpop.f32.mrb[8].mxu1  ;;  %v4206_v56 = vpop.f32.mrb[9].mxu0 }
 0x101   : > { %v4208_v57 = vpop.f32.mrb[9].mxu1  ;;  %v4210_v58 = vpop.f32.mrb[10].mxu0 }
 0x102   : > { %v4212_v59 = vpop.f32.mrb[10].mxu1  ;;  %v4214_v60 = vpop.f32.mrb[11].mxu0 }
 0x103   : > { %4696 = vst [vmem:[#allocation2_spill] sm:$0xff] %v4214_v60  ;;  %v4216_v61 = vpop.f32.mrb[11].mxu1 }
 0x107   : > { %v4218_v62 = vpop.f32.mrb[12].mxu0 }
 0x108   : > { %4697 = vst [vmem:[#allocation3_spill] sm:$0xff] %v4218_v62  ;;  %v4220_v63 = vpop.f32.mrb[12].mxu1  ;;  %v4222_v1 = vpop.f32.mrb[13].mxu0 }
 0x109   : > { %4698 = vst [vmem:[#allocation4_spill] sm:$0xff] %v4222_v1  ;;  %v4224_v2 = vpop.f32.mrb[13].mxu1  ;;  %v4226_v3 = vpop.f32.mrb[14].mxu0 }
 0x10a   : > { %4699 = vst [vmem:[#allocation5_spill] sm:$0xff] %v4224_v2  ;;  %4700 = vst [vmem:[#allocation6_spill] sm:$0xff] %v4226_v3  ;;  %v4228_v4 = vpop.f32.mrb[14].mxu1  ;;  %v4230_v5 = vpop.f32.mrb[15].mxu0 }
 0x10b   : > { %4701 = vst [vmem:[#allocation7_spill] sm:$0xff] %v4230_v5  ;;  %v4232_v6 = vpop.f32.mrb[15].mxu1 }
 0x10f   : > { %v4234_v8 = vpop.f32.mrb[16].mxu0 }
 0x110   : > { %4702 = vst [vmem:[#allocation8_spill] sm:$0xff] %v4234_v8  ;;  %v4236_v9 = vpop.f32.mrb[16].mxu1  ;;  %v4240_v11 = vpop.f32.mrb[17].mxu0 }
 0x111   : > { %4703 = vst [vmem:[#allocation9_spill] sm:$0xff] %v4240_v11  ;;  %v4242_v12 = vpop.f32.mrb[17].mxu1  ;;  %v4246_v15 = vpop.f32.mrb[18].mxu0 }
 0x112   : > { %4704 = vst [vmem:[#allocation10_spill] sm:$0xff] %v4246_v15  ;;  %v4248_v16 = vpop.f32.mrb[18].mxu1  ;;  %v4252_v18 = vpop.f32.mrb[19].mxu0  ;;  %v4718_v23 = vmax.f32 %v4174_v42, %v4242_v12 }
 0x113   : > { %v4254_v19 = vpop.f32.mrb[19].mxu1 }
 0x114   : > { %v4722_v12 = vmax.f32 %v4182_v45, %v4254_v19 }
 0x117   : > { %v4258_v14 = vpop.f32.mrb[20].mxu0 }
 0x118   : > { %v4260_v21 = vpop.f32.mrb[20].mxu1  ;;  %v4266_v24 = vpop.f32.mrb[21].mxu0  ;;  %v4717_v39 = vmax.f32 %v4172_v41, %v4258_v14 }
 0x119   : > { %v4268_v25 = vpop.f32.mrb[21].mxu1  ;;  %v4274_v28 = vpop.f32.mrb[22].mxu0  ;;  %v4719_v35 = vmax.f32 %v4176_v43, %v4266_v24 }
 0x11a   : > { %v4276_v29 = vpop.f32.mrb[22].mxu1  ;;  %v4282_v32 = vpop.f32.mrb[23].mxu0 }
 0x11b   : > { %v4284_v33 = vpop.f32.mrb[23].mxu1 }
 0x11f   : > { %v4290_v36 = vpop.f32.mrb[24].mxu0 }
 0x120   : > { %v4292_v37 = vpop.f32.mrb[24].mxu1  ;;  %v4298_v31 = vpop.f32.mrb[25].mxu0  ;;  %v4725_v24 = vmax.f32 %v4188_v47, %v4290_v36 }
 0x121   : > { %v4300_v27 = vpop.f32.mrb[25].mxu1  ;;  %v4306_v34 = vpop.f32.mrb[26].mxu0 }
 0x122   : > { %v4308_v20 = vpop.f32.mrb[26].mxu1  ;;  %v4314_v30 = vpop.f32.mrb[27].mxu0  ;;  %v4729_v36 = vmax.f32 %v4196_v51, %v4306_v34 }
 0x123   : > { %v4316_v17 = vpop.f32.mrb[27].mxu1 }
 0x124   : > { %4705 = vst [vmem:[#allocation11_spill] sm:$0xff] %v4316_v17 }
 0x127   : > { %v4322_v26 = vpop.f32.mrb[28].mxu0 }
 0x128   : > { %v4324_v13 = vpop.f32.mrb[28].mxu1  ;;  %v4330_v22 = vpop.f32.mrb[29].mxu0  ;;  %v4733_v34 = vmax.f32 %v4204_v55, %v4322_v26 }
 0x129   : > { %4706 = vst [vmem:[#allocation12_spill] sm:$0xff] %v4324_v13  ;;  %v4332_v10 = vpop.f32.mrb[29].mxu1  ;;  %v4338_v17 = vpop.f32.mrb[30].mxu0 }
 0x12a   : > { %4707 = vst [vmem:[#allocation13_spill] sm:$0xff] %v4332_v10  ;;  %v4340_v60 = vpop.f32.mrb[30].mxu1  ;;  %v4346_v13 = vpop.f32.mrb[31].mxu0  ;;  %v4737_v26 = vmax.f32 %v4212_v59, %v4338_v17 }
 0x12b   : > { %4708 = vst [vmem:[#allocation14_spill] sm:$0xff] %v4340_v60  ;;  %v4348_v62 = vpop.f32.mrb[31].mxu1 }
 0x12c   : > { %4709 = vst [vmem:[#allocation15_spill] sm:$0xff] %v4348_v62 }
 0x12f   : > { %v4354_v10 = vpop.f32.mrb[32].mxu0 }
 0x130   : > { %v4356_v1 = vpop.f32.mrb[32].mxu1  ;;  %v4362_v60 = vpop.f32.mrb[33].mxu0  ;;  %v4743_v59 = vld [vmem:[#allocation12_spill] sm:$0xff] }
 0x131   : > { %4710 = vst [vmem:[#allocation16_spill] sm:$0xff] %v4356_v1  ;;  %4711 = vst [vmem:[#allocation17_spill] sm:$0xff] %v4362_v60  ;;  %v4364_v3 = vpop.f32.mrb[33].mxu1  ;;  %v4370_v62 = vpop.f32.mrb[34].mxu0  ;;  %v4716_v60 = vmax.f32 %v4170_v40, %v4236_v9  ;;  %v4721_v9 = vmax.f32 %v4180_v44, %v4274_v28 }
 0x132   : > { %4712 = vst [vmem:[#allocation18_spill] sm:$0xff] %v4364_v3  ;;  %v4372_v5 = vpop.f32.mrb[34].mxu1  ;;  %v4378_v1 = vpop.f32.mrb[35].mxu0 }
 0x133   : > { %4713 = vst [vmem:[#allocation19_spill] sm:$0xff] %v4372_v5  ;;  %4714 = vst [vmem:[#allocation20_spill] sm:$0xff] %v4378_v1  ;;  %v4380_v8 = vpop.f32.mrb[35].mxu1 }
 0x134   : > { %4715 = vst [vmem:[#allocation21_spill] sm:$0xff] %v4380_v8 }
 0x137   : > { %v1928_v3 = vpop.f32.mrb[36].mxu0 }
 0x138   : > { %v1971_v11 = vpop.f32.mrb[36].mxu1  ;;  %v4389_v2 = vmax.f32 %v4716_v60, %v1928_v3  ;;  %v1930_v5 = vpop.f32.mrb[37].mxu0  ;;  %v4720_v3 = vmax.f32 %v4178_v7, %v4248_v16 }
 0x139   : > { %v4394_v38 = vmax.f32 %v4717_v39, %v1971_v11  ;;  %v1973_v15 = vpop.f32.mrb[37].mxu1  ;;  %v4399_v1 = vmax.f32 %v4718_v23, %v1930_v5  ;;  %v1932_v40 = vpop.f32.mrb[38].mxu0  ;;  %v4724_v23 = vmax.f32 %v4186_v46, %v4260_v21 }
 0x13a   : > { %v4404_v8 = vmax.f32 %v4719_v35, %v1973_v15  ;;  %v1975_v60 = vpop.f32.mrb[38].mxu1  ;;  %v4409_v41 = vmax.f32 %v4720_v3, %v1932_v40  ;;  %v1934_v42 = vpop.f32.mrb[39].mxu0  ;;  %v4723_v15 = vmax.f32 %v4184_v0, %v4282_v32  ;;  %v4726_v35 = vmax.f32 %v4190_v48, %v4268_v25 }
 0x13b   : > { %v4414_v11 = vmax.f32 %v4721_v9, %v1975_v60  ;;  %v1977_v5 = vpop.f32.mrb[39].mxu1  ;;  %v4419_v43 = vmax.f32 %v4722_v12, %v1934_v42  ;;  %v4727_v32 = vmax.f32 %v4192_v49, %v4298_v31  ;;  %v4728_v40 = vmax.f32 %v4194_v50, %v4276_v29 }
 0x13c   : > { %v4424_v14 = vmax.f32 %v4723_v15, %v1977_v5  ;;  %v4730_v3 = vmax.f32 %v4198_v52, %v4284_v33  ;;  %v4731_v31 = vmax.f32 %v4200_v53, %v4314_v30  ;;  %v4732_v42 = vmax.f32 %v4202_v54, %v4292_v37 }
 0x13d   : > { %v4734_v12 = vmax.f32 %v4206_v56, %v4300_v27  ;;  %v4735_v30 = vmax.f32 %v4208_v57, %v4330_v22  ;;  %v4741_v22 = vmax.f32 %v4216_v61, %v4346_v13  ;;  %v4747_v61 = vld [vmem:[#allocation13_spill] sm:$0xff] }
 0x13f   : > { %v2014_v7 = vpop.f32.mrb[40].mxu0 }
 0x140   : > { %v2057_v16 = vpop.f32.mrb[40].mxu1  ;;  %v4429_v44 = vmax.f32 %v4724_v23, %v2014_v7  ;;  %v2016_v45 = vpop.f32.mrb[41].mxu0  ;;  %v4736_v7 = vmax.f32 %v4210_v58, %v4308_v20  ;;  %v4738_v23 = vld [vmem:[#allocation2_spill] sm:$0xff] }
 0x141   : > { %v4434_v28 = vmax.f32 %v4725_v24, %v2057_v16  ;;  %v2059_v19 = vpop.f32.mrb[41].mxu1  ;;  %v4439_v0 = vmax.f32 %v4726_v35, %v2016_v45  ;;  %v2018_v46 = vpop.f32.mrb[42].mxu0  ;;  %v4739_v24 = vld [vmem:[#allocation11_spill] sm:$0xff] }
 0x142   : > { %v4444_v39 = vmax.f32 %v4727_v32, %v2059_v19  ;;  %v2061_v21 = vpop.f32.mrb[42].mxu1  ;;  %v4449_v47 = vmax.f32 %v4728_v40, %v2018_v46  ;;  %v2020_v48 = vpop.f32.mrb[43].mxu0  ;;  %v4740_v45 = vmax.f32 %v4738_v23, %v4739_v24  ;;  %v4742_v32 = vld [vmem:[#allocation3_spill] sm:$0xff]  ;;  %v4759_v24 = vld [vmem:[#allocation20_spill] sm:$0xff] }
 0x143   : > { %v4454_v60 = vmax.f32 %v4729_v36, %v2061_v21  ;;  %v2063_v25 = vpop.f32.mrb[43].mxu1  ;;  %v4459_v49 = vmax.f32 %v4730_v3, %v2020_v48  ;;  %v4506_v58 = vpop.permute.xlu0 %2996  ;;  %v4744_v17 = vmax.f32 %v4742_v32, %v4743_v59  ;;  %v4745_v21 = vmax.f32 %v4220_v63, %v4354_v10 }
 0x144   : > { %v4464_v9 = vmax.f32 %v4731_v31, %v2063_v25  ;;  %v4746_v25 = vld [vmem:[#allocation4_spill] sm:$0xff]  ;;  %v4749_v31 = vld [vmem:[#allocation5_spill] sm:$0xff]  ;;  %v4755_v10 = vmax.f32 %v4228_v4, %v4370_v62 }
 0x145   : > { %v4748_v13 = vmax.f32 %v4746_v25, %v4747_v61  ;;  %v4761_v62 = vld [vmem:[#allocation8_spill] sm:$0xff]  ;;  %v4764_v25 = vld [vmem:[#allocation9_spill] sm:$0xff]  ;;  %v4765_v61 = vld [vmem:[#allocation18_spill] sm:$0xff] }
 0x146   : > { %v4762_v4 = vld [vmem:[#allocation16_spill] sm:$0xff] }
 0x147   : > { %v2100_v50 = vpop.f32.mrb[44].mxu0  ;;  %v4763_v59 = vmax.f32 %v4761_v62, %v4762_v4 }
 0x148   : > { %v2143_v29 = vpop.f32.mrb[44].mxu1  ;;  %v4469_v51 = vmax.f32 %v4732_v42, %v2100_v50  ;;  %v2102_v52 = vpop.f32.mrb[45].mxu0  ;;  %v4750_v50 = vld [vmem:[#allocation17_spill] sm:$0xff] }
 0x149   : > { %v4474_v5 = vmax.f32 %v4733_v34, %v2143_v29  ;;  %v2145_v33 = vpop.f32.mrb[45].mxu1  ;;  %v4479_v53 = vmax.f32 %v4734_v12, %v2102_v52  ;;  %v2104_v54 = vpop.f32.mrb[46].mxu0  ;;  %v4751_v29 = vmax.f32 %v4749_v31, %v4750_v50  ;;  %v4753_v12 = vld [vmem:[#allocation14_spill] sm:$0xff] }
 0x14a   : > { %v4484_v15 = vmax.f32 %v4735_v30, %v2145_v33  ;;  %v2147_v37 = vpop.f32.mrb[46].mxu1  ;;  %v4489_v55 = vmax.f32 %v4736_v7, %v2104_v54  ;;  %v2106_v56 = vpop.f32.mrb[47].mxu0  ;;  %v4752_v33 = vld [vmem:[#allocation6_spill] sm:$0xff] }
 0x14b   : > { %v4494_v16 = vmax.f32 %v4737_v26, %v2147_v37  ;;  %v2149_v27 = vpop.f32.mrb[47].mxu1  ;;  %v4499_v57 = vmax.f32 %v4740_v45, %v2106_v56  ;;  %v4754_v30 = vmax.f32 %v4752_v33, %v4753_v12  ;;  %v4756_v26 = vld [vmem:[#allocation7_spill] sm:$0xff]  ;;  %v4760_v45 = vmax.f32 %v4232_v6, %v4759_v24 }
 0x14c   : > { %v4504_v19 = vmax.f32 %v4741_v22, %v2149_v27  ;;  %v4757_v56 = vld [vmem:[#allocation15_spill] sm:$0xff] }
 0x14d   : > { %v4758_v27 = vmax.f32 %v4756_v26, %v4757_v56  ;;  %v4768_v33 = vld [vmem:[#allocation19_spill] sm:$0xff]  ;;  %v4770_v26 = vld [vmem:[#allocation21_spill] sm:$0xff] }
 0x14e   : > { %v4771_v56 = vmax.f32 %v4252_v18, %v4770_v26 }
 0x14f   : > { %v2186_v20 = vpop.f32.mrb[48].mxu0 }
 0x150   : > { %v2229_v35 = vpop.f32.mrb[48].mxu1  ;;  %v4511_v46 = vmax.f32 %v4744_v17, %v2186_v20  ;;  %v2188_v36 = vpop.f32.mrb[49].mxu0 }
 0x151   : > { %v4516_v40 = vmax.f32 %v4745_v21, %v2229_v35  ;;  %v2231_v48 = vpop.f32.mrb[49].mxu1  ;;  %v4521_v3 = vmax.f32 %v4748_v13, %v2188_v36  ;;  %v2190_v34 = vpop.f32.mrb[50].mxu0  ;;  %v4766_v13 = vmax.f32 %v4764_v25, %v4765_v61 }
 0x152   : > { %v4526_v42 = vmax.f32 %v4751_v29, %v2231_v48  ;;  %v2233_v52 = vpop.f32.mrb[50].mxu1  ;;  %v4531_v63 = vmax.f32 %v4754_v30, %v2190_v34  ;;  %v2192_v37 = vpop.f32.mrb[51].mxu0 }
 0x153   : > { %v4536_v54 = vmax.f32 %v4755_v10, %v2233_v52  ;;  %v2235_v7 = vpop.f32.mrb[51].mxu1  ;;  %v4541_v23 = vmax.f32 %v4758_v27, %v2192_v37  ;;  %v4548_v20 = vpop.permute.xlu0 %3001  ;;  %v4767_v52 = vld [vmem:[#allocation10_spill] sm:$0xff] }
 0x154   : > { %v4546_v22 = vmax.f32 %v4760_v45, %v2235_v7  ;;  %v4769_v12 = vmax.f32 %v4767_v52, %v4768_v33 }
 0x157   : > { %v2272_v35 = vpop.f32.mrb[52].mxu0 }
 0x158   : > { %v2603_v32 = vpop.f32.mrb[52].mxu1  ;;  %v4553_v17 = vmax.f32 %v4763_v59, %v2272_v35  ;;  %v2274_v36 = vpop.f32.mrb[53].mxu0 }
 0x159   : > { %v2956_v21 = vmax.f32 %v4389_v2, %v2603_v32  ;;  %v2605_v48 = vpop.f32.mrb[53].mxu1  ;;  %v4559_v31 = vmax.f32 %v4766_v13, %v2274_v36  ;;  %v2276_v50 = vpop.f32.mrb[54].mxu0 }
 0x15a   : > { %v2957_v6 = vmax.f32 %v4399_v1, %v2605_v48  ;;  %v2607_v29 = vpop.f32.mrb[54].mxu1  ;;  %v4567_v30 = vmax.f32 %v4769_v12, %v2276_v50  ;;  %v2278_v10 = vpop.f32.mrb[55].mxu0 }
 0x15b   : > { %v3004_v34 = vadd.f32 %v4506_v58, %v2956_v21  ;;  %v2974_v2 = vmax.f32 %v4409_v41, %v2607_v29  ;;  %v2609_v37 = vpop.f32.mrb[55].mxu1  ;;  %v4574_v1 = vmax.f32 %v4771_v56, %v2278_v10 }
 0x15c   : > { %v3005_v7 = vadd.f32 %v4506_v58, %v2957_v6  ;;  %v2975_v27 = vmax.f32 %v4419_v43, %v2609_v37 }
 0x15d   : > { %v3040_v24 = vmax.f32 %v3004_v34, 0.0  ;;  %v3022_v45 = vadd.f32 %v4548_v20, %v2974_v2 }
 0x15e   : > { %v3041_v35 = vmax.f32 %v3005_v7, 0.0  ;;  %v3023_v32 = vadd.f32 %v4548_v20, %v2975_v27 }
 0x15f   : > { %v3058_v41 = vmax.f32 %v3022_v45, 0.0  ;;  %v2646_v18 = vpop.f32.mrb[56].mxu0 }
 0x160   : > { %v3504_v62 = vpack.c.bf16 %v3041_v35, %v3040_v24  ;;  %v3059_v4 = vmax.f32 %v3023_v32, 0.0  ;;  %v2689_v59 = vpop.f32.mrb[56].mxu1  ;;  %v2958_v21 = vmax.f32 %v4394_v38, %v2646_v18  ;;  %v2648_v36 = vpop.f32.mrb[57].mxu0 }
 0x161   : > { %v2960_v43 = vmax.f32 %v4429_v44, %v2689_v59  ;;  %v2691_v48 = vpop.f32.mrb[57].mxu1  ;;  %v2959_v61 = vmax.f32 %v4404_v8, %v2648_v36  ;;  %v2650_v6 = vpop.f32.mrb[58].mxu0 }
 0x162   : > { %3184 = vst [vmem:[%s4582_s24] sm:$0xff] %v3504_v62  ;;  %v3513_v25 = vpack.c.bf16 %v3059_v4, %v3058_v41  ;;  %v2961_v13 = vmax.f32 %v4439_v0, %v2691_v48  ;;  %v2693_v50 = vpop.f32.mrb[58].mxu1  ;;  %v3006_v29 = vadd.f32 %v4506_v58, %v2958_v21  ;;  %v2976_v52 = vmax.f32 %v4414_v11, %v2650_v6  ;;  %v2652_v33 = vpop.f32.mrb[59].mxu0 }
 0x163   : > { %v3008_v34 = vadd.f32 %v4506_v58, %v2960_v43  ;;  %v2978_v38 = vmax.f32 %v4449_v47, %v2693_v50  ;;  %v2695_v44 = vpop.f32.mrb[59].mxu1  ;;  %v3007_v12 = vadd.f32 %v4506_v58, %v2959_v61  ;;  %v2977_v8 = vmax.f32 %v4424_v14, %v2652_v33 }
 0x164   : > { %3193 = vst [vmem:[%s4582_s24 + $0x48] sm:$0xff] %v3513_v25  ;;  %v3009_v2 = vadd.f32 %v4506_v58, %v2961_v13  ;;  %v2979_v0 = vmax.f32 %v4459_v49, %v2695_v44  ;;  %v3042_v10 = vmax.f32 %v3006_v29, 0.0  ;;  %v3024_v7 = vadd.f32 %v4548_v20, %v2976_v52 }
 0x165   : > { %v3044_v37 = vmax.f32 %v3008_v34, 0.0  ;;  %v3026_v26 = vadd.f32 %v4548_v20, %v2978_v38  ;;  %v3043_v11 = vmax.f32 %v3007_v12, 0.0  ;;  %v3025_v56 = vadd.f32 %v4548_v20, %v2977_v8 }
 0x166   : > { %v3045_v47 = vmax.f32 %v3009_v2, 0.0  ;;  %v3027_v27 = vadd.f32 %v4548_v20, %v2979_v0  ;;  %v3060_v24 = vmax.f32 %v3024_v7, 0.0 }
 0x167   : > { %v3062_v45 = vmax.f32 %v3026_v26, 0.0  ;;  %v3505_v35 = vpack.c.bf16 %v3043_v11, %v3042_v10  ;;  %v3061_v32 = vmax.f32 %v3025_v56, 0.0  ;;  %v2732_v41 = vpop.f32.mrb[60].mxu0 }
 0x168   : > { %v3506_v14 = vpack.c.bf16 %v3045_v47, %v3044_v37  ;;  %v3063_v49 = vmax.f32 %v3027_v27, 0.0  ;;  %v2775_v62 = vpop.f32.mrb[60].mxu1  ;;  %v2962_v4 = vmax.f32 %v4434_v28, %v2732_v41  ;;  %v2734_v59 = vpop.f32.mrb[61].mxu0 }
 0x169   : > { %v2964_v18 = vmax.f32 %v4469_v51, %v2775_v62  ;;  %v2777_v21 = vpop.f32.mrb[61].mxu1  ;;  %3185 = vst [vmem:[%s4582_s24 + $0x8] sm:$0xff] %v3505_v35  ;;  %v3514_v43 = vpack.c.bf16 %v3061_v32, %v3060_v24  ;;  %v2963_v48 = vmax.f32 %v4444_v39, %v2734_v59  ;;  %v2736_v61 = vpop.f32.mrb[62].mxu0 }
 0x16a   : > { %3186 = vst [vmem:[%s4582_s24 + $0x10] sm:$0xff] %v3506_v14  ;;  %v3515_v36 = vpack.c.bf16 %v3063_v49, %v3062_v45  ;;  %v2965_v25 = vmax.f32 %v4479_v53, %v2777_v21  ;;  %v2779_v13 = vpop.f32.mrb[62].mxu1  ;;  %v3010_v6 = vadd.f32 %v4506_v58, %v2962_v4  ;;  %v2980_v51 = vmax.f32 %v4454_v60, %v2736_v61  ;;  %v2738_v29 = vpop.f32.mrb[63].mxu0 }
 0x16b   : > { %v3012_v28 = vadd.f32 %v4506_v58, %v2964_v18  ;;  %v2982_v50 = vmax.f32 %v4489_v55, %v2779_v13  ;;  %v2781_v34 = vpop.f32.mrb[63].mxu1  ;;  %3194 = vst [vmem:[%s4582_s24 + $0x50] sm:$0xff] %v3514_v43  ;;  %v3011_v52 = vadd.f32 %v4506_v58, %v2963_v48  ;;  %v2981_v53 = vmax.f32 %v4464_v9, %v2738_v29 }
 0x16c   : > { %3195 = vst [vmem:[%s4582_s24 + $0x58] sm:$0xff] %v3515_v36  ;;  %v3013_v39 = vadd.f32 %v4506_v58, %v2965_v25  ;;  %v2983_v38 = vmax.f32 %v4499_v57, %v2781_v34  ;;  %v3046_v33 = vmax.f32 %v3010_v6, 0.0  ;;  %v3028_v12 = vadd.f32 %v4548_v20, %v2980_v51 }
 0x16d   : > { %v3048_v44 = vmax.f32 %v3012_v28, 0.0  ;;  %v3030_v60 = vadd.f32 %v4548_v20, %v2982_v50  ;;  %v3047_v2 = vmax.f32 %v3011_v52, 0.0  ;;  %v3029_v8 = vadd.f32 %v4548_v20, %v2981_v53 }
 0x16e   : > { %v3049_v55 = vmax.f32 %v3013_v39, 0.0  ;;  %v3031_v0 = vadd.f32 %v4548_v20, %v2983_v38  ;;  %v3064_v10 = vmax.f32 %v3028_v12, 0.0 }
 0x16f   : > { %v3066_v37 = vmax.f32 %v3030_v60, 0.0  ;;  %v3507_v7 = vpack.c.bf16 %v3047_v2, %v3046_v33  ;;  %v3065_v26 = vmax.f32 %v3029_v8, 0.0  ;;  %v2818_v11 = vpop.f32.mrb[64].mxu0 }
 0x170   : > { %v3508_v9 = vpack.c.bf16 %v3049_v55, %v3048_v44  ;;  %v3067_v57 = vmax.f32 %v3031_v0, 0.0  ;;  %v2861_v47 = vpop.f32.mrb[64].mxu1  ;;  %v2966_v56 = vmax.f32 %v4474_v5, %v2818_v11  ;;  %v2820_v24 = vpop.f32.mrb[65].mxu0 }
 0x171   : > { %v2968_v27 = vmax.f32 %v4511_v46, %v2861_v47  ;;  %v2863_v45 = vpop.f32.mrb[65].mxu1  ;;  %3187 = vst [vmem:[%s4582_s24 + $0x18] sm:$0xff] %v3507_v7  ;;  %v3516_v35 = vpack.c.bf16 %v3065_v26, %v3064_v10  ;;  %v2967_v32 = vmax.f32 %v4484_v15, %v2820_v24  ;;  %v2822_v41 = vpop.f32.mrb[66].mxu0 }
 0x172   : > { %3188 = vst [vmem:[%s4582_s24 + $0x20] sm:$0xff] %v3508_v9  ;;  %v3517_v14 = vpack.c.bf16 %v3067_v57, %v3066_v37  ;;  %v2969_v49 = vmax.f32 %v4521_v3, %v2863_v45  ;;  %v2865_v62 = vpop.f32.mrb[66].mxu1  ;;  %v3014_v4 = vadd.f32 %v4506_v58, %v2966_v56  ;;  %v2984_v46 = vmax.f32 %v4494_v16, %v2822_v41  ;;  %v2824_v59 = vpop.f32.mrb[67].mxu0 }
 0x173   : > { %v3016_v5 = vadd.f32 %v4506_v58, %v2968_v27  ;;  %v2986_v18 = vmax.f32 %v4531_v63, %v2865_v62  ;;  %v2867_v21 = vpop.f32.mrb[67].mxu1  ;;  %3196 = vst [vmem:[%s4582_s24 + $0x60] sm:$0xff] %v3516_v35  ;;  %v3015_v43 = vadd.f32 %v4506_v58, %v2967_v32  ;;  %v2985_v3 = vmax.f32 %v4504_v19, %v2824_v59 }
 0x174   : > { %3197 = vst [vmem:[%s4582_s24 + $0x68] sm:$0xff] %v3517_v14  ;;  %v3017_v15 = vadd.f32 %v4506_v58, %v2969_v49  ;;  %v2987_v36 = vmax.f32 %v4541_v23, %v2867_v21  ;;  %v3050_v48 = vmax.f32 %v3014_v4, 0.0  ;;  %v3032_v61 = vadd.f32 %v4548_v20, %v2984_v46 }
 0x175   : > { %v3052_v25 = vmax.f32 %v3016_v5, 0.0  ;;  %v3034_v16 = vadd.f32 %v4548_v20, %v2986_v18  ;;  %v3051_v13 = vmax.f32 %v3015_v43, 0.0  ;;  %v3033_v6 = vadd.f32 %v4548_v20, %v2985_v3 }
 0x176   : > { %v3053_v63 = vmax.f32 %v3017_v15, 0.0  ;;  %v3035_v28 = vadd.f32 %v4548_v20, %v2987_v36  ;;  %v3068_v51 = vmax.f32 %v3032_v61, 0.0 }
 0x177   : > { %v3070_v50 = vmax.f32 %v3034_v16, 0.0  ;;  %v3509_v29 = vpack.c.bf16 %v3051_v13, %v3050_v48  ;;  %v3069_v34 = vmax.f32 %v3033_v6, 0.0  ;;  %v2904_v52 = vpop.f32.mrb[68].mxu0 }
 0x178   : > { %v3510_v19 = vpack.c.bf16 %v3053_v63, %v3052_v25  ;;  %v3071_v23 = vmax.f32 %v3035_v28, 0.0  ;;  %v2947_v39 = vpop.f32.mrb[68].mxu1  ;;  %v2970_v53 = vmax.f32 %v4516_v40, %v2904_v52  ;;  %v2906_v33 = vpop.f32.mrb[69].mxu0 }
 0x179   : > { %v2972_v38 = vmax.f32 %v4553_v17, %v2947_v39  ;;  %v2949_v44 = vpop.f32.mrb[69].mxu1  ;;  %3189 = vst [vmem:[%s4582_s24 + $0x28] sm:$0xff] %v3509_v29  ;;  %v3518_v12 = vpack.c.bf16 %v3069_v34, %v3068_v51  ;;  %v2971_v2 = vmax.f32 %v4526_v42, %v2906_v33  ;;  %v2908_v8 = vpop.f32.mrb[70].mxu0 }
 0x17a   : > { %3190 = vst [vmem:[%s4582_s24 + $0x30] sm:$0xff] %v3510_v19  ;;  %v3519_v60 = vpack.c.bf16 %v3071_v23, %v3070_v50  ;;  %v2973_v55 = vmax.f32 %v4559_v31, %v2949_v44  ;;  %v2951_v0 = vpop.f32.mrb[70].mxu1  ;;  %v3018_v10 = vadd.f32 %v4506_v58, %v2970_v53  ;;  %v2988_v17 = vmax.f32 %v4536_v54, %v2908_v8  ;;  %v2910_v7 = vpop.f32.mrb[71].mxu0 }
 0x17b   : > { %v3020_v40 = vadd.f32 %v4506_v58, %v2972_v38  ;;  %v2990_v37 = vmax.f32 %v4567_v30, %v2951_v0  ;;  %v2953_v9 = vpop.f32.mrb[71].mxu1  ;;  %3198 = vst [vmem:[%s4582_s24 + $0x70] sm:$0xff] %v3518_v12  ;;  %v3019_v26 = vadd.f32 %v4506_v58, %v2971_v2  ;;  %v2989_v31 = vmax.f32 %v4546_v22, %v2910_v7 }
 0x17c   : > { %3199 = vst [vmem:[%s4582_s24 + $0x78] sm:$0xff] %v3519_v60  ;;  %v3021_v42 = vadd.f32 %v4506_v58, %v2973_v55  ;;  %v2991_v57 = vmax.f32 %v4574_v1, %v2953_v9  ;;  %v3054_v11 = vmax.f32 %v3018_v10, 0.0  ;;  %v3036_v54 = vadd.f32 %v4548_v20, %v2988_v17 }
 0x17d   : > { %v3056_v47 = vmax.f32 %v3020_v40, 0.0  ;;  %v3038_v30 = vadd.f32 %v4548_v20, %v2990_v37  ;;  %v3055_v56 = vmax.f32 %v3019_v26, 0.0  ;;  %v3037_v24 = vadd.f32 %v4548_v20, %v2989_v31 }
 0x17e   : > { %v3057_v27 = vmax.f32 %v3021_v42, 0.0  ;;  %v3039_v58 = vadd.f32 %v4548_v20, %v2991_v57  ;;  %v3072_v45 = vmax.f32 %v3036_v54, 0.0 }
 0x17f   : > { %v3074_v22 = vmax.f32 %v3038_v30, 0.0  ;;  %v3511_v35 = vpack.c.bf16 %v3055_v56, %v3054_v11  ;;  %v3073_v1 = vmax.f32 %v3037_v24, 0.0 }
 0x180   : > { %v3512_v14 = vpack.c.bf16 %v3057_v27, %v3056_v47  ;;  %v3075_v32 = vmax.f32 %v3039_v58, 0.0 }
 0x181   : > { %3191 = vst [vmem:[%s4582_s24 + $0x38] sm:$0xff] %v3511_v35  ;;  %v3520_v49 = vpack.c.bf16 %v3073_v1, %v3072_v45 }
 0x182   : > { %3192 = vst [vmem:[%s4582_s24 + $0x40] sm:$0xff] %v3512_v14  ;;  %v3521_v41 = vpack.c.bf16 %v3075_v32, %v3074_v22 }
 0x183   : > { %3200 = vst [vmem:[%s4582_s24 + $0x80] sm:$0xff] %v3520_v49 }
 0x184   : > { %3201 = vst [vmem:[%s4582_s24 + $0x88] sm:$0xff] %v3521_v41 }
 0x185 PF: > { %s16_s21 = sadd.s32 1, %s3759_s21  }
 0x186   : > { %p13_p4 = scmp.ge.s32.totalorder %s16_s21, 4  }
 0x188   :  { %15 = sbr.rel (!%p13_p4) target bundleno = 1 (0x1), region = 83 }

// kernel: simple_cnn_forward.4
= control target key start
LH: loop header
LB: loop body
LE: loop exit
PB: predicated region body
PF: predicated region fallthrough
CT: control target
= control target key end

     0   :  { %s2968_s21 = smov 0   ;;  %s3504_s0 = inlined_call_operand.vmem [shape: bf16[2,144,529], index: 0, kind: input, shape index: {}]   ;;  %s3505_s1 = inlined_call_operand.vmem [shape: bf16[2,144,529], index: 1, kind: input, shape index: {}]   ;;  %s3506_s2 = inlined_call_operand.vmem [shape: bf16[2,144,529], index: 2, kind: input, shape index: {}]   ;;  %s3507_s3 = inlined_call_operand.vmem [shape: bf16[2,144,529], index: 3, kind: input, shape index: {}]   ;;  %s3508_s4 = inlined_call_operand.vmem [shape: bf16[32,144], index: 4, kind: input, shape index: {}]   ;;  %s3509_s5 = inlined_call_operand.vmem [shape: f32[32,1], index: 5, kind: input, shape index: {}]   ;;  %s3510_s6 = inlined_call_operand.vmem [shape: bf16[2,32,529], index: 6, kind: output, shape index: {}]  }
   0x1 LB: > { %s2406_s22 = sadd.s32 4294967295, %s2930_s21   ;;  %p2410_p0 = scmp.ge.s32.totalorder %s2930_s21, 1  ;;  %s2930_s21 = sphi %s2968_s21, %s16_s21  }
   0x2   : > { %p242_p1 = scmp.lt.s32.totalorder %s2930_s21, 3 }
   0x4   : > { %p243_p2 = pnand %p2410_p0, %p242_p1 }
   0x5   : > { %p287_p3 = scmp.lt.s32.totalorder (!%p243_p2), %s2406_s22, 1  ;;  %v2979_v0 = vld [vmem:[%s3508_s4 + $0x4] ss:$8 sps:$4 sm:$0xff] (!%p243_p2)   ;;  %vm623_vm0 = vcmask (!%p243_p2), 130048   ;;  %v2932_v1 = vmov (!%p243_p2), 0   ;;  %vm2304_vm1 = vcmask (!%p243_p2), 134144  }
   0x6   : > { %246 = sbr.rel (%p243_p2) target bundleno = 466 (0x1d2), region = 44  ;;  %2465 = vmatprep.mubr.msk.bf16.mxu0 (!%p243_p2), %vm623_vm0, %v2979_v0  ;;  %2467 = vmatprep.mubr.msk.bf16.mxu1 (!%p243_p2), %vm623_vm0, %v2979_v0  ;;  %v3044_v39 = vld [vmem:[%s3508_s4] ss:$8 sps:$4 sm:$0xff] (!%p243_p2)   ;;  %v3053_v43 = vld [vmem:[%s3508_s4 + $0x14] ss:$8 sps:$4 sm:$0xff] (!%p243_p2)  }
   0x7   : > { %2661 = vset.pattern.permute.xlu0 (!%p243_p2), %v2932_v1  ;;  %2662 = vset.pattern.permute.xlu1 (!%p243_p2), %v2932_v1  ;;  %v3069_v48 = vld [vmem:[%s3508_s4 + $0x10] ss:$8 sps:$4 sm:$0xff] (!%p243_p2)  }
   0xd   : > { %s3512_s22 = smov (!%p287_p3, %s2406_s22), 1 }
   0xe   : > { %s2990_s25 = smul.u32 360, %s3512_s22 }
   0xf   : > { %s2651_s12 = smul.u32 80, %s3512_s22 }
  0x10   : > { %s2996_s28 = scalar_lea.vmem %s3504_s0, %s2990_s25  ;;  %s3030_s7 = scalar_lea.vmem %s3505_s1, %s2990_s25 }
  0x11   : > { %v2663_v2 = vld [vmem:[%s2996_s28 + $0x4] ss:$20 sps:$4 sm:$0xff]   ;;  %v2665_v3 = vld [vmem:[%s2996_s28 + $0xc] ss:$20 sps:$4 sm:$0xff]   ;;  %v2668_v5 = vld [vmem:[%s2996_s28 + $0x8] ss:$20 sps:$4 sm:$0xff]   ;;  %s3104_s16 = scalar_lea.vmem %s3506_s2, %s2990_s25  ;;  %s3146_s19 = scalar_lea.vmem %s3507_s3, %s2990_s25 }
  0x12   : > { %630 = vmatprep.subr.bf16.mxu0 %v2663_v2  ;;  %v2667_v4 = vld [vmem:[%s2996_s28] ss:$20 sps:$4 sm:$0xff]   ;;  %683 = vmatprep.subr.bf16.mxu1 %v2665_v3  ;;  %v2673_v8 = vld [vmem:[%s2996_s28 + $0x28] ss:$20 sps:$4 sm:$0xff]   ;;  %v2674_v9 = vld [vmem:[%s2996_s28 + $0x30] ss:$20 sps:$4 sm:$0xff]   ;;  %s3443_s22 = scalar_lea.vmem %s3510_s6, %s2651_s12 }
  0x13   : > { %v2669_v6 = vld [vmem:[%s2996_s28 + $0x2c] ss:$20 sps:$4 sm:$0xff]   ;;  %631 = vmatpush1.bf16.msra.mxu0 %v2667_v4  ;;  %684 = vmatpush1.bf16.msra.mxu1 %v2668_v5  ;;  %v2671_v7 = vld [vmem:[%s2996_s28 + $0x34] ss:$20 sps:$4 sm:$0xff]   ;;  %v2677_v11 = vld [vmem:[%s2996_s28 + $0x5c] ss:$20 sps:$4 sm:$0xff]  }
  0x14   : > { %632 = vmatprep.subr.bf16.mxu0 %v2669_v6  ;;  %685 = vmatprep.subr.bf16.mxu1 %v2671_v7  ;;  %v2675_v10 = vld [vmem:[%s2996_s28 + $0x54] ss:$20 sps:$4 sm:$0xff]   ;;  %v2679_v12 = vld [vmem:[%s2996_s28 + $0x50] ss:$20 sps:$4 sm:$0xff]   ;;  %v2680_v13 = vld [vmem:[%s2996_s28 + $0x58] ss:$20 sps:$4 sm:$0xff]  }
  0x15   : > { %v2681_v14 = vld [vmem:[%s2996_s28 + $0x7c] ss:$20 sps:$4 sm:$0xff]   ;;  %v2683_v15 = vld [vmem:[%s2996_s28 + $0x84] ss:$20 sps:$4 sm:$0xff]   ;;  %v2686_v17 = vld [vmem:[%s2996_s28 + $0x80] ss:$20 sps:$4 sm:$0xff]  }
  0x16   : > { %v2685_v16 = vld [vmem:[%s2996_s28 + $0x78] ss:$20 sps:$4 sm:$0xff]   ;;  %v2691_v20 = vld [vmem:[%s2996_s28 + $0xa0] ss:$20 sps:$4 sm:$0xff]   ;;  %v2692_v21 = vld [vmem:[%s2996_s28 + $0xa8] ss:$20 sps:$4 sm:$0xff]  }
  0x17   : > { %633 = vmatpush1.bf16.msra.mxu0 %v2673_v8  ;;  %686 = vmatpush1.bf16.msra.mxu1 %v2674_v9  ;;  %v2687_v18 = vld [vmem:[%s2996_s28 + $0xa4] ss:$20 sps:$4 sm:$0xff]   ;;  %v2689_v19 = vld [vmem:[%s2996_s28 + $0xac] ss:$20 sps:$4 sm:$0xff]   ;;  %v2695_v23 = vld [vmem:[%s2996_s28 + $0xd4] ss:$20 sps:$4 sm:$0xff]  }
  0x18   : > { %634 = vmatprep.subr.bf16.mxu0 %v2675_v10  ;;  %687 = vmatprep.subr.bf16.mxu1 %v2677_v11  ;;  %v2693_v22 = vld [vmem:[%s2996_s28 + $0xcc] ss:$20 sps:$4 sm:$0xff]   ;;  %v2697_v24 = vld [vmem:[%s2996_s28 + $0xc8] ss:$20 sps:$4 sm:$0xff]   ;;  %v2698_v25 = vld [vmem:[%s2996_s28 + $0xd0] ss:$20 sps:$4 sm:$0xff]  }
  0x19   : > { %v2699_v26 = vld [vmem:[%s2996_s28 + $0xf4] ss:$20 sps:$4 sm:$0xff]   ;;  %v2701_v27 = vld [vmem:[%s2996_s28 + $0xfc] ss:$20 sps:$4 sm:$0xff]   ;;  %v2704_v29 = vld [vmem:[%s2996_s28 + $0xf8] ss:$20 sps:$4 sm:$0xff]  }
  0x1a   : > { %v2703_v28 = vld [vmem:[%s2996_s28 + $0xf0] ss:$20 sps:$4 sm:$0xff]   ;;  %v2709_v32 = vld [vmem:[%s2996_s28 + $0x118] ss:$20 sps:$4 sm:$0xff]   ;;  %v2710_v33 = vld [vmem:[%s2996_s28 + $0x120] ss:$20 sps:$4 sm:$0xff]  }
  0x1b   : > { %635 = vmatpush1.bf16.msra.mxu0 %v2679_v12  ;;  %688 = vmatpush1.bf16.msra.mxu1 %v2680_v13  ;;  %v2705_v30 = vld [vmem:[%s2996_s28 + $0x11c] ss:$20 sps:$4 sm:$0xff]   ;;  %v2707_v31 = vld [vmem:[%s2996_s28 + $0x124] ss:$20 sps:$4 sm:$0xff]   ;;  %v2713_v35 = vld [vmem:[%s2996_s28 + $0x14c] ss:$20 sps:$4 sm:$0xff]  }
  0x1c   : > { %636 = vmatprep.subr.bf16.mxu0 %v2681_v14  ;;  %689 = vmatprep.subr.bf16.mxu1 %v2683_v15  ;;  %v2711_v34 = vld [vmem:[%s2996_s28 + $0x144] ss:$20 sps:$4 sm:$0xff]   ;;  %v2715_v36 = vld [vmem:[%s2996_s28 + $0x140] ss:$20 sps:$4 sm:$0xff]   ;;  %v2716_v37 = vld [vmem:[%s2996_s28 + $0x148] ss:$20 sps:$4 sm:$0xff]  }
  0x1d   : > { %v2722_v38 = vld [vmem:[%s3030_s7 + $0x4] ss:$20 sps:$4 sm:$0xff]   ;;  %v2720_v40 = vld [vmem:[%s3030_s7] ss:$20 sps:$4 sm:$0xff]   ;;  %v2724_v44 = vld [vmem:[%s3030_s7 + $0x28] ss:$20 sps:$4 sm:$0xff]  }
  0x1e   : > { %v2723_v41 = vld [vmem:[%s2996_s28 + $0x10] ss:$20 sps:$4 sm:$0xff]   ;;  %v2726_v42 = vld [vmem:[%s3030_s7 + $0x2c] ss:$20 sps:$4 sm:$0xff]   ;;  %v2730_v46 = vld [vmem:[%s3030_s7 + $0x54] ss:$20 sps:$4 sm:$0xff]  }
  0x1f   : > { %637 = vmatpush1.bf16.msra.mxu0 %v2685_v16  ;;  %690 = vmatpush1.bf16.msra.mxu1 %v2686_v17  ;;  %v2727_v45 = vld [vmem:[%s2996_s28 + $0x38] ss:$20 sps:$4 sm:$0xff]   ;;  %v2728_v47 = vld [vmem:[%s3030_s7 + $0x50] ss:$20 sps:$4 sm:$0xff]   ;;  %v2731_v49 = vld [vmem:[%s2996_s28 + $0x60] ss:$20 sps:$4 sm:$0xff]  }
  0x20   : > { %638 = vmatprep.subr.bf16.mxu0 %v2687_v18  ;;  %691 = vmatprep.subr.bf16.mxu1 %v2689_v19  ;;  %v2734_v50 = vld [vmem:[%s3030_s7 + $0x7c] ss:$20 sps:$4 sm:$0xff]   ;;  %v2732_v51 = vld [vmem:[%s3030_s7 + $0x78] ss:$20 sps:$4 sm:$0xff]   ;;  %v2736_v54 = vld [vmem:[%s3030_s7 + $0xa0] ss:$20 sps:$4 sm:$0xff]  }
  0x21   : > { %v2735_v52 = vld [vmem:[%s2996_s28 + $0x88] ss:$20 sps:$4 sm:$0xff]   ;;  %v2738_v53 = vld [vmem:[%s3030_s7 + $0xa4] ss:$20 sps:$4 sm:$0xff]   ;;  %v2742_v56 = vld [vmem:[%s3030_s7 + $0xcc] ss:$20 sps:$4 sm:$0xff]  }
  0x22   : > { %v2739_v55 = vld [vmem:[%s2996_s28 + $0xb0] ss:$20 sps:$4 sm:$0xff]   ;;  %v2740_v57 = vld [vmem:[%s3030_s7 + $0xc8] ss:$20 sps:$4 sm:$0xff]   ;;  %v2743_v58 = vld [vmem:[%s2996_s28 + $0xd8] ss:$20 sps:$4 sm:$0xff]  }
  0x23   : > { %639 = vmatpush1.bf16.msra.mxu0 %v2691_v20  ;;  %692 = vmatpush1.bf16.msra.mxu1 %v2692_v21  ;;  %v2746_v59 = vld [vmem:[%s3030_s7 + $0xf4] ss:$20 sps:$4 sm:$0xff]   ;;  %v2744_v60 = vld [vmem:[%s3030_s7 + $0xf0] ss:$20 sps:$4 sm:$0xff]   ;;  %v2751_v63 = vld [vmem:[%s3030_s7 + $0x118] ss:$20 sps:$4 sm:$0xff]  }
  0x24   : > { %640 = vmatprep.subr.bf16.mxu0 %v2693_v22  ;;  %693 = vmatprep.subr.bf16.mxu1 %v2695_v23  ;;  %v2749_v61 = vld [vmem:[%s2996_s28 + $0x100] ss:$20 sps:$4 sm:$0xff]   ;;  %v2753_v62 = vld [vmem:[%s3030_s7 + $0x11c] ss:$20 sps:$4 sm:$0xff]   ;;  %v2757_v3 = vld [vmem:[%s3030_s7 + $0x144] ss:$20 sps:$4 sm:$0xff]  }
  0x25   : > { %v2754_v2 = vld [vmem:[%s2996_s28 + $0x128] ss:$20 sps:$4 sm:$0xff]   ;;  %v2755_v4 = vld [vmem:[%s3030_s7 + $0x140] ss:$20 sps:$4 sm:$0xff]   ;;  %v2758_v5 = vld [vmem:[%s2996_s28 + $0x150] ss:$20 sps:$4 sm:$0xff]  }
  0x26   : > { %v2761_v6 = vld [vmem:[%s3030_s7 + $0xc] ss:$20 sps:$4 sm:$0xff]   ;;  %v2759_v7 = vld [vmem:[%s3030_s7 + $0x8] ss:$20 sps:$4 sm:$0xff]   ;;  %v2762_v8 = vld [vmem:[%s3030_s7 + $0x10] ss:$20 sps:$4 sm:$0xff]  }
  0x27   : > { %641 = vmatpush1.bf16.msra.mxu0 %v2697_v24  ;;  %694 = vmatpush1.bf16.msra.mxu1 %v2698_v25  ;;  %v2765_v9 = vld [vmem:[%s3030_s7 + $0x34] ss:$20 sps:$4 sm:$0xff]   ;;  %v2763_v10 = vld [vmem:[%s3030_s7 + $0x30] ss:$20 sps:$4 sm:$0xff]   ;;  %v2766_v11 = vld [vmem:[%s3030_s7 + $0x38] ss:$20 sps:$4 sm:$0xff]  }
  0x28   : > { %642 = vmatprep.subr.bf16.mxu0 %v2699_v26  ;;  %695 = vmatprep.subr.bf16.mxu1 %v2701_v27  ;;  %v2769_v12 = vld [vmem:[%s3030_s7 + $0x5c] ss:$20 sps:$4 sm:$0xff]   ;;  %v2767_v13 = vld [vmem:[%s3030_s7 + $0x58] ss:$20 sps:$4 sm:$0xff]   ;;  %v2770_v14 = vld [vmem:[%s3030_s7 + $0x60] ss:$20 sps:$4 sm:$0xff]  }
  0x29   : > { %v2773_v15 = vld [vmem:[%s3030_s7 + $0x84] ss:$20 sps:$4 sm:$0xff]   ;;  %v2771_v16 = vld [vmem:[%s3030_s7 + $0x80] ss:$20 sps:$4 sm:$0xff]   ;;  %v2774_v17 = vld [vmem:[%s3030_s7 + $0x88] ss:$20 sps:$4 sm:$0xff]  }
  0x2a   : > { %v2777_v18 = vld [vmem:[%s3030_s7 + $0xac] ss:$20 sps:$4 sm:$0xff]   ;;  %v2775_v19 = vld [vmem:[%s3030_s7 + $0xa8] ss:$20 sps:$4 sm:$0xff]   ;;  %v2778_v20 = vld [vmem:[%s3030_s7 + $0xb0] ss:$20 sps:$4 sm:$0xff]  }
  0x2b   : > { %643 = vmatpush1.bf16.msra.mxu0 %v2703_v28  ;;  %696 = vmatpush1.bf16.msra.mxu1 %v2704_v29  ;;  %v2781_v21 = vld [vmem:[%s3030_s7 + $0xd4] ss:$20 sps:$4 sm:$0xff]   ;;  %v2779_v22 = vld [vmem:[%s3030_s7 + $0xd0] ss:$20 sps:$4 sm:$0xff]   ;;  %v2782_v23 = vld [vmem:[%s3030_s7 + $0xd8] ss:$20 sps:$4 sm:$0xff]  }
  0x2c   : > { %644 = vmatprep.subr.bf16.mxu0 %v2705_v30  ;;  %697 = vmatprep.subr.bf16.mxu1 %v2707_v31  ;;  %v2785_v24 = vld [vmem:[%s3030_s7 + $0xfc] ss:$20 sps:$4 sm:$0xff]   ;;  %v2783_v25 = vld [vmem:[%s3030_s7 + $0xf8] ss:$20 sps:$4 sm:$0xff]   ;;  %v2786_v26 = vld [vmem:[%s3030_s7 + $0x100] ss:$20 sps:$4 sm:$0xff]  }
  0x2d   : > { %v2789_v27 = vld [vmem:[%s3030_s7 + $0x124] ss:$20 sps:$4 sm:$0xff]   ;;  %v2787_v28 = vld [vmem:[%s3030_s7 + $0x120] ss:$20 sps:$4 sm:$0xff]   ;;  %v2790_v29 = vld [vmem:[%s3030_s7 + $0x128] ss:$20 sps:$4 sm:$0xff]  }
  0x2e   : > { %v2793_v30 = vld [vmem:[%s3030_s7 + $0x14c] ss:$20 sps:$4 sm:$0xff]   ;;  %v2791_v31 = vld [vmem:[%s3030_s7 + $0x148] ss:$20 sps:$4 sm:$0xff]  }
  0x2f   : > { %645 = vmatpush1.bf16.msra.mxu0 %v2709_v32  ;;  %698 = vmatpush1.bf16.msra.mxu1 %v2710_v33  ;;  %v2794_v32 = vld [vmem:[%s3030_s7 + $0x150] ss:$20 sps:$4 sm:$0xff]  }
  0x30   : > { %646 = vmatprep.subr.bf16.mxu0 %v2711_v34  ;;  %699 = vmatprep.subr.bf16.mxu1 %v2713_v35  ;;  %v2797_v33 = vld [vmem:[%s3104_s16 + $0x4] ss:$20 sps:$4 sm:$0xff]   ;;  %v2800_v34 = vld [vmem:[%s3104_s16 + $0xc] ss:$20 sps:$4 sm:$0xff]  }
  0x31   : > { %v2795_v35 = vld [vmem:[%s3104_s16] ss:$20 sps:$4 sm:$0xff]  }
  0x33   : > { %647 = vmatpush1.bf16.msra.mxu0 %v2715_v36  ;;  %700 = vmatpush1.bf16.msra.mxu1 %v2716_v37  ;;  %v2798_v36 = vld [vmem:[%s3104_s16 + $0x8] ss:$20 sps:$4 sm:$0xff]   ;;  %v2803_v37 = vld [vmem:[%s3104_s16 + $0x2c] ss:$20 sps:$4 sm:$0xff]  }
  0x34   : > { %736 = vmatprep.subr.bf16.mxu0 %v2932_v1  ;;  %1073 = vmatprep.subr.bf16.mxu1 %v2722_v38  ;;  %v2806_v38 = vld [vmem:[%s3104_s16 + $0x34] ss:$20 sps:$4 sm:$0xff]  }
  0x36   : > { %663 = vmatmul.mubr.bf16.vlgmr.msra.gmra.mrb[0].mxu0 %v3044_v39  ;;  %716 = vmatmul.mubr.bf16.vlgmr.msra.gmra.mrb[0].mxu1 %v3044_v39 }
  0x37   : > { %737 = vmatpush1.bf16.msra.mxu0 %v2723_v41  ;;  %1074 = vmatpush1.bf16.msra.mxu1 %v2720_v40  ;;  %v2801_v40 = vld [vmem:[%s3104_s16 + $0x28] ss:$20 sps:$4 sm:$0xff]   ;;  %v2804_v41 = vld [vmem:[%s3104_s16 + $0x30] ss:$20 sps:$4 sm:$0xff]  }
  0x38   : > { %738 = vmatprep.subr.bf16.mxu0 %v2932_v1  ;;  %1075 = vmatprep.subr.bf16.mxu1 %v2726_v42  ;;  %v2809_v42 = vld [vmem:[%s3104_s16 + $0x54] ss:$20 sps:$4 sm:$0xff]  }
  0x39   : > { %2466 = vmatprep.mubr.msk.bf16.mxu0 %vm623_vm0, %v3053_v43  ;;  %2468 = vmatprep.mubr.msk.bf16.mxu1 %vm623_vm0, %v3053_v43 }
  0x3b   : > { %739 = vmatpush1.bf16.msra.mxu0 %v2727_v45  ;;  %1076 = vmatpush1.bf16.msra.mxu1 %v2724_v44  ;;  %v2812_v44 = vld [vmem:[%s3104_s16 + $0x5c] ss:$20 sps:$4 sm:$0xff]  }
  0x3c   : > { %740 = vmatprep.subr.bf16.mxu0 %v2932_v1  ;;  %1077 = vmatprep.subr.bf16.mxu1 %v2730_v46  ;;  %v2807_v45 = vld [vmem:[%s3104_s16 + $0x50] ss:$20 sps:$4 sm:$0xff]   ;;  %v2810_v46 = vld [vmem:[%s3104_s16 + $0x58] ss:$20 sps:$4 sm:$0xff]  }
  0x3e   : > { %673 = vmatmul.mubr.bf16.gmra.mrb[4].mxu0 %v3069_v48  ;;  %726 = vmatmul.mubr.bf16.gmra.mrb[4].mxu1 %v3069_v48 }
  0x3f   : > { %741 = vmatpush1.bf16.msra.mxu0 %v2731_v49  ;;  %1078 = vmatpush1.bf16.msra.mxu1 %v2728_v47  ;;  %v2815_v47 = vld [vmem:[%s3104_s16 + $0x7c] ss:$20 sps:$4 sm:$0xff]   ;;  %v2818_v49 = vld [vmem:[%s3104_s16 + $0x84] ss:$20 sps:$4 sm:$0xff]  }
  0x40   : > { %742 = vmatprep.subr.bf16.mxu0 %v2932_v1  ;;  %1079 = vmatprep.subr.bf16.mxu1 %v2734_v50  ;;  %v2813_v50 = vld [vmem:[%s3104_s16 + $0x78] ss:$20 sps:$4 sm:$0xff]  }
  0x41   : > { %2469 = vmatprep.mubr.msk.bf16.mxu0 %vm623_vm0, %v2979_v0  ;;  %2516 = vmatprep.mubr.msk.bf16.mxu1 %vm623_vm0, %v2979_v0 }
  0x43   : > { %743 = vmatpush1.bf16.msra.mxu0 %v2735_v52  ;;  %1080 = vmatpush1.bf16.msra.mxu1 %v2732_v51  ;;  %v2816_v51 = vld [vmem:[%s3104_s16 + $0x80] ss:$20 sps:$4 sm:$0xff]   ;;  %v2821_v52 = vld [vmem:[%s3104_s16 + $0xa4] ss:$20 sps:$4 sm:$0xff]  }
  0x44   : > { %744 = vmatprep.subr.bf16.mxu0 %v2932_v1  ;;  %1081 = vmatprep.subr.bf16.mxu1 %v2738_v53  ;;  %v2824_v53 = vld [vmem:[%s3104_s16 + $0xac] ss:$20 sps:$4 sm:$0xff]  }
  0x47   : > { %745 = vmatpush1.bf16.msra.mxu0 %v2739_v55  ;;  %1082 = vmatpush1.bf16.msra.mxu1 %v2736_v54  ;;  %v2819_v54 = vld [vmem:[%s3104_s16 + $0xa0] ss:$20 sps:$4 sm:$0xff]   ;;  %v2822_v55 = vld [vmem:[%s3104_s16 + $0xa8] ss:$20 sps:$4 sm:$0xff]  }
  0x48   : > { %746 = vmatprep.subr.bf16.mxu0 %v2932_v1  ;;  %1083 = vmatprep.subr.bf16.mxu1 %v2742_v56  ;;  %v2827_v56 = vld [vmem:[%s3104_s16 + $0xcc] ss:$20 sps:$4 sm:$0xff]  }
  0x4b   : > { %747 = vmatpush1.bf16.msra.mxu0 %v2743_v58  ;;  %1084 = vmatpush1.bf16.msra.mxu1 %v2740_v57  ;;  %v2830_v57 = vld [vmem:[%s3104_s16 + $0xd4] ss:$20 sps:$4 sm:$0xff]  }
  0x4c   : > { %748 = vmatprep.subr.bf16.mxu0 %v2932_v1  ;;  %1085 = vmatprep.subr.bf16.mxu1 %v2746_v59  ;;  %v2825_v58 = vld [vmem:[%s3104_s16 + $0xc8] ss:$20 sps:$4 sm:$0xff]   ;;  %v2828_v59 = vld [vmem:[%s3104_s16 + $0xd0] ss:$20 sps:$4 sm:$0xff]  }
  0x4f   : > { %749 = vmatpush1.bf16.msra.mxu0 %v2749_v61  ;;  %1086 = vmatpush1.bf16.msra.mxu1 %v2744_v60  ;;  %v2833_v60 = vld [vmem:[%s3104_s16 + $0xf4] ss:$20 sps:$4 sm:$0xff]   ;;  %v2831_v61 = vld [vmem:[%s3104_s16 + $0xf0] ss:$20 sps:$4 sm:$0xff]  }
  0x50   : > { %750 = vmatprep.subr.bf16.mxu0 %v2932_v1  ;;  %1087 = vmatprep.subr.bf16.mxu1 %v2753_v62  ;;  %v2834_v62 = vld [vmem:[%s3104_s16 + $0xf8] ss:$20 sps:$4 sm:$0xff]  }
  0x53   : > { %751 = vmatpush1.bf16.msra.mxu0 %v2754_v2  ;;  %1088 = vmatpush1.bf16.msra.mxu1 %v2751_v63  ;;  %v2174_v63 = vld [vmem:[%s3509_s5] sm:$0xff]  ;;  %v2176_v2 = vld [vmem:[%s3509_s5 + $0x10] sm:$0xff] }
  0x54   : > { %752 = vmatprep.subr.bf16.mxu0 %v2932_v1  ;;  %1089 = vmatprep.subr.bf16.mxu1 %v2757_v3  ;;  %v2839_v3 = vld [vmem:[%s3104_s16 + $0x11c] ss:$20 sps:$4 sm:$0xff]  }
  0x55   : > { %2180 = vperm.xlu0 %2661, %v2174_v63   ;;  %2190 = vperm.xlu1 %2662, %v2176_v2   ;;  %v2913_v63 = vld [vmem:[%s3146_s19 + $0x120] ss:$20 sps:$4 sm:$0xff]   ;;  %v2916_v2 = vld [vmem:[%s3146_s19 + $0x128] ss:$20 sps:$4 sm:$0xff]  }
  0x57   : > { %753 = vmatpush1.bf16.msra.mxu0 %v2758_v5  ;;  %1090 = vmatpush1.bf16.msra.mxu1 %v2755_v4  ;;  %v2842_v4 = vld [vmem:[%s3104_s16 + $0x124] ss:$20 sps:$4 sm:$0xff]   ;;  %v2175_v5 = vld [vmem:[%s3509_s5 + $0x8] sm:$0xff] }
  0x58   : > { %1126 = vmatprep.subr.bf16.mxu0 %v2761_v6  ;;  %1179 = vmatprep.subr.bf16.mxu1 %v2932_v1  ;;  %v2177_v6 = vld [vmem:[%s3509_s5 + $0x18] sm:$0xff] }
  0x59   : > { %2185 = vperm.xlu0 %2661, %v2175_v5   ;;  %2195 = vperm.xlu1 %2662, %v2177_v6   ;;  %v2920_v5 = vld [vmem:[%s3146_s19 + $0x150] ss:$20 sps:$4 sm:$0xff]   ;;  %v2922_v6 = vld [vmem:[%s3508_s4] ss:$8 sps:$4 sm:$0xff]  }
  0x5a   : > { %769 = vmatmul.mubr.bf16.vlgmr.msra.gmra.mrb[8].mxu0 %v3044_v39  ;;  %1106 = vmatmul.mubr.bf16.vlgmr.msra.gmra.mrb[8].mxu1 %v3044_v39 }
  0x5b   : > { %1127 = vmatpush1.bf16.msra.mxu0 %v2759_v7  ;;  %1180 = vmatpush1.bf16.msra.mxu1 %v2762_v8  ;;  %v2837_v7 = vld [vmem:[%s3104_s16 + $0x118] ss:$20 sps:$4 sm:$0xff]   ;;  %v2840_v8 = vld [vmem:[%s3104_s16 + $0x120] ss:$20 sps:$4 sm:$0xff]  }
  0x5c   : > { %1128 = vmatprep.subr.bf16.mxu0 %v2765_v9  ;;  %1181 = vmatprep.subr.bf16.mxu1 %v2932_v1  ;;  %v2845_v9 = vld [vmem:[%s3104_s16 + $0x144] ss:$20 sps:$4 sm:$0xff]  }
  0x5d   : > { %2517 = vmatprep.mubr.msk.bf16.mxu1 %vm623_vm0, %v3053_v43  ;;  %2470 = vmatprep.mubr.msk.bf16.mxu0 %vm623_vm0, %v3053_v43 }
  0x5f   : > { %1129 = vmatpush1.bf16.msra.mxu0 %v2763_v10  ;;  %1182 = vmatpush1.bf16.msra.mxu1 %v2766_v11  ;;  %v2848_v10 = vld [vmem:[%s3104_s16 + $0x14c] ss:$20 sps:$4 sm:$0xff]  }
  0x60   : > { %1130 = vmatprep.subr.bf16.mxu0 %v2769_v12  ;;  %1183 = vmatprep.subr.bf16.mxu1 %v2932_v1  ;;  %v2843_v11 = vld [vmem:[%s3104_s16 + $0x140] ss:$20 sps:$4 sm:$0xff]   ;;  %v2846_v12 = vld [vmem:[%s3104_s16 + $0x148] ss:$20 sps:$4 sm:$0xff]  }
  0x62   : > { %1116 = vmatmul.mubr.bf16.gmra.mrb[12].mxu1 %v3069_v48  ;;  %777 = vmatmul.mubr.bf16.gmra.mrb[12].mxu0 %v3069_v48 }
  0x63   : > { %1131 = vmatpush1.bf16.msra.mxu0 %v2767_v13  ;;  %1184 = vmatpush1.bf16.msra.mxu1 %v2770_v14  ;;  %v2851_v13 = vld [vmem:[%s3146_s19 + $0x4] ss:$20 sps:$4 sm:$0xff]   ;;  %v2849_v14 = vld [vmem:[%s3146_s19] ss:$20 sps:$4 sm:$0xff]  }
  0x64   : > { %1132 = vmatprep.subr.bf16.mxu0 %v2773_v15  ;;  %1185 = vmatprep.subr.bf16.mxu1 %v2932_v1  ;;  %v2852_v15 = vld [vmem:[%s3104_s16 + $0x10] ss:$20 sps:$4 sm:$0xff]  }
  0x65   : > { %2518 = vmatprep.mubr.msk.bf16.mxu0 %vm623_vm0, %v2979_v0  ;;  %2520 = vmatprep.mubr.msk.bf16.mxu1 %vm623_vm0, %v2979_v0 }
  0x67   : > { %1133 = vmatpush1.bf16.msra.mxu0 %v2771_v16  ;;  %1186 = vmatpush1.bf16.msra.mxu1 %v2774_v17  ;;  %v2855_v16 = vld [vmem:[%s3146_s19 + $0x2c] ss:$20 sps:$4 sm:$0xff]   ;;  %v2853_v17 = vld [vmem:[%s3146_s19 + $0x28] ss:$20 sps:$4 sm:$0xff]  }
  0x68   : > { %1134 = vmatprep.subr.bf16.mxu0 %v2777_v18  ;;  %1187 = vmatprep.subr.bf16.mxu1 %v2932_v1  ;;  %v2856_v18 = vld [vmem:[%s3104_s16 + $0x38] ss:$20 sps:$4 sm:$0xff]  }
  0x6b   : > { %1135 = vmatpush1.bf16.msra.mxu0 %v2775_v19  ;;  %1188 = vmatpush1.bf16.msra.mxu1 %v2778_v20  ;;  %v2859_v19 = vld [vmem:[%s3146_s19 + $0x54] ss:$20 sps:$4 sm:$0xff]   ;;  %v2857_v20 = vld [vmem:[%s3146_s19 + $0x50] ss:$20 sps:$4 sm:$0xff]  }
  0x6c   : > { %1136 = vmatprep.subr.bf16.mxu0 %v2781_v21  ;;  %1189 = vmatprep.subr.bf16.mxu1 %v2932_v1  ;;  %v2860_v21 = vld [vmem:[%s3104_s16 + $0x60] ss:$20 sps:$4 sm:$0xff]  }
  0x6f   : > { %1137 = vmatpush1.bf16.msra.mxu0 %v2779_v22  ;;  %1190 = vmatpush1.bf16.msra.mxu1 %v2782_v23  ;;  %v2863_v22 = vld [vmem:[%s3146_s19 + $0x7c] ss:$20 sps:$4 sm:$0xff]   ;;  %v2861_v23 = vld [vmem:[%s3146_s19 + $0x78] ss:$20 sps:$4 sm:$0xff]  }
  0x70   : > { %1138 = vmatprep.subr.bf16.mxu0 %v2785_v24  ;;  %1191 = vmatprep.subr.bf16.mxu1 %v2932_v1  ;;  %v2864_v24 = vld [vmem:[%s3104_s16 + $0x88] ss:$20 sps:$4 sm:$0xff]  }
  0x73   : > { %1139 = vmatpush1.bf16.msra.mxu0 %v2783_v25  ;;  %1192 = vmatpush1.bf16.msra.mxu1 %v2786_v26  ;;  %v2867_v25 = vld [vmem:[%s3146_s19 + $0xa4] ss:$20 sps:$4 sm:$0xff]  }
  0x74   : > { %1140 = vmatprep.subr.bf16.mxu0 %v2789_v27  ;;  %1193 = vmatprep.subr.bf16.mxu1 %v2932_v1  ;;  %v3251_v26 = vld [vmem:[%s3508_s4 + $0x4] ss:$8 sps:$4 sm:$0xff]   ;;  %v2865_v27 = vld [vmem:[%s3146_s19 + $0xa0] ss:$20 sps:$4 sm:$0xff]  }
  0x77   : > { %1141 = vmatpush1.bf16.msra.mxu0 %v2787_v28  ;;  %1194 = vmatpush1.bf16.msra.mxu1 %v2790_v29  ;;  %v2868_v28 = vld [vmem:[%s3104_s16 + $0xb0] ss:$20 sps:$4 sm:$0xff]   ;;  %v2871_v29 = vld [vmem:[%s3146_s19 + $0xcc] ss:$20 sps:$4 sm:$0xff]  }
  0x78   : > { %1142 = vmatprep.subr.bf16.mxu0 %v2793_v30  ;;  %1195 = vmatprep.subr.bf16.mxu1 %v2932_v1  ;;  %v2869_v30 = vld [vmem:[%s3146_s19 + $0xc8] ss:$20 sps:$4 sm:$0xff]  }
  0x7b   : > { %1143 = vmatpush1.bf16.msra.mxu0 %v2791_v31  ;;  %1196 = vmatpush1.bf16.msra.mxu1 %v2794_v32  ;;  %v2872_v31 = vld [vmem:[%s3104_s16 + $0xd8] ss:$20 sps:$4 sm:$0xff]   ;;  %v2875_v32 = vld [vmem:[%s3146_s19 + $0xf4] ss:$20 sps:$4 sm:$0xff]  }
  0x7c   : > { %1536 = vmatprep.subr.bf16.mxu0 %v2797_v33  ;;  %1589 = vmatprep.subr.bf16.mxu1 %v2800_v34  ;;  %v2873_v33 = vld [vmem:[%s3146_s19 + $0xf0] ss:$20 sps:$4 sm:$0xff]   ;;  %v2876_v34 = vld [vmem:[%s3104_s16 + $0x100] ss:$20 sps:$4 sm:$0xff]  }
  0x7e   : > { %1159 = vmatmul.mubr.bf16.vlgmr.msra.gmra.mrb[16].mxu0 %v3044_v39  ;;  %1212 = vmatmul.mubr.bf16.vlgmr.msra.gmra.mrb[16].mxu1 %v3044_v39 }
  0x7f   : > { %1537 = vmatpush1.bf16.msra.mxu0 %v2795_v35  ;;  %1590 = vmatpush1.bf16.msra.mxu1 %v2798_v36  ;;  %v2879_v35 = vld [vmem:[%s3146_s19 + $0x11c] ss:$20 sps:$4 sm:$0xff]   ;;  %v2877_v36 = vld [vmem:[%s3146_s19 + $0x118] ss:$20 sps:$4 sm:$0xff]  }
  0x80   : > { %1538 = vmatprep.subr.bf16.mxu0 %v2803_v37  ;;  %1591 = vmatprep.subr.bf16.mxu1 %v2806_v38  ;;  %v2880_v37 = vld [vmem:[%s3104_s16 + $0x128] ss:$20 sps:$4 sm:$0xff]   ;;  %v2883_v38 = vld [vmem:[%s3146_s19 + $0x144] ss:$20 sps:$4 sm:$0xff]  }
  0x81   : > { %2519 = vmatprep.mubr.msk.bf16.mxu0 %vm623_vm0, %v3053_v43  ;;  %2521 = vmatprep.mubr.msk.bf16.mxu1 %vm623_vm0, %v3053_v43 }
  0x83   : > { %1539 = vmatpush1.bf16.msra.mxu0 %v2801_v40  ;;  %1592 = vmatpush1.bf16.msra.mxu1 %v2804_v41  ;;  %v2881_v40 = vld [vmem:[%s3146_s19 + $0x140] ss:$20 sps:$4 sm:$0xff]   ;;  %v2884_v41 = vld [vmem:[%s3104_s16 + $0x150] ss:$20 sps:$4 sm:$0xff]  }
  0x84   : > { %1540 = vmatprep.subr.bf16.mxu0 %v2809_v42  ;;  %1593 = vmatprep.subr.bf16.mxu1 %v2812_v44  ;;  %v2887_v42 = vld [vmem:[%s3146_s19 + $0xc] ss:$20 sps:$4 sm:$0xff]   ;;  %v2885_v44 = vld [vmem:[%s3146_s19 + $0x8] ss:$20 sps:$4 sm:$0xff]  }
  0x86   : > { %1169 = vmatmul.mubr.bf16.gmra.mrb[20].mxu0 %v3069_v48  ;;  %1220 = vmatmul.mubr.bf16.gmra.mrb[20].mxu1 %v3069_v48 }
  0x87   : > { %1541 = vmatpush1.bf16.msra.mxu0 %v2807_v45  ;;  %1594 = vmatpush1.bf16.msra.mxu1 %v2810_v46  ;;  %v2888_v45 = vld [vmem:[%s3146_s19 + $0x10] ss:$20 sps:$4 sm:$0xff]   ;;  %v2891_v46 = vld [vmem:[%s3146_s19 + $0x34] ss:$20 sps:$4 sm:$0xff]  }
  0x88   : > { %1542 = vmatprep.subr.bf16.mxu0 %v2815_v47  ;;  %1595 = vmatprep.subr.bf16.mxu1 %v2818_v49  ;;  %v2889_v47 = vld [vmem:[%s3146_s19 + $0x30] ss:$20 sps:$4 sm:$0xff]   ;;  %v2892_v49 = vld [vmem:[%s3146_s19 + $0x38] ss:$20 sps:$4 sm:$0xff]  }
  0x89   : > { %2567 = vmatprep.mubr.msk.bf16.mxu0 %vm623_vm0, %v2979_v0  ;;  %2569 = vmatprep.mubr.msk.bf16.mxu1 %vm623_vm0, %v2979_v0  ;;  %v2836_v0 = vld [vmem:[%s3104_s16 + $0xfc] ss:$20 sps:$4 sm:$0xff]  }
  0x8b   : > { %1543 = vmatpush1.bf16.msra.mxu0 %v2813_v50  ;;  %1596 = vmatpush1.bf16.msra.mxu1 %v2816_v51  ;;  %v2895_v50 = vld [vmem:[%s3146_s19 + $0x5c] ss:$20 sps:$4 sm:$0xff]   ;;  %v2896_v51 = vld [vmem:[%s3146_s19 + $0x60] ss:$20 sps:$4 sm:$0xff]  }
  0x8c   : > { %1544 = vmatprep.subr.bf16.mxu0 %v2821_v52  ;;  %1597 = vmatprep.subr.bf16.mxu1 %v2824_v53  ;;  %v2899_v52 = vld [vmem:[%s3146_s19 + $0x84] ss:$20 sps:$4 sm:$0xff]   ;;  %v2897_v53 = vld [vmem:[%s3146_s19 + $0x80] ss:$20 sps:$4 sm:$0xff]  }
  0x8f   : > { %1545 = vmatpush1.bf16.msra.mxu0 %v2819_v54  ;;  %1598 = vmatpush1.bf16.msra.mxu1 %v2822_v55  ;;  %v2903_v54 = vld [vmem:[%s3146_s19 + $0xac] ss:$20 sps:$4 sm:$0xff]   ;;  %v2901_v55 = vld [vmem:[%s3146_s19 + $0xa8] ss:$20 sps:$4 sm:$0xff]  }
  0x90   : > { %1546 = vmatprep.subr.bf16.mxu0 %v2827_v56  ;;  %1599 = vmatprep.subr.bf16.mxu1 %v2830_v57  ;;  %v2904_v56 = vld [vmem:[%s3146_s19 + $0xb0] ss:$20 sps:$4 sm:$0xff]   ;;  %v2907_v57 = vld [vmem:[%s3146_s19 + $0xd4] ss:$20 sps:$4 sm:$0xff]  }
  0x93   : > { %1547 = vmatpush1.bf16.msra.mxu0 %v2825_v58  ;;  %1600 = vmatpush1.bf16.msra.mxu1 %v2828_v59  ;;  %v2905_v58 = vld [vmem:[%s3146_s19 + $0xd0] ss:$20 sps:$4 sm:$0xff]   ;;  %v2908_v59 = vld [vmem:[%s3146_s19 + $0xd8] ss:$20 sps:$4 sm:$0xff]  }
  0x94   : > { %1548 = vmatprep.subr.bf16.mxu0 %v2833_v60  ;;  %1601 = vmatprep.subr.bf16.mxu1 %v2836_v0  ;;  %v2911_v60 = vld [vmem:[%s3146_s19 + $0xfc] ss:$20 sps:$4 sm:$0xff]   ;;  %v2909_v0 = vld [vmem:[%s3146_s19 + $0xf8] ss:$20 sps:$4 sm:$0xff]  }
  0x97   : > { %1549 = vmatpush1.bf16.msra.mxu0 %v2831_v61  ;;  %1602 = vmatpush1.bf16.msra.mxu1 %v2834_v62  ;;  %v2912_v61 = vld [vmem:[%s3146_s19 + $0x100] ss:$20 sps:$4 sm:$0xff]   ;;  %v2915_v62 = vld [vmem:[%s3146_s19 + $0x124] ss:$20 sps:$4 sm:$0xff]  }
  0x98   : > { %1550 = vmatprep.subr.bf16.mxu0 %v2839_v3  ;;  %1603 = vmatprep.subr.bf16.mxu1 %v2842_v4  ;;  %v2919_v3 = vld [vmem:[%s3146_s19 + $0x14c] ss:$20 sps:$4 sm:$0xff]   ;;  %v2917_v4 = vld [vmem:[%s3146_s19 + $0x148] ss:$20 sps:$4 sm:$0xff]  }
  0x9b   : > { %1551 = vmatpush1.bf16.msra.mxu0 %v2837_v7  ;;  %1604 = vmatpush1.bf16.msra.mxu1 %v2840_v8  ;;  %v2923_v7 = vld [vmem:[%s3508_s4 + $0x14] ss:$8 sps:$4 sm:$0xff]  }
  0x9c   : > { %1552 = vmatprep.subr.bf16.mxu0 %v2845_v9  ;;  %1605 = vmatprep.subr.bf16.mxu1 %v2848_v10 }
  0x9f   : > { %1553 = vmatpush1.bf16.msra.mxu0 %v2843_v11  ;;  %1606 = vmatpush1.bf16.msra.mxu1 %v2846_v12 }
  0xa0   : > { %1642 = vmatprep.subr.bf16.mxu0 %v2932_v1  ;;  %1999 = vmatprep.subr.bf16.mxu1 %v2851_v13 }
  0xa2   : > { %1569 = vmatmul.mubr.bf16.vlgmr.msra.gmra.mrb[24].mxu0 %v3044_v39  ;;  %1622 = vmatmul.mubr.bf16.vlgmr.msra.gmra.mrb[24].mxu1 %v3044_v39 }
  0xa3   : > { %1643 = vmatpush1.bf16.msra.mxu0 %v2852_v15  ;;  %2000 = vmatpush1.bf16.msra.mxu1 %v2849_v14 }
  0xa4   : > { %1644 = vmatprep.subr.bf16.mxu0 %v2932_v1  ;;  %2001 = vmatprep.subr.bf16.mxu1 %v2855_v16 }
  0xa5   : > { %2568 = vmatprep.mubr.msk.bf16.mxu0 %vm623_vm0, %v3053_v43  ;;  %2570 = vmatprep.mubr.msk.bf16.mxu1 %vm623_vm0, %v3053_v43 }
  0xa7   : > { %1645 = vmatpush1.bf16.msra.mxu0 %v2856_v18  ;;  %2002 = vmatpush1.bf16.msra.mxu1 %v2853_v17 }
  0xa8   : > { %1646 = vmatprep.subr.bf16.mxu0 %v2932_v1  ;;  %2003 = vmatprep.subr.bf16.mxu1 %v2859_v19 }
  0xaa   : > { %1579 = vmatmul.mubr.bf16.gmra.mrb[28].mxu0 %v3069_v48  ;;  %1632 = vmatmul.mubr.bf16.gmra.mrb[28].mxu1 %v3069_v48 }
  0xab   : > { %1647 = vmatpush1.bf16.msra.mxu0 %v2860_v21  ;;  %2004 = vmatpush1.bf16.msra.mxu1 %v2857_v20 }
  0xac   : > { %1648 = vmatprep.subr.bf16.mxu0 %v2932_v1  ;;  %2005 = vmatprep.subr.bf16.mxu1 %v2863_v22 }
  0xad   : > { %2571 = vmatprep.mubr.msk.bf16.mxu0 %vm623_vm0, %v3251_v26  ;;  %2618 = vmatprep.mubr.msk.bf16.mxu1 %vm623_vm0, %v3251_v26 }
  0xaf   : > { %1649 = vmatpush1.bf16.msra.mxu0 %v2864_v24  ;;  %2006 = vmatpush1.bf16.msra.mxu1 %v2861_v23 }
  0xb0   : > { %1650 = vmatprep.subr.bf16.mxu0 %v2932_v1  ;;  %2007 = vmatprep.subr.bf16.mxu1 %v2867_v25 }
  0xb3   : > { %1651 = vmatpush1.bf16.msra.mxu0 %v2868_v28  ;;  %2008 = vmatpush1.bf16.msra.mxu1 %v2865_v27 }
  0xb4   : > { %1652 = vmatprep.subr.bf16.mxu0 %v2932_v1  ;;  %2009 = vmatprep.subr.bf16.mxu1 %v2871_v29 }
  0xb7   : > { %1653 = vmatpush1.bf16.msra.mxu0 %v2872_v31  ;;  %2010 = vmatpush1.bf16.msra.mxu1 %v2869_v30 }
  0xb8   : > { %1654 = vmatprep.subr.bf16.mxu0 %v2932_v1  ;;  %2011 = vmatprep.subr.bf16.mxu1 %v2875_v32 }
  0xbb   : > { %1655 = vmatpush1.bf16.msra.mxu0 %v2876_v34  ;;  %2012 = vmatpush1.bf16.msra.mxu1 %v2873_v33 }
  0xbc   : > { %1656 = vmatprep.subr.bf16.mxu0 %v2932_v1  ;;  %2013 = vmatprep.subr.bf16.mxu1 %v2879_v35 }
  0xbf   : > { %1657 = vmatpush1.bf16.msra.mxu0 %v2880_v37  ;;  %2014 = vmatpush1.bf16.msra.mxu1 %v2877_v36 }
  0xc0   : > { %1658 = vmatprep.subr.bf16.mxu0 %v2932_v1  ;;  %2015 = vmatprep.subr.bf16.mxu1 %v2883_v38 }
  0xc3   : > { %1659 = vmatpush1.bf16.msra.mxu0 %v2884_v41  ;;  %2016 = vmatpush1.bf16.msra.mxu1 %v2881_v40 }
  0xc4   : > { %2052 = vmatprep.subr.bf16.mxu0 %v2887_v42  ;;  %2105 = vmatprep.subr.bf16.mxu1 %v2932_v1 }
  0xc6   : > { %1675 = vmatmul.mubr.bf16.vlgmr.msra.gmra.mrb[32].mxu0 %v3044_v39  ;;  %2032 = vmatmul.mubr.bf16.vlgmr.msra.gmra.mrb[32].mxu1 %v3044_v39  ;;  %v2893_v39 = vld [vmem:[%s3146_s19 + $0x58] ss:$20 sps:$4 sm:$0xff]  }
  0xc7   : > { %2053 = vmatpush1.bf16.msra.mxu0 %v2885_v44  ;;  %2106 = vmatpush1.bf16.msra.mxu1 %v2888_v45 }
  0xc8   : > { %2054 = vmatprep.subr.bf16.mxu0 %v2891_v46  ;;  %2107 = vmatprep.subr.bf16.mxu1 %v2932_v1 }
  0xc9   : > { %2572 = vmatprep.mubr.msk.bf16.mxu0 %vm623_vm0, %v3053_v43  ;;  %2619 = vmatprep.mubr.msk.bf16.mxu1 %vm623_vm0, %v3053_v43  ;;  %v2900_v43 = vld [vmem:[%s3146_s19 + $0x88] ss:$20 sps:$4 sm:$0xff]  }
  0xcb   : > { %2055 = vmatpush1.bf16.msra.mxu0 %v2889_v47  ;;  %2108 = vmatpush1.bf16.msra.mxu1 %v2892_v49 }
  0xcc   : > { %2056 = vmatprep.subr.bf16.mxu0 %v2895_v50  ;;  %2109 = vmatprep.subr.bf16.mxu1 %v2932_v1 }
  0xce   : > { %1683 = vmatmul.mubr.bf16.gmra.mrb[36].mxu0 %v3069_v48  ;;  %2042 = vmatmul.mubr.bf16.gmra.mrb[36].mxu1 %v3069_v48 }
  0xcf   : > { %2057 = vmatpush1.bf16.msra.mxu0 %v2893_v39  ;;  %2110 = vmatpush1.bf16.msra.mxu1 %v2896_v51 }
  0xd0   : > { %2058 = vmatprep.subr.bf16.mxu0 %v2899_v52  ;;  %2111 = vmatprep.subr.bf16.mxu1 %v2932_v1 }
  0xd1   : > { %2620 = vmatprep.mubr.msk.bf16.mxu0 %vm623_vm0, %v3251_v26  ;;  %2622 = vmatprep.mubr.msk.bf16.mxu1 %vm623_vm0, %v3251_v26 }
  0xd3   : > { %2059 = vmatpush1.bf16.msra.mxu0 %v2897_v53  ;;  %2112 = vmatpush1.bf16.msra.mxu1 %v2900_v43 }
  0xd4   : > { %2060 = vmatprep.subr.bf16.mxu0 %v2903_v54  ;;  %2113 = vmatprep.subr.bf16.mxu1 %v2932_v1 }
  0xd7   : > { %2061 = vmatpush1.bf16.msra.mxu0 %v2901_v55  ;;  %2114 = vmatpush1.bf16.msra.mxu1 %v2904_v56 }
  0xd8   : > { %2062 = vmatprep.subr.bf16.mxu0 %v2907_v57  ;;  %2115 = vmatprep.subr.bf16.mxu1 %v2932_v1 }
  0xdb   : > { %2063 = vmatpush1.bf16.msra.mxu0 %v2905_v58  ;;  %2116 = vmatpush1.bf16.msra.mxu1 %v2908_v59 }
  0xdc   : > { %2064 = vmatprep.subr.bf16.mxu0 %v2911_v60  ;;  %2117 = vmatprep.subr.bf16.mxu1 %v2932_v1 }
  0xdf   : > { %2065 = vmatpush1.bf16.msra.mxu0 %v2909_v0  ;;  %2118 = vmatpush1.bf16.msra.mxu1 %v2912_v61 }
  0xe0   : > { %2066 = vmatprep.subr.bf16.mxu0 %v2915_v62  ;;  %2119 = vmatprep.subr.bf16.mxu1 %v2932_v1 }
  0xe3   : > { %2067 = vmatpush1.bf16.msra.mxu0 %v2913_v63  ;;  %2120 = vmatpush1.bf16.msra.mxu1 %v2916_v2 }
  0xe4   : > { %2068 = vmatprep.subr.bf16.mxu0 %v2919_v3  ;;  %2121 = vmatprep.subr.bf16.mxu1 %v2932_v1 }
  0xe7   : > { %2069 = vmatpush1.bf16.msra.mxu0 %v2917_v4  ;;  %2122 = vmatpush1.bf16.msra.mxu1 %v2920_v5 }
  0xea   : > { %2085 = vmatmul.mubr.bf16.vlgmr.msra.gmra.mrb[40].mxu0 %v2922_v6  ;;  %2138 = vmatmul.mubr.bf16.vlgmr.msra.gmra.mrb[40].mxu1 %v2922_v6 }
  0xeb   : > { %2621 = vmatprep.mubr.msk.bf16.mxu0 %vm623_vm0, %v2923_v7  ;;  %2623 = vmatprep.mubr.msk.bf16.mxu1 %vm623_vm0, %v2923_v7 }
  0xf2   : > { %2095 = vmatmul.mubr.bf16.gmra.mrb[44].mxu0 %v3069_v48  ;;  %2146 = vmatmul.mubr.bf16.gmra.mrb[44].mxu1 %v3069_v48 }
 0x109   : > { %v3334_v1 = vpop.f32.mrb[0].mxu0  ;;  %v3336_v8 = vpop.f32.mrb[0].mxu1 }
 0x10a   : > { %v3338_v9 = vpop.f32.mrb[1].mxu0  ;;  %v3340_v10 = vpop.f32.mrb[1].mxu1 }
 0x10b   : > { %v3342_v11 = vpop.f32.mrb[2].mxu0  ;;  %v3344_v12 = vpop.f32.mrb[2].mxu1 }
 0x10c   : > { %v3346_v13 = vpop.f32.mrb[3].mxu0  ;;  %v3348_v14 = vpop.f32.mrb[3].mxu1 }
 0x111   : > { %v3350_v15 = vpop.f32.mrb[4].mxu0  ;;  %v3352_v16 = vpop.f32.mrb[4].mxu1 }
 0x112   : > { %v3354_v48 = vpop.f32.mrb[5].mxu0  ;;  %v3356_v17 = vpop.f32.mrb[5].mxu1 }
 0x113   : > { %v3358_v18 = vpop.f32.mrb[6].mxu0  ;;  %v3360_v19 = vpop.f32.mrb[6].mxu1 }
 0x114   : > { %v3362_v20 = vpop.f32.mrb[7].mxu0  ;;  %v3364_v21 = vpop.f32.mrb[7].mxu1 }
 0x12d   : > { %v3366_v22 = vpop.f32.mrb[8].mxu0  ;;  %v1107_v23 = vpop.f32.mrb[8].mxu1 }
 0x12e   : > { %v1228_v24 = vmax.f32 %v3334_v1, %v1107_v23  ;;  %v772_v25 = vpop.f32.mrb[9].mxu0  ;;  %v1109_v26 = vpop.f32.mrb[9].mxu1 }
 0x12f   : > { %v1229_v27 = vmax.f32 %v3338_v9, %v1109_v26  ;;  %v3370_v28 = vpop.f32.mrb[10].mxu0  ;;  %v1111_v29 = vpop.f32.mrb[10].mxu1 }
 0x130   : > { %v1233_v30 = vmax.f32 %v3342_v11, %v1111_v29  ;;  %v775_v31 = vpop.f32.mrb[11].mxu0  ;;  %v1113_v32 = vpop.f32.mrb[11].mxu1 }
 0x131   : > { %v1234_v33 = vmax.f32 %v3346_v13, %v1113_v32 }
 0x135   : > { %v1117_v34 = vpop.f32.mrb[12].mxu1  ;;  %v3374_v35 = vpop.f32.mrb[12].mxu0 }
 0x136   : > { %v1238_v36 = vmax.f32 %v3350_v15, %v1117_v34  ;;  %v1119_v37 = vpop.f32.mrb[13].mxu1  ;;  %v780_v38 = vpop.f32.mrb[13].mxu0 }
 0x137   : > { %v1239_v40 = vmax.f32 %v3354_v48, %v1119_v37  ;;  %v1121_v41 = vpop.f32.mrb[14].mxu1  ;;  %v3378_v42 = vpop.f32.mrb[14].mxu0 }
 0x138   : > { %v1243_v44 = vmax.f32 %v3358_v18, %v1121_v41  ;;  %v1123_v45 = vpop.f32.mrb[15].mxu1  ;;  %v783_v46 = vpop.f32.mrb[15].mxu0 }
 0x139   : > { %v1244_v47 = vmax.f32 %v3362_v20, %v1123_v45 }
 0x151   : > { %v1160_v49 = vpop.f32.mrb[16].mxu0  ;;  %v3382_v50 = vpop.f32.mrb[16].mxu1 }
 0x152   : > { %v1230_v39 = vmax.f32 %v3336_v8, %v1160_v49  ;;  %v1232_v51 = vmax.f32 %v3366_v22, %v3382_v50  ;;  %v1162_v52 = vpop.f32.mrb[17].mxu0  ;;  %v1215_v53 = vpop.f32.mrb[17].mxu1 }
 0x153   : > { %v1231_v43 = vmax.f32 %v3340_v10, %v1162_v52  ;;  %v1164_v54 = vpop.f32.mrb[18].mxu0  ;;  %v3388_v55 = vpop.f32.mrb[18].mxu1 }
 0x154   : > { %v1235_v56 = vmax.f32 %v3344_v12, %v1164_v54  ;;  %v1237_v57 = vmax.f32 %v3370_v28, %v3388_v55  ;;  %v1166_v58 = vpop.f32.mrb[19].mxu0  ;;  %v1218_v59 = vpop.f32.mrb[19].mxu1 }
 0x155   : > { %v1236_v60 = vmax.f32 %v3348_v14, %v1166_v58  ;;  %v3422_v52 = vpop.permute.xlu0 %2180  ;;  %v3426_v53 = vpop.permute.xlu1 %2190 }
 0x159   : > { %v1170_v0 = vpop.f32.mrb[20].mxu0  ;;  %v3394_v61 = vpop.f32.mrb[20].mxu1 }
 0x15a   : > { %v1240_v62 = vmax.f32 %v3352_v16, %v1170_v0  ;;  %v1242_v63 = vmax.f32 %v3374_v35, %v3394_v61  ;;  %v1172_v2 = vpop.f32.mrb[21].mxu0  ;;  %v1223_v3 = vpop.f32.mrb[21].mxu1 }
 0x15b   : > { %v1241_v4 = vmax.f32 %v3356_v17, %v1172_v2  ;;  %v1174_v5 = vpop.f32.mrb[22].mxu0  ;;  %v3400_v6 = vpop.f32.mrb[22].mxu1 }
 0x15c   : > { %v1245_v7 = vmax.f32 %v3360_v19, %v1174_v5  ;;  %v1247_v1 = vmax.f32 %v3378_v42, %v3400_v6  ;;  %v1176_v8 = vpop.f32.mrb[23].mxu0  ;;  %v1226_v9 = vpop.f32.mrb[23].mxu1 }
 0x15d   : > { %v1246_v10 = vmax.f32 %v3364_v21, %v1176_v8  ;;  %v3445_v55 = vpop.permute.xlu1 %2195 }
 0x175   : > { %v1570_v11 = vpop.f32.mrb[24].mxu0  ;;  %v1623_v12 = vpop.f32.mrb[24].mxu1 }
 0x176   : > { %v1691_v13 = vmax.f32 %v1228_v24, %v1570_v11  ;;  %v3406_v14 = vmax.f32 %v1230_v39, %v1623_v12  ;;  %v1572_v15 = vpop.f32.mrb[25].mxu0  ;;  %v1625_v16 = vpop.f32.mrb[25].mxu1 }
 0x177   : > { %v1692_v48 = vmax.f32 %v1229_v27, %v1572_v15  ;;  %v3408_v17 = vmax.f32 %v1231_v43, %v1625_v16  ;;  %v1574_v18 = vpop.f32.mrb[26].mxu0  ;;  %v1627_v20 = vpop.f32.mrb[26].mxu1 }
 0x178   : > { %v1696_v19 = vmax.f32 %v1233_v30, %v1574_v18  ;;  %v3410_v22 = vmax.f32 %v1235_v56, %v1627_v20  ;;  %v1576_v23 = vpop.f32.mrb[27].mxu0  ;;  %v1629_v25 = vpop.f32.mrb[27].mxu1 }
 0x179   : > { %v1697_v26 = vmax.f32 %v1234_v33, %v1576_v23  ;;  %v3412_v29 = vmax.f32 %v1236_v60, %v1629_v25 }
 0x17d   : > { %v1580_v21 = vpop.f32.mrb[28].mxu0  ;;  %v1633_v31 = vpop.f32.mrb[28].mxu1 }
 0x17e   : > { %v1701_v24 = vmax.f32 %v1238_v36, %v1580_v21  ;;  %v3414_v32 = vmax.f32 %v1240_v62, %v1633_v31  ;;  %v1582_v34 = vpop.f32.mrb[29].mxu0  ;;  %v1635_v37 = vpop.f32.mrb[29].mxu1 }
 0x17f   : > { %v1702_v27 = vmax.f32 %v1239_v40, %v1582_v34  ;;  %v3416_v38 = vmax.f32 %v1241_v4, %v1635_v37  ;;  %v1584_v41 = vpop.f32.mrb[30].mxu0  ;;  %v1637_v45 = vpop.f32.mrb[30].mxu1 }
 0x180   : > { %v1706_v30 = vmax.f32 %v1243_v44, %v1584_v41  ;;  %v3418_v46 = vmax.f32 %v1245_v7, %v1637_v45  ;;  %v1586_v49 = vpop.f32.mrb[31].mxu0  ;;  %v1639_v50 = vpop.f32.mrb[31].mxu1 }
 0x181   : > { %v1707_v33 = vmax.f32 %v1244_v47, %v1586_v49  ;;  %v3420_v39 = vmax.f32 %v1246_v10, %v1639_v50  ;;  %v3424_v36 = vpop.permute.xlu0 %2185 }
 0x199   : > { %v1676_v40 = vpop.f32.mrb[32].mxu0  ;;  %v2033_v43 = vpop.f32.mrb[32].mxu1 }
 0x19a   : > { %v3428_v54 = vmax.f32 %v1232_v51, %v1676_v40  ;;  %v2154_v56 = vmax.f32 %v1691_v13, %v2033_v43  ;;  %v1678_v44 = vpop.f32.mrb[33].mxu0  ;;  %v2035_v58 = vpop.f32.mrb[33].mxu1 }
 0x19b   : > { %v2155_v59 = vmax.f32 %v1692_v48, %v2035_v58  ;;  %v1679_v60 = vpop.f32.mrb[34].mxu0  ;;  %v2037_v0 = vpop.f32.mrb[34].mxu1 }
 0x19c   : > { %v2198_v47 = vadd.f32 %v3422_v52, %v2154_v56  ;;  %v3435_v62 = vmax.f32 %v1237_v57, %v1679_v60  ;;  %v2159_v2 = vmax.f32 %v1696_v19, %v2037_v0  ;;  %v1681_v3 = vpop.f32.mrb[35].mxu0  ;;  %v2039_v4 = vpop.f32.mrb[35].mxu1 }
 0x19d   : > { %v2199_v51 = vadd.f32 %v3422_v52, %v2155_v59  ;;  %v2160_v5 = vmax.f32 %v1697_v26, %v2039_v4 }
 0x19e   : > { %v2218_v7 = vmax.f32 %v2198_v47, 0.0  ;;  %v2203_v8 = vadd.f32 %v3424_v36, %v2159_v2 }
 0x19f   : > { %v2219_v9 = vmax.f32 %v2199_v51, 0.0  ;;  %v2204_v10 = vadd.f32 %v3424_v36, %v2160_v5 }
 0x1a0   : > { %v2223_v28 = vmax.f32 %v2203_v8, 0.0 }
 0x1a1   : > { %v2638_v57 = vpack.c.bf16 %v2219_v9, %v2218_v7  ;;  %v2224_v11 = vmax.f32 %v2204_v10, 0.0  ;;  %v1684_v12 = vpop.f32.mrb[36].mxu0  ;;  %v2043_v13 = vpop.f32.mrb[36].mxu1 }
 0x1a2   : > { %v3450_v15 = vmax.f32 %v1242_v63, %v1684_v12  ;;  %v2164_v16 = vmax.f32 %v1701_v24, %v2043_v13  ;;  %v1686_v48 = vpop.f32.mrb[37].mxu0  ;;  %v2045_v18 = vpop.f32.mrb[37].mxu1 }
 0x1a3   : > { %2302 = vst [vmem:[%s3443_s22] sm:$0xff] %v2638_v57  ;;  %v2641_v20 = vpack.c.bf16 %v2224_v11, %v2223_v28  ;;  %v2165_v19 = vmax.f32 %v1702_v27, %v2045_v18  ;;  %v1687_v23 = vpop.f32.mrb[38].mxu0  ;;  %v2047_v25 = vpop.f32.mrb[38].mxu1 }
 0x1a4   : > { %v2208_v26 = vadd.f32 %v3426_v53, %v2164_v16  ;;  %v3457_v21 = vmax.f32 %v1247_v1, %v1687_v23  ;;  %v2169_v35 = vmax.f32 %v1706_v30, %v2047_v25  ;;  %v2049_v61 = vpop.f32.mrb[39].mxu1  ;;  %v1689_v63 = vpop.f32.mrb[39].mxu0 }
 0x1a5   : > { %2306 = vst [vmem:[%s3443_s22 + $0x14] sm:$0xff] %v2641_v20  ;;  %v2209_v31 = vadd.f32 %v3426_v53, %v2165_v19  ;;  %v2170_v24 = vmax.f32 %v1707_v33, %v2049_v61 }
 0x1a6   : > { %v2228_v34 = vmax.f32 %v2208_v26, 0.0  ;;  %v2213_v37 = vadd.f32 %v3445_v55, %v2169_v35 }
 0x1a7   : > { %v2229_v27 = vmax.f32 %v2209_v31, 0.0  ;;  %v2214_v41 = vadd.f32 %v3445_v55, %v2170_v24 }
 0x1a8   : > { %v2233_v45 = vmax.f32 %v2213_v37, 0.0 }
 0x1a9   : > { %v2644_v49 = vpack.c.bf16 %v2229_v27, %v2228_v34  ;;  %v2234_v50 = vmax.f32 %v2214_v41, 0.0 }
 0x1ab   : > { %2309 = vst [vmem:[%s3443_s22 + $0x28] sm:$0xff] %v2644_v49  ;;  %v2647_v42 = vpack.c.bf16 %v2234_v50, %v2233_v45 }
 0x1ad   : > { %2312 = vst [vmem:[%s3443_s22 + $0x3c] sm:$0xff] %v2647_v42 }
 0x1bd   : > { %v2086_v6 = vpop.f32.mrb[40].mxu0  ;;  %v2139_v1 = vpop.f32.mrb[40].mxu1 }
 0x1be   : > { %v2156_v30 = vmax.f32 %v3406_v14, %v2086_v6  ;;  %v2158_v40 = vmax.f32 %v3428_v54, %v2139_v1  ;;  %v2088_v43 = vpop.f32.mrb[41].mxu0  ;;  %v2141_v33 = vpop.f32.mrb[41].mxu1 }
 0x1bf   : > { %v2157_v56 = vmax.f32 %v3408_v17, %v2088_v43  ;;  %v2090_v44 = vpop.f32.mrb[42].mxu0  ;;  %v2142_v58 = vpop.f32.mrb[42].mxu1 }
 0x1c0   : > { %v2200_v59 = vadd.f32 %v3422_v52, %v2156_v30  ;;  %v2202_v60 = vadd.f32 %v3422_v52, %v2158_v40  ;;  %v2161_v0 = vmax.f32 %v3410_v22, %v2090_v44  ;;  %v2163_v47 = vmax.f32 %v3435_v62, %v2142_v58  ;;  %v2092_v2 = vpop.f32.mrb[43].mxu0  ;;  %v2144_v3 = vpop.f32.mrb[43].mxu1 }
 0x1c1   : > { %v2201_v14 = vadd.f32 %v3422_v52, %v2157_v56  ;;  %v2162_v54 = vmax.f32 %v3412_v29, %v2092_v2 }
 0x1c2   : > { %v2220_v4 = vmax.f32 %v2200_v59, 0.0  ;;  %v2222_v51 = vmax.f32 %v2202_v60, 0.0  ;;  %v2205_v17 = vadd.f32 %v3424_v36, %v2161_v0  ;;  %v2207_v5 = vadd.f32 %v3424_v36, %v2163_v47 }
 0x1c3   : > { %v2221_v7 = vmax.f32 %v2201_v14, 0.0  ;;  %v2206_v22 = vadd.f32 %v3424_v36, %v2162_v54 }
 0x1c4   : > { %v2640_v8 = vpack.c.bf16 %v2222_v51, %v2222_v51  ;;  %v2225_v62 = vmax.f32 %v2205_v17, 0.0  ;;  %v2227_v9 = vmax.f32 %v2207_v5, 0.0 }
 0x1c5   : > { %v2639_v10 = vpack.c.bf16 %v2221_v7, %v2220_v4  ;;  %v2226_v52 = vmax.f32 %v2206_v22, 0.0  ;;  %v2096_v28 = vpop.f32.mrb[44].mxu0  ;;  %v2147_v57 = vpop.f32.mrb[44].mxu1 }
 0x1c6   : > { %2305 = vst.msk [vmem:[%s3443_s22 + $0x10] sm:$0xf] %vm2304_vm1, %v2640_v8  ;;  %v2643_v29 = vpack.c.bf16 %v2227_v9, %v2227_v9  ;;  %v2166_v11 = vmax.f32 %v3414_v32, %v2096_v28  ;;  %v2168_v12 = vmax.f32 %v3450_v15, %v2147_v57  ;;  %v2098_v13 = vpop.f32.mrb[45].mxu0  ;;  %v2149_v16 = vpop.f32.mrb[45].mxu1 }
 0x1c7   : > { %2303 = vst [vmem:[%s3443_s22 + $0x8] sm:$0xff] %v2639_v10  ;;  %v2642_v36 = vpack.c.bf16 %v2226_v52, %v2225_v62  ;;  %v2167_v48 = vmax.f32 %v3416_v38, %v2098_v13  ;;  %v2100_v18 = vpop.f32.mrb[46].mxu0  ;;  %v2150_v20 = vpop.f32.mrb[46].mxu1 }
 0x1c8   : > { %2308 = vst.msk [vmem:[%s3443_s22 + $0x24] sm:$0xf] %vm2304_vm1, %v2643_v29  ;;  %v2210_v19 = vadd.f32 %v3426_v53, %v2166_v11  ;;  %v2212_v23 = vadd.f32 %v3426_v53, %v2168_v12  ;;  %v2171_v25 = vmax.f32 %v3418_v46, %v2100_v18  ;;  %v2173_v32 = vmax.f32 %v3457_v21, %v2150_v20  ;;  %v2102_v26 = vpop.f32.mrb[47].mxu0  ;;  %v2152_v15 = vpop.f32.mrb[47].mxu1 }
 0x1c9   : > { %2307 = vst [vmem:[%s3443_s22 + $0x1c] sm:$0xff] %v2642_v36  ;;  %v2211_v35 = vadd.f32 %v3426_v53, %v2167_v48  ;;  %v2172_v38 = vmax.f32 %v3420_v39, %v2102_v26 }
 0x1ca   : > { %v2230_v61 = vmax.f32 %v2210_v19, 0.0  ;;  %v2232_v63 = vmax.f32 %v2212_v23, 0.0  ;;  %v2215_v31 = vadd.f32 %v3445_v55, %v2171_v25  ;;  %v2217_v24 = vadd.f32 %v3445_v55, %v2173_v32 }
 0x1cb   : > { %v2231_v46 = vmax.f32 %v2211_v35, 0.0  ;;  %v2216_v21 = vadd.f32 %v3445_v55, %v2172_v38 }
 0x1cc   : > { %v2646_v34 = vpack.c.bf16 %v2232_v63, %v2232_v63  ;;  %v2235_v37 = vmax.f32 %v2215_v31, 0.0  ;;  %v2237_v27 = vmax.f32 %v2217_v24, 0.0 }
 0x1cd   : > { %v2645_v41 = vpack.c.bf16 %v2231_v46, %v2230_v61  ;;  %v2236_v45 = vmax.f32 %v2216_v21, 0.0 }
 0x1ce   : > { %2311 = vst.msk [vmem:[%s3443_s22 + $0x38] sm:$0xf] %vm2304_vm1, %v2646_v34  ;;  %v2649_v53 = vpack.c.bf16 %v2237_v27, %v2237_v27 }
 0x1cf   : > { %2310 = vst [vmem:[%s3443_s22 + $0x30] sm:$0xff] %v2645_v41  ;;  %v2648_v39 = vpack.c.bf16 %v2236_v45, %v2235_v37 }
 0x1d0   : > { %2314 = vst.msk [vmem:[%s3443_s22 + $0x4c] sm:$0xf] %vm2304_vm1, %v2649_v53 }
 0x1d1   : > { %2313 = vst [vmem:[%s3443_s22 + $0x44] sm:$0xff] %v2648_v39 }
 0x1d2 PF: > { %s16_s21 = sadd.s32 1, %s2930_s21  }
 0x1d3   : > { %p13_p4 = scmp.ge.s32.totalorder %s16_s21, 4  }
 0x1d5   :  { %15 = sbr.rel (!%p13_p4) target bundleno = 1 (0x1), region = 83 }

// kernel: simple_cnn_forward.5
= control target key start
LH: loop header
LB: loop body
LE: loop exit
PB: predicated region body
PF: predicated region fallthrough
CT: control target
= control target key end

     0   :  { %s11862_s15 = smov 0   ;;  %s11864_s16 = smov 0   ;;  %s13416_s0 = inlined_call_operand.vmem [shape: bf16[2,17152], index: 0, kind: input, shape index: {}]   ;;  %s13417_s1 = inlined_call_operand.vmem [shape: bf16[17152,256], index: 1, kind: input, shape index: {}]   ;;  %s13418_s2 = inlined_call_operand.vmem [shape: f32[1,256], index: 2, kind: input, shape index: {}]   ;;  %s13419_s3 = inlined_call_operand.vmem [shape: f32[256,10], index: 3, kind: input, shape index: {}]   ;;  %s13420_s4 = inlined_call_operand.vmem [shape: f32[1,2,10], index: 4, kind: output, shape index: {}]  }
   0x1   :  { %s11866_s17 = smov 0  }
   0x2 LB: > { %s23_s18 = sadd.s32 1, %s11827_s16  ;;  %p8882_p0 = scmp.ge.s32.totalorder %s11831_s17, 1  ;;  %s11831_s17 = sphi %s11866_s17, %s14_s17   ;;  %s11827_s16 = sphi %s11864_s16, %s13422_s16   ;;  %s11823_s15 = sphi %s11862_s15, %s13421_s15  }
   0x3   : > { %p24_p1 = scmp.ge.s32.totalorder %s23_s18, 2  ;;  %p214_p2 = scmp.lt.s32.totalorder %s11831_s17, 3 }
   0x5   : > { %s13424_s18 = smov (%p24_p1, %s23_s18), 0  ;;  %p215_p3 = pnand %p8882_p0, %p214_p2 }
   0x6   : > { %s257_s19 = smul.u32 (!%p215_p3), 67, %s11823_s15  ;;  %p8885_p6 = scmp.ne.s32.totalorder (!%p215_p3), %s11823_s15, 0 }
   0x7   : > { %218 = sbr.rel (%p215_p3) target bundleno = 1566 (0x61e), region = 36 }
   0x8   : > { %s262_s20 = smul.u32 (!%p215_p3), 1072, %s11823_s15  ;;  %p258_p4 = scmp.lt.s32.totalorder (!%p215_p3), %s257_s19, 133 }
   0xa   : > { %p264_p5 = scmp.lt.s32.totalorder (!%p215_p3), %s262_s20, 2143 }
   0xe   : > { %s13426_s19 = smov (!%p258_p4, %s257_s19), 133  ;;  %s13428_s20 = smov (!%p264_p5, %s262_s20), 2143 }
   0xf   : > { %s11887_s23 = scalar_lea.vmem %s13416_s0, %s13426_s19  ;;  %s9963_s24 = sshll.u32 %s13428_s20, 3  ;;  %v11833_v0 = vmov (!%p8885_p6), 0.0  }
  0x10   : > { %s11892_s27 = scalar_lea.vmem %s13417_s1, %s9963_s24  ;;  %293 = sbr.rel (%p8885_p6) target bundleno = 23 (0x17), region = 40  ;;  %294 = vst [vmem:[#allocation2] sm:$0xf] (!%p8885_p6), %v11833_v0 }
  0x17 PF: > { %v10189_v1 = vld [vmem:[%s11892_s27 + $0x4] ss:$8 sps:$4 sm:$0xff]   ;;  %v10193_v3 = vld [vmem:[%s11892_s27] ss:$8 sps:$4 sm:$0xff]   ;;  %v10195_v5 = vld [vmem:[%s11892_s27 + $0x14] ss:$8 sps:$4 sm:$0xff]   ;;  %v1390_v41 = vlaneseq }
  0x18   : > { %v10191_v2 = vld [vmem:[%s11892_s27 + $0x1104] ss:$8 sps:$4 sm:$0xff]   ;;  %7228 = vmatprep.subr.bf16.mxu1 %v10189_v1  ;;  %v10194_v4 = vld [vmem:[%s11892_s27 + $0x1100] ss:$8 sps:$4 sm:$0xff]   ;;  %v10197_v6 = vld [vmem:[%s11892_s27 + $0x1114] ss:$8 sps:$4 sm:$0xff]  }
  0x19   : > { %7925 = vmatprep.subr.bf16.mxu0 %v10191_v2  ;;  %7229 = vmatpush1.bf16.msra.mxu1 %v10193_v3  ;;  %v10199_v7 = vld [vmem:[%s11892_s27 + $0x10] ss:$8 sps:$4 sm:$0xff]   ;;  %v10201_v9 = vld [vmem:[%s11892_s27 + $0x24] ss:$8 sps:$4 sm:$0xff]   ;;  %v10205_v11 = vld [vmem:[%s11892_s27 + $0x20] ss:$8 sps:$4 sm:$0xff]  }
  0x1a   : > { %7926 = vmatpush1.bf16.msra.mxu0 %v10194_v4  ;;  %7230 = vmatprep.subr.bf16.mxu1 %v10195_v5  ;;  %v10200_v8 = vld [vmem:[%s11892_s27 + $0x1110] ss:$8 sps:$4 sm:$0xff]   ;;  %v10203_v10 = vld [vmem:[%s11892_s27 + $0x1124] ss:$8 sps:$4 sm:$0xff]   ;;  %v10206_v12 = vld [vmem:[%s11892_s27 + $0x1120] ss:$8 sps:$4 sm:$0xff]  }
  0x1b   : > { %7927 = vmatprep.subr.bf16.mxu0 %v10197_v6  ;;  %v10207_v13 = vld [vmem:[%s11892_s27 + $0x34] ss:$8 sps:$4 sm:$0xff]   ;;  %v10211_v15 = vld [vmem:[%s11892_s27 + $0x30] ss:$8 sps:$4 sm:$0xff]   ;;  %v10213_v17 = vld [vmem:[%s11892_s27 + $0x44] ss:$8 sps:$4 sm:$0xff]  }
  0x1c   : > { %v10209_v14 = vld [vmem:[%s11892_s27 + $0x1134] ss:$8 sps:$4 sm:$0xff]   ;;  %v10212_v16 = vld [vmem:[%s11892_s27 + $0x1130] ss:$8 sps:$4 sm:$0xff]   ;;  %v10215_v18 = vld [vmem:[%s11892_s27 + $0x1144] ss:$8 sps:$4 sm:$0xff]  }
  0x1d   : > { %7231 = vmatpush1.bf16.msra.mxu1 %v10199_v7  ;;  %v10217_v19 = vld [vmem:[%s11892_s27 + $0x40] ss:$8 sps:$4 sm:$0xff]   ;;  %v10219_v21 = vld [vmem:[%s11892_s27 + $0x54] ss:$8 sps:$4 sm:$0xff]   ;;  %v10223_v23 = vld [vmem:[%s11892_s27 + $0x50] ss:$8 sps:$4 sm:$0xff]  }
  0x1e   : > { %7928 = vmatpush1.bf16.msra.mxu0 %v10200_v8  ;;  %7232 = vmatprep.subr.bf16.mxu1 %v10201_v9  ;;  %v10218_v20 = vld [vmem:[%s11892_s27 + $0x1140] ss:$8 sps:$4 sm:$0xff]   ;;  %v10221_v22 = vld [vmem:[%s11892_s27 + $0x1154] ss:$8 sps:$4 sm:$0xff]   ;;  %v10224_v24 = vld [vmem:[%s11892_s27 + $0x1150] ss:$8 sps:$4 sm:$0xff]  }
  0x1f   : > { %7929 = vmatprep.subr.bf16.mxu0 %v10203_v10  ;;  %v10225_v25 = vld [vmem:[%s11892_s27 + $0x64] ss:$8 sps:$4 sm:$0xff]   ;;  %v10229_v27 = vld [vmem:[%s11892_s27 + $0x60] ss:$8 sps:$4 sm:$0xff]   ;;  %v10231_v29 = vld [vmem:[%s11892_s27 + $0x74] ss:$8 sps:$4 sm:$0xff]  }
  0x20   : > { %v10227_v26 = vld [vmem:[%s11892_s27 + $0x1164] ss:$8 sps:$4 sm:$0xff]   ;;  %v10230_v28 = vld [vmem:[%s11892_s27 + $0x1160] ss:$8 sps:$4 sm:$0xff]   ;;  %v10233_v30 = vld [vmem:[%s11892_s27 + $0x1174] ss:$8 sps:$4 sm:$0xff]  }
  0x21   : > { %7233 = vmatpush1.bf16.msra.mxu1 %v10205_v11  ;;  %v10235_v31 = vld [vmem:[%s11892_s27 + $0x70] ss:$8 sps:$4 sm:$0xff]   ;;  %v10237_v33 = vld [vmem:[%s11892_s27 + $0x84] ss:$8 sps:$4 sm:$0xff]   ;;  %v10241_v35 = vld [vmem:[%s11892_s27 + $0x80] ss:$8 sps:$4 sm:$0xff]  }
  0x22   : > { %7930 = vmatpush1.bf16.msra.mxu0 %v10206_v12  ;;  %7234 = vmatprep.subr.bf16.mxu1 %v10207_v13  ;;  %v10236_v32 = vld [vmem:[%s11892_s27 + $0x1170] ss:$8 sps:$4 sm:$0xff]   ;;  %v10239_v34 = vld [vmem:[%s11892_s27 + $0x1184] ss:$8 sps:$4 sm:$0xff]   ;;  %v10242_v36 = vld [vmem:[%s11892_s27 + $0x1180] ss:$8 sps:$4 sm:$0xff]  }
  0x23   : > { %7931 = vmatprep.subr.bf16.mxu0 %v10209_v14  ;;  %v10243_v37 = vld [vmem:[%s11892_s27 + $0x94] ss:$8 sps:$4 sm:$0xff]   ;;  %v11834_v39 = vmov 1966171168   ;;  %v10247_v42 = vld [vmem:[%s11892_s27 + $0x90] ss:$8 sps:$4 sm:$0xff]  }
  0x24   : > { %v10245_v38 = vld [vmem:[%s11892_s27 + $0x1194] ss:$8 sps:$4 sm:$0xff]   ;;  %v1388_v40 = vunpack.c.l.s4 %v11834_v39  ;;  %v10248_v43 = vld [vmem:[%s11892_s27 + $0x1190] ss:$8 sps:$4 sm:$0xff]   ;;  %v10249_v44 = vld [vmem:[%s11892_s27 + $0xa4] ss:$8 sps:$4 sm:$0xff]  }
  0x25   : > { %7235 = vmatpush1.bf16.msra.mxu1 %v10211_v15  ;;  %v10251_v45 = vld [vmem:[%s11892_s27 + $0x11a4] ss:$8 sps:$4 sm:$0xff]   ;;  %v11937_v47 = vshrl.u32 %v1390_v41, 7  ;;  %v10253_v48 = vld [vmem:[%s11892_s27 + $0xa0] ss:$8 sps:$4 sm:$0xff]   ;;  %p9959_p7 = scmp.ne.s32.totalorder %s11823_s15, 1 }
  0x26   : > { %7932 = vmatpush1.bf16.msra.mxu0 %v10212_v16  ;;  %7236 = vmatprep.subr.bf16.mxu1 %v10213_v17  ;;  %v1389_v46 = vunpack.c.0.s8 %v1388_v40  ;;  %v10254_v49 = vld [vmem:[%s11892_s27 + $0x11a0] ss:$8 sps:$4 sm:$0xff]   ;;  %v10255_v50 = vld [vmem:[%s11892_s27 + $0xb4] ss:$8 sps:$4 sm:$0xff]   ;;  %v10259_v54 = vld [vmem:[%s11892_s27 + $0xb0] ss:$8 sps:$4 sm:$0xff]  }
  0x27   : > { %7933 = vmatprep.subr.bf16.mxu0 %v10215_v18  ;;  %v10257_v51 = vld [vmem:[%s11892_s27 + $0x11b4] ss:$8 sps:$4 sm:$0xff]   ;;  %v11947_v53 = vld [vmem:[%s11887_s23] sm:$0xff]  ;;  %v10260_v56 = vld [vmem:[%s11892_s27 + $0x11b0] ss:$8 sps:$4 sm:$0xff]   ;;  %vm8774_vm0 = vcmask (!%p9959_p7), 74752  }
  0x28   : > { %v11944_v52 = vsub.s32 %v1389_v46, %v11937_v47  ;;  %v300_v57 = vld [vmem:[%s11887_s23 + $0x20] sm:$0xff]  ;;  %v10267_v2 = vld [vmem:[%s11892_s27 + $0xd4] ss:$8 sps:$4 sm:$0xff]   ;;  %v10271_v6 = vld [vmem:[%s11892_s27 + $0xd0] ss:$8 sps:$4 sm:$0xff]  }
  0x29   : > { %7237 = vmatpush1.bf16.msra.mxu1 %v10217_v19  ;;  %v10261_v58 = vld [vmem:[%s11892_s27 + $0xc4] ss:$8 sps:$4 sm:$0xff]   ;;  %v10265_v0 = vld [vmem:[%s11892_s27 + $0xc0] ss:$8 sps:$4 sm:$0xff]   ;;  %v10269_v3 = vld [vmem:[%s11892_s27 + $0x11d4] ss:$8 sps:$4 sm:$0xff]   ;;  %v1582_v10 = vcombine.high %v300_v57, %v300_v57 }
  0x2a   : > { %7934 = vmatpush1.bf16.msra.mxu0 %v10218_v20  ;;  %7238 = vmatprep.subr.bf16.mxu1 %v10219_v21  ;;  %v1393_v55 = vrot.slane %v11947_v53, %v11944_v52  ;;  %v10263_v59 = vld [vmem:[%s11892_s27 + $0x11c4] ss:$8 sps:$4 sm:$0xff]   ;;  %v1589_v61 = vrot.slane %v300_v57, %v11944_v52  ;;  %v10266_v1 = vld [vmem:[%s11892_s27 + $0x11c0] ss:$8 sps:$4 sm:$0xff]   ;;  %v10272_v7 = vld [vmem:[%s11892_s27 + $0x11d0] ss:$8 sps:$4 sm:$0xff]  }
  0x2b   : > { %7935 = vmatprep.subr.bf16.mxu0 %v10221_v22  ;;  %v10273_v8 = vld [vmem:[%s11892_s27 + $0xe4] ss:$8 sps:$4 sm:$0xff]   ;;  %v10277_v11 = vld [vmem:[%s11892_s27 + $0xe0] ss:$8 sps:$4 sm:$0xff]   ;;  %v10279_v13 = vld [vmem:[%s11892_s27 + $0xf4] ss:$8 sps:$4 sm:$0xff]   ;;  %v11979_v15 = vrot.slane %v1582_v10, %v11944_v52 }
  0x2c   : > { %v1401_v60 = vcombine.high %v1393_v55, %v1393_v55  ;;  %v1597_v63 = vcombine.high %v1589_v61, %v1589_v61  ;;  %v10275_v9 = vld [vmem:[%s11892_s27 + $0x11e4] ss:$8 sps:$4 sm:$0xff]   ;;  %v10278_v12 = vld [vmem:[%s11892_s27 + $0x11e0] ss:$8 sps:$4 sm:$0xff]   ;;  %v10281_v14 = vld [vmem:[%s11892_s27 + $0x11f4] ss:$8 sps:$4 sm:$0xff]   ;;  %v11982_v16 = vrot.slane %v1589_v61, %v11944_v52  ;;  %v11991_v22 = vrot.slane %v1393_v55, %v11944_v52 }
  0x2d   : > { %7239 = vmatpush1.bf16.msra.mxu1 %v10223_v23  ;;  %v10283_v17 = vld [vmem:[%s11892_s27 + $0xf0] ss:$8 sps:$4 sm:$0xff]   ;;  %v10288_v19 = vld [vmem:[%s11892_s27 + $0x104] ss:$8 sps:$4 sm:$0xff]   ;;  %v1598_v21 = vcombine.high %v11979_v15, %v11979_v15  ;;  %v10331_v55 = vld [vmem:[%s11892_s27 + $0x174] ss:$8 sps:$4 sm:$0xff]  }
  0x2e   : > { %7936 = vmatpush1.bf16.msra.mxu0 %v10224_v24  ;;  %7240 = vmatprep.subr.bf16.mxu1 %v10225_v25  ;;  %v11958_v62 = vrot.slane %v1401_v60, %v11944_v52  ;;  %v11965_v4 = vrot.slane %v1597_v63, %v11944_v52  ;;  %v10284_v18 = vld [vmem:[%s11892_s27 + $0x11f0] ss:$8 sps:$4 sm:$0xff]   ;;  %v10292_v20 = vld [vmem:[%s11892_s27 + $0x1204] ss:$8 sps:$4 sm:$0xff]   ;;  %v1627_v23 = vcombine.high %v11982_v16, %v11982_v16  ;;  %v10286_v24 = vld [vmem:[%s11892_s27 + $0x100] ss:$8 sps:$4 sm:$0xff]  }
  0x2f   : > { %7937 = vmatprep.subr.bf16.mxu0 %v10227_v26  ;;  %v10290_v25 = vld [vmem:[%s11892_s27 + $0x1200] ss:$8 sps:$4 sm:$0xff]   ;;  %v10295_v26 = vld [vmem:[%s11892_s27 + $0x114] ss:$8 sps:$4 sm:$0xff]   ;;  %v10308_v39 = vld [vmem:[%s11892_s27 + $0x1230] ss:$8 sps:$4 sm:$0xff]  }
  0x30   : > { %7260 = vmatprep.mubr.bf16.mxu1 %v11958_v62  ;;  %v1629_v5 = vcombine.high %v11965_v4, %v11965_v4  ;;  %v10313_v40 = vld [vmem:[%s11892_s27 + $0x144] ss:$8 sps:$4 sm:$0xff]   ;;  %v10317_v46 = vld [vmem:[%s11892_s27 + $0x150] ss:$8 sps:$4 sm:$0xff]   ;;  %v10335_v61 = vld [vmem:[%s11892_s27 + $0x180] ss:$8 sps:$4 sm:$0xff]  }
  0x31   : > { %7241 = vmatpush1.bf16.msra.mxu1 %v10229_v27  ;;  %v10298_v27 = vld [vmem:[%s11892_s27 + $0x1214] ss:$8 sps:$4 sm:$0xff]   ;;  %v10316_v41 = vld [vmem:[%s11892_s27 + $0x1244] ss:$8 sps:$4 sm:$0xff]   ;;  %v10329_v57 = vld [vmem:[%s11892_s27 + $0x170] ss:$8 sps:$4 sm:$0xff]  }
  0x32   : > { %7938 = vmatpush1.bf16.msra.mxu0 %v10230_v28  ;;  %7242 = vmatprep.subr.bf16.mxu1 %v10231_v29  ;;  %v1433_v28 = vcombine.high %v11958_v62, %v11958_v62  ;;  %v12002_v29 = vrot.slane %v1598_v21, %v11944_v52  ;;  %v10340_v60 = vld [vmem:[%s11892_s27 + $0x1284] ss:$8 sps:$4 sm:$0xff]   ;;  %v10338_v62 = vld [vmem:[%s11892_s27 + $0x1280] ss:$8 sps:$4 sm:$0xff]   ;;  %v10343_v63 = vld [vmem:[%s11892_s27 + $0x194] ss:$8 sps:$4 sm:$0xff]  }
  0x33   : > { %7939 = vmatprep.subr.bf16.mxu0 %v10233_v30  ;;  %7957 = vmatprep.mubr.bf16.mxu0 %v1629_v5  ;;  %v10293_v30 = vld [vmem:[%s11892_s27 + $0x110] ss:$8 sps:$4 sm:$0xff]   ;;  %v10352_v5 = vld [vmem:[%s11892_s27 + $0x12a4] ss:$8 sps:$4 sm:$0xff]  }
  0x34   : > { %v10353_v10 = vld [vmem:[%s11892_s27 + $0x1b0] ss:$8 sps:$4 sm:$0xff]  }
  0x35   : > { %7243 = vmatpush1.bf16.msra.mxu1 %v10235_v31  ;;  %v10296_v31 = vld [vmem:[%s11892_s27 + $0x1210] ss:$8 sps:$4 sm:$0xff]  }
  0x36   : > { %7940 = vmatpush1.bf16.msra.mxu0 %v10236_v32  ;;  %7244 = vmatprep.subr.bf16.mxu1 %v10237_v33  ;;  %v10301_v32 = vld [vmem:[%s11892_s27 + $0x124] ss:$8 sps:$4 sm:$0xff]   ;;  %v10368_v21 = vld [vmem:[%s11892_s27 + $0x12d0] ss:$8 sps:$4 sm:$0xff]  }
  0x37   : > { %7941 = vmatprep.subr.bf16.mxu0 %v10239_v34  ;;  %v10304_v33 = vld [vmem:[%s11892_s27 + $0x1224] ss:$8 sps:$4 sm:$0xff]   ;;  %v10299_v34 = vld [vmem:[%s11892_s27 + $0x120] ss:$8 sps:$4 sm:$0xff]  }
  0x39   : > { %7245 = vmatpush1.bf16.msra.mxu1 %v10241_v35  ;;  %v10302_v35 = vld [vmem:[%s11892_s27 + $0x1220] ss:$8 sps:$4 sm:$0xff]  }
  0x3a   : > { %7942 = vmatpush1.bf16.msra.mxu0 %v10242_v36  ;;  %7246 = vmatprep.subr.bf16.mxu1 %v10243_v37  ;;  %v10307_v36 = vld [vmem:[%s11892_s27 + $0x134] ss:$8 sps:$4 sm:$0xff]  }
  0x3b   : > { %7943 = vmatprep.subr.bf16.mxu0 %v10245_v38  ;;  %v10310_v37 = vld [vmem:[%s11892_s27 + $0x1234] ss:$8 sps:$4 sm:$0xff]   ;;  %v10305_v38 = vld [vmem:[%s11892_s27 + $0x130] ss:$8 sps:$4 sm:$0xff]  }
  0x3d   : > { %7247 = vmatpush1.bf16.msra.mxu1 %v10247_v42  ;;  %v10311_v42 = vld [vmem:[%s11892_s27 + $0x140] ss:$8 sps:$4 sm:$0xff]  }
  0x3e   : > { %7944 = vmatpush1.bf16.msra.mxu0 %v10248_v43  ;;  %7248 = vmatprep.subr.bf16.mxu1 %v10249_v44  ;;  %v10314_v43 = vld [vmem:[%s11892_s27 + $0x1240] ss:$8 sps:$4 sm:$0xff]   ;;  %v10319_v44 = vld [vmem:[%s11892_s27 + $0x154] ss:$8 sps:$4 sm:$0xff]  }
  0x3f   : > { %7945 = vmatprep.subr.bf16.mxu0 %v10251_v45  ;;  %v10322_v45 = vld [vmem:[%s11892_s27 + $0x1254] ss:$8 sps:$4 sm:$0xff]  }
  0x41   : > { %7249 = vmatpush1.bf16.msra.mxu1 %v10253_v48  ;;  %v10320_v48 = vld [vmem:[%s11892_s27 + $0x1250] ss:$8 sps:$4 sm:$0xff]  }
  0x42   : > { %7946 = vmatpush1.bf16.msra.mxu0 %v10254_v49  ;;  %7250 = vmatprep.subr.bf16.mxu1 %v10255_v50  ;;  %v10325_v49 = vld [vmem:[%s11892_s27 + $0x164] ss:$8 sps:$4 sm:$0xff]  }
  0x43   : > { %7947 = vmatprep.subr.bf16.mxu0 %v10257_v51  ;;  %v10328_v50 = vld [vmem:[%s11892_s27 + $0x1264] ss:$8 sps:$4 sm:$0xff]   ;;  %v10323_v51 = vld [vmem:[%s11892_s27 + $0x160] ss:$8 sps:$4 sm:$0xff]  }
  0x45   : > { %7251 = vmatpush1.bf16.msra.mxu1 %v10259_v54  ;;  %v10326_v54 = vld [vmem:[%s11892_s27 + $0x1260] ss:$8 sps:$4 sm:$0xff]  }
  0x46   : > { %7948 = vmatpush1.bf16.msra.mxu0 %v10260_v56  ;;  %7252 = vmatprep.subr.bf16.mxu1 %v10261_v58  ;;  %v10334_v56 = vld [vmem:[%s11892_s27 + $0x1274] ss:$8 sps:$4 sm:$0xff]   ;;  %v10332_v58 = vld [vmem:[%s11892_s27 + $0x1270] ss:$8 sps:$4 sm:$0xff]  }
  0x47   : > { %7949 = vmatprep.subr.bf16.mxu0 %v10263_v59  ;;  %v10337_v59 = vld [vmem:[%s11892_s27 + $0x184] ss:$8 sps:$4 sm:$0xff]  }
  0x49   : > { %7253 = vmatpush1.bf16.msra.mxu1 %v10265_v0  ;;  %v10346_v0 = vld [vmem:[%s11892_s27 + $0x1294] ss:$8 sps:$4 sm:$0xff]  }
  0x4a   : > { %7950 = vmatpush1.bf16.msra.mxu0 %v10266_v1  ;;  %7254 = vmatprep.subr.bf16.mxu1 %v10267_v2  ;;  %v10341_v1 = vld [vmem:[%s11892_s27 + $0x190] ss:$8 sps:$4 sm:$0xff]  }
  0x4b   : > { %7951 = vmatprep.subr.bf16.mxu0 %v10269_v3  ;;  %v10344_v2 = vld [vmem:[%s11892_s27 + $0x1290] ss:$8 sps:$4 sm:$0xff]   ;;  %v10349_v3 = vld [vmem:[%s11892_s27 + $0x1a4] ss:$8 sps:$4 sm:$0xff]  }
  0x4d   : > { %7255 = vmatpush1.bf16.msra.mxu1 %v10271_v6  ;;  %v10347_v6 = vld [vmem:[%s11892_s27 + $0x1a0] ss:$8 sps:$4 sm:$0xff]  }
  0x4e   : > { %7952 = vmatpush1.bf16.msra.mxu0 %v10272_v7  ;;  %7256 = vmatprep.subr.bf16.mxu1 %v10273_v8  ;;  %v10350_v7 = vld [vmem:[%s11892_s27 + $0x12a0] ss:$8 sps:$4 sm:$0xff]   ;;  %v10355_v8 = vld [vmem:[%s11892_s27 + $0x1b4] ss:$8 sps:$4 sm:$0xff]  }
  0x4f   : > { %7953 = vmatprep.subr.bf16.mxu0 %v10275_v9  ;;  %v10358_v9 = vld [vmem:[%s11892_s27 + $0x12b4] ss:$8 sps:$4 sm:$0xff]  }
  0x51   : > { %7257 = vmatpush1.bf16.msra.mxu1 %v10277_v11  ;;  %v10356_v11 = vld [vmem:[%s11892_s27 + $0x12b0] ss:$8 sps:$4 sm:$0xff]  }
  0x52   : > { %7954 = vmatpush1.bf16.msra.mxu0 %v10278_v12  ;;  %7258 = vmatprep.subr.bf16.mxu1 %v10279_v13  ;;  %v10361_v12 = vld [vmem:[%s11892_s27 + $0x1c4] ss:$8 sps:$4 sm:$0xff]  }
  0x53   : > { %7955 = vmatprep.subr.bf16.mxu0 %v10281_v14  ;;  %v10364_v13 = vld [vmem:[%s11892_s27 + $0x12c4] ss:$8 sps:$4 sm:$0xff]   ;;  %v10359_v14 = vld [vmem:[%s11892_s27 + $0x1c0] ss:$8 sps:$4 sm:$0xff]  }
  0x55   : > { %7259 = vmatpush1.bf16.msra.mxu1 %v10283_v17  ;;  %v10362_v17 = vld [vmem:[%s11892_s27 + $0x12c0] ss:$8 sps:$4 sm:$0xff]  }
  0x56   : > { %7956 = vmatpush1.bf16.msra.mxu0 %v10284_v18  ;;  %7269 = vmatprep.subr.bf16.mxu1 %v10288_v19  ;;  %v10367_v18 = vld [vmem:[%s11892_s27 + $0x1d4] ss:$8 sps:$4 sm:$0xff]  }
  0x57   : > { %7966 = vmatprep.subr.bf16.mxu0 %v10292_v20  ;;  %v10370_v19 = vld [vmem:[%s11892_s27 + $0x12d4] ss:$8 sps:$4 sm:$0xff]   ;;  %v10365_v20 = vld [vmem:[%s11892_s27 + $0x1d0] ss:$8 sps:$4 sm:$0xff]  }
  0x58   : > { %7261 = vmatmul.mubr.bf16.vlgmr.msra.gmra.mrb[0].mxu1 %v11991_v22 }
  0x59   : > { %7958 = vmatmul.mubr.bf16.vlgmr.msra.gmra.mrb[0].mxu0 %v1627_v23  ;;  %7270 = vmatpush1.bf16.msra.mxu1 %v10286_v24  ;;  %v10373_v23 = vld [vmem:[%s11892_s27 + $0x1e4] ss:$8 sps:$4 sm:$0xff]  }
  0x5a   : > { %7967 = vmatpush1.bf16.msra.mxu0 %v10290_v25  ;;  %7271 = vmatprep.subr.bf16.mxu1 %v10295_v26  ;;  %v10376_v24 = vld [vmem:[%s11892_s27 + $0x12e4] ss:$8 sps:$4 sm:$0xff]   ;;  %v1386_v25 = vcombine.high %v11947_v53, %v11947_v53  ;;  %v10371_v26 = vld [vmem:[%s11892_s27 + $0x1e0] ss:$8 sps:$4 sm:$0xff]   ;;  %v10380_v53 = vld [vmem:[%s11892_s27 + $0x12f0] ss:$8 sps:$4 sm:$0xff]  }
  0x5b   : > { %7968 = vmatprep.subr.bf16.mxu0 %v10298_v27  ;;  %7301 = vmatprep.mubr.bf16.mxu1 %v1433_v28  ;;  %v10374_v27 = vld [vmem:[%s11892_s27 + $0x12e0] ss:$8 sps:$4 sm:$0xff]   ;;  %v10379_v28 = vld [vmem:[%s11892_s27 + $0x1f4] ss:$8 sps:$4 sm:$0xff]  }
  0x5c   : > { %7998 = vmatprep.mubr.bf16.mxu0 %v12002_v29 }
  0x5d   : > { %7272 = vmatpush1.bf16.msra.mxu1 %v10293_v30  ;;  %v10382_v30 = vld [vmem:[%s11892_s27 + $0x12f4] ss:$8 sps:$4 sm:$0xff]  }
  0x5e   : > { %7969 = vmatpush1.bf16.msra.mxu0 %v10296_v31  ;;  %7273 = vmatprep.subr.bf16.mxu1 %v10301_v32  ;;  %v12065_v31 = vrot.slane %v1386_v25, %v11944_v52  ;;  %v10377_v32 = vld [vmem:[%s11892_s27 + $0x1f0] ss:$8 sps:$4 sm:$0xff]  }
  0x5f   : > { %7970 = vmatprep.subr.bf16.mxu0 %v10304_v33  ;;  %v10385_v33 = vld [vmem:[%s11892_s27 + $0x204] ss:$8 sps:$4 sm:$0xff]   ;;  %v10452_v25 = vld [vmem:[%s11892_s27 + $0x13b0] ss:$8 sps:$4 sm:$0xff]  }
  0x61   : > { %7274 = vmatpush1.bf16.msra.mxu1 %v10299_v34  ;;  %v10388_v34 = vld [vmem:[%s11892_s27 + $0x1304] ss:$8 sps:$4 sm:$0xff]  }
  0x62   : > { %7971 = vmatpush1.bf16.msra.mxu0 %v10302_v35  ;;  %7275 = vmatprep.subr.bf16.mxu1 %v10307_v36  ;;  %v1402_v35 = vcombine.high %v12065_v31, %v12065_v31  ;;  %v1431_v36 = vcombine.high %v11991_v22, %v11991_v22  ;;  %v1630_v22 = vcombine.high %v12002_v29, %v12002_v29  ;;  %v10395_v29 = vld [vmem:[%s11892_s27 + $0x220] ss:$8 sps:$4 sm:$0xff]  }
  0x63   : > { %7972 = vmatprep.subr.bf16.mxu0 %v10310_v37  ;;  %v12077_v37 = vrot.slane %v11979_v15, %v11944_v52  ;;  %v10389_v15 = vld [vmem:[%s11892_s27 + $0x210] ss:$8 sps:$4 sm:$0xff]  }
  0x65   : > { %7276 = vmatpush1.bf16.msra.mxu1 %v10305_v38  ;;  %v10383_v38 = vld [vmem:[%s11892_s27 + $0x200] ss:$8 sps:$4 sm:$0xff]  }
  0x66   : > { %7973 = vmatpush1.bf16.msra.mxu0 %v10308_v39  ;;  %7277 = vmatprep.subr.bf16.mxu1 %v10313_v40  ;;  %v10386_v39 = vld [vmem:[%s11892_s27 + $0x1300] ss:$8 sps:$4 sm:$0xff]   ;;  %v10391_v40 = vld [vmem:[%s11892_s27 + $0x214] ss:$8 sps:$4 sm:$0xff]  }
  0x67   : > { %7974 = vmatprep.subr.bf16.mxu0 %v10316_v41  ;;  %v10394_v41 = vld [vmem:[%s11892_s27 + $0x1314] ss:$8 sps:$4 sm:$0xff]  }
  0x69   : > { %7278 = vmatpush1.bf16.msra.mxu1 %v10311_v42  ;;  %v12084_v42 = vrot.slane %v1402_v35, %v11944_v52  ;;  %v10469_v35 = vld [vmem:[%s11892_s27 + $0x2e4] ss:$8 sps:$4 sm:$0xff]  }
  0x6a   : > { %7975 = vmatpush1.bf16.msra.mxu0 %v10314_v43  ;;  %7279 = vmatprep.subr.bf16.mxu1 %v10319_v44  ;;  %v10392_v43 = vld [vmem:[%s11892_s27 + $0x1310] ss:$8 sps:$4 sm:$0xff]   ;;  %v10397_v44 = vld [vmem:[%s11892_s27 + $0x224] ss:$8 sps:$4 sm:$0xff]  }
  0x6b   : > { %7976 = vmatprep.subr.bf16.mxu0 %v10322_v45  ;;  %v10400_v45 = vld [vmem:[%s11892_s27 + $0x1324] ss:$8 sps:$4 sm:$0xff]  }
  0x6d   : > { %7280 = vmatpush1.bf16.msra.mxu1 %v10317_v46  ;;  %v10398_v46 = vld [vmem:[%s11892_s27 + $0x1320] ss:$8 sps:$4 sm:$0xff]  }
  0x6e   : > { %7977 = vmatpush1.bf16.msra.mxu0 %v10320_v48  ;;  %7281 = vmatprep.subr.bf16.mxu1 %v10325_v49  ;;  %v10403_v48 = vld [vmem:[%s11892_s27 + $0x234] ss:$8 sps:$4 sm:$0xff]  }
  0x6f   : > { %7978 = vmatprep.subr.bf16.mxu0 %v10328_v50  ;;  %v10406_v49 = vld [vmem:[%s11892_s27 + $0x1334] ss:$8 sps:$4 sm:$0xff]   ;;  %v10401_v50 = vld [vmem:[%s11892_s27 + $0x230] ss:$8 sps:$4 sm:$0xff]  }
  0x71   : > { %7282 = vmatpush1.bf16.msra.mxu1 %v10323_v51  ;;  %v10404_v51 = vld [vmem:[%s11892_s27 + $0x1330] ss:$8 sps:$4 sm:$0xff]  }
  0x72   : > { %7979 = vmatpush1.bf16.msra.mxu0 %v10326_v54  ;;  %7283 = vmatprep.subr.bf16.mxu1 %v10331_v55  ;;  %v10409_v54 = vld [vmem:[%s11892_s27 + $0x244] ss:$8 sps:$4 sm:$0xff]  }
  0x73   : > { %7980 = vmatprep.subr.bf16.mxu0 %v10334_v56  ;;  %v10412_v55 = vld [vmem:[%s11892_s27 + $0x1344] ss:$8 sps:$4 sm:$0xff]   ;;  %v10407_v56 = vld [vmem:[%s11892_s27 + $0x240] ss:$8 sps:$4 sm:$0xff]  }
  0x75   : > { %7284 = vmatpush1.bf16.msra.mxu1 %v10329_v57  ;;  %v10410_v57 = vld [vmem:[%s11892_s27 + $0x1340] ss:$8 sps:$4 sm:$0xff]  }
  0x76   : > { %7981 = vmatpush1.bf16.msra.mxu0 %v10332_v58  ;;  %7285 = vmatprep.subr.bf16.mxu1 %v10337_v59  ;;  %v10415_v58 = vld [vmem:[%s11892_s27 + $0x254] ss:$8 sps:$4 sm:$0xff]  }
  0x77   : > { %7982 = vmatprep.subr.bf16.mxu0 %v10340_v60  ;;  %v10418_v59 = vld [vmem:[%s11892_s27 + $0x1354] ss:$8 sps:$4 sm:$0xff]   ;;  %v10413_v60 = vld [vmem:[%s11892_s27 + $0x250] ss:$8 sps:$4 sm:$0xff]  }
  0x79   : > { %7286 = vmatpush1.bf16.msra.mxu1 %v10335_v61  ;;  %v10416_v61 = vld [vmem:[%s11892_s27 + $0x1350] ss:$8 sps:$4 sm:$0xff]  }
  0x7a   : > { %7983 = vmatpush1.bf16.msra.mxu0 %v10338_v62  ;;  %7287 = vmatprep.subr.bf16.mxu1 %v10343_v63  ;;  %v10421_v62 = vld [vmem:[%s11892_s27 + $0x264] ss:$8 sps:$4 sm:$0xff]  }
  0x7b   : > { %7984 = vmatprep.subr.bf16.mxu0 %v10346_v0  ;;  %v10424_v63 = vld [vmem:[%s11892_s27 + $0x1364] ss:$8 sps:$4 sm:$0xff]   ;;  %v10419_v0 = vld [vmem:[%s11892_s27 + $0x260] ss:$8 sps:$4 sm:$0xff]  }
  0x7d   : > { %7288 = vmatpush1.bf16.msra.mxu1 %v10341_v1  ;;  %v10422_v1 = vld [vmem:[%s11892_s27 + $0x1360] ss:$8 sps:$4 sm:$0xff]  }
  0x7e   : > { %7985 = vmatpush1.bf16.msra.mxu0 %v10344_v2  ;;  %7289 = vmatprep.subr.bf16.mxu1 %v10349_v3  ;;  %v10427_v2 = vld [vmem:[%s11892_s27 + $0x274] ss:$8 sps:$4 sm:$0xff]  }
  0x7f   : > { %7986 = vmatprep.subr.bf16.mxu0 %v10352_v5  ;;  %v10430_v3 = vld [vmem:[%s11892_s27 + $0x1374] ss:$8 sps:$4 sm:$0xff]   ;;  %v10425_v5 = vld [vmem:[%s11892_s27 + $0x270] ss:$8 sps:$4 sm:$0xff]  }
  0x81   : > { %7290 = vmatpush1.bf16.msra.mxu1 %v10347_v6  ;;  %v10428_v6 = vld [vmem:[%s11892_s27 + $0x1370] ss:$8 sps:$4 sm:$0xff]  }
  0x82   : > { %7987 = vmatpush1.bf16.msra.mxu0 %v10350_v7  ;;  %7291 = vmatprep.subr.bf16.mxu1 %v10355_v8  ;;  %v10433_v7 = vld [vmem:[%s11892_s27 + $0x284] ss:$8 sps:$4 sm:$0xff]  }
  0x83   : > { %7988 = vmatprep.subr.bf16.mxu0 %v10358_v9  ;;  %v10436_v8 = vld [vmem:[%s11892_s27 + $0x1384] ss:$8 sps:$4 sm:$0xff]   ;;  %v10431_v9 = vld [vmem:[%s11892_s27 + $0x280] ss:$8 sps:$4 sm:$0xff]  }
  0x85   : > { %7292 = vmatpush1.bf16.msra.mxu1 %v10353_v10  ;;  %v10434_v10 = vld [vmem:[%s11892_s27 + $0x1380] ss:$8 sps:$4 sm:$0xff]  }
  0x86   : > { %7989 = vmatpush1.bf16.msra.mxu0 %v10356_v11  ;;  %7293 = vmatprep.subr.bf16.mxu1 %v10361_v12  ;;  %v10439_v11 = vld [vmem:[%s11892_s27 + $0x294] ss:$8 sps:$4 sm:$0xff]  }
  0x87   : > { %7990 = vmatprep.subr.bf16.mxu0 %v10364_v13  ;;  %v10442_v12 = vld [vmem:[%s11892_s27 + $0x1394] ss:$8 sps:$4 sm:$0xff]   ;;  %v10437_v13 = vld [vmem:[%s11892_s27 + $0x290] ss:$8 sps:$4 sm:$0xff]  }
  0x89   : > { %7294 = vmatpush1.bf16.msra.mxu1 %v10359_v14  ;;  %v10440_v14 = vld [vmem:[%s11892_s27 + $0x1390] ss:$8 sps:$4 sm:$0xff]  }
  0x8a   : > { %7991 = vmatpush1.bf16.msra.mxu0 %v10362_v17  ;;  %7295 = vmatprep.subr.bf16.mxu1 %v10367_v18  ;;  %v10445_v17 = vld [vmem:[%s11892_s27 + $0x2a4] ss:$8 sps:$4 sm:$0xff]  }
  0x8b   : > { %7992 = vmatprep.subr.bf16.mxu0 %v10370_v19  ;;  %v10448_v18 = vld [vmem:[%s11892_s27 + $0x13a4] ss:$8 sps:$4 sm:$0xff]   ;;  %v10443_v19 = vld [vmem:[%s11892_s27 + $0x2a0] ss:$8 sps:$4 sm:$0xff]  }
  0x8d   : > { %7296 = vmatpush1.bf16.msra.mxu1 %v10365_v20  ;;  %v10446_v20 = vld [vmem:[%s11892_s27 + $0x13a0] ss:$8 sps:$4 sm:$0xff]  }
  0x8e   : > { %7993 = vmatpush1.bf16.msra.mxu0 %v10368_v21  ;;  %7297 = vmatprep.subr.bf16.mxu1 %v10373_v23  ;;  %v10451_v21 = vld [vmem:[%s11892_s27 + $0x2b4] ss:$8 sps:$4 sm:$0xff]  }
  0x8f   : > { %7994 = vmatprep.subr.bf16.mxu0 %v10376_v24  ;;  %v10454_v23 = vld [vmem:[%s11892_s27 + $0x13b4] ss:$8 sps:$4 sm:$0xff]   ;;  %v10449_v24 = vld [vmem:[%s11892_s27 + $0x2b0] ss:$8 sps:$4 sm:$0xff]  }
  0x91   : > { %7298 = vmatpush1.bf16.msra.mxu1 %v10371_v26  ;;  %v10457_v26 = vld [vmem:[%s11892_s27 + $0x2c4] ss:$8 sps:$4 sm:$0xff]  }
  0x92   : > { %7995 = vmatpush1.bf16.msra.mxu0 %v10374_v27  ;;  %7299 = vmatprep.subr.bf16.mxu1 %v10379_v28  ;;  %v10460_v27 = vld [vmem:[%s11892_s27 + $0x13c4] ss:$8 sps:$4 sm:$0xff]   ;;  %v10455_v28 = vld [vmem:[%s11892_s27 + $0x2c0] ss:$8 sps:$4 sm:$0xff]  }
  0x93   : > { %7996 = vmatprep.subr.bf16.mxu0 %v10382_v30  ;;  %v10458_v30 = vld [vmem:[%s11892_s27 + $0x13c0] ss:$8 sps:$4 sm:$0xff]  }
  0x95   : > { %7300 = vmatpush1.bf16.msra.mxu1 %v10377_v32  ;;  %v10463_v32 = vld [vmem:[%s11892_s27 + $0x2d4] ss:$8 sps:$4 sm:$0xff]  }
  0x96   : > { %7997 = vmatpush1.bf16.msra.mxu0 %v10380_v53  ;;  %7310 = vmatprep.subr.bf16.mxu1 %v10385_v33  ;;  %v10466_v53 = vld [vmem:[%s11892_s27 + $0x13d4] ss:$8 sps:$4 sm:$0xff]   ;;  %v10461_v33 = vld [vmem:[%s11892_s27 + $0x2d0] ss:$8 sps:$4 sm:$0xff]  }
  0x97   : > { %8007 = vmatprep.subr.bf16.mxu0 %v10388_v34  ;;  %v10464_v34 = vld [vmem:[%s11892_s27 + $0x13d0] ss:$8 sps:$4 sm:$0xff]  }
  0x98   : > { %7302 = vmatmul.mubr.bf16.vlgmr.msra.gmra.mrb[0].mxu1 %v1431_v36  ;;  %v10472_v36 = vld [vmem:[%s11892_s27 + $0x13e4] ss:$8 sps:$4 sm:$0xff]  }
  0x99   : > { %7999 = vmatmul.mubr.bf16.vlgmr.msra.gmra.mrb[0].mxu0 %v12077_v37  ;;  %7311 = vmatpush1.bf16.msra.mxu1 %v10383_v38  ;;  %v10467_v38 = vld [vmem:[%s11892_s27 + $0x2e0] ss:$8 sps:$4 sm:$0xff]  }
  0x9a   : > { %8008 = vmatpush1.bf16.msra.mxu0 %v10386_v39  ;;  %7312 = vmatprep.subr.bf16.mxu1 %v10391_v40  ;;  %v12144_v39 = vld [vmem:[%s11887_s23 + $0x28] sm:$0xff] }
  0x9b   : > { %8009 = vmatprep.subr.bf16.mxu0 %v10394_v41  ;;  %7342 = vmatprep.mubr.bf16.mxu1 %v12084_v42  ;;  %v10470_v40 = vld [vmem:[%s11892_s27 + $0x13e0] ss:$8 sps:$4 sm:$0xff]   ;;  %v10475_v41 = vld [vmem:[%s11892_s27 + $0x2f4] ss:$8 sps:$4 sm:$0xff]  }
  0x9c   : > { %8039 = vmatprep.mubr.bf16.mxu0 %v1630_v22  ;;  %v10478_v22 = vld [vmem:[%s11892_s27 + $0x13f4] ss:$8 sps:$4 sm:$0xff]  }
  0x9d   : > { %7313 = vmatpush1.bf16.msra.mxu1 %v10389_v15  ;;  %v12151_v15 = vrot.slane %v12144_v39, %v11944_v52 }
  0x9e   : > { %8010 = vmatpush1.bf16.msra.mxu0 %v10392_v43  ;;  %7314 = vmatprep.subr.bf16.mxu1 %v10397_v44  ;;  %v10473_v43 = vld [vmem:[%s11892_s27 + $0x2f0] ss:$8 sps:$4 sm:$0xff]  }
  0x9f   : > { %8011 = vmatprep.subr.bf16.mxu0 %v10400_v45  ;;  %v10476_v44 = vld [vmem:[%s11892_s27 + $0x13f0] ss:$8 sps:$4 sm:$0xff]   ;;  %v10481_v45 = vld [vmem:[%s11892_s27 + $0x304] ss:$8 sps:$4 sm:$0xff]  }
  0xa1   : > { %7315 = vmatpush1.bf16.msra.mxu1 %v10395_v29  ;;  %v10484_v29 = vld [vmem:[%s11892_s27 + $0x1404] ss:$8 sps:$4 sm:$0xff]  }
  0xa2   : > { %8012 = vmatpush1.bf16.msra.mxu0 %v10398_v46  ;;  %7316 = vmatprep.subr.bf16.mxu1 %v10403_v48  ;;  %v1646_v46 = vcombine.high %v12151_v15, %v12151_v15  ;;  %v10479_v48 = vld [vmem:[%s11892_s27 + $0x300] ss:$8 sps:$4 sm:$0xff]  }
  0xa3   : > { %8013 = vmatprep.subr.bf16.mxu0 %v10406_v49  ;;  %v12162_v49 = vrot.slane %v12065_v31, %v11944_v52 }
  0xa4   : > { %v12172_v31 = vrot.slane %v1646_v46, %v11944_v52  ;;  %v10560_v46 = vld [vmem:[%s11892_s27 + $0x14d0] ss:$8 sps:$4 sm:$0xff]  }
  0xa5   : > { %7317 = vmatpush1.bf16.msra.mxu1 %v10401_v50  ;;  %v1628_v50 = vcombine.high %v12077_v37, %v12077_v37  ;;  %v10485_v37 = vld [vmem:[%s11892_s27 + $0x310] ss:$8 sps:$4 sm:$0xff]  }
  0xa6   : > { %8014 = vmatpush1.bf16.msra.mxu0 %v10404_v51  ;;  %7318 = vmatprep.subr.bf16.mxu1 %v10409_v54  ;;  %v10482_v51 = vld [vmem:[%s11892_s27 + $0x1400] ss:$8 sps:$4 sm:$0xff]   ;;  %v10487_v54 = vld [vmem:[%s11892_s27 + $0x314] ss:$8 sps:$4 sm:$0xff]  }
  0xa7   : > { %8015 = vmatprep.subr.bf16.mxu0 %v10412_v55  ;;  %v10490_v55 = vld [vmem:[%s11892_s27 + $0x1414] ss:$8 sps:$4 sm:$0xff]  }
  0xa9   : > { %7319 = vmatpush1.bf16.msra.mxu1 %v10407_v56  ;;  %v1434_v56 = vcombine.high %v12084_v42, %v12084_v42  ;;  %v10496_v42 = vld [vmem:[%s11892_s27 + $0x1424] ss:$8 sps:$4 sm:$0xff]  }
  0xaa   : > { %8016 = vmatpush1.bf16.msra.mxu0 %v10410_v57  ;;  %7320 = vmatprep.subr.bf16.mxu1 %v10415_v58  ;;  %v10488_v57 = vld [vmem:[%s11892_s27 + $0x1410] ss:$8 sps:$4 sm:$0xff]   ;;  %v10493_v58 = vld [vmem:[%s11892_s27 + $0x324] ss:$8 sps:$4 sm:$0xff]  }
  0xab   : > { %8017 = vmatprep.subr.bf16.mxu0 %v10418_v59  ;;  %v10491_v59 = vld [vmem:[%s11892_s27 + $0x320] ss:$8 sps:$4 sm:$0xff]  }
  0xad   : > { %7321 = vmatpush1.bf16.msra.mxu1 %v10413_v60  ;;  %v10494_v60 = vld [vmem:[%s11892_s27 + $0x1420] ss:$8 sps:$4 sm:$0xff]  }
  0xae   : > { %8018 = vmatpush1.bf16.msra.mxu0 %v10416_v61  ;;  %7322 = vmatprep.subr.bf16.mxu1 %v10421_v62  ;;  %v10499_v61 = vld [vmem:[%s11892_s27 + $0x334] ss:$8 sps:$4 sm:$0xff]  }
  0xaf   : > { %8019 = vmatprep.subr.bf16.mxu0 %v10424_v63  ;;  %v10502_v62 = vld [vmem:[%s11892_s27 + $0x1434] ss:$8 sps:$4 sm:$0xff]   ;;  %v10497_v63 = vld [vmem:[%s11892_s27 + $0x330] ss:$8 sps:$4 sm:$0xff]  }
  0xb1   : > { %7323 = vmatpush1.bf16.msra.mxu1 %v10419_v0  ;;  %v10500_v0 = vld [vmem:[%s11892_s27 + $0x1430] ss:$8 sps:$4 sm:$0xff]  }
  0xb2   : > { %8020 = vmatpush1.bf16.msra.mxu0 %v10422_v1  ;;  %7324 = vmatprep.subr.bf16.mxu1 %v10427_v2  ;;  %v10505_v1 = vld [vmem:[%s11892_s27 + $0x344] ss:$8 sps:$4 sm:$0xff]  }
  0xb3   : > { %8021 = vmatprep.subr.bf16.mxu0 %v10430_v3  ;;  %v10508_v2 = vld [vmem:[%s11892_s27 + $0x1444] ss:$8 sps:$4 sm:$0xff]   ;;  %v10503_v3 = vld [vmem:[%s11892_s27 + $0x340] ss:$8 sps:$4 sm:$0xff]  }
  0xb5   : > { %7325 = vmatpush1.bf16.msra.mxu1 %v10425_v5  ;;  %v10506_v5 = vld [vmem:[%s11892_s27 + $0x1440] ss:$8 sps:$4 sm:$0xff]  }
  0xb6   : > { %8022 = vmatpush1.bf16.msra.mxu0 %v10428_v6  ;;  %7326 = vmatprep.subr.bf16.mxu1 %v10433_v7  ;;  %v10511_v6 = vld [vmem:[%s11892_s27 + $0x354] ss:$8 sps:$4 sm:$0xff]  }
  0xb7   : > { %8023 = vmatprep.subr.bf16.mxu0 %v10436_v8  ;;  %v10514_v7 = vld [vmem:[%s11892_s27 + $0x1454] ss:$8 sps:$4 sm:$0xff]   ;;  %v10509_v8 = vld [vmem:[%s11892_s27 + $0x350] ss:$8 sps:$4 sm:$0xff]  }
  0xb9   : > { %7327 = vmatpush1.bf16.msra.mxu1 %v10431_v9  ;;  %v10512_v9 = vld [vmem:[%s11892_s27 + $0x1450] ss:$8 sps:$4 sm:$0xff]  }
  0xba   : > { %8024 = vmatpush1.bf16.msra.mxu0 %v10434_v10  ;;  %7328 = vmatprep.subr.bf16.mxu1 %v10439_v11  ;;  %v10517_v10 = vld [vmem:[%s11892_s27 + $0x364] ss:$8 sps:$4 sm:$0xff]  }
  0xbb   : > { %8025 = vmatprep.subr.bf16.mxu0 %v10442_v12  ;;  %v10520_v11 = vld [vmem:[%s11892_s27 + $0x1464] ss:$8 sps:$4 sm:$0xff]   ;;  %v10515_v12 = vld [vmem:[%s11892_s27 + $0x360] ss:$8 sps:$4 sm:$0xff]  }
  0xbd   : > { %7329 = vmatpush1.bf16.msra.mxu1 %v10437_v13  ;;  %v10518_v13 = vld [vmem:[%s11892_s27 + $0x1460] ss:$8 sps:$4 sm:$0xff]  }
  0xbe   : > { %8026 = vmatpush1.bf16.msra.mxu0 %v10440_v14  ;;  %7330 = vmatprep.subr.bf16.mxu1 %v10445_v17  ;;  %v10523_v14 = vld [vmem:[%s11892_s27 + $0x374] ss:$8 sps:$4 sm:$0xff]  }
  0xbf   : > { %8027 = vmatprep.subr.bf16.mxu0 %v10448_v18  ;;  %v10526_v17 = vld [vmem:[%s11892_s27 + $0x1474] ss:$8 sps:$4 sm:$0xff]   ;;  %v10521_v18 = vld [vmem:[%s11892_s27 + $0x370] ss:$8 sps:$4 sm:$0xff]  }
  0xc1   : > { %7331 = vmatpush1.bf16.msra.mxu1 %v10443_v19  ;;  %v10524_v19 = vld [vmem:[%s11892_s27 + $0x1470] ss:$8 sps:$4 sm:$0xff]  }
  0xc2   : > { %8028 = vmatpush1.bf16.msra.mxu0 %v10446_v20  ;;  %7332 = vmatprep.subr.bf16.mxu1 %v10451_v21  ;;  %v10529_v20 = vld [vmem:[%s11892_s27 + $0x384] ss:$8 sps:$4 sm:$0xff]  }
  0xc3   : > { %8029 = vmatprep.subr.bf16.mxu0 %v10454_v23  ;;  %v10532_v21 = vld [vmem:[%s11892_s27 + $0x1484] ss:$8 sps:$4 sm:$0xff]   ;;  %v10527_v23 = vld [vmem:[%s11892_s27 + $0x380] ss:$8 sps:$4 sm:$0xff]  }
  0xc5   : > { %7333 = vmatpush1.bf16.msra.mxu1 %v10449_v24  ;;  %v10530_v24 = vld [vmem:[%s11892_s27 + $0x1480] ss:$8 sps:$4 sm:$0xff]  }
  0xc6   : > { %8030 = vmatpush1.bf16.msra.mxu0 %v10452_v25  ;;  %7334 = vmatprep.subr.bf16.mxu1 %v10457_v26  ;;  %v10535_v25 = vld [vmem:[%s11892_s27 + $0x394] ss:$8 sps:$4 sm:$0xff]  }
  0xc7   : > { %8031 = vmatprep.subr.bf16.mxu0 %v10460_v27  ;;  %v10538_v26 = vld [vmem:[%s11892_s27 + $0x1494] ss:$8 sps:$4 sm:$0xff]   ;;  %v10533_v27 = vld [vmem:[%s11892_s27 + $0x390] ss:$8 sps:$4 sm:$0xff]  }
  0xc9   : > { %7335 = vmatpush1.bf16.msra.mxu1 %v10455_v28  ;;  %v10536_v28 = vld [vmem:[%s11892_s27 + $0x1490] ss:$8 sps:$4 sm:$0xff]  }
  0xca   : > { %8032 = vmatpush1.bf16.msra.mxu0 %v10458_v30  ;;  %7336 = vmatprep.subr.bf16.mxu1 %v10463_v32  ;;  %v10541_v30 = vld [vmem:[%s11892_s27 + $0x3a4] ss:$8 sps:$4 sm:$0xff]  }
  0xcb   : > { %8033 = vmatprep.subr.bf16.mxu0 %v10466_v53  ;;  %v10544_v32 = vld [vmem:[%s11892_s27 + $0x14a4] ss:$8 sps:$4 sm:$0xff]   ;;  %v10539_v53 = vld [vmem:[%s11892_s27 + $0x3a0] ss:$8 sps:$4 sm:$0xff]  }
  0xcd   : > { %7337 = vmatpush1.bf16.msra.mxu1 %v10461_v33  ;;  %v10542_v33 = vld [vmem:[%s11892_s27 + $0x14a0] ss:$8 sps:$4 sm:$0xff]  }
  0xce   : > { %8034 = vmatpush1.bf16.msra.mxu0 %v10464_v34  ;;  %7338 = vmatprep.subr.bf16.mxu1 %v10469_v35  ;;  %v10547_v34 = vld [vmem:[%s11892_s27 + $0x3b4] ss:$8 sps:$4 sm:$0xff]  }
  0xcf   : > { %8035 = vmatprep.subr.bf16.mxu0 %v10472_v36  ;;  %v10550_v35 = vld [vmem:[%s11892_s27 + $0x14b4] ss:$8 sps:$4 sm:$0xff]   ;;  %v10545_v36 = vld [vmem:[%s11892_s27 + $0x3b0] ss:$8 sps:$4 sm:$0xff]  }
  0xd1   : > { %7339 = vmatpush1.bf16.msra.mxu1 %v10467_v38  ;;  %v10548_v38 = vld [vmem:[%s11892_s27 + $0x14b0] ss:$8 sps:$4 sm:$0xff]  }
  0xd2   : > { %8036 = vmatpush1.bf16.msra.mxu0 %v10470_v40  ;;  %7340 = vmatprep.subr.bf16.mxu1 %v10475_v41  ;;  %v10553_v40 = vld [vmem:[%s11892_s27 + $0x3c4] ss:$8 sps:$4 sm:$0xff]  }
  0xd3   : > { %8037 = vmatprep.subr.bf16.mxu0 %v10478_v22  ;;  %v10556_v41 = vld [vmem:[%s11892_s27 + $0x14c4] ss:$8 sps:$4 sm:$0xff]   ;;  %v10551_v22 = vld [vmem:[%s11892_s27 + $0x3c0] ss:$8 sps:$4 sm:$0xff]  }
  0xd5   : > { %7341 = vmatpush1.bf16.msra.mxu1 %v10473_v43  ;;  %v10554_v43 = vld [vmem:[%s11892_s27 + $0x14c0] ss:$8 sps:$4 sm:$0xff]  }
  0xd6   : > { %8038 = vmatpush1.bf16.msra.mxu0 %v10476_v44  ;;  %7351 = vmatprep.subr.bf16.mxu1 %v10481_v45  ;;  %v10559_v44 = vld [vmem:[%s11892_s27 + $0x3d4] ss:$8 sps:$4 sm:$0xff]  }
  0xd7   : > { %8048 = vmatprep.subr.bf16.mxu0 %v10484_v29  ;;  %v10562_v45 = vld [vmem:[%s11892_s27 + $0x14d4] ss:$8 sps:$4 sm:$0xff]   ;;  %v10557_v29 = vld [vmem:[%s11892_s27 + $0x3d0] ss:$8 sps:$4 sm:$0xff]  }
  0xd8   : > { %7343 = vmatmul.mubr.bf16.vlgmr.msra.gmra.mrb[0].mxu1 %v12162_v49 }
  0xd9   : > { %8040 = vmatmul.mubr.bf16.vlgmr.msra.gmra.mrb[0].mxu0 %v1628_v50  ;;  %7352 = vmatpush1.bf16.msra.mxu1 %v10479_v48  ;;  %v10565_v48 = vld [vmem:[%s11892_s27 + $0x3e4] ss:$8 sps:$4 sm:$0xff]  }
  0xda   : > { %8049 = vmatpush1.bf16.msra.mxu0 %v10482_v51  ;;  %7353 = vmatprep.subr.bf16.mxu1 %v10487_v54  ;;  %v10568_v50 = vld [vmem:[%s11892_s27 + $0x14e4] ss:$8 sps:$4 sm:$0xff]   ;;  %v10563_v51 = vld [vmem:[%s11892_s27 + $0x3e0] ss:$8 sps:$4 sm:$0xff]  }
  0xdb   : > { %8050 = vmatprep.subr.bf16.mxu0 %v10490_v55  ;;  %7383 = vmatprep.mubr.bf16.mxu1 %v1434_v56  ;;  %v10566_v54 = vld [vmem:[%s11892_s27 + $0x14e0] ss:$8 sps:$4 sm:$0xff]   ;;  %v10571_v56 = vld [vmem:[%s11892_s27 + $0x3f4] ss:$8 sps:$4 sm:$0xff]  }
  0xdc   : > { %8080 = vmatprep.mubr.bf16.mxu0 %v12172_v31  ;;  %v12231_v55 = vld.sshfl [vmem:[%s11887_s23 + $0x8] sm:$0xff pattern:$0x75316420] }
  0xdd   : > { %7354 = vmatpush1.bf16.msra.mxu1 %v10485_v37  ;;  %v10574_v37 = vld [vmem:[%s11892_s27 + $0x14f4] ss:$8 sps:$4 sm:$0xff]  }
  0xde   : > { %8051 = vmatpush1.bf16.msra.mxu0 %v10488_v57  ;;  %7355 = vmatprep.subr.bf16.mxu1 %v10493_v58  ;;  %v10569_v57 = vld [vmem:[%s11892_s27 + $0x3f0] ss:$8 sps:$4 sm:$0xff]  }
  0xdf   : > { %8052 = vmatprep.subr.bf16.mxu0 %v10496_v42  ;;  %v10572_v58 = vld [vmem:[%s11892_s27 + $0x14f0] ss:$8 sps:$4 sm:$0xff]   ;;  %v10577_v42 = vld [vmem:[%s11892_s27 + $0x404] ss:$8 sps:$4 sm:$0xff]  }
  0xe1   : > { %7356 = vmatpush1.bf16.msra.mxu1 %v10491_v59  ;;  %v10580_v59 = vld [vmem:[%s11892_s27 + $0x1504] ss:$8 sps:$4 sm:$0xff]  }
  0xe2   : > { %8053 = vmatpush1.bf16.msra.mxu0 %v10494_v60  ;;  %7357 = vmatprep.subr.bf16.mxu1 %v10499_v61  ;;  %v1450_v60 = vcombine.high %v12231_v55, %v12231_v55  ;;  %v10575_v61 = vld [vmem:[%s11892_s27 + $0x400] ss:$8 sps:$4 sm:$0xff]  }
  0xe3   : > { %8054 = vmatprep.subr.bf16.mxu0 %v10502_v62  ;;  %v10578_v62 = vld [vmem:[%s11892_s27 + $0x1500] ss:$8 sps:$4 sm:$0xff]  }
  0xe5   : > { %7358 = vmatpush1.bf16.msra.mxu1 %v10497_v63  ;;  %v1432_v63 = vcombine.high %v12162_v49, %v12162_v49  ;;  %v10584_v49 = vld [vmem:[%s11892_s27 + $0x1510] ss:$8 sps:$4 sm:$0xff]  }
  0xe6   : > { %8055 = vmatpush1.bf16.msra.mxu0 %v10500_v0  ;;  %7359 = vmatprep.subr.bf16.mxu1 %v10505_v1  ;;  %v12247_v0 = vrot.slane %v12151_v15, %v11944_v52  ;;  %v10583_v1 = vld [vmem:[%s11892_s27 + $0x414] ss:$8 sps:$4 sm:$0xff]   ;;  %v10581_v15 = vld [vmem:[%s11892_s27 + $0x410] ss:$8 sps:$4 sm:$0xff]  }
  0xe7   : > { %8056 = vmatprep.subr.bf16.mxu0 %v10508_v2  ;;  %v10586_v2 = vld [vmem:[%s11892_s27 + $0x1514] ss:$8 sps:$4 sm:$0xff]  }
  0xe9   : > { %7360 = vmatpush1.bf16.msra.mxu1 %v10503_v3  ;;  %v12252_v3 = vrot.slane %v1450_v60, %v11944_v52  ;;  %v10656_v60 = vld [vmem:[%s11892_s27 + $0x15d0] ss:$8 sps:$4 sm:$0xff]  }
  0xea   : > { %8057 = vmatpush1.bf16.msra.mxu0 %v10506_v5  ;;  %7361 = vmatprep.subr.bf16.mxu1 %v10511_v6  ;;  %v1678_v5 = vcombine.high %v12172_v31, %v12172_v31  ;;  %v10589_v6 = vld [vmem:[%s11892_s27 + $0x424] ss:$8 sps:$4 sm:$0xff]   ;;  %v10587_v31 = vld [vmem:[%s11892_s27 + $0x420] ss:$8 sps:$4 sm:$0xff]  }
  0xeb   : > { %8058 = vmatprep.subr.bf16.mxu0 %v10514_v7  ;;  %v10592_v7 = vld [vmem:[%s11892_s27 + $0x1524] ss:$8 sps:$4 sm:$0xff]  }
  0xed   : > { %7362 = vmatpush1.bf16.msra.mxu1 %v10509_v8  ;;  %v10590_v8 = vld [vmem:[%s11892_s27 + $0x1520] ss:$8 sps:$4 sm:$0xff]  }
  0xee   : > { %8059 = vmatpush1.bf16.msra.mxu0 %v10512_v9  ;;  %7363 = vmatprep.subr.bf16.mxu1 %v10517_v10  ;;  %v10595_v9 = vld [vmem:[%s11892_s27 + $0x434] ss:$8 sps:$4 sm:$0xff]  }
  0xef   : > { %8060 = vmatprep.subr.bf16.mxu0 %v10520_v11  ;;  %v10598_v10 = vld [vmem:[%s11892_s27 + $0x1534] ss:$8 sps:$4 sm:$0xff]   ;;  %v10593_v11 = vld [vmem:[%s11892_s27 + $0x430] ss:$8 sps:$4 sm:$0xff]  }
  0xf1   : > { %7364 = vmatpush1.bf16.msra.mxu1 %v10515_v12  ;;  %v10596_v12 = vld [vmem:[%s11892_s27 + $0x1530] ss:$8 sps:$4 sm:$0xff]  }
  0xf2   : > { %8061 = vmatpush1.bf16.msra.mxu0 %v10518_v13  ;;  %7365 = vmatprep.subr.bf16.mxu1 %v10523_v14  ;;  %v10601_v13 = vld [vmem:[%s11892_s27 + $0x444] ss:$8 sps:$4 sm:$0xff]  }
  0xf3   : > { %8062 = vmatprep.subr.bf16.mxu0 %v10526_v17  ;;  %v10604_v14 = vld [vmem:[%s11892_s27 + $0x1544] ss:$8 sps:$4 sm:$0xff]   ;;  %v10599_v17 = vld [vmem:[%s11892_s27 + $0x440] ss:$8 sps:$4 sm:$0xff]  }
  0xf5   : > { %7366 = vmatpush1.bf16.msra.mxu1 %v10521_v18  ;;  %v10602_v18 = vld [vmem:[%s11892_s27 + $0x1540] ss:$8 sps:$4 sm:$0xff]  }
  0xf6   : > { %8063 = vmatpush1.bf16.msra.mxu0 %v10524_v19  ;;  %7367 = vmatprep.subr.bf16.mxu1 %v10529_v20  ;;  %v10607_v19 = vld [vmem:[%s11892_s27 + $0x454] ss:$8 sps:$4 sm:$0xff]  }
  0xf7   : > { %8064 = vmatprep.subr.bf16.mxu0 %v10532_v21  ;;  %v10610_v20 = vld [vmem:[%s11892_s27 + $0x1554] ss:$8 sps:$4 sm:$0xff]   ;;  %v10605_v21 = vld [vmem:[%s11892_s27 + $0x450] ss:$8 sps:$4 sm:$0xff]  }
  0xf9   : > { %7368 = vmatpush1.bf16.msra.mxu1 %v10527_v23  ;;  %v10608_v23 = vld [vmem:[%s11892_s27 + $0x1550] ss:$8 sps:$4 sm:$0xff]  }
  0xfa   : > { %8065 = vmatpush1.bf16.msra.mxu0 %v10530_v24  ;;  %7369 = vmatprep.subr.bf16.mxu1 %v10535_v25  ;;  %v10613_v24 = vld [vmem:[%s11892_s27 + $0x464] ss:$8 sps:$4 sm:$0xff]  }
  0xfb   : > { %8066 = vmatprep.subr.bf16.mxu0 %v10538_v26  ;;  %v10616_v25 = vld [vmem:[%s11892_s27 + $0x1564] ss:$8 sps:$4 sm:$0xff]   ;;  %v10611_v26 = vld [vmem:[%s11892_s27 + $0x460] ss:$8 sps:$4 sm:$0xff]  }
  0xfd   : > { %7370 = vmatpush1.bf16.msra.mxu1 %v10533_v27  ;;  %v10614_v27 = vld [vmem:[%s11892_s27 + $0x1560] ss:$8 sps:$4 sm:$0xff]  }
  0xfe   : > { %8067 = vmatpush1.bf16.msra.mxu0 %v10536_v28  ;;  %7371 = vmatprep.subr.bf16.mxu1 %v10541_v30  ;;  %v10619_v28 = vld [vmem:[%s11892_s27 + $0x474] ss:$8 sps:$4 sm:$0xff]  }
  0xff   : > { %8068 = vmatprep.subr.bf16.mxu0 %v10544_v32  ;;  %v10622_v30 = vld [vmem:[%s11892_s27 + $0x1574] ss:$8 sps:$4 sm:$0xff]   ;;  %v10617_v32 = vld [vmem:[%s11892_s27 + $0x470] ss:$8 sps:$4 sm:$0xff]  }
 0x101   : > { %7372 = vmatpush1.bf16.msra.mxu1 %v10539_v53  ;;  %v10620_v53 = vld [vmem:[%s11892_s27 + $0x1570] ss:$8 sps:$4 sm:$0xff]  }
 0x102   : > { %8069 = vmatpush1.bf16.msra.mxu0 %v10542_v33  ;;  %7373 = vmatprep.subr.bf16.mxu1 %v10547_v34  ;;  %v10625_v33 = vld [vmem:[%s11892_s27 + $0x484] ss:$8 sps:$4 sm:$0xff]  }
 0x103   : > { %8070 = vmatprep.subr.bf16.mxu0 %v10550_v35  ;;  %v10628_v34 = vld [vmem:[%s11892_s27 + $0x1584] ss:$8 sps:$4 sm:$0xff]   ;;  %v10623_v35 = vld [vmem:[%s11892_s27 + $0x480] ss:$8 sps:$4 sm:$0xff]  }
 0x105   : > { %7374 = vmatpush1.bf16.msra.mxu1 %v10545_v36  ;;  %v10626_v36 = vld [vmem:[%s11892_s27 + $0x1580] ss:$8 sps:$4 sm:$0xff]  }
 0x106   : > { %8071 = vmatpush1.bf16.msra.mxu0 %v10548_v38  ;;  %7375 = vmatprep.subr.bf16.mxu1 %v10553_v40  ;;  %v10631_v38 = vld [vmem:[%s11892_s27 + $0x494] ss:$8 sps:$4 sm:$0xff]  }
 0x107   : > { %8072 = vmatprep.subr.bf16.mxu0 %v10556_v41  ;;  %v10634_v40 = vld [vmem:[%s11892_s27 + $0x1594] ss:$8 sps:$4 sm:$0xff]   ;;  %v10629_v41 = vld [vmem:[%s11892_s27 + $0x490] ss:$8 sps:$4 sm:$0xff]  }
 0x109   : > { %7376 = vmatpush1.bf16.msra.mxu1 %v10551_v22  ;;  %v10632_v22 = vld [vmem:[%s11892_s27 + $0x1590] ss:$8 sps:$4 sm:$0xff]  }
 0x10a   : > { %8073 = vmatpush1.bf16.msra.mxu0 %v10554_v43  ;;  %7377 = vmatprep.subr.bf16.mxu1 %v10559_v44  ;;  %v10637_v43 = vld [vmem:[%s11892_s27 + $0x4a4] ss:$8 sps:$4 sm:$0xff]  }
 0x10b   : > { %8074 = vmatprep.subr.bf16.mxu0 %v10562_v45  ;;  %v10640_v44 = vld [vmem:[%s11892_s27 + $0x15a4] ss:$8 sps:$4 sm:$0xff]   ;;  %v10635_v45 = vld [vmem:[%s11892_s27 + $0x4a0] ss:$8 sps:$4 sm:$0xff]  }
 0x10d   : > { %7378 = vmatpush1.bf16.msra.mxu1 %v10557_v29  ;;  %v10638_v29 = vld [vmem:[%s11892_s27 + $0x15a0] ss:$8 sps:$4 sm:$0xff]  }
 0x10e   : > { %8075 = vmatpush1.bf16.msra.mxu0 %v10560_v46  ;;  %7379 = vmatprep.subr.bf16.mxu1 %v10565_v48  ;;  %v10643_v46 = vld [vmem:[%s11892_s27 + $0x4b4] ss:$8 sps:$4 sm:$0xff]  }
 0x10f   : > { %8076 = vmatprep.subr.bf16.mxu0 %v10568_v50  ;;  %v10646_v48 = vld [vmem:[%s11892_s27 + $0x15b4] ss:$8 sps:$4 sm:$0xff]   ;;  %v10641_v50 = vld [vmem:[%s11892_s27 + $0x4b0] ss:$8 sps:$4 sm:$0xff]  }
 0x111   : > { %7380 = vmatpush1.bf16.msra.mxu1 %v10563_v51  ;;  %v10644_v51 = vld [vmem:[%s11892_s27 + $0x15b0] ss:$8 sps:$4 sm:$0xff]  }
 0x112   : > { %8077 = vmatpush1.bf16.msra.mxu0 %v10566_v54  ;;  %7381 = vmatprep.subr.bf16.mxu1 %v10571_v56  ;;  %v10649_v54 = vld [vmem:[%s11892_s27 + $0x4c4] ss:$8 sps:$4 sm:$0xff]  }
 0x113   : > { %8078 = vmatprep.subr.bf16.mxu0 %v10574_v37  ;;  %v10652_v56 = vld [vmem:[%s11892_s27 + $0x15c4] ss:$8 sps:$4 sm:$0xff]   ;;  %v10647_v37 = vld [vmem:[%s11892_s27 + $0x4c0] ss:$8 sps:$4 sm:$0xff]  }
 0x115   : > { %7382 = vmatpush1.bf16.msra.mxu1 %v10569_v57  ;;  %v10650_v57 = vld [vmem:[%s11892_s27 + $0x15c0] ss:$8 sps:$4 sm:$0xff]  }
 0x116   : > { %8079 = vmatpush1.bf16.msra.mxu0 %v10572_v58  ;;  %7392 = vmatprep.subr.bf16.mxu1 %v10577_v42  ;;  %v10655_v58 = vld [vmem:[%s11892_s27 + $0x4d4] ss:$8 sps:$4 sm:$0xff]  }
 0x117   : > { %8089 = vmatprep.subr.bf16.mxu0 %v10580_v59  ;;  %v10658_v42 = vld [vmem:[%s11892_s27 + $0x15d4] ss:$8 sps:$4 sm:$0xff]   ;;  %v10653_v59 = vld [vmem:[%s11892_s27 + $0x4d0] ss:$8 sps:$4 sm:$0xff]  }
 0x118   : > { %7384 = vmatmul.mubr.bf16.vlgmr.msra.gmra.mrb[0].mxu1 %v1432_v63  ;;  %v1631_v63 = vcombine.high %v12144_v39, %v12144_v39  ;;  %v10668_v39 = vld [vmem:[%s11892_s27 + $0x15f0] ss:$8 sps:$4 sm:$0xff]  }
 0x119   : > { %8081 = vmatmul.mubr.bf16.vlgmr.msra.gmra.mrb[0].mxu0 %v12247_v0  ;;  %7393 = vmatpush1.bf16.msra.mxu1 %v10575_v61  ;;  %v10661_v61 = vld [vmem:[%s11892_s27 + $0x4e4] ss:$8 sps:$4 sm:$0xff]  }
 0x11a   : > { %8090 = vmatpush1.bf16.msra.mxu0 %v10578_v62  ;;  %7394 = vmatprep.subr.bf16.mxu1 %v10583_v1  ;;  %v10664_v62 = vld [vmem:[%s11892_s27 + $0x15e4] ss:$8 sps:$4 sm:$0xff]   ;;  %v10659_v1 = vld [vmem:[%s11892_s27 + $0x4e0] ss:$8 sps:$4 sm:$0xff]  }
 0x11b   : > { %8091 = vmatprep.subr.bf16.mxu0 %v10586_v2  ;;  %7424 = vmatprep.mubr.bf16.mxu1 %v12252_v3  ;;  %v10662_v2 = vld [vmem:[%s11892_s27 + $0x15e0] ss:$8 sps:$4 sm:$0xff]  }
 0x11c   : > { %8121 = vmatprep.mubr.bf16.mxu0 %v1678_v5  ;;  %v10667_v5 = vld [vmem:[%s11892_s27 + $0x4f4] ss:$8 sps:$4 sm:$0xff]  }
 0x11d   : > { %7395 = vmatpush1.bf16.msra.mxu1 %v10581_v15  ;;  %v10670_v15 = vld [vmem:[%s11892_s27 + $0x15f4] ss:$8 sps:$4 sm:$0xff]  }
 0x11e   : > { %8092 = vmatpush1.bf16.msra.mxu0 %v10584_v49  ;;  %7396 = vmatprep.subr.bf16.mxu1 %v10589_v6  ;;  %v12317_v49 = vrot.slane %v1631_v63, %v11944_v52  ;;  %v10665_v6 = vld [vmem:[%s11892_s27 + $0x4f0] ss:$8 sps:$4 sm:$0xff]  }
 0x11f   : > { %8093 = vmatprep.subr.bf16.mxu0 %v10592_v7  ;;  %v10673_v7 = vld [vmem:[%s11892_s27 + $0x504] ss:$8 sps:$4 sm:$0xff]   ;;  %v10740_v63 = vld [vmem:[%s11892_s27 + $0x16b0] ss:$8 sps:$4 sm:$0xff]  }
 0x121   : > { %7397 = vmatpush1.bf16.msra.mxu1 %v10587_v31  ;;  %v10676_v31 = vld [vmem:[%s11892_s27 + $0x1604] ss:$8 sps:$4 sm:$0xff]  }
 0x122   : > { %8094 = vmatpush1.bf16.msra.mxu0 %v10590_v8  ;;  %7398 = vmatprep.subr.bf16.mxu1 %v10595_v9  ;;  %v1647_v8 = vcombine.high %v12317_v49, %v12317_v49  ;;  %v12327_v9 = vrot.slane %v12231_v55, %v11944_v52 }
 0x123   : > { %8095 = vmatprep.subr.bf16.mxu0 %v10598_v10  ;;  %v1676_v10 = vcombine.high %v12247_v0, %v12247_v0  ;;  %v10677_v0 = vld [vmem:[%s11892_s27 + $0x510] ss:$8 sps:$4 sm:$0xff]  }
 0x124   : > { %v12338_v55 = vrot.slane %v1647_v8, %v11944_v52  ;;  %v10757_v8 = vld [vmem:[%s11892_s27 + $0x5e4] ss:$8 sps:$4 sm:$0xff]  }
 0x125   : > { %7399 = vmatpush1.bf16.msra.mxu1 %v10593_v11  ;;  %v10671_v11 = vld [vmem:[%s11892_s27 + $0x500] ss:$8 sps:$4 sm:$0xff]  }
 0x126   : > { %8096 = vmatpush1.bf16.msra.mxu0 %v10596_v12  ;;  %7400 = vmatprep.subr.bf16.mxu1 %v10601_v13  ;;  %v10674_v12 = vld [vmem:[%s11892_s27 + $0x1600] ss:$8 sps:$4 sm:$0xff]   ;;  %v10679_v13 = vld [vmem:[%s11892_s27 + $0x514] ss:$8 sps:$4 sm:$0xff]  }
 0x127   : > { %8097 = vmatprep.subr.bf16.mxu0 %v10604_v14  ;;  %v10682_v14 = vld [vmem:[%s11892_s27 + $0x1614] ss:$8 sps:$4 sm:$0xff]  }
 0x129   : > { %7401 = vmatpush1.bf16.msra.mxu1 %v10599_v17  ;;  %v1482_v17 = vcombine.high %v12252_v3, %v12252_v3  ;;  %v10688_v3 = vld [vmem:[%s11892_s27 + $0x1624] ss:$8 sps:$4 sm:$0xff]  }
 0x12a   : > { %8098 = vmatpush1.bf16.msra.mxu0 %v10602_v18  ;;  %7402 = vmatprep.subr.bf16.mxu1 %v10607_v19  ;;  %v10680_v18 = vld [vmem:[%s11892_s27 + $0x1610] ss:$8 sps:$4 sm:$0xff]   ;;  %v10685_v19 = vld [vmem:[%s11892_s27 + $0x524] ss:$8 sps:$4 sm:$0xff]  }
 0x12b   : > { %8099 = vmatprep.subr.bf16.mxu0 %v10610_v20  ;;  %v10683_v20 = vld [vmem:[%s11892_s27 + $0x520] ss:$8 sps:$4 sm:$0xff]  }
 0x12d   : > { %7403 = vmatpush1.bf16.msra.mxu1 %v10605_v21  ;;  %v10686_v21 = vld [vmem:[%s11892_s27 + $0x1620] ss:$8 sps:$4 sm:$0xff]  }
 0x12e   : > { %8100 = vmatpush1.bf16.msra.mxu0 %v10608_v23  ;;  %7404 = vmatprep.subr.bf16.mxu1 %v10613_v24  ;;  %v10691_v23 = vld [vmem:[%s11892_s27 + $0x534] ss:$8 sps:$4 sm:$0xff]  }
 0x12f   : > { %8101 = vmatprep.subr.bf16.mxu0 %v10616_v25  ;;  %v10694_v24 = vld [vmem:[%s11892_s27 + $0x1634] ss:$8 sps:$4 sm:$0xff]   ;;  %v10689_v25 = vld [vmem:[%s11892_s27 + $0x530] ss:$8 sps:$4 sm:$0xff]  }
 0x131   : > { %7405 = vmatpush1.bf16.msra.mxu1 %v10611_v26  ;;  %v10692_v26 = vld [vmem:[%s11892_s27 + $0x1630] ss:$8 sps:$4 sm:$0xff]  }
 0x132   : > { %8102 = vmatpush1.bf16.msra.mxu0 %v10614_v27  ;;  %7406 = vmatprep.subr.bf16.mxu1 %v10619_v28  ;;  %v10697_v27 = vld [vmem:[%s11892_s27 + $0x544] ss:$8 sps:$4 sm:$0xff]  }
 0x133   : > { %8103 = vmatprep.subr.bf16.mxu0 %v10622_v30  ;;  %v10700_v28 = vld [vmem:[%s11892_s27 + $0x1644] ss:$8 sps:$4 sm:$0xff]   ;;  %v10695_v30 = vld [vmem:[%s11892_s27 + $0x540] ss:$8 sps:$4 sm:$0xff]  }
 0x135   : > { %7407 = vmatpush1.bf16.msra.mxu1 %v10617_v32  ;;  %v10698_v32 = vld [vmem:[%s11892_s27 + $0x1640] ss:$8 sps:$4 sm:$0xff]  }
 0x136   : > { %8104 = vmatpush1.bf16.msra.mxu0 %v10620_v53  ;;  %7408 = vmatprep.subr.bf16.mxu1 %v10625_v33  ;;  %v10703_v53 = vld [vmem:[%s11892_s27 + $0x554] ss:$8 sps:$4 sm:$0xff]  }
 0x137   : > { %8105 = vmatprep.subr.bf16.mxu0 %v10628_v34  ;;  %v10706_v33 = vld [vmem:[%s11892_s27 + $0x1654] ss:$8 sps:$4 sm:$0xff]   ;;  %v10701_v34 = vld [vmem:[%s11892_s27 + $0x550] ss:$8 sps:$4 sm:$0xff]  }
 0x139   : > { %7409 = vmatpush1.bf16.msra.mxu1 %v10623_v35  ;;  %v10704_v35 = vld [vmem:[%s11892_s27 + $0x1650] ss:$8 sps:$4 sm:$0xff]  }
 0x13a   : > { %8106 = vmatpush1.bf16.msra.mxu0 %v10626_v36  ;;  %7410 = vmatprep.subr.bf16.mxu1 %v10631_v38  ;;  %v10709_v36 = vld [vmem:[%s11892_s27 + $0x564] ss:$8 sps:$4 sm:$0xff]  }
 0x13b   : > { %8107 = vmatprep.subr.bf16.mxu0 %v10634_v40  ;;  %v10712_v38 = vld [vmem:[%s11892_s27 + $0x1664] ss:$8 sps:$4 sm:$0xff]   ;;  %v10707_v40 = vld [vmem:[%s11892_s27 + $0x560] ss:$8 sps:$4 sm:$0xff]  }
 0x13d   : > { %7411 = vmatpush1.bf16.msra.mxu1 %v10629_v41  ;;  %v10710_v41 = vld [vmem:[%s11892_s27 + $0x1660] ss:$8 sps:$4 sm:$0xff]  }
 0x13e   : > { %8108 = vmatpush1.bf16.msra.mxu0 %v10632_v22  ;;  %7412 = vmatprep.subr.bf16.mxu1 %v10637_v43  ;;  %v10715_v22 = vld [vmem:[%s11892_s27 + $0x574] ss:$8 sps:$4 sm:$0xff]  }
 0x13f   : > { %8109 = vmatprep.subr.bf16.mxu0 %v10640_v44  ;;  %v10718_v43 = vld [vmem:[%s11892_s27 + $0x1674] ss:$8 sps:$4 sm:$0xff]   ;;  %v10713_v44 = vld [vmem:[%s11892_s27 + $0x570] ss:$8 sps:$4 sm:$0xff]  }
 0x141   : > { %7413 = vmatpush1.bf16.msra.mxu1 %v10635_v45  ;;  %v10716_v45 = vld [vmem:[%s11892_s27 + $0x1670] ss:$8 sps:$4 sm:$0xff]  }
 0x142   : > { %8110 = vmatpush1.bf16.msra.mxu0 %v10638_v29  ;;  %7414 = vmatprep.subr.bf16.mxu1 %v10643_v46  ;;  %v10721_v29 = vld [vmem:[%s11892_s27 + $0x584] ss:$8 sps:$4 sm:$0xff]  }
 0x143   : > { %8111 = vmatprep.subr.bf16.mxu0 %v10646_v48  ;;  %v10724_v46 = vld [vmem:[%s11892_s27 + $0x1684] ss:$8 sps:$4 sm:$0xff]   ;;  %v10719_v48 = vld [vmem:[%s11892_s27 + $0x580] ss:$8 sps:$4 sm:$0xff]  }
 0x145   : > { %7415 = vmatpush1.bf16.msra.mxu1 %v10641_v50  ;;  %v10722_v50 = vld [vmem:[%s11892_s27 + $0x1680] ss:$8 sps:$4 sm:$0xff]  }
 0x146   : > { %8112 = vmatpush1.bf16.msra.mxu0 %v10644_v51  ;;  %7416 = vmatprep.subr.bf16.mxu1 %v10649_v54  ;;  %v10727_v51 = vld [vmem:[%s11892_s27 + $0x594] ss:$8 sps:$4 sm:$0xff]  }
 0x147   : > { %8113 = vmatprep.subr.bf16.mxu0 %v10652_v56  ;;  %v10730_v54 = vld [vmem:[%s11892_s27 + $0x1694] ss:$8 sps:$4 sm:$0xff]   ;;  %v10725_v56 = vld [vmem:[%s11892_s27 + $0x590] ss:$8 sps:$4 sm:$0xff]  }
 0x149   : > { %7417 = vmatpush1.bf16.msra.mxu1 %v10647_v37  ;;  %v10728_v37 = vld [vmem:[%s11892_s27 + $0x1690] ss:$8 sps:$4 sm:$0xff]  }
 0x14a   : > { %8114 = vmatpush1.bf16.msra.mxu0 %v10650_v57  ;;  %7418 = vmatprep.subr.bf16.mxu1 %v10655_v58  ;;  %v10733_v57 = vld [vmem:[%s11892_s27 + $0x5a4] ss:$8 sps:$4 sm:$0xff]  }
 0x14b   : > { %8115 = vmatprep.subr.bf16.mxu0 %v10658_v42  ;;  %v10736_v58 = vld [vmem:[%s11892_s27 + $0x16a4] ss:$8 sps:$4 sm:$0xff]   ;;  %v10731_v42 = vld [vmem:[%s11892_s27 + $0x5a0] ss:$8 sps:$4 sm:$0xff]  }
 0x14d   : > { %7419 = vmatpush1.bf16.msra.mxu1 %v10653_v59  ;;  %v10734_v59 = vld [vmem:[%s11892_s27 + $0x16a0] ss:$8 sps:$4 sm:$0xff]  }
 0x14e   : > { %8116 = vmatpush1.bf16.msra.mxu0 %v10656_v60  ;;  %7420 = vmatprep.subr.bf16.mxu1 %v10661_v61  ;;  %v10739_v60 = vld [vmem:[%s11892_s27 + $0x5b4] ss:$8 sps:$4 sm:$0xff]  }
 0x14f   : > { %8117 = vmatprep.subr.bf16.mxu0 %v10664_v62  ;;  %v10742_v61 = vld [vmem:[%s11892_s27 + $0x16b4] ss:$8 sps:$4 sm:$0xff]   ;;  %v10737_v62 = vld [vmem:[%s11892_s27 + $0x5b0] ss:$8 sps:$4 sm:$0xff]  }
 0x151   : > { %7421 = vmatpush1.bf16.msra.mxu1 %v10659_v1  ;;  %v10745_v1 = vld [vmem:[%s11892_s27 + $0x5c4] ss:$8 sps:$4 sm:$0xff]  }
 0x152   : > { %8118 = vmatpush1.bf16.msra.mxu0 %v10662_v2  ;;  %7422 = vmatprep.subr.bf16.mxu1 %v10667_v5  ;;  %v10748_v2 = vld [vmem:[%s11892_s27 + $0x16c4] ss:$8 sps:$4 sm:$0xff]   ;;  %v10743_v5 = vld [vmem:[%s11892_s27 + $0x5c0] ss:$8 sps:$4 sm:$0xff]  }
 0x153   : > { %8119 = vmatprep.subr.bf16.mxu0 %v10670_v15  ;;  %v10746_v15 = vld [vmem:[%s11892_s27 + $0x16c0] ss:$8 sps:$4 sm:$0xff]  }
 0x155   : > { %7423 = vmatpush1.bf16.msra.mxu1 %v10665_v6  ;;  %v10751_v6 = vld [vmem:[%s11892_s27 + $0x5d4] ss:$8 sps:$4 sm:$0xff]  }
 0x156   : > { %8120 = vmatpush1.bf16.msra.mxu0 %v10668_v39  ;;  %7433 = vmatprep.subr.bf16.mxu1 %v10673_v7  ;;  %v10754_v39 = vld [vmem:[%s11892_s27 + $0x16d4] ss:$8 sps:$4 sm:$0xff]   ;;  %v10749_v7 = vld [vmem:[%s11892_s27 + $0x5d0] ss:$8 sps:$4 sm:$0xff]  }
 0x157   : > { %8130 = vmatprep.subr.bf16.mxu0 %v10676_v31  ;;  %v10752_v31 = vld [vmem:[%s11892_s27 + $0x16d0] ss:$8 sps:$4 sm:$0xff]  }
 0x158   : > { %7425 = vmatmul.mubr.bf16.vlgmr.msra.gmra.mrb[0].mxu1 %v12327_v9 }
 0x159   : > { %8122 = vmatmul.mubr.bf16.vlgmr.msra.gmra.mrb[0].mxu0 %v1676_v10  ;;  %7434 = vmatpush1.bf16.msra.mxu1 %v10671_v11  ;;  %v10760_v10 = vld [vmem:[%s11892_s27 + $0x16e4] ss:$8 sps:$4 sm:$0xff]  }
 0x15a   : > { %8131 = vmatpush1.bf16.msra.mxu0 %v10674_v12  ;;  %7435 = vmatprep.subr.bf16.mxu1 %v10679_v13  ;;  %v11805_v11 = vld [vmem:[%s11887_s23 + $0x8] sm:$0xff] }
 0x15b   : > { %8132 = vmatprep.subr.bf16.mxu0 %v10682_v14  ;;  %7465 = vmatprep.mubr.bf16.mxu1 %v1482_v17  ;;  %v1435_v12 = vcombine.high %v11805_v11, %v11805_v11  ;;  %v10755_v13 = vld [vmem:[%s11892_s27 + $0x5e0] ss:$8 sps:$4 sm:$0xff]   ;;  %v10763_v17 = vld [vmem:[%s11892_s27 + $0x5f4] ss:$8 sps:$4 sm:$0xff]   ;;  %v10834_v11 = vld [vmem:[%s11892_s27 + $0x6b0] ss:$8 sps:$4 sm:$0xff]  }
 0x15c   : > { %8162 = vmatprep.mubr.bf16.mxu0 %v12338_v55  ;;  %v10758_v14 = vld [vmem:[%s11892_s27 + $0x16e0] ss:$8 sps:$4 sm:$0xff]  }
 0x15d   : > { %7436 = vmatpush1.bf16.msra.mxu1 %v10677_v0  ;;  %v10766_v0 = vld [vmem:[%s11892_s27 + $0x16f4] ss:$8 sps:$4 sm:$0xff]  }
 0x15e   : > { %8133 = vmatpush1.bf16.msra.mxu0 %v10680_v18  ;;  %7437 = vmatprep.subr.bf16.mxu1 %v10685_v19  ;;  %v12400_v18 = vrot.slane %v1435_v12, %v11944_v52  ;;  %v10761_v19 = vld [vmem:[%s11892_s27 + $0x5f0] ss:$8 sps:$4 sm:$0xff]  }
 0x15f   : > { %8134 = vmatprep.subr.bf16.mxu0 %v10688_v3  ;;  %v10764_v3 = vld [vmem:[%s11892_s27 + $0x16f0] ss:$8 sps:$4 sm:$0xff]  }
 0x160   : > { %v10837_v12 = vld [vmem:[%s11892_s27 + $0x17b0] ss:$8 sps:$4 sm:$0xff]  }
 0x161   : > { %7438 = vmatpush1.bf16.msra.mxu1 %v10683_v20  ;;  %v10769_v20 = vld [vmem:[%s11892_s27 + $0x604] ss:$8 sps:$4 sm:$0xff]  }
 0x162   : > { %8135 = vmatpush1.bf16.msra.mxu0 %v10686_v21  ;;  %7439 = vmatprep.subr.bf16.mxu1 %v10691_v23  ;;  %v10773_v21 = vld [vmem:[%s11892_s27 + $0x1704] ss:$8 sps:$4 sm:$0xff]   ;;  %v1451_v23 = vcombine.high %v12400_v18, %v12400_v18 }
 0x163   : > { %8136 = vmatprep.subr.bf16.mxu0 %v10694_v24  ;;  %v1480_v24 = vcombine.high %v12327_v9, %v12327_v9  ;;  %v1679_v9 = vcombine.high %v12338_v55, %v12338_v55  ;;  %v10780_v55 = vld [vmem:[%s11892_s27 + $0x620] ss:$8 sps:$4 sm:$0xff]  }
 0x165   : > { %7440 = vmatpush1.bf16.msra.mxu1 %v10689_v25  ;;  %v12412_v25 = vrot.slane %v12317_v49, %v11944_v52  ;;  %v10774_v49 = vld [vmem:[%s11892_s27 + $0x610] ss:$8 sps:$4 sm:$0xff]  }
 0x166   : > { %8137 = vmatpush1.bf16.msra.mxu0 %v10692_v26  ;;  %7441 = vmatprep.subr.bf16.mxu1 %v10697_v27  ;;  %v10767_v26 = vld [vmem:[%s11892_s27 + $0x600] ss:$8 sps:$4 sm:$0xff]  }
 0x167   : > { %8138 = vmatprep.subr.bf16.mxu0 %v10700_v28  ;;  %v10771_v27 = vld [vmem:[%s11892_s27 + $0x1700] ss:$8 sps:$4 sm:$0xff]   ;;  %v10776_v28 = vld [vmem:[%s11892_s27 + $0x614] ss:$8 sps:$4 sm:$0xff]  }
 0x169   : > { %7442 = vmatpush1.bf16.msra.mxu1 %v10695_v30  ;;  %v10779_v30 = vld [vmem:[%s11892_s27 + $0x1714] ss:$8 sps:$4 sm:$0xff]  }
 0x16a   : > { %8139 = vmatpush1.bf16.msra.mxu0 %v10698_v32  ;;  %7443 = vmatprep.subr.bf16.mxu1 %v10703_v53  ;;  %v12419_v32 = vrot.slane %v1451_v23, %v11944_v52  ;;  %v10777_v53 = vld [vmem:[%s11892_s27 + $0x1710] ss:$8 sps:$4 sm:$0xff]   ;;  %v10854_v23 = vld [vmem:[%s11892_s27 + $0x6e4] ss:$8 sps:$4 sm:$0xff]  }
 0x16b   : > { %8140 = vmatprep.subr.bf16.mxu0 %v10706_v33  ;;  %v10782_v33 = vld [vmem:[%s11892_s27 + $0x624] ss:$8 sps:$4 sm:$0xff]  }
 0x16d   : > { %7444 = vmatpush1.bf16.msra.mxu1 %v10701_v34  ;;  %v10785_v34 = vld [vmem:[%s11892_s27 + $0x1724] ss:$8 sps:$4 sm:$0xff]  }
 0x16e   : > { %8141 = vmatpush1.bf16.msra.mxu0 %v10704_v35  ;;  %7445 = vmatprep.subr.bf16.mxu1 %v10709_v36  ;;  %v10783_v35 = vld [vmem:[%s11892_s27 + $0x1720] ss:$8 sps:$4 sm:$0xff]   ;;  %v10788_v36 = vld [vmem:[%s11892_s27 + $0x634] ss:$8 sps:$4 sm:$0xff]  }
 0x16f   : > { %8142 = vmatprep.subr.bf16.mxu0 %v10712_v38  ;;  %v10791_v38 = vld [vmem:[%s11892_s27 + $0x1734] ss:$8 sps:$4 sm:$0xff]  }
 0x171   : > { %7446 = vmatpush1.bf16.msra.mxu1 %v10707_v40  ;;  %v10786_v40 = vld [vmem:[%s11892_s27 + $0x630] ss:$8 sps:$4 sm:$0xff]  }
 0x172   : > { %8143 = vmatpush1.bf16.msra.mxu0 %v10710_v41  ;;  %7447 = vmatprep.subr.bf16.mxu1 %v10715_v22  ;;  %v10789_v41 = vld [vmem:[%s11892_s27 + $0x1730] ss:$8 sps:$4 sm:$0xff]   ;;  %v10794_v22 = vld [vmem:[%s11892_s27 + $0x644] ss:$8 sps:$4 sm:$0xff]  }
 0x173   : > { %8144 = vmatprep.subr.bf16.mxu0 %v10718_v43  ;;  %v10797_v43 = vld [vmem:[%s11892_s27 + $0x1744] ss:$8 sps:$4 sm:$0xff]  }
 0x175   : > { %7448 = vmatpush1.bf16.msra.mxu1 %v10713_v44  ;;  %v10792_v44 = vld [vmem:[%s11892_s27 + $0x640] ss:$8 sps:$4 sm:$0xff]  }
 0x176   : > { %8145 = vmatpush1.bf16.msra.mxu0 %v10716_v45  ;;  %7449 = vmatprep.subr.bf16.mxu1 %v10721_v29  ;;  %v10795_v45 = vld [vmem:[%s11892_s27 + $0x1740] ss:$8 sps:$4 sm:$0xff]   ;;  %v10800_v29 = vld [vmem:[%s11892_s27 + $0x654] ss:$8 sps:$4 sm:$0xff]  }
 0x177   : > { %8146 = vmatprep.subr.bf16.mxu0 %v10724_v46  ;;  %v10803_v46 = vld [vmem:[%s11892_s27 + $0x1754] ss:$8 sps:$4 sm:$0xff]  }
 0x179   : > { %7450 = vmatpush1.bf16.msra.mxu1 %v10719_v48  ;;  %v10798_v48 = vld [vmem:[%s11892_s27 + $0x650] ss:$8 sps:$4 sm:$0xff]  }
 0x17a   : > { %8147 = vmatpush1.bf16.msra.mxu0 %v10722_v50  ;;  %7451 = vmatprep.subr.bf16.mxu1 %v10727_v51  ;;  %v10801_v50 = vld [vmem:[%s11892_s27 + $0x1750] ss:$8 sps:$4 sm:$0xff]   ;;  %v10806_v51 = vld [vmem:[%s11892_s27 + $0x664] ss:$8 sps:$4 sm:$0xff]  }
 0x17b   : > { %8148 = vmatprep.subr.bf16.mxu0 %v10730_v54  ;;  %v10809_v54 = vld [vmem:[%s11892_s27 + $0x1764] ss:$8 sps:$4 sm:$0xff]  }
 0x17d   : > { %7452 = vmatpush1.bf16.msra.mxu1 %v10725_v56  ;;  %v10804_v56 = vld [vmem:[%s11892_s27 + $0x660] ss:$8 sps:$4 sm:$0xff]  }
 0x17e   : > { %8149 = vmatpush1.bf16.msra.mxu0 %v10728_v37  ;;  %7453 = vmatprep.subr.bf16.mxu1 %v10733_v57  ;;  %v10807_v37 = vld [vmem:[%s11892_s27 + $0x1760] ss:$8 sps:$4 sm:$0xff]   ;;  %v10812_v57 = vld [vmem:[%s11892_s27 + $0x674] ss:$8 sps:$4 sm:$0xff]  }
 0x17f   : > { %8150 = vmatprep.subr.bf16.mxu0 %v10736_v58  ;;  %v10815_v58 = vld [vmem:[%s11892_s27 + $0x1774] ss:$8 sps:$4 sm:$0xff]  }
 0x181   : > { %7454 = vmatpush1.bf16.msra.mxu1 %v10731_v42  ;;  %v10810_v42 = vld [vmem:[%s11892_s27 + $0x670] ss:$8 sps:$4 sm:$0xff]  }
 0x182   : > { %8151 = vmatpush1.bf16.msra.mxu0 %v10734_v59  ;;  %7455 = vmatprep.subr.bf16.mxu1 %v10739_v60  ;;  %v10813_v59 = vld [vmem:[%s11892_s27 + $0x1770] ss:$8 sps:$4 sm:$0xff]   ;;  %v10818_v60 = vld [vmem:[%s11892_s27 + $0x684] ss:$8 sps:$4 sm:$0xff]  }
 0x183   : > { %8152 = vmatprep.subr.bf16.mxu0 %v10742_v61  ;;  %v10821_v61 = vld [vmem:[%s11892_s27 + $0x1784] ss:$8 sps:$4 sm:$0xff]  }
 0x185   : > { %7456 = vmatpush1.bf16.msra.mxu1 %v10737_v62  ;;  %v10816_v62 = vld [vmem:[%s11892_s27 + $0x680] ss:$8 sps:$4 sm:$0xff]  }
 0x186   : > { %8153 = vmatpush1.bf16.msra.mxu0 %v10740_v63  ;;  %7457 = vmatprep.subr.bf16.mxu1 %v10745_v1  ;;  %v10819_v63 = vld [vmem:[%s11892_s27 + $0x1780] ss:$8 sps:$4 sm:$0xff]   ;;  %v10824_v1 = vld [vmem:[%s11892_s27 + $0x694] ss:$8 sps:$4 sm:$0xff]  }
 0x187   : > { %8154 = vmatprep.subr.bf16.mxu0 %v10748_v2  ;;  %v10827_v2 = vld [vmem:[%s11892_s27 + $0x1794] ss:$8 sps:$4 sm:$0xff]  }
 0x189   : > { %7458 = vmatpush1.bf16.msra.mxu1 %v10743_v5  ;;  %v10822_v5 = vld [vmem:[%s11892_s27 + $0x690] ss:$8 sps:$4 sm:$0xff]  }
 0x18a   : > { %8155 = vmatpush1.bf16.msra.mxu0 %v10746_v15  ;;  %7459 = vmatprep.subr.bf16.mxu1 %v10751_v6  ;;  %v10825_v15 = vld [vmem:[%s11892_s27 + $0x1790] ss:$8 sps:$4 sm:$0xff]   ;;  %v10830_v6 = vld [vmem:[%s11892_s27 + $0x6a4] ss:$8 sps:$4 sm:$0xff]  }
 0x18b   : > { %8156 = vmatprep.subr.bf16.mxu0 %v10754_v39  ;;  %v10833_v39 = vld [vmem:[%s11892_s27 + $0x17a4] ss:$8 sps:$4 sm:$0xff]  }
 0x18d   : > { %7460 = vmatpush1.bf16.msra.mxu1 %v10749_v7  ;;  %v10828_v7 = vld [vmem:[%s11892_s27 + $0x6a0] ss:$8 sps:$4 sm:$0xff]  }
 0x18e   : > { %8157 = vmatpush1.bf16.msra.mxu0 %v10752_v31  ;;  %7461 = vmatprep.subr.bf16.mxu1 %v10757_v8  ;;  %v10831_v31 = vld [vmem:[%s11892_s27 + $0x17a0] ss:$8 sps:$4 sm:$0xff]   ;;  %v10836_v8 = vld [vmem:[%s11892_s27 + $0x6b4] ss:$8 sps:$4 sm:$0xff]  }
 0x18f   : > { %8158 = vmatprep.subr.bf16.mxu0 %v10760_v10  ;;  %v10839_v10 = vld [vmem:[%s11892_s27 + $0x17b4] ss:$8 sps:$4 sm:$0xff]  }
 0x191   : > { %7462 = vmatpush1.bf16.msra.mxu1 %v10755_v13  ;;  %v10842_v13 = vld [vmem:[%s11892_s27 + $0x6c4] ss:$8 sps:$4 sm:$0xff]  }
 0x192   : > { %8159 = vmatpush1.bf16.msra.mxu0 %v10758_v14  ;;  %7463 = vmatprep.subr.bf16.mxu1 %v10763_v17  ;;  %v10845_v14 = vld [vmem:[%s11892_s27 + $0x17c4] ss:$8 sps:$4 sm:$0xff]   ;;  %v10840_v17 = vld [vmem:[%s11892_s27 + $0x6c0] ss:$8 sps:$4 sm:$0xff]  }
 0x193   : > { %8160 = vmatprep.subr.bf16.mxu0 %v10766_v0  ;;  %v10843_v0 = vld [vmem:[%s11892_s27 + $0x17c0] ss:$8 sps:$4 sm:$0xff]  }
 0x195   : > { %7464 = vmatpush1.bf16.msra.mxu1 %v10761_v19  ;;  %v10848_v19 = vld [vmem:[%s11892_s27 + $0x6d4] ss:$8 sps:$4 sm:$0xff]  }
 0x196   : > { %8161 = vmatpush1.bf16.msra.mxu0 %v10764_v3  ;;  %7474 = vmatprep.subr.bf16.mxu1 %v10769_v20  ;;  %v10851_v3 = vld [vmem:[%s11892_s27 + $0x17d4] ss:$8 sps:$4 sm:$0xff]   ;;  %v10846_v20 = vld [vmem:[%s11892_s27 + $0x6d0] ss:$8 sps:$4 sm:$0xff]  }
 0x197   : > { %8171 = vmatprep.subr.bf16.mxu0 %v10773_v21  ;;  %v10849_v21 = vld [vmem:[%s11892_s27 + $0x17d0] ss:$8 sps:$4 sm:$0xff]  }
 0x198   : > { %7466 = vmatmul.mubr.bf16.vlgmr.msra.gmra.mrb[0].mxu1 %v1480_v24  ;;  %v10857_v24 = vld [vmem:[%s11892_s27 + $0x17e4] ss:$8 sps:$4 sm:$0xff]  }
 0x199   : > { %8163 = vmatmul.mubr.bf16.vlgmr.msra.gmra.mrb[0].mxu0 %v12412_v25  ;;  %7475 = vmatpush1.bf16.msra.mxu1 %v10767_v26  ;;  %v12478_v26 = vld.sshfl [vmem:[%s11887_s23 + $0x30] sm:$0xff pattern:$0x75316420] }
 0x19a   : > { %8172 = vmatpush1.bf16.msra.mxu0 %v10771_v27  ;;  %7476 = vmatprep.subr.bf16.mxu1 %v10776_v28  ;;  %v10852_v27 = vld [vmem:[%s11892_s27 + $0x6e0] ss:$8 sps:$4 sm:$0xff]  }
 0x19b   : > { %8173 = vmatprep.subr.bf16.mxu0 %v10779_v30  ;;  %7506 = vmatprep.mubr.bf16.mxu1 %v12419_v32  ;;  %v10855_v28 = vld [vmem:[%s11892_s27 + $0x17e0] ss:$8 sps:$4 sm:$0xff]   ;;  %v10860_v30 = vld [vmem:[%s11892_s27 + $0x6f4] ss:$8 sps:$4 sm:$0xff]  }
 0x19c   : > { %8203 = vmatprep.mubr.bf16.mxu0 %v1679_v9  ;;  %v10863_v9 = vld [vmem:[%s11892_s27 + $0x17f4] ss:$8 sps:$4 sm:$0xff]  }
 0x19d   : > { %7477 = vmatpush1.bf16.msra.mxu1 %v10774_v49  ;;  %v10858_v49 = vld [vmem:[%s11892_s27 + $0x6f0] ss:$8 sps:$4 sm:$0xff]  }
 0x19e   : > { %8174 = vmatpush1.bf16.msra.mxu0 %v10777_v53  ;;  %7478 = vmatprep.subr.bf16.mxu1 %v10782_v33  ;;  %v10861_v53 = vld [vmem:[%s11892_s27 + $0x17f0] ss:$8 sps:$4 sm:$0xff]   ;;  %v10867_v33 = vld [vmem:[%s11892_s27 + $0x704] ss:$8 sps:$4 sm:$0xff]  }
 0x19f   : > { %8175 = vmatprep.subr.bf16.mxu0 %v10785_v34  ;;  %v10870_v34 = vld [vmem:[%s11892_s27 + $0x1804] ss:$8 sps:$4 sm:$0xff]  }
 0x1a1   : > { %7479 = vmatpush1.bf16.msra.mxu1 %v10780_v55  ;;  %v1695_v55 = vcombine.high %v12478_v26, %v12478_v26 }
 0x1a2   : > { %8176 = vmatpush1.bf16.msra.mxu0 %v10783_v35  ;;  %7480 = vmatprep.subr.bf16.mxu1 %v10788_v36  ;;  %v12492_v35 = vrot.slane %v12400_v18, %v11944_v52  ;;  %v1677_v36 = vcombine.high %v12412_v25, %v12412_v25  ;;  %v10871_v25 = vld [vmem:[%s11892_s27 + $0x710] ss:$8 sps:$4 sm:$0xff]  }
 0x1a3   : > { %8177 = vmatprep.subr.bf16.mxu0 %v10791_v38  ;;  %v10865_v38 = vld [vmem:[%s11892_s27 + $0x700] ss:$8 sps:$4 sm:$0xff]   ;;  %v12503_v18 = vrot.slane %v1695_v55, %v11944_v52  ;;  %v10951_v55 = vld [vmem:[%s11892_s27 + $0x7e4] ss:$8 sps:$4 sm:$0xff]  }
 0x1a5   : > { %7481 = vmatpush1.bf16.msra.mxu1 %v10786_v40  ;;  %v10868_v40 = vld [vmem:[%s11892_s27 + $0x1800] ss:$8 sps:$4 sm:$0xff]  }
 0x1a6   : > { %8178 = vmatpush1.bf16.msra.mxu0 %v10789_v41  ;;  %7482 = vmatprep.subr.bf16.mxu1 %v10794_v22  ;;  %v10873_v41 = vld [vmem:[%s11892_s27 + $0x714] ss:$8 sps:$4 sm:$0xff]  }
 0x1a7   : > { %8179 = vmatprep.subr.bf16.mxu0 %v10797_v43  ;;  %v10876_v22 = vld [vmem:[%s11892_s27 + $0x1814] ss:$8 sps:$4 sm:$0xff]   ;;  %v1483_v43 = vcombine.high %v12419_v32, %v12419_v32  ;;  %v10882_v32 = vld [vmem:[%s11892_s27 + $0x1824] ss:$8 sps:$4 sm:$0xff]  }
 0x1a9   : > { %7483 = vmatpush1.bf16.msra.mxu1 %v10792_v44  ;;  %v10874_v44 = vld [vmem:[%s11892_s27 + $0x1810] ss:$8 sps:$4 sm:$0xff]  }
 0x1aa   : > { %8180 = vmatpush1.bf16.msra.mxu0 %v10795_v45  ;;  %7484 = vmatprep.subr.bf16.mxu1 %v10800_v29  ;;  %v10879_v45 = vld [vmem:[%s11892_s27 + $0x724] ss:$8 sps:$4 sm:$0xff]   ;;  %v10877_v29 = vld [vmem:[%s11892_s27 + $0x720] ss:$8 sps:$4 sm:$0xff]  }
 0x1ab   : > { %8181 = vmatprep.subr.bf16.mxu0 %v10803_v46  ;;  %v10880_v46 = vld [vmem:[%s11892_s27 + $0x1820] ss:$8 sps:$4 sm:$0xff]  }
 0x1ad   : > { %7485 = vmatpush1.bf16.msra.mxu1 %v10798_v48  ;;  %v10885_v48 = vld [vmem:[%s11892_s27 + $0x734] ss:$8 sps:$4 sm:$0xff]  }
 0x1ae   : > { %8182 = vmatpush1.bf16.msra.mxu0 %v10801_v50  ;;  %7486 = vmatprep.subr.bf16.mxu1 %v10806_v51  ;;  %v10888_v50 = vld [vmem:[%s11892_s27 + $0x1834] ss:$8 sps:$4 sm:$0xff]   ;;  %v10883_v51 = vld [vmem:[%s11892_s27 + $0x730] ss:$8 sps:$4 sm:$0xff]  }
 0x1af   : > { %8183 = vmatprep.subr.bf16.mxu0 %v10809_v54  ;;  %v10886_v54 = vld [vmem:[%s11892_s27 + $0x1830] ss:$8 sps:$4 sm:$0xff]  }
 0x1b1   : > { %7487 = vmatpush1.bf16.msra.mxu1 %v10804_v56  ;;  %v10891_v56 = vld [vmem:[%s11892_s27 + $0x744] ss:$8 sps:$4 sm:$0xff]  }
 0x1b2   : > { %8184 = vmatpush1.bf16.msra.mxu0 %v10807_v37  ;;  %7488 = vmatprep.subr.bf16.mxu1 %v10812_v57  ;;  %v10894_v37 = vld [vmem:[%s11892_s27 + $0x1844] ss:$8 sps:$4 sm:$0xff]   ;;  %v10889_v57 = vld [vmem:[%s11892_s27 + $0x740] ss:$8 sps:$4 sm:$0xff]  }
 0x1b3   : > { %8185 = vmatprep.subr.bf16.mxu0 %v10815_v58  ;;  %v10892_v58 = vld [vmem:[%s11892_s27 + $0x1840] ss:$8 sps:$4 sm:$0xff]  }
 0x1b5   : > { %7489 = vmatpush1.bf16.msra.mxu1 %v10810_v42  ;;  %v10897_v42 = vld [vmem:[%s11892_s27 + $0x754] ss:$8 sps:$4 sm:$0xff]  }
 0x1b6   : > { %8186 = vmatpush1.bf16.msra.mxu0 %v10813_v59  ;;  %7490 = vmatprep.subr.bf16.mxu1 %v10818_v60  ;;  %v10900_v59 = vld [vmem:[%s11892_s27 + $0x1854] ss:$8 sps:$4 sm:$0xff]   ;;  %v10895_v60 = vld [vmem:[%s11892_s27 + $0x750] ss:$8 sps:$4 sm:$0xff]  }
 0x1b7   : > { %8187 = vmatprep.subr.bf16.mxu0 %v10821_v61  ;;  %v10898_v61 = vld [vmem:[%s11892_s27 + $0x1850] ss:$8 sps:$4 sm:$0xff]  }
 0x1b9   : > { %7491 = vmatpush1.bf16.msra.mxu1 %v10816_v62  ;;  %v10903_v62 = vld [vmem:[%s11892_s27 + $0x764] ss:$8 sps:$4 sm:$0xff]  }
 0x1ba   : > { %8188 = vmatpush1.bf16.msra.mxu0 %v10819_v63  ;;  %7492 = vmatprep.subr.bf16.mxu1 %v10824_v1  ;;  %v10906_v63 = vld [vmem:[%s11892_s27 + $0x1864] ss:$8 sps:$4 sm:$0xff]   ;;  %v10901_v1 = vld [vmem:[%s11892_s27 + $0x760] ss:$8 sps:$4 sm:$0xff]  }
 0x1bb   : > { %8189 = vmatprep.subr.bf16.mxu0 %v10827_v2  ;;  %v10904_v2 = vld [vmem:[%s11892_s27 + $0x1860] ss:$8 sps:$4 sm:$0xff]  }
 0x1bd   : > { %7493 = vmatpush1.bf16.msra.mxu1 %v10822_v5  ;;  %v10909_v5 = vld [vmem:[%s11892_s27 + $0x774] ss:$8 sps:$4 sm:$0xff]  }
 0x1be   : > { %8190 = vmatpush1.bf16.msra.mxu0 %v10825_v15  ;;  %7494 = vmatprep.subr.bf16.mxu1 %v10830_v6  ;;  %v10912_v15 = vld [vmem:[%s11892_s27 + $0x1874] ss:$8 sps:$4 sm:$0xff]   ;;  %v10907_v6 = vld [vmem:[%s11892_s27 + $0x770] ss:$8 sps:$4 sm:$0xff]  }
 0x1bf   : > { %8191 = vmatprep.subr.bf16.mxu0 %v10833_v39  ;;  %v10910_v39 = vld [vmem:[%s11892_s27 + $0x1870] ss:$8 sps:$4 sm:$0xff]  }
 0x1c1   : > { %7495 = vmatpush1.bf16.msra.mxu1 %v10828_v7  ;;  %v10915_v7 = vld [vmem:[%s11892_s27 + $0x784] ss:$8 sps:$4 sm:$0xff]  }
 0x1c2   : > { %8192 = vmatpush1.bf16.msra.mxu0 %v10831_v31  ;;  %7496 = vmatprep.subr.bf16.mxu1 %v10836_v8  ;;  %v10918_v31 = vld [vmem:[%s11892_s27 + $0x1884] ss:$8 sps:$4 sm:$0xff]   ;;  %v10913_v8 = vld [vmem:[%s11892_s27 + $0x780] ss:$8 sps:$4 sm:$0xff]  }
 0x1c3   : > { %8193 = vmatprep.subr.bf16.mxu0 %v10839_v10  ;;  %v10916_v10 = vld [vmem:[%s11892_s27 + $0x1880] ss:$8 sps:$4 sm:$0xff]  }
 0x1c5   : > { %7497 = vmatpush1.bf16.msra.mxu1 %v10834_v11  ;;  %v10921_v11 = vld [vmem:[%s11892_s27 + $0x794] ss:$8 sps:$4 sm:$0xff]  }
 0x1c6   : > { %8194 = vmatpush1.bf16.msra.mxu0 %v10837_v12  ;;  %7498 = vmatprep.subr.bf16.mxu1 %v10842_v13  ;;  %v10924_v12 = vld [vmem:[%s11892_s27 + $0x1894] ss:$8 sps:$4 sm:$0xff]   ;;  %v10919_v13 = vld [vmem:[%s11892_s27 + $0x790] ss:$8 sps:$4 sm:$0xff]  }
 0x1c7   : > { %8195 = vmatprep.subr.bf16.mxu0 %v10845_v14  ;;  %v10922_v14 = vld [vmem:[%s11892_s27 + $0x1890] ss:$8 sps:$4 sm:$0xff]  }
 0x1c9   : > { %7499 = vmatpush1.bf16.msra.mxu1 %v10840_v17  ;;  %v10927_v17 = vld [vmem:[%s11892_s27 + $0x7a4] ss:$8 sps:$4 sm:$0xff]  }
 0x1ca   : > { %8196 = vmatpush1.bf16.msra.mxu0 %v10843_v0  ;;  %7500 = vmatprep.subr.bf16.mxu1 %v10848_v19  ;;  %v10930_v0 = vld [vmem:[%s11892_s27 + $0x18a4] ss:$8 sps:$4 sm:$0xff]   ;;  %v10925_v19 = vld [vmem:[%s11892_s27 + $0x7a0] ss:$8 sps:$4 sm:$0xff]  }
 0x1cb   : > { %8197 = vmatprep.subr.bf16.mxu0 %v10851_v3  ;;  %v10928_v3 = vld [vmem:[%s11892_s27 + $0x18a0] ss:$8 sps:$4 sm:$0xff]  }
 0x1cd   : > { %7501 = vmatpush1.bf16.msra.mxu1 %v10846_v20  ;;  %v10933_v20 = vld [vmem:[%s11892_s27 + $0x7b4] ss:$8 sps:$4 sm:$0xff]  }
 0x1ce   : > { %8198 = vmatpush1.bf16.msra.mxu0 %v10849_v21  ;;  %7502 = vmatprep.subr.bf16.mxu1 %v10854_v23  ;;  %v10936_v21 = vld [vmem:[%s11892_s27 + $0x18b4] ss:$8 sps:$4 sm:$0xff]   ;;  %v10931_v23 = vld [vmem:[%s11892_s27 + $0x7b0] ss:$8 sps:$4 sm:$0xff]  }
 0x1cf   : > { %8199 = vmatprep.subr.bf16.mxu0 %v10857_v24  ;;  %v10934_v24 = vld [vmem:[%s11892_s27 + $0x18b0] ss:$8 sps:$4 sm:$0xff]  }
 0x1d1   : > { %7503 = vmatpush1.bf16.msra.mxu1 %v10852_v27  ;;  %v10939_v27 = vld [vmem:[%s11892_s27 + $0x7c4] ss:$8 sps:$4 sm:$0xff]  }
 0x1d2   : > { %8200 = vmatpush1.bf16.msra.mxu0 %v10855_v28  ;;  %7504 = vmatprep.subr.bf16.mxu1 %v10860_v30  ;;  %v10942_v28 = vld [vmem:[%s11892_s27 + $0x18c4] ss:$8 sps:$4 sm:$0xff]   ;;  %v10937_v30 = vld [vmem:[%s11892_s27 + $0x7c0] ss:$8 sps:$4 sm:$0xff]  }
 0x1d3   : > { %8201 = vmatprep.subr.bf16.mxu0 %v10863_v9  ;;  %v10940_v9 = vld [vmem:[%s11892_s27 + $0x18c0] ss:$8 sps:$4 sm:$0xff]  }
 0x1d5   : > { %7505 = vmatpush1.bf16.msra.mxu1 %v10858_v49  ;;  %v10945_v49 = vld [vmem:[%s11892_s27 + $0x7d4] ss:$8 sps:$4 sm:$0xff]  }
 0x1d6   : > { %8202 = vmatpush1.bf16.msra.mxu0 %v10861_v53  ;;  %7515 = vmatprep.subr.bf16.mxu1 %v10867_v33  ;;  %v10948_v53 = vld [vmem:[%s11892_s27 + $0x18d4] ss:$8 sps:$4 sm:$0xff]   ;;  %v10943_v33 = vld [vmem:[%s11892_s27 + $0x7d0] ss:$8 sps:$4 sm:$0xff]  }
 0x1d7   : > { %8212 = vmatprep.subr.bf16.mxu0 %v10870_v34  ;;  %v10946_v34 = vld [vmem:[%s11892_s27 + $0x18d0] ss:$8 sps:$4 sm:$0xff]  }
 0x1d8   : > { %7507 = vmatmul.mubr.bf16.vlgmr.msra.gmra.mrb[0].mxu1 %v12492_v35 }
 0x1d9   : > { %8204 = vmatmul.mubr.bf16.vlgmr.msra.gmra.mrb[0].mxu0 %v1677_v36  ;;  %7516 = vmatpush1.bf16.msra.mxu1 %v10865_v38  ;;  %v10954_v36 = vld [vmem:[%s11892_s27 + $0x18e4] ss:$8 sps:$4 sm:$0xff]   ;;  %v12560_v38 = vld [vmem:[%s11887_s23 + $0x10] sm:$0xff] }
 0x1da   : > { %8213 = vmatpush1.bf16.msra.mxu0 %v10868_v40  ;;  %7517 = vmatprep.subr.bf16.mxu1 %v10873_v41  ;;  %v10949_v40 = vld [vmem:[%s11892_s27 + $0x7e0] ss:$8 sps:$4 sm:$0xff]  }
 0x1db   : > { %8214 = vmatprep.subr.bf16.mxu0 %v10876_v22  ;;  %7547 = vmatprep.mubr.bf16.mxu1 %v1483_v43  ;;  %v10952_v41 = vld [vmem:[%s11892_s27 + $0x18e0] ss:$8 sps:$4 sm:$0xff]   ;;  %v10957_v22 = vld [vmem:[%s11892_s27 + $0x7f4] ss:$8 sps:$4 sm:$0xff]  }
 0x1dc   : > { %8244 = vmatprep.mubr.bf16.mxu0 %v12503_v18  ;;  %v10960_v43 = vld [vmem:[%s11892_s27 + $0x18f4] ss:$8 sps:$4 sm:$0xff]  }
 0x1dd   : > { %7518 = vmatpush1.bf16.msra.mxu1 %v10871_v25  ;;  %v12568_v25 = vrot.slane %v12560_v38, %v11944_v52 }
 0x1de   : > { %8215 = vmatpush1.bf16.msra.mxu0 %v10874_v44  ;;  %7519 = vmatprep.subr.bf16.mxu1 %v10879_v45  ;;  %v10955_v44 = vld [vmem:[%s11892_s27 + $0x7f0] ss:$8 sps:$4 sm:$0xff]  }
 0x1df   : > { %8216 = vmatprep.subr.bf16.mxu0 %v10882_v32  ;;  %v10958_v45 = vld [vmem:[%s11892_s27 + $0x18f0] ss:$8 sps:$4 sm:$0xff]   ;;  %v10963_v32 = vld [vmem:[%s11892_s27 + $0x804] ss:$8 sps:$4 sm:$0xff]  }
 0x1e1   : > { %7520 = vmatpush1.bf16.msra.mxu1 %v10877_v29  ;;  %v10966_v29 = vld [vmem:[%s11892_s27 + $0x1904] ss:$8 sps:$4 sm:$0xff]  }
 0x1e2   : > { %8217 = vmatpush1.bf16.msra.mxu0 %v10880_v46  ;;  %7521 = vmatprep.subr.bf16.mxu1 %v10885_v48  ;;  %v1499_v46 = vcombine.high %v12568_v25, %v12568_v25  ;;  %v1481_v48 = vcombine.high %v12492_v35, %v12492_v35  ;;  %v1727_v35 = vcombine.high %v12503_v18, %v12503_v18  ;;  %v10973_v18 = vld [vmem:[%s11892_s27 + $0x820] ss:$8 sps:$4 sm:$0xff]  }
 0x1e3   : > { %8218 = vmatprep.subr.bf16.mxu0 %v10888_v50  ;;  %v12580_v50 = vrot.slane %v12478_v26, %v11944_v52  ;;  %v10967_v26 = vld [vmem:[%s11892_s27 + $0x810] ss:$8 sps:$4 sm:$0xff]  }
 0x1e5   : > { %7522 = vmatpush1.bf16.msra.mxu1 %v10883_v51  ;;  %v10961_v51 = vld [vmem:[%s11892_s27 + $0x800] ss:$8 sps:$4 sm:$0xff]  }
 0x1e6   : > { %8219 = vmatpush1.bf16.msra.mxu0 %v10886_v54  ;;  %7523 = vmatprep.subr.bf16.mxu1 %v10891_v56  ;;  %v10964_v54 = vld [vmem:[%s11892_s27 + $0x1900] ss:$8 sps:$4 sm:$0xff]   ;;  %v10969_v56 = vld [vmem:[%s11892_s27 + $0x814] ss:$8 sps:$4 sm:$0xff]  }
 0x1e7   : > { %8220 = vmatprep.subr.bf16.mxu0 %v10894_v37  ;;  %v10972_v37 = vld [vmem:[%s11892_s27 + $0x1914] ss:$8 sps:$4 sm:$0xff]  }
 0x1e9   : > { %7524 = vmatpush1.bf16.msra.mxu1 %v10889_v57  ;;  %v12587_v57 = vrot.slane %v1499_v46, %v11944_v52  ;;  %v11042_v46 = vld [vmem:[%s11892_s27 + $0x19d0] ss:$8 sps:$4 sm:$0xff]  }
 0x1ea   : > { %8221 = vmatpush1.bf16.msra.mxu0 %v10892_v58  ;;  %7525 = vmatprep.subr.bf16.mxu1 %v10897_v42  ;;  %v10970_v58 = vld [vmem:[%s11892_s27 + $0x1910] ss:$8 sps:$4 sm:$0xff]   ;;  %v10975_v42 = vld [vmem:[%s11892_s27 + $0x824] ss:$8 sps:$4 sm:$0xff]  }
 0x1eb   : > { %8222 = vmatprep.subr.bf16.mxu0 %v10900_v59  ;;  %v10978_v59 = vld [vmem:[%s11892_s27 + $0x1924] ss:$8 sps:$4 sm:$0xff]  }
 0x1ed   : > { %7526 = vmatpush1.bf16.msra.mxu1 %v10895_v60  ;;  %v10976_v60 = vld [vmem:[%s11892_s27 + $0x1920] ss:$8 sps:$4 sm:$0xff]  }
 0x1ee   : > { %8223 = vmatpush1.bf16.msra.mxu0 %v10898_v61  ;;  %7527 = vmatprep.subr.bf16.mxu1 %v10903_v62  ;;  %v10981_v61 = vld [vmem:[%s11892_s27 + $0x834] ss:$8 sps:$4 sm:$0xff]  }
 0x1ef   : > { %8224 = vmatprep.subr.bf16.mxu0 %v10906_v63  ;;  %v10984_v62 = vld [vmem:[%s11892_s27 + $0x1934] ss:$8 sps:$4 sm:$0xff]   ;;  %v10979_v63 = vld [vmem:[%s11892_s27 + $0x830] ss:$8 sps:$4 sm:$0xff]  }
 0x1f1   : > { %7528 = vmatpush1.bf16.msra.mxu1 %v10901_v1  ;;  %v10982_v1 = vld [vmem:[%s11892_s27 + $0x1930] ss:$8 sps:$4 sm:$0xff]  }
 0x1f2   : > { %8225 = vmatpush1.bf16.msra.mxu0 %v10904_v2  ;;  %7529 = vmatprep.subr.bf16.mxu1 %v10909_v5  ;;  %v10987_v2 = vld [vmem:[%s11892_s27 + $0x844] ss:$8 sps:$4 sm:$0xff]  }
 0x1f3   : > { %8226 = vmatprep.subr.bf16.mxu0 %v10912_v15  ;;  %v10990_v5 = vld [vmem:[%s11892_s27 + $0x1944] ss:$8 sps:$4 sm:$0xff]   ;;  %v10985_v15 = vld [vmem:[%s11892_s27 + $0x840] ss:$8 sps:$4 sm:$0xff]  }
 0x1f5   : > { %7530 = vmatpush1.bf16.msra.mxu1 %v10907_v6  ;;  %v10988_v6 = vld [vmem:[%s11892_s27 + $0x1940] ss:$8 sps:$4 sm:$0xff]  }
 0x1f6   : > { %8227 = vmatpush1.bf16.msra.mxu0 %v10910_v39  ;;  %7531 = vmatprep.subr.bf16.mxu1 %v10915_v7  ;;  %v10993_v39 = vld [vmem:[%s11892_s27 + $0x854] ss:$8 sps:$4 sm:$0xff]  }
 0x1f7   : > { %8228 = vmatprep.subr.bf16.mxu0 %v10918_v31  ;;  %v10996_v7 = vld [vmem:[%s11892_s27 + $0x1954] ss:$8 sps:$4 sm:$0xff]   ;;  %v10991_v31 = vld [vmem:[%s11892_s27 + $0x850] ss:$8 sps:$4 sm:$0xff]  }
 0x1f9   : > { %7532 = vmatpush1.bf16.msra.mxu1 %v10913_v8  ;;  %v10994_v8 = vld [vmem:[%s11892_s27 + $0x1950] ss:$8 sps:$4 sm:$0xff]  }
 0x1fa   : > { %8229 = vmatpush1.bf16.msra.mxu0 %v10916_v10  ;;  %7533 = vmatprep.subr.bf16.mxu1 %v10921_v11  ;;  %v10999_v10 = vld [vmem:[%s11892_s27 + $0x864] ss:$8 sps:$4 sm:$0xff]  }
 0x1fb   : > { %8230 = vmatprep.subr.bf16.mxu0 %v10924_v12  ;;  %v11002_v11 = vld [vmem:[%s11892_s27 + $0x1964] ss:$8 sps:$4 sm:$0xff]   ;;  %v10997_v12 = vld [vmem:[%s11892_s27 + $0x860] ss:$8 sps:$4 sm:$0xff]  }
 0x1fd   : > { %7534 = vmatpush1.bf16.msra.mxu1 %v10919_v13  ;;  %v11000_v13 = vld [vmem:[%s11892_s27 + $0x1960] ss:$8 sps:$4 sm:$0xff]  }
 0x1fe   : > { %8231 = vmatpush1.bf16.msra.mxu0 %v10922_v14  ;;  %7535 = vmatprep.subr.bf16.mxu1 %v10927_v17  ;;  %v11005_v14 = vld [vmem:[%s11892_s27 + $0x874] ss:$8 sps:$4 sm:$0xff]  }
 0x1ff   : > { %8232 = vmatprep.subr.bf16.mxu0 %v10930_v0  ;;  %v11008_v17 = vld [vmem:[%s11892_s27 + $0x1974] ss:$8 sps:$4 sm:$0xff]   ;;  %v11003_v0 = vld [vmem:[%s11892_s27 + $0x870] ss:$8 sps:$4 sm:$0xff]  }
 0x201   : > { %7536 = vmatpush1.bf16.msra.mxu1 %v10925_v19  ;;  %v11006_v19 = vld [vmem:[%s11892_s27 + $0x1970] ss:$8 sps:$4 sm:$0xff]  }
 0x202   : > { %8233 = vmatpush1.bf16.msra.mxu0 %v10928_v3  ;;  %7537 = vmatprep.subr.bf16.mxu1 %v10933_v20  ;;  %v11011_v3 = vld [vmem:[%s11892_s27 + $0x884] ss:$8 sps:$4 sm:$0xff]  }
 0x203   : > { %8234 = vmatprep.subr.bf16.mxu0 %v10936_v21  ;;  %v11014_v20 = vld [vmem:[%s11892_s27 + $0x1984] ss:$8 sps:$4 sm:$0xff]   ;;  %v11009_v21 = vld [vmem:[%s11892_s27 + $0x880] ss:$8 sps:$4 sm:$0xff]  }
 0x205   : > { %7538 = vmatpush1.bf16.msra.mxu1 %v10931_v23  ;;  %v11012_v23 = vld [vmem:[%s11892_s27 + $0x1980] ss:$8 sps:$4 sm:$0xff]  }
 0x206   : > { %8235 = vmatpush1.bf16.msra.mxu0 %v10934_v24  ;;  %7539 = vmatprep.subr.bf16.mxu1 %v10939_v27  ;;  %v11017_v24 = vld [vmem:[%s11892_s27 + $0x894] ss:$8 sps:$4 sm:$0xff]  }
 0x207   : > { %8236 = vmatprep.subr.bf16.mxu0 %v10942_v28  ;;  %v11020_v27 = vld [vmem:[%s11892_s27 + $0x1994] ss:$8 sps:$4 sm:$0xff]   ;;  %v11015_v28 = vld [vmem:[%s11892_s27 + $0x890] ss:$8 sps:$4 sm:$0xff]  }
 0x209   : > { %7540 = vmatpush1.bf16.msra.mxu1 %v10937_v30  ;;  %v11018_v30 = vld [vmem:[%s11892_s27 + $0x1990] ss:$8 sps:$4 sm:$0xff]  }
 0x20a   : > { %8237 = vmatpush1.bf16.msra.mxu0 %v10940_v9  ;;  %7541 = vmatprep.subr.bf16.mxu1 %v10945_v49  ;;  %v11023_v9 = vld [vmem:[%s11892_s27 + $0x8a4] ss:$8 sps:$4 sm:$0xff]  }
 0x20b   : > { %8238 = vmatprep.subr.bf16.mxu0 %v10948_v53  ;;  %v11026_v49 = vld [vmem:[%s11892_s27 + $0x19a4] ss:$8 sps:$4 sm:$0xff]   ;;  %v11021_v53 = vld [vmem:[%s11892_s27 + $0x8a0] ss:$8 sps:$4 sm:$0xff]  }
 0x20d   : > { %7542 = vmatpush1.bf16.msra.mxu1 %v10943_v33  ;;  %v11024_v33 = vld [vmem:[%s11892_s27 + $0x19a0] ss:$8 sps:$4 sm:$0xff]  }
 0x20e   : > { %8239 = vmatpush1.bf16.msra.mxu0 %v10946_v34  ;;  %7543 = vmatprep.subr.bf16.mxu1 %v10951_v55  ;;  %v11029_v34 = vld [vmem:[%s11892_s27 + $0x8b4] ss:$8 sps:$4 sm:$0xff]  }
 0x20f   : > { %8240 = vmatprep.subr.bf16.mxu0 %v10954_v36  ;;  %v11032_v55 = vld [vmem:[%s11892_s27 + $0x19b4] ss:$8 sps:$4 sm:$0xff]   ;;  %v11027_v36 = vld [vmem:[%s11892_s27 + $0x8b0] ss:$8 sps:$4 sm:$0xff]  }
 0x211   : > { %7544 = vmatpush1.bf16.msra.mxu1 %v10949_v40  ;;  %v11030_v40 = vld [vmem:[%s11892_s27 + $0x19b0] ss:$8 sps:$4 sm:$0xff]  }
 0x212   : > { %8241 = vmatpush1.bf16.msra.mxu0 %v10952_v41  ;;  %7545 = vmatprep.subr.bf16.mxu1 %v10957_v22  ;;  %v11035_v41 = vld [vmem:[%s11892_s27 + $0x8c4] ss:$8 sps:$4 sm:$0xff]  }
 0x213   : > { %8242 = vmatprep.subr.bf16.mxu0 %v10960_v43  ;;  %v11038_v22 = vld [vmem:[%s11892_s27 + $0x19c4] ss:$8 sps:$4 sm:$0xff]   ;;  %v11033_v43 = vld [vmem:[%s11892_s27 + $0x8c0] ss:$8 sps:$4 sm:$0xff]  }
 0x215   : > { %7546 = vmatpush1.bf16.msra.mxu1 %v10955_v44  ;;  %v11036_v44 = vld [vmem:[%s11892_s27 + $0x19c0] ss:$8 sps:$4 sm:$0xff]  }
 0x216   : > { %8243 = vmatpush1.bf16.msra.mxu0 %v10958_v45  ;;  %7556 = vmatprep.subr.bf16.mxu1 %v10963_v32  ;;  %v11041_v45 = vld [vmem:[%s11892_s27 + $0x8d4] ss:$8 sps:$4 sm:$0xff]  }
 0x217   : > { %8253 = vmatprep.subr.bf16.mxu0 %v10966_v29  ;;  %v11044_v32 = vld [vmem:[%s11892_s27 + $0x19d4] ss:$8 sps:$4 sm:$0xff]   ;;  %v11039_v29 = vld [vmem:[%s11892_s27 + $0x8d0] ss:$8 sps:$4 sm:$0xff]  }
 0x218   : > { %7548 = vmatmul.mubr.bf16.vlgmr.msra.gmra.mrb[0].mxu1 %v1481_v48  ;;  %v11047_v48 = vld [vmem:[%s11892_s27 + $0x8e4] ss:$8 sps:$4 sm:$0xff]  }
 0x219   : > { %8245 = vmatmul.mubr.bf16.vlgmr.msra.gmra.mrb[0].mxu0 %v12580_v50  ;;  %7557 = vmatpush1.bf16.msra.mxu1 %v10961_v51  ;;  %v11050_v51 = vld [vmem:[%s11892_s27 + $0x19e4] ss:$8 sps:$4 sm:$0xff]  }
 0x21a   : > { %8254 = vmatpush1.bf16.msra.mxu0 %v10964_v54  ;;  %7558 = vmatprep.subr.bf16.mxu1 %v10969_v56  ;;  %v11806_v54 = vld [vmem:[%s11887_s23 + $0x30] sm:$0xff] }
 0x21b   : > { %8255 = vmatprep.subr.bf16.mxu0 %v10972_v37  ;;  %7588 = vmatprep.mubr.bf16.mxu1 %v12587_v57  ;;  %v1680_v56 = vcombine.high %v11806_v54, %v11806_v54  ;;  %v11045_v37 = vld [vmem:[%s11892_s27 + $0x8e0] ss:$8 sps:$4 sm:$0xff]   ;;  %v11128_v54 = vld [vmem:[%s11892_s27 + $0x1ab4] ss:$8 sps:$4 sm:$0xff]  }
 0x21c   : > { %8285 = vmatprep.mubr.bf16.mxu0 %v1727_v35  ;;  %v11048_v35 = vld [vmem:[%s11892_s27 + $0x19e0] ss:$8 sps:$4 sm:$0xff]  }
 0x21d   : > { %7559 = vmatpush1.bf16.msra.mxu1 %v10967_v26  ;;  %v11053_v26 = vld [vmem:[%s11892_s27 + $0x8f4] ss:$8 sps:$4 sm:$0xff]  }
 0x21e   : > { %8256 = vmatpush1.bf16.msra.mxu0 %v10970_v58  ;;  %7560 = vmatprep.subr.bf16.mxu1 %v10975_v42  ;;  %v11056_v58 = vld [vmem:[%s11892_s27 + $0x19f4] ss:$8 sps:$4 sm:$0xff]   ;;  %v12651_v42 = vrot.slane %v1680_v56, %v11944_v52  ;;  %v11123_v56 = vld [vmem:[%s11892_s27 + $0x9b0] ss:$8 sps:$4 sm:$0xff]  }
 0x21f   : > { %8257 = vmatprep.subr.bf16.mxu0 %v10978_v59  ;;  %v11051_v59 = vld [vmem:[%s11892_s27 + $0x8f0] ss:$8 sps:$4 sm:$0xff]  }
 0x221   : > { %7561 = vmatpush1.bf16.msra.mxu1 %v10973_v18  ;;  %v11054_v18 = vld [vmem:[%s11892_s27 + $0x19f0] ss:$8 sps:$4 sm:$0xff]  }
 0x222   : > { %8258 = vmatpush1.bf16.msra.mxu0 %v10976_v60  ;;  %7562 = vmatprep.subr.bf16.mxu1 %v10981_v61  ;;  %v11059_v60 = vld [vmem:[%s11892_s27 + $0x904] ss:$8 sps:$4 sm:$0xff]  }
 0x223   : > { %8259 = vmatprep.subr.bf16.mxu0 %v10984_v62  ;;  %v11062_v61 = vld [vmem:[%s11892_s27 + $0x1a04] ss:$8 sps:$4 sm:$0xff]   ;;  %v1696_v62 = vcombine.high %v12651_v42, %v12651_v42 }
 0x225   : > { %7563 = vmatpush1.bf16.msra.mxu1 %v10979_v63  ;;  %v12661_v63 = vrot.slane %v12568_v25, %v11944_v52  ;;  %v12672_v25 = vrot.slane %v1696_v62, %v11944_v52  ;;  %v11138_v62 = vld [vmem:[%s11892_s27 + $0x1ad0] ss:$8 sps:$4 sm:$0xff]  }
 0x226   : > { %8260 = vmatpush1.bf16.msra.mxu0 %v10982_v1  ;;  %7564 = vmatprep.subr.bf16.mxu1 %v10987_v2  ;;  %v1725_v1 = vcombine.high %v12580_v50, %v12580_v50  ;;  %v11057_v2 = vld [vmem:[%s11892_s27 + $0x900] ss:$8 sps:$4 sm:$0xff]   ;;  %v11063_v50 = vld [vmem:[%s11892_s27 + $0x910] ss:$8 sps:$4 sm:$0xff]  }
 0x227   : > { %8261 = vmatprep.subr.bf16.mxu0 %v10990_v5  ;;  %v11060_v5 = vld [vmem:[%s11892_s27 + $0x1a00] ss:$8 sps:$4 sm:$0xff]  }
 0x229   : > { %7565 = vmatpush1.bf16.msra.mxu1 %v10985_v15  ;;  %v11065_v15 = vld [vmem:[%s11892_s27 + $0x914] ss:$8 sps:$4 sm:$0xff]  }
 0x22a   : > { %8262 = vmatpush1.bf16.msra.mxu0 %v10988_v6  ;;  %7566 = vmatprep.subr.bf16.mxu1 %v10993_v39  ;;  %v11068_v6 = vld [vmem:[%s11892_s27 + $0x1a14] ss:$8 sps:$4 sm:$0xff]   ;;  %v1531_v39 = vcombine.high %v12587_v57, %v12587_v57  ;;  %v11074_v57 = vld [vmem:[%s11892_s27 + $0x1a24] ss:$8 sps:$4 sm:$0xff]  }
 0x22b   : > { %8263 = vmatprep.subr.bf16.mxu0 %v10996_v7  ;;  %v11066_v7 = vld [vmem:[%s11892_s27 + $0x1a10] ss:$8 sps:$4 sm:$0xff]  }
 0x22d   : > { %7567 = vmatpush1.bf16.msra.mxu1 %v10991_v31  ;;  %v11071_v31 = vld [vmem:[%s11892_s27 + $0x924] ss:$8 sps:$4 sm:$0xff]  }
 0x22e   : > { %8264 = vmatpush1.bf16.msra.mxu0 %v10994_v8  ;;  %7568 = vmatprep.subr.bf16.mxu1 %v10999_v10  ;;  %v11069_v8 = vld [vmem:[%s11892_s27 + $0x920] ss:$8 sps:$4 sm:$0xff]  }
 0x22f   : > { %8265 = vmatprep.subr.bf16.mxu0 %v11002_v11  ;;  %v11072_v10 = vld [vmem:[%s11892_s27 + $0x1a20] ss:$8 sps:$4 sm:$0xff]   ;;  %v11077_v11 = vld [vmem:[%s11892_s27 + $0x934] ss:$8 sps:$4 sm:$0xff]  }
 0x231   : > { %7569 = vmatpush1.bf16.msra.mxu1 %v10997_v12  ;;  %v11080_v12 = vld [vmem:[%s11892_s27 + $0x1a34] ss:$8 sps:$4 sm:$0xff]  }
 0x232   : > { %8266 = vmatpush1.bf16.msra.mxu0 %v11000_v13  ;;  %7570 = vmatprep.subr.bf16.mxu1 %v11005_v14  ;;  %v11075_v13 = vld [vmem:[%s11892_s27 + $0x930] ss:$8 sps:$4 sm:$0xff]  }
 0x233   : > { %8267 = vmatprep.subr.bf16.mxu0 %v11008_v17  ;;  %v11078_v14 = vld [vmem:[%s11892_s27 + $0x1a30] ss:$8 sps:$4 sm:$0xff]   ;;  %v11083_v17 = vld [vmem:[%s11892_s27 + $0x944] ss:$8 sps:$4 sm:$0xff]  }
 0x235   : > { %7571 = vmatpush1.bf16.msra.mxu1 %v11003_v0  ;;  %v11086_v0 = vld [vmem:[%s11892_s27 + $0x1a44] ss:$8 sps:$4 sm:$0xff]  }
 0x236   : > { %8268 = vmatpush1.bf16.msra.mxu0 %v11006_v19  ;;  %7572 = vmatprep.subr.bf16.mxu1 %v11011_v3  ;;  %v11081_v19 = vld [vmem:[%s11892_s27 + $0x940] ss:$8 sps:$4 sm:$0xff]  }
 0x237   : > { %8269 = vmatprep.subr.bf16.mxu0 %v11014_v20  ;;  %v11084_v3 = vld [vmem:[%s11892_s27 + $0x1a40] ss:$8 sps:$4 sm:$0xff]   ;;  %v11089_v20 = vld [vmem:[%s11892_s27 + $0x954] ss:$8 sps:$4 sm:$0xff]  }
 0x239   : > { %7573 = vmatpush1.bf16.msra.mxu1 %v11009_v21  ;;  %v11092_v21 = vld [vmem:[%s11892_s27 + $0x1a54] ss:$8 sps:$4 sm:$0xff]  }
 0x23a   : > { %8270 = vmatpush1.bf16.msra.mxu0 %v11012_v23  ;;  %7574 = vmatprep.subr.bf16.mxu1 %v11017_v24  ;;  %v11087_v23 = vld [vmem:[%s11892_s27 + $0x950] ss:$8 sps:$4 sm:$0xff]  }
 0x23b   : > { %8271 = vmatprep.subr.bf16.mxu0 %v11020_v27  ;;  %v11090_v24 = vld [vmem:[%s11892_s27 + $0x1a50] ss:$8 sps:$4 sm:$0xff]   ;;  %v11095_v27 = vld [vmem:[%s11892_s27 + $0x964] ss:$8 sps:$4 sm:$0xff]  }
 0x23d   : > { %7575 = vmatpush1.bf16.msra.mxu1 %v11015_v28  ;;  %v11098_v28 = vld [vmem:[%s11892_s27 + $0x1a64] ss:$8 sps:$4 sm:$0xff]  }
 0x23e   : > { %8272 = vmatpush1.bf16.msra.mxu0 %v11018_v30  ;;  %7576 = vmatprep.subr.bf16.mxu1 %v11023_v9  ;;  %v11093_v30 = vld [vmem:[%s11892_s27 + $0x960] ss:$8 sps:$4 sm:$0xff]  }
 0x23f   : > { %8273 = vmatprep.subr.bf16.mxu0 %v11026_v49  ;;  %v11096_v9 = vld [vmem:[%s11892_s27 + $0x1a60] ss:$8 sps:$4 sm:$0xff]   ;;  %v11101_v49 = vld [vmem:[%s11892_s27 + $0x974] ss:$8 sps:$4 sm:$0xff]  }
 0x241   : > { %7577 = vmatpush1.bf16.msra.mxu1 %v11021_v53  ;;  %v11104_v53 = vld [vmem:[%s11892_s27 + $0x1a74] ss:$8 sps:$4 sm:$0xff]  }
 0x242   : > { %8274 = vmatpush1.bf16.msra.mxu0 %v11024_v33  ;;  %7578 = vmatprep.subr.bf16.mxu1 %v11029_v34  ;;  %v11099_v33 = vld [vmem:[%s11892_s27 + $0x970] ss:$8 sps:$4 sm:$0xff]  }
 0x243   : > { %8275 = vmatprep.subr.bf16.mxu0 %v11032_v55  ;;  %v11102_v34 = vld [vmem:[%s11892_s27 + $0x1a70] ss:$8 sps:$4 sm:$0xff]   ;;  %v11107_v55 = vld [vmem:[%s11892_s27 + $0x984] ss:$8 sps:$4 sm:$0xff]  }
 0x245   : > { %7579 = vmatpush1.bf16.msra.mxu1 %v11027_v36  ;;  %v11110_v36 = vld [vmem:[%s11892_s27 + $0x1a84] ss:$8 sps:$4 sm:$0xff]  }
 0x246   : > { %8276 = vmatpush1.bf16.msra.mxu0 %v11030_v40  ;;  %7580 = vmatprep.subr.bf16.mxu1 %v11035_v41  ;;  %v11105_v40 = vld [vmem:[%s11892_s27 + $0x980] ss:$8 sps:$4 sm:$0xff]  }
 0x247   : > { %8277 = vmatprep.subr.bf16.mxu0 %v11038_v22  ;;  %v11108_v41 = vld [vmem:[%s11892_s27 + $0x1a80] ss:$8 sps:$4 sm:$0xff]   ;;  %v11113_v22 = vld [vmem:[%s11892_s27 + $0x994] ss:$8 sps:$4 sm:$0xff]  }
 0x249   : > { %7581 = vmatpush1.bf16.msra.mxu1 %v11033_v43  ;;  %v11116_v43 = vld [vmem:[%s11892_s27 + $0x1a94] ss:$8 sps:$4 sm:$0xff]  }
 0x24a   : > { %8278 = vmatpush1.bf16.msra.mxu0 %v11036_v44  ;;  %7582 = vmatprep.subr.bf16.mxu1 %v11041_v45  ;;  %v11111_v44 = vld [vmem:[%s11892_s27 + $0x990] ss:$8 sps:$4 sm:$0xff]  }
 0x24b   : > { %8279 = vmatprep.subr.bf16.mxu0 %v11044_v32  ;;  %v11114_v45 = vld [vmem:[%s11892_s27 + $0x1a90] ss:$8 sps:$4 sm:$0xff]   ;;  %v11119_v32 = vld [vmem:[%s11892_s27 + $0x9a4] ss:$8 sps:$4 sm:$0xff]  }
 0x24d   : > { %7583 = vmatpush1.bf16.msra.mxu1 %v11039_v29  ;;  %v11122_v29 = vld [vmem:[%s11892_s27 + $0x1aa4] ss:$8 sps:$4 sm:$0xff]  }
 0x24e   : > { %8280 = vmatpush1.bf16.msra.mxu0 %v11042_v46  ;;  %7584 = vmatprep.subr.bf16.mxu1 %v11047_v48  ;;  %v11117_v46 = vld [vmem:[%s11892_s27 + $0x9a0] ss:$8 sps:$4 sm:$0xff]  }
 0x24f   : > { %8281 = vmatprep.subr.bf16.mxu0 %v11050_v51  ;;  %v11120_v48 = vld [vmem:[%s11892_s27 + $0x1aa0] ss:$8 sps:$4 sm:$0xff]   ;;  %v11125_v51 = vld [vmem:[%s11892_s27 + $0x9b4] ss:$8 sps:$4 sm:$0xff]  }
 0x251   : > { %7585 = vmatpush1.bf16.msra.mxu1 %v11045_v37  ;;  %v11126_v37 = vld [vmem:[%s11892_s27 + $0x1ab0] ss:$8 sps:$4 sm:$0xff]  }
 0x252   : > { %8282 = vmatpush1.bf16.msra.mxu0 %v11048_v35  ;;  %7586 = vmatprep.subr.bf16.mxu1 %v11053_v26  ;;  %v11131_v35 = vld [vmem:[%s11892_s27 + $0x9c4] ss:$8 sps:$4 sm:$0xff]  }
 0x253   : > { %8283 = vmatprep.subr.bf16.mxu0 %v11056_v58  ;;  %v11134_v26 = vld [vmem:[%s11892_s27 + $0x1ac4] ss:$8 sps:$4 sm:$0xff]   ;;  %v11129_v58 = vld [vmem:[%s11892_s27 + $0x9c0] ss:$8 sps:$4 sm:$0xff]  }
 0x255   : > { %7587 = vmatpush1.bf16.msra.mxu1 %v11051_v59  ;;  %v11132_v59 = vld [vmem:[%s11892_s27 + $0x1ac0] ss:$8 sps:$4 sm:$0xff]  }
 0x256   : > { %8284 = vmatpush1.bf16.msra.mxu0 %v11054_v18  ;;  %7597 = vmatprep.subr.bf16.mxu1 %v11059_v60  ;;  %v11137_v18 = vld [vmem:[%s11892_s27 + $0x9d4] ss:$8 sps:$4 sm:$0xff]  }
 0x257   : > { %8294 = vmatprep.subr.bf16.mxu0 %v11062_v61  ;;  %v11140_v60 = vld [vmem:[%s11892_s27 + $0x1ad4] ss:$8 sps:$4 sm:$0xff]   ;;  %v11135_v61 = vld [vmem:[%s11892_s27 + $0x9d0] ss:$8 sps:$4 sm:$0xff]  }
 0x258   : > { %7589 = vmatmul.mubr.bf16.vlgmr.msra.gmra.mrb[0].mxu1 %v12661_v63 }
 0x259   : > { %8286 = vmatmul.mubr.bf16.vlgmr.msra.gmra.mrb[0].mxu0 %v1725_v1  ;;  %7598 = vmatpush1.bf16.msra.mxu1 %v11057_v2  ;;  %v11143_v1 = vld [vmem:[%s11892_s27 + $0x9e4] ss:$8 sps:$4 sm:$0xff]  }
 0x25a   : > { %8295 = vmatpush1.bf16.msra.mxu0 %v11060_v5  ;;  %7599 = vmatprep.subr.bf16.mxu1 %v11065_v15  ;;  %v11146_v2 = vld [vmem:[%s11892_s27 + $0x1ae4] ss:$8 sps:$4 sm:$0xff]   ;;  %v1484_v5 = vcombine.high %v12560_v38, %v12560_v38  ;;  %v11141_v15 = vld [vmem:[%s11892_s27 + $0x9e0] ss:$8 sps:$4 sm:$0xff]   ;;  %v11150_v38 = vld [vmem:[%s11892_s27 + $0x1af0] ss:$8 sps:$4 sm:$0xff]  }
 0x25b   : > { %8296 = vmatprep.subr.bf16.mxu0 %v11068_v6  ;;  %7629 = vmatprep.mubr.bf16.mxu1 %v1531_v39  ;;  %v11144_v6 = vld [vmem:[%s11892_s27 + $0x1ae0] ss:$8 sps:$4 sm:$0xff]   ;;  %v11149_v39 = vld [vmem:[%s11892_s27 + $0x9f4] ss:$8 sps:$4 sm:$0xff]  }
 0x25c   : > { %8326 = vmatprep.mubr.bf16.mxu0 %v12672_v25 }
 0x25d   : > { %7600 = vmatpush1.bf16.msra.mxu1 %v11063_v50  ;;  %v11152_v50 = vld [vmem:[%s11892_s27 + $0x1af4] ss:$8 sps:$4 sm:$0xff]  }
 0x25e   : > { %8297 = vmatpush1.bf16.msra.mxu0 %v11066_v7  ;;  %7601 = vmatprep.subr.bf16.mxu1 %v11071_v31  ;;  %v12735_v7 = vrot.slane %v1484_v5, %v11944_v52  ;;  %v11147_v31 = vld [vmem:[%s11892_s27 + $0x9f0] ss:$8 sps:$4 sm:$0xff]  }
 0x25f   : > { %8298 = vmatprep.subr.bf16.mxu0 %v11074_v57  ;;  %v11155_v57 = vld [vmem:[%s11892_s27 + $0xa04] ss:$8 sps:$4 sm:$0xff]   ;;  %v11223_v5 = vld [vmem:[%s11892_s27 + $0x1bb0] ss:$8 sps:$4 sm:$0xff]  }
 0x261   : > { %7602 = vmatpush1.bf16.msra.mxu1 %v11069_v8  ;;  %v11159_v8 = vld [vmem:[%s11892_s27 + $0x1b04] ss:$8 sps:$4 sm:$0xff]  }
 0x262   : > { %8299 = vmatpush1.bf16.msra.mxu0 %v11072_v10  ;;  %7603 = vmatprep.subr.bf16.mxu1 %v11077_v11  ;;  %v1500_v10 = vcombine.high %v12735_v7, %v12735_v7  ;;  %v1529_v11 = vcombine.high %v12661_v63, %v12661_v63  ;;  %v1728_v63 = vcombine.high %v12672_v25, %v12672_v25  ;;  %v11166_v25 = vld [vmem:[%s11892_s27 + $0xa20] ss:$8 sps:$4 sm:$0xff]  }
 0x263   : > { %8300 = vmatprep.subr.bf16.mxu0 %v11080_v12  ;;  %v12747_v12 = vrot.slane %v12651_v42, %v11944_v52  ;;  %v11160_v42 = vld [vmem:[%s11892_s27 + $0xa10] ss:$8 sps:$4 sm:$0xff]  }
 0x265   : > { %7604 = vmatpush1.bf16.msra.mxu1 %v11075_v13  ;;  %v11153_v13 = vld [vmem:[%s11892_s27 + $0xa00] ss:$8 sps:$4 sm:$0xff]  }
 0x266   : > { %8301 = vmatpush1.bf16.msra.mxu0 %v11078_v14  ;;  %7605 = vmatprep.subr.bf16.mxu1 %v11083_v17  ;;  %v11157_v14 = vld [vmem:[%s11892_s27 + $0x1b00] ss:$8 sps:$4 sm:$0xff]   ;;  %v11162_v17 = vld [vmem:[%s11892_s27 + $0xa14] ss:$8 sps:$4 sm:$0xff]  }
 0x267   : > { %8302 = vmatprep.subr.bf16.mxu0 %v11086_v0  ;;  %v11165_v0 = vld [vmem:[%s11892_s27 + $0x1b14] ss:$8 sps:$4 sm:$0xff]  }
 0x269   : > { %7606 = vmatpush1.bf16.msra.mxu1 %v11081_v19  ;;  %v12754_v19 = vrot.slane %v1500_v10, %v11944_v52  ;;  %v11240_v10 = vld [vmem:[%s11892_s27 + $0xae4] ss:$8 sps:$4 sm:$0xff]  }
 0x26a   : > { %8303 = vmatpush1.bf16.msra.mxu0 %v11084_v3  ;;  %7607 = vmatprep.subr.bf16.mxu1 %v11089_v20  ;;  %v11163_v3 = vld [vmem:[%s11892_s27 + $0x1b10] ss:$8 sps:$4 sm:$0xff]   ;;  %v11168_v20 = vld [vmem:[%s11892_s27 + $0xa24] ss:$8 sps:$4 sm:$0xff]  }
 0x26b   : > { %8304 = vmatprep.subr.bf16.mxu0 %v11092_v21  ;;  %v11171_v21 = vld [vmem:[%s11892_s27 + $0x1b24] ss:$8 sps:$4 sm:$0xff]  }
 0x26d   : > { %7608 = vmatpush1.bf16.msra.mxu1 %v11087_v23  ;;  %v11169_v23 = vld [vmem:[%s11892_s27 + $0x1b20] ss:$8 sps:$4 sm:$0xff]  }
 0x26e   : > { %8305 = vmatpush1.bf16.msra.mxu0 %v11090_v24  ;;  %7609 = vmatprep.subr.bf16.mxu1 %v11095_v27  ;;  %v11174_v24 = vld [vmem:[%s11892_s27 + $0xa34] ss:$8 sps:$4 sm:$0xff]  }
 0x26f   : > { %8306 = vmatprep.subr.bf16.mxu0 %v11098_v28  ;;  %v11177_v27 = vld [vmem:[%s11892_s27 + $0x1b34] ss:$8 sps:$4 sm:$0xff]   ;;  %v11172_v28 = vld [vmem:[%s11892_s27 + $0xa30] ss:$8 sps:$4 sm:$0xff]  }
 0x271   : > { %7610 = vmatpush1.bf16.msra.mxu1 %v11093_v30  ;;  %v11175_v30 = vld [vmem:[%s11892_s27 + $0x1b30] ss:$8 sps:$4 sm:$0xff]  }
 0x272   : > { %8307 = vmatpush1.bf16.msra.mxu0 %v11096_v9  ;;  %7611 = vmatprep.subr.bf16.mxu1 %v11101_v49  ;;  %v11180_v9 = vld [vmem:[%s11892_s27 + $0xa44] ss:$8 sps:$4 sm:$0xff]  }
 0x273   : > { %8308 = vmatprep.subr.bf16.mxu0 %v11104_v53  ;;  %v11183_v49 = vld [vmem:[%s11892_s27 + $0x1b44] ss:$8 sps:$4 sm:$0xff]   ;;  %v11178_v53 = vld [vmem:[%s11892_s27 + $0xa40] ss:$8 sps:$4 sm:$0xff]  }
 0x275   : > { %7612 = vmatpush1.bf16.msra.mxu1 %v11099_v33  ;;  %v11181_v33 = vld [vmem:[%s11892_s27 + $0x1b40] ss:$8 sps:$4 sm:$0xff]  }
 0x276   : > { %8309 = vmatpush1.bf16.msra.mxu0 %v11102_v34  ;;  %7613 = vmatprep.subr.bf16.mxu1 %v11107_v55  ;;  %v11186_v34 = vld [vmem:[%s11892_s27 + $0xa54] ss:$8 sps:$4 sm:$0xff]  }
 0x277   : > { %8310 = vmatprep.subr.bf16.mxu0 %v11110_v36  ;;  %v11189_v55 = vld [vmem:[%s11892_s27 + $0x1b54] ss:$8 sps:$4 sm:$0xff]   ;;  %v11184_v36 = vld [vmem:[%s11892_s27 + $0xa50] ss:$8 sps:$4 sm:$0xff]  }
 0x279   : > { %7614 = vmatpush1.bf16.msra.mxu1 %v11105_v40  ;;  %v11187_v40 = vld [vmem:[%s11892_s27 + $0x1b50] ss:$8 sps:$4 sm:$0xff]  }
 0x27a   : > { %8311 = vmatpush1.bf16.msra.mxu0 %v11108_v41  ;;  %7615 = vmatprep.subr.bf16.mxu1 %v11113_v22  ;;  %v11192_v41 = vld [vmem:[%s11892_s27 + $0xa64] ss:$8 sps:$4 sm:$0xff]  }
 0x27b   : > { %8312 = vmatprep.subr.bf16.mxu0 %v11116_v43  ;;  %v11195_v22 = vld [vmem:[%s11892_s27 + $0x1b64] ss:$8 sps:$4 sm:$0xff]   ;;  %v11190_v43 = vld [vmem:[%s11892_s27 + $0xa60] ss:$8 sps:$4 sm:$0xff]  }
 0x27d   : > { %7616 = vmatpush1.bf16.msra.mxu1 %v11111_v44  ;;  %v11193_v44 = vld [vmem:[%s11892_s27 + $0x1b60] ss:$8 sps:$4 sm:$0xff]  }
 0x27e   : > { %8313 = vmatpush1.bf16.msra.mxu0 %v11114_v45  ;;  %7617 = vmatprep.subr.bf16.mxu1 %v11119_v32  ;;  %v11198_v45 = vld [vmem:[%s11892_s27 + $0xa74] ss:$8 sps:$4 sm:$0xff]  }
 0x27f   : > { %8314 = vmatprep.subr.bf16.mxu0 %v11122_v29  ;;  %v11201_v32 = vld [vmem:[%s11892_s27 + $0x1b74] ss:$8 sps:$4 sm:$0xff]   ;;  %v11196_v29 = vld [vmem:[%s11892_s27 + $0xa70] ss:$8 sps:$4 sm:$0xff]  }
 0x281   : > { %7618 = vmatpush1.bf16.msra.mxu1 %v11117_v46  ;;  %v11199_v46 = vld [vmem:[%s11892_s27 + $0x1b70] ss:$8 sps:$4 sm:$0xff]  }
 0x282   : > { %8315 = vmatpush1.bf16.msra.mxu0 %v11120_v48  ;;  %7619 = vmatprep.subr.bf16.mxu1 %v11125_v51  ;;  %v11204_v48 = vld [vmem:[%s11892_s27 + $0xa84] ss:$8 sps:$4 sm:$0xff]  }
 0x283   : > { %8316 = vmatprep.subr.bf16.mxu0 %v11128_v54  ;;  %v11207_v51 = vld [vmem:[%s11892_s27 + $0x1b84] ss:$8 sps:$4 sm:$0xff]   ;;  %v11202_v54 = vld [vmem:[%s11892_s27 + $0xa80] ss:$8 sps:$4 sm:$0xff]  }
 0x285   : > { %7620 = vmatpush1.bf16.msra.mxu1 %v11123_v56  ;;  %v11205_v56 = vld [vmem:[%s11892_s27 + $0x1b80] ss:$8 sps:$4 sm:$0xff]  }
 0x286   : > { %8317 = vmatpush1.bf16.msra.mxu0 %v11126_v37  ;;  %7621 = vmatprep.subr.bf16.mxu1 %v11131_v35  ;;  %v11210_v37 = vld [vmem:[%s11892_s27 + $0xa94] ss:$8 sps:$4 sm:$0xff]  }
 0x287   : > { %8318 = vmatprep.subr.bf16.mxu0 %v11134_v26  ;;  %v11213_v35 = vld [vmem:[%s11892_s27 + $0x1b94] ss:$8 sps:$4 sm:$0xff]   ;;  %v11208_v26 = vld [vmem:[%s11892_s27 + $0xa90] ss:$8 sps:$4 sm:$0xff]  }
 0x289   : > { %7622 = vmatpush1.bf16.msra.mxu1 %v11129_v58  ;;  %v11211_v58 = vld [vmem:[%s11892_s27 + $0x1b90] ss:$8 sps:$4 sm:$0xff]  }
 0x28a   : > { %8319 = vmatpush1.bf16.msra.mxu0 %v11132_v59  ;;  %7623 = vmatprep.subr.bf16.mxu1 %v11137_v18  ;;  %v11216_v59 = vld [vmem:[%s11892_s27 + $0xaa4] ss:$8 sps:$4 sm:$0xff]  }
 0x28b   : > { %8320 = vmatprep.subr.bf16.mxu0 %v11140_v60  ;;  %v11219_v18 = vld [vmem:[%s11892_s27 + $0x1ba4] ss:$8 sps:$4 sm:$0xff]   ;;  %v11214_v60 = vld [vmem:[%s11892_s27 + $0xaa0] ss:$8 sps:$4 sm:$0xff]  }
 0x28d   : > { %7624 = vmatpush1.bf16.msra.mxu1 %v11135_v61  ;;  %v11217_v61 = vld [vmem:[%s11892_s27 + $0x1ba0] ss:$8 sps:$4 sm:$0xff]  }
 0x28e   : > { %8321 = vmatpush1.bf16.msra.mxu0 %v11138_v62  ;;  %7625 = vmatprep.subr.bf16.mxu1 %v11143_v1  ;;  %v11222_v62 = vld [vmem:[%s11892_s27 + $0xab4] ss:$8 sps:$4 sm:$0xff]  }
 0x28f   : > { %8322 = vmatprep.subr.bf16.mxu0 %v11146_v2  ;;  %v11225_v1 = vld [vmem:[%s11892_s27 + $0x1bb4] ss:$8 sps:$4 sm:$0xff]   ;;  %v11220_v2 = vld [vmem:[%s11892_s27 + $0xab0] ss:$8 sps:$4 sm:$0xff]  }
 0x291   : > { %7626 = vmatpush1.bf16.msra.mxu1 %v11141_v15  ;;  %v11228_v15 = vld [vmem:[%s11892_s27 + $0xac4] ss:$8 sps:$4 sm:$0xff]  }
 0x292   : > { %8323 = vmatpush1.bf16.msra.mxu0 %v11144_v6  ;;  %7627 = vmatprep.subr.bf16.mxu1 %v11149_v39  ;;  %v11231_v6 = vld [vmem:[%s11892_s27 + $0x1bc4] ss:$8 sps:$4 sm:$0xff]   ;;  %v11226_v39 = vld [vmem:[%s11892_s27 + $0xac0] ss:$8 sps:$4 sm:$0xff]  }
 0x293   : > { %8324 = vmatprep.subr.bf16.mxu0 %v11152_v50  ;;  %v11229_v50 = vld [vmem:[%s11892_s27 + $0x1bc0] ss:$8 sps:$4 sm:$0xff]  }
 0x295   : > { %7628 = vmatpush1.bf16.msra.mxu1 %v11147_v31  ;;  %v11234_v31 = vld [vmem:[%s11892_s27 + $0xad4] ss:$8 sps:$4 sm:$0xff]  }
 0x296   : > { %8325 = vmatpush1.bf16.msra.mxu0 %v11150_v38  ;;  %7638 = vmatprep.subr.bf16.mxu1 %v11155_v57  ;;  %v11237_v38 = vld [vmem:[%s11892_s27 + $0x1bd4] ss:$8 sps:$4 sm:$0xff]   ;;  %v11232_v57 = vld [vmem:[%s11892_s27 + $0xad0] ss:$8 sps:$4 sm:$0xff]  }
 0x297   : > { %8335 = vmatprep.subr.bf16.mxu0 %v11159_v8  ;;  %v11235_v8 = vld [vmem:[%s11892_s27 + $0x1bd0] ss:$8 sps:$4 sm:$0xff]  }
 0x298   : > { %7630 = vmatmul.mubr.bf16.vlgmr.msra.gmra.mrb[0].mxu1 %v1529_v11  ;;  %v11243_v11 = vld [vmem:[%s11892_s27 + $0x1be4] ss:$8 sps:$4 sm:$0xff]  }
 0x299   : > { %8327 = vmatmul.mubr.bf16.vlgmr.msra.gmra.mrb[0].mxu0 %v12747_v12  ;;  %7639 = vmatpush1.bf16.msra.mxu1 %v11153_v13  ;;  %v12813_v13 = vld [vmem:[%s11887_s23 + $0x38] sm:$0xff] }
 0x29a   : > { %8336 = vmatpush1.bf16.msra.mxu0 %v11157_v14  ;;  %7640 = vmatprep.subr.bf16.mxu1 %v11162_v17  ;;  %v11238_v14 = vld [vmem:[%s11892_s27 + $0xae0] ss:$8 sps:$4 sm:$0xff]  }
 0x29b   : > { %8337 = vmatprep.subr.bf16.mxu0 %v11165_v0  ;;  %7670 = vmatprep.mubr.bf16.mxu1 %v12754_v19  ;;  %v11241_v17 = vld [vmem:[%s11892_s27 + $0x1be0] ss:$8 sps:$4 sm:$0xff]   ;;  %v11246_v0 = vld [vmem:[%s11892_s27 + $0xaf4] ss:$8 sps:$4 sm:$0xff]  }
 0x29c   : > { %8367 = vmatprep.mubr.bf16.mxu0 %v1728_v63  ;;  %v11249_v63 = vld [vmem:[%s11892_s27 + $0x1bf4] ss:$8 sps:$4 sm:$0xff]  }
 0x29d   : > { %7641 = vmatpush1.bf16.msra.mxu1 %v11160_v42  ;;  %v12821_v42 = vrot.slane %v12813_v13, %v11944_v52 }
 0x29e   : > { %8338 = vmatpush1.bf16.msra.mxu0 %v11163_v3  ;;  %7642 = vmatprep.subr.bf16.mxu1 %v11168_v20  ;;  %v11244_v3 = vld [vmem:[%s11892_s27 + $0xaf0] ss:$8 sps:$4 sm:$0xff]  }
 0x29f   : > { %8339 = vmatprep.subr.bf16.mxu0 %v11171_v21  ;;  %v11247_v20 = vld [vmem:[%s11892_s27 + $0x1bf0] ss:$8 sps:$4 sm:$0xff]   ;;  %v11253_v21 = vld [vmem:[%s11892_s27 + $0xb04] ss:$8 sps:$4 sm:$0xff]  }
 0x2a1   : > { %7643 = vmatpush1.bf16.msra.mxu1 %v11166_v25  ;;  %v11256_v25 = vld [vmem:[%s11892_s27 + $0x1c04] ss:$8 sps:$4 sm:$0xff]  }
 0x2a2   : > { %8340 = vmatpush1.bf16.msra.mxu0 %v11169_v23  ;;  %7644 = vmatprep.subr.bf16.mxu1 %v11174_v24  ;;  %v1744_v23 = vcombine.high %v12821_v42, %v12821_v42  ;;  %v12831_v24 = vrot.slane %v12735_v7, %v11944_v52 }
 0x2a3   : > { %8341 = vmatprep.subr.bf16.mxu0 %v11177_v27  ;;  %v1726_v27 = vcombine.high %v12747_v12, %v12747_v12  ;;  %v11257_v12 = vld [vmem:[%s11892_s27 + $0xb10] ss:$8 sps:$4 sm:$0xff]  }
 0x2a4   : > { %v12842_v7 = vrot.slane %v1744_v23, %v11944_v52  ;;  %v11332_v23 = vld [vmem:[%s11892_s27 + $0x1cd0] ss:$8 sps:$4 sm:$0xff]  }
 0x2a5   : > { %7645 = vmatpush1.bf16.msra.mxu1 %v11172_v28  ;;  %v11251_v28 = vld [vmem:[%s11892_s27 + $0xb00] ss:$8 sps:$4 sm:$0xff]  }
 0x2a6   : > { %8342 = vmatpush1.bf16.msra.mxu0 %v11175_v30  ;;  %7646 = vmatprep.subr.bf16.mxu1 %v11180_v9  ;;  %v11254_v30 = vld [vmem:[%s11892_s27 + $0x1c00] ss:$8 sps:$4 sm:$0xff]   ;;  %v11259_v9 = vld [vmem:[%s11892_s27 + $0xb14] ss:$8 sps:$4 sm:$0xff]  }
 0x2a7   : > { %8343 = vmatprep.subr.bf16.mxu0 %v11183_v49  ;;  %v11262_v49 = vld [vmem:[%s11892_s27 + $0x1c14] ss:$8 sps:$4 sm:$0xff]  }
 0x2a9   : > { %7647 = vmatpush1.bf16.msra.mxu1 %v11178_v53  ;;  %v1532_v53 = vcombine.high %v12754_v19, %v12754_v19  ;;  %v11268_v19 = vld [vmem:[%s11892_s27 + $0x1c24] ss:$8 sps:$4 sm:$0xff]  }
 0x2aa   : > { %8344 = vmatpush1.bf16.msra.mxu0 %v11181_v33  ;;  %7648 = vmatprep.subr.bf16.mxu1 %v11186_v34  ;;  %v11260_v33 = vld [vmem:[%s11892_s27 + $0x1c10] ss:$8 sps:$4 sm:$0xff]   ;;  %v11265_v34 = vld [vmem:[%s11892_s27 + $0xb24] ss:$8 sps:$4 sm:$0xff]  }
 0x2ab   : > { %8345 = vmatprep.subr.bf16.mxu0 %v11189_v55  ;;  %v11263_v55 = vld [vmem:[%s11892_s27 + $0xb20] ss:$8 sps:$4 sm:$0xff]  }
 0x2ad   : > { %7649 = vmatpush1.bf16.msra.mxu1 %v11184_v36  ;;  %v11266_v36 = vld [vmem:[%s11892_s27 + $0x1c20] ss:$8 sps:$4 sm:$0xff]  }
 0x2ae   : > { %8346 = vmatpush1.bf16.msra.mxu0 %v11187_v40  ;;  %7650 = vmatprep.subr.bf16.mxu1 %v11192_v41  ;;  %v11271_v40 = vld [vmem:[%s11892_s27 + $0xb34] ss:$8 sps:$4 sm:$0xff]  }
 0x2af   : > { %8347 = vmatprep.subr.bf16.mxu0 %v11195_v22  ;;  %v11274_v41 = vld [vmem:[%s11892_s27 + $0x1c34] ss:$8 sps:$4 sm:$0xff]   ;;  %v11269_v22 = vld [vmem:[%s11892_s27 + $0xb30] ss:$8 sps:$4 sm:$0xff]  }
 0x2b1   : > { %7651 = vmatpush1.bf16.msra.mxu1 %v11190_v43  ;;  %v11272_v43 = vld [vmem:[%s11892_s27 + $0x1c30] ss:$8 sps:$4 sm:$0xff]  }
 0x2b2   : > { %8348 = vmatpush1.bf16.msra.mxu0 %v11193_v44  ;;  %7652 = vmatprep.subr.bf16.mxu1 %v11198_v45  ;;  %v11277_v44 = vld [vmem:[%s11892_s27 + $0xb44] ss:$8 sps:$4 sm:$0xff]  }
 0x2b3   : > { %8349 = vmatprep.subr.bf16.mxu0 %v11201_v32  ;;  %v11280_v45 = vld [vmem:[%s11892_s27 + $0x1c44] ss:$8 sps:$4 sm:$0xff]   ;;  %v11275_v32 = vld [vmem:[%s11892_s27 + $0xb40] ss:$8 sps:$4 sm:$0xff]  }
 0x2b5   : > { %7653 = vmatpush1.bf16.msra.mxu1 %v11196_v29  ;;  %v11278_v29 = vld [vmem:[%s11892_s27 + $0x1c40] ss:$8 sps:$4 sm:$0xff]  }
 0x2b6   : > { %8350 = vmatpush1.bf16.msra.mxu0 %v11199_v46  ;;  %7654 = vmatprep.subr.bf16.mxu1 %v11204_v48  ;;  %v11283_v46 = vld [vmem:[%s11892_s27 + $0xb54] ss:$8 sps:$4 sm:$0xff]  }
 0x2b7   : > { %8351 = vmatprep.subr.bf16.mxu0 %v11207_v51  ;;  %v11286_v48 = vld [vmem:[%s11892_s27 + $0x1c54] ss:$8 sps:$4 sm:$0xff]   ;;  %v11281_v51 = vld [vmem:[%s11892_s27 + $0xb50] ss:$8 sps:$4 sm:$0xff]  }
 0x2b9   : > { %7655 = vmatpush1.bf16.msra.mxu1 %v11202_v54  ;;  %v11284_v54 = vld [vmem:[%s11892_s27 + $0x1c50] ss:$8 sps:$4 sm:$0xff]  }
 0x2ba   : > { %8352 = vmatpush1.bf16.msra.mxu0 %v11205_v56  ;;  %7656 = vmatprep.subr.bf16.mxu1 %v11210_v37  ;;  %v11289_v56 = vld [vmem:[%s11892_s27 + $0xb64] ss:$8 sps:$4 sm:$0xff]  }
 0x2bb   : > { %8353 = vmatprep.subr.bf16.mxu0 %v11213_v35  ;;  %v11292_v37 = vld [vmem:[%s11892_s27 + $0x1c64] ss:$8 sps:$4 sm:$0xff]   ;;  %v11287_v35 = vld [vmem:[%s11892_s27 + $0xb60] ss:$8 sps:$4 sm:$0xff]  }
 0x2bd   : > { %7657 = vmatpush1.bf16.msra.mxu1 %v11208_v26  ;;  %v11290_v26 = vld [vmem:[%s11892_s27 + $0x1c60] ss:$8 sps:$4 sm:$0xff]  }
 0x2be   : > { %8354 = vmatpush1.bf16.msra.mxu0 %v11211_v58  ;;  %7658 = vmatprep.subr.bf16.mxu1 %v11216_v59  ;;  %v11295_v58 = vld [vmem:[%s11892_s27 + $0xb74] ss:$8 sps:$4 sm:$0xff]  }
 0x2bf   : > { %8355 = vmatprep.subr.bf16.mxu0 %v11219_v18  ;;  %v11298_v59 = vld [vmem:[%s11892_s27 + $0x1c74] ss:$8 sps:$4 sm:$0xff]   ;;  %v11293_v18 = vld [vmem:[%s11892_s27 + $0xb70] ss:$8 sps:$4 sm:$0xff]  }
 0x2c1   : > { %7659 = vmatpush1.bf16.msra.mxu1 %v11214_v60  ;;  %v11296_v60 = vld [vmem:[%s11892_s27 + $0x1c70] ss:$8 sps:$4 sm:$0xff]  }
 0x2c2   : > { %8356 = vmatpush1.bf16.msra.mxu0 %v11217_v61  ;;  %7660 = vmatprep.subr.bf16.mxu1 %v11222_v62  ;;  %v11301_v61 = vld [vmem:[%s11892_s27 + $0xb84] ss:$8 sps:$4 sm:$0xff]  }
 0x2c3   : > { %8357 = vmatprep.subr.bf16.mxu0 %v11225_v1  ;;  %v11304_v62 = vld [vmem:[%s11892_s27 + $0x1c84] ss:$8 sps:$4 sm:$0xff]   ;;  %v11299_v1 = vld [vmem:[%s11892_s27 + $0xb80] ss:$8 sps:$4 sm:$0xff]  }
 0x2c5   : > { %7661 = vmatpush1.bf16.msra.mxu1 %v11220_v2  ;;  %v11302_v2 = vld [vmem:[%s11892_s27 + $0x1c80] ss:$8 sps:$4 sm:$0xff]  }
 0x2c6   : > { %8358 = vmatpush1.bf16.msra.mxu0 %v11223_v5  ;;  %7662 = vmatprep.subr.bf16.mxu1 %v11228_v15  ;;  %v11307_v5 = vld [vmem:[%s11892_s27 + $0xb94] ss:$8 sps:$4 sm:$0xff]  }
 0x2c7   : > { %8359 = vmatprep.subr.bf16.mxu0 %v11231_v6  ;;  %v11310_v15 = vld [vmem:[%s11892_s27 + $0x1c94] ss:$8 sps:$4 sm:$0xff]   ;;  %v11305_v6 = vld [vmem:[%s11892_s27 + $0xb90] ss:$8 sps:$4 sm:$0xff]  }
 0x2c9   : > { %7663 = vmatpush1.bf16.msra.mxu1 %v11226_v39  ;;  %v11308_v39 = vld [vmem:[%s11892_s27 + $0x1c90] ss:$8 sps:$4 sm:$0xff]  }
 0x2ca   : > { %8360 = vmatpush1.bf16.msra.mxu0 %v11229_v50  ;;  %7664 = vmatprep.subr.bf16.mxu1 %v11234_v31  ;;  %v11313_v50 = vld [vmem:[%s11892_s27 + $0xba4] ss:$8 sps:$4 sm:$0xff]  }
 0x2cb   : > { %8361 = vmatprep.subr.bf16.mxu0 %v11237_v38  ;;  %v11316_v31 = vld [vmem:[%s11892_s27 + $0x1ca4] ss:$8 sps:$4 sm:$0xff]   ;;  %v11311_v38 = vld [vmem:[%s11892_s27 + $0xba0] ss:$8 sps:$4 sm:$0xff]  }
 0x2cd   : > { %7665 = vmatpush1.bf16.msra.mxu1 %v11232_v57  ;;  %v11314_v57 = vld [vmem:[%s11892_s27 + $0x1ca0] ss:$8 sps:$4 sm:$0xff]  }
 0x2ce   : > { %8362 = vmatpush1.bf16.msra.mxu0 %v11235_v8  ;;  %7666 = vmatprep.subr.bf16.mxu1 %v11240_v10  ;;  %v11319_v8 = vld [vmem:[%s11892_s27 + $0xbb4] ss:$8 sps:$4 sm:$0xff]  }
 0x2cf   : > { %8363 = vmatprep.subr.bf16.mxu0 %v11243_v11  ;;  %v11322_v10 = vld [vmem:[%s11892_s27 + $0x1cb4] ss:$8 sps:$4 sm:$0xff]   ;;  %v11317_v11 = vld [vmem:[%s11892_s27 + $0xbb0] ss:$8 sps:$4 sm:$0xff]  }
 0x2d1   : > { %7667 = vmatpush1.bf16.msra.mxu1 %v11238_v14  ;;  %v11320_v14 = vld [vmem:[%s11892_s27 + $0x1cb0] ss:$8 sps:$4 sm:$0xff]  }
 0x2d2   : > { %8364 = vmatpush1.bf16.msra.mxu0 %v11241_v17  ;;  %7668 = vmatprep.subr.bf16.mxu1 %v11246_v0  ;;  %v11325_v17 = vld [vmem:[%s11892_s27 + $0xbc4] ss:$8 sps:$4 sm:$0xff]  }
 0x2d3   : > { %8365 = vmatprep.subr.bf16.mxu0 %v11249_v63  ;;  %v11328_v0 = vld [vmem:[%s11892_s27 + $0x1cc4] ss:$8 sps:$4 sm:$0xff]   ;;  %v11323_v63 = vld [vmem:[%s11892_s27 + $0xbc0] ss:$8 sps:$4 sm:$0xff]  }
 0x2d5   : > { %7669 = vmatpush1.bf16.msra.mxu1 %v11244_v3  ;;  %v11326_v3 = vld [vmem:[%s11892_s27 + $0x1cc0] ss:$8 sps:$4 sm:$0xff]  }
 0x2d6   : > { %8366 = vmatpush1.bf16.msra.mxu0 %v11247_v20  ;;  %7679 = vmatprep.subr.bf16.mxu1 %v11253_v21  ;;  %v11331_v20 = vld [vmem:[%s11892_s27 + $0xbd4] ss:$8 sps:$4 sm:$0xff]  }
 0x2d7   : > { %8376 = vmatprep.subr.bf16.mxu0 %v11256_v25  ;;  %v11334_v21 = vld [vmem:[%s11892_s27 + $0x1cd4] ss:$8 sps:$4 sm:$0xff]   ;;  %v11329_v25 = vld [vmem:[%s11892_s27 + $0xbd0] ss:$8 sps:$4 sm:$0xff]  }
 0x2d8   : > { %7671 = vmatmul.mubr.bf16.vlgmr.msra.gmra.mrb[0].mxu1 %v12831_v24 }
 0x2d9   : > { %8368 = vmatmul.mubr.bf16.vlgmr.msra.gmra.mrb[0].mxu0 %v1726_v27  ;;  %7680 = vmatpush1.bf16.msra.mxu1 %v11251_v28  ;;  %v11337_v27 = vld [vmem:[%s11892_s27 + $0xbe4] ss:$8 sps:$4 sm:$0xff]  }
 0x2da   : > { %8377 = vmatpush1.bf16.msra.mxu0 %v11254_v30  ;;  %7681 = vmatprep.subr.bf16.mxu1 %v11259_v9  ;;  %v11340_v28 = vld [vmem:[%s11892_s27 + $0x1ce4] ss:$8 sps:$4 sm:$0xff]   ;;  %v12899_v30 = vld [vmem:[%s11887_s23 + $0x18] sm:$0xff]  ;;  %v11335_v9 = vld [vmem:[%s11892_s27 + $0xbe0] ss:$8 sps:$4 sm:$0xff]  }
 0x2db   : > { %8378 = vmatprep.subr.bf16.mxu0 %v11262_v49  ;;  %7711 = vmatprep.mubr.bf16.mxu1 %v1532_v53  ;;  %v11338_v49 = vld [vmem:[%s11892_s27 + $0x1ce0] ss:$8 sps:$4 sm:$0xff]   ;;  %v11343_v53 = vld [vmem:[%s11892_s27 + $0xbf4] ss:$8 sps:$4 sm:$0xff]  }
 0x2dc   : > { %8408 = vmatprep.mubr.bf16.mxu0 %v12842_v7 }
 0x2dd   : > { %7682 = vmatpush1.bf16.msra.mxu1 %v11257_v12  ;;  %v11346_v12 = vld [vmem:[%s11892_s27 + $0x1cf4] ss:$8 sps:$4 sm:$0xff]  }
 0x2de   : > { %8379 = vmatpush1.bf16.msra.mxu0 %v11260_v33  ;;  %7683 = vmatprep.subr.bf16.mxu1 %v11265_v34  ;;  %v12907_v33 = vrot.slane %v12899_v30, %v11944_v52  ;;  %v11341_v34 = vld [vmem:[%s11892_s27 + $0xbf0] ss:$8 sps:$4 sm:$0xff]  }
 0x2df   : > { %8380 = vmatprep.subr.bf16.mxu0 %v11268_v19  ;;  %v11344_v19 = vld [vmem:[%s11892_s27 + $0x1cf0] ss:$8 sps:$4 sm:$0xff]  }
 0x2e1   : > { %7684 = vmatpush1.bf16.msra.mxu1 %v11263_v55  ;;  %v11349_v55 = vld [vmem:[%s11892_s27 + $0xc04] ss:$8 sps:$4 sm:$0xff]  }
 0x2e2   : > { %8381 = vmatpush1.bf16.msra.mxu0 %v11266_v36  ;;  %7685 = vmatprep.subr.bf16.mxu1 %v11271_v40  ;;  %v11352_v36 = vld [vmem:[%s11892_s27 + $0x1d04] ss:$8 sps:$4 sm:$0xff]   ;;  %v1548_v40 = vcombine.high %v12907_v33, %v12907_v33 }
 0x2e3   : > { %8382 = vmatprep.subr.bf16.mxu0 %v11274_v41  ;;  %v1530_v41 = vcombine.high %v12831_v24, %v12831_v24  ;;  %v1776_v24 = vcombine.high %v12842_v7, %v12842_v7  ;;  %v11359_v7 = vld [vmem:[%s11892_s27 + $0xc20] ss:$8 sps:$4 sm:$0xff]  }
 0x2e5   : > { %7686 = vmatpush1.bf16.msra.mxu1 %v11269_v22  ;;  %v12919_v22 = vrot.slane %v12821_v42, %v11944_v52  ;;  %v11353_v42 = vld [vmem:[%s11892_s27 + $0xc10] ss:$8 sps:$4 sm:$0xff]  }
 0x2e6   : > { %8383 = vmatpush1.bf16.msra.mxu0 %v11272_v43  ;;  %7687 = vmatprep.subr.bf16.mxu1 %v11277_v44  ;;  %v11347_v43 = vld [vmem:[%s11892_s27 + $0xc00] ss:$8 sps:$4 sm:$0xff]  }
 0x2e7   : > { %8384 = vmatprep.subr.bf16.mxu0 %v11280_v45  ;;  %v11350_v44 = vld [vmem:[%s11892_s27 + $0x1d00] ss:$8 sps:$4 sm:$0xff]   ;;  %v11355_v45 = vld [vmem:[%s11892_s27 + $0xc14] ss:$8 sps:$4 sm:$0xff]  }
 0x2e9   : > { %7688 = vmatpush1.bf16.msra.mxu1 %v11275_v32  ;;  %v11358_v32 = vld [vmem:[%s11892_s27 + $0x1d14] ss:$8 sps:$4 sm:$0xff]  }
 0x2ea   : > { %8385 = vmatpush1.bf16.msra.mxu0 %v11278_v29  ;;  %7689 = vmatprep.subr.bf16.mxu1 %v11283_v46  ;;  %v12926_v29 = vrot.slane %v1548_v40, %v11944_v52  ;;  %v11356_v46 = vld [vmem:[%s11892_s27 + $0x1d10] ss:$8 sps:$4 sm:$0xff]  }
 0x2eb   : > { %8386 = vmatprep.subr.bf16.mxu0 %v11286_v48  ;;  %v11361_v48 = vld [vmem:[%s11892_s27 + $0xc24] ss:$8 sps:$4 sm:$0xff]   ;;  %v11425_v40 = vld [vmem:[%s11892_s27 + $0xcd0] ss:$8 sps:$4 sm:$0xff]  }
 0x2ed   : > { %7690 = vmatpush1.bf16.msra.mxu1 %v11281_v51  ;;  %v11364_v51 = vld [vmem:[%s11892_s27 + $0x1d24] ss:$8 sps:$4 sm:$0xff]  }
 0x2ee   : > { %8387 = vmatpush1.bf16.msra.mxu0 %v11284_v54  ;;  %7691 = vmatprep.subr.bf16.mxu1 %v11289_v56  ;;  %v11362_v54 = vld [vmem:[%s11892_s27 + $0x1d20] ss:$8 sps:$4 sm:$0xff]   ;;  %v11367_v56 = vld [vmem:[%s11892_s27 + $0xc34] ss:$8 sps:$4 sm:$0xff]  }
 0x2ef   : > { %8388 = vmatprep.subr.bf16.mxu0 %v11292_v37  ;;  %v11370_v37 = vld [vmem:[%s11892_s27 + $0x1d34] ss:$8 sps:$4 sm:$0xff]  }
 0x2f1   : > { %7692 = vmatpush1.bf16.msra.mxu1 %v11287_v35  ;;  %v11365_v35 = vld [vmem:[%s11892_s27 + $0xc30] ss:$8 sps:$4 sm:$0xff]  }
 0x2f2   : > { %8389 = vmatpush1.bf16.msra.mxu0 %v11290_v26  ;;  %7693 = vmatprep.subr.bf16.mxu1 %v11295_v58  ;;  %v11368_v26 = vld [vmem:[%s11892_s27 + $0x1d30] ss:$8 sps:$4 sm:$0xff]   ;;  %v11373_v58 = vld [vmem:[%s11892_s27 + $0xc44] ss:$8 sps:$4 sm:$0xff]  }
 0x2f3   : > { %8390 = vmatprep.subr.bf16.mxu0 %v11298_v59  ;;  %v11376_v59 = vld [vmem:[%s11892_s27 + $0x1d44] ss:$8 sps:$4 sm:$0xff]  }
 0x2f5   : > { %7694 = vmatpush1.bf16.msra.mxu1 %v11293_v18  ;;  %v11371_v18 = vld [vmem:[%s11892_s27 + $0xc40] ss:$8 sps:$4 sm:$0xff]  }
 0x2f6   : > { %8391 = vmatpush1.bf16.msra.mxu0 %v11296_v60  ;;  %7695 = vmatprep.subr.bf16.mxu1 %v11301_v61  ;;  %v11374_v60 = vld [vmem:[%s11892_s27 + $0x1d40] ss:$8 sps:$4 sm:$0xff]   ;;  %v11379_v61 = vld [vmem:[%s11892_s27 + $0xc54] ss:$8 sps:$4 sm:$0xff]  }
 0x2f7   : > { %8392 = vmatprep.subr.bf16.mxu0 %v11304_v62  ;;  %v11382_v62 = vld [vmem:[%s11892_s27 + $0x1d54] ss:$8 sps:$4 sm:$0xff]  }
 0x2f9   : > { %7696 = vmatpush1.bf16.msra.mxu1 %v11299_v1  ;;  %v11377_v1 = vld [vmem:[%s11892_s27 + $0xc50] ss:$8 sps:$4 sm:$0xff]  }
 0x2fa   : > { %8393 = vmatpush1.bf16.msra.mxu0 %v11302_v2  ;;  %7697 = vmatprep.subr.bf16.mxu1 %v11307_v5  ;;  %v11380_v2 = vld [vmem:[%s11892_s27 + $0x1d50] ss:$8 sps:$4 sm:$0xff]   ;;  %v11385_v5 = vld [vmem:[%s11892_s27 + $0xc64] ss:$8 sps:$4 sm:$0xff]  }
 0x2fb   : > { %8394 = vmatprep.subr.bf16.mxu0 %v11310_v15  ;;  %v11388_v15 = vld [vmem:[%s11892_s27 + $0x1d64] ss:$8 sps:$4 sm:$0xff]  }
 0x2fd   : > { %7698 = vmatpush1.bf16.msra.mxu1 %v11305_v6  ;;  %v11383_v6 = vld [vmem:[%s11892_s27 + $0xc60] ss:$8 sps:$4 sm:$0xff]  }
 0x2fe   : > { %8395 = vmatpush1.bf16.msra.mxu0 %v11308_v39  ;;  %7699 = vmatprep.subr.bf16.mxu1 %v11313_v50  ;;  %v11386_v39 = vld [vmem:[%s11892_s27 + $0x1d60] ss:$8 sps:$4 sm:$0xff]   ;;  %v11391_v50 = vld [vmem:[%s11892_s27 + $0xc74] ss:$8 sps:$4 sm:$0xff]  }
 0x2ff   : > { %8396 = vmatprep.subr.bf16.mxu0 %v11316_v31  ;;  %v11394_v31 = vld [vmem:[%s11892_s27 + $0x1d74] ss:$8 sps:$4 sm:$0xff]  }
 0x301   : > { %7700 = vmatpush1.bf16.msra.mxu1 %v11311_v38  ;;  %v11389_v38 = vld [vmem:[%s11892_s27 + $0xc70] ss:$8 sps:$4 sm:$0xff]  }
 0x302   : > { %8397 = vmatpush1.bf16.msra.mxu0 %v11314_v57  ;;  %7701 = vmatprep.subr.bf16.mxu1 %v11319_v8  ;;  %v11392_v57 = vld [vmem:[%s11892_s27 + $0x1d70] ss:$8 sps:$4 sm:$0xff]   ;;  %v11397_v8 = vld [vmem:[%s11892_s27 + $0xc84] ss:$8 sps:$4 sm:$0xff]  }
 0x303   : > { %8398 = vmatprep.subr.bf16.mxu0 %v11322_v10  ;;  %v11400_v10 = vld [vmem:[%s11892_s27 + $0x1d84] ss:$8 sps:$4 sm:$0xff]  }
 0x305   : > { %7702 = vmatpush1.bf16.msra.mxu1 %v11317_v11  ;;  %v11395_v11 = vld [vmem:[%s11892_s27 + $0xc80] ss:$8 sps:$4 sm:$0xff]  }
 0x306   : > { %8399 = vmatpush1.bf16.msra.mxu0 %v11320_v14  ;;  %7703 = vmatprep.subr.bf16.mxu1 %v11325_v17  ;;  %v11398_v14 = vld [vmem:[%s11892_s27 + $0x1d80] ss:$8 sps:$4 sm:$0xff]   ;;  %v11403_v17 = vld [vmem:[%s11892_s27 + $0xc94] ss:$8 sps:$4 sm:$0xff]  }
 0x307   : > { %8400 = vmatprep.subr.bf16.mxu0 %v11328_v0  ;;  %v11406_v0 = vld [vmem:[%s11892_s27 + $0x1d94] ss:$8 sps:$4 sm:$0xff]  }
 0x309   : > { %7704 = vmatpush1.bf16.msra.mxu1 %v11323_v63  ;;  %v11401_v63 = vld [vmem:[%s11892_s27 + $0xc90] ss:$8 sps:$4 sm:$0xff]  }
 0x30a   : > { %8401 = vmatpush1.bf16.msra.mxu0 %v11326_v3  ;;  %7705 = vmatprep.subr.bf16.mxu1 %v11331_v20  ;;  %v11404_v3 = vld [vmem:[%s11892_s27 + $0x1d90] ss:$8 sps:$4 sm:$0xff]   ;;  %v11409_v20 = vld [vmem:[%s11892_s27 + $0xca4] ss:$8 sps:$4 sm:$0xff]  }
 0x30b   : > { %8402 = vmatprep.subr.bf16.mxu0 %v11334_v21  ;;  %v11412_v21 = vld [vmem:[%s11892_s27 + $0x1da4] ss:$8 sps:$4 sm:$0xff]  }
 0x30d   : > { %7706 = vmatpush1.bf16.msra.mxu1 %v11329_v25  ;;  %v11407_v25 = vld [vmem:[%s11892_s27 + $0xca0] ss:$8 sps:$4 sm:$0xff]  }
 0x30e   : > { %8403 = vmatpush1.bf16.msra.mxu0 %v11332_v23  ;;  %7707 = vmatprep.subr.bf16.mxu1 %v11337_v27  ;;  %v11410_v23 = vld [vmem:[%s11892_s27 + $0x1da0] ss:$8 sps:$4 sm:$0xff]   ;;  %v11415_v27 = vld [vmem:[%s11892_s27 + $0xcb4] ss:$8 sps:$4 sm:$0xff]  }
 0x30f   : > { %8404 = vmatprep.subr.bf16.mxu0 %v11340_v28  ;;  %v11418_v28 = vld [vmem:[%s11892_s27 + $0x1db4] ss:$8 sps:$4 sm:$0xff]  }
 0x311   : > { %7708 = vmatpush1.bf16.msra.mxu1 %v11335_v9  ;;  %v11413_v9 = vld [vmem:[%s11892_s27 + $0xcb0] ss:$8 sps:$4 sm:$0xff]  }
 0x312   : > { %8405 = vmatpush1.bf16.msra.mxu0 %v11338_v49  ;;  %7709 = vmatprep.subr.bf16.mxu1 %v11343_v53  ;;  %v11416_v49 = vld [vmem:[%s11892_s27 + $0x1db0] ss:$8 sps:$4 sm:$0xff]   ;;  %v11421_v53 = vld [vmem:[%s11892_s27 + $0xcc4] ss:$8 sps:$4 sm:$0xff]  }
 0x313   : > { %8406 = vmatprep.subr.bf16.mxu0 %v11346_v12  ;;  %v11424_v12 = vld [vmem:[%s11892_s27 + $0x1dc4] ss:$8 sps:$4 sm:$0xff]  }
 0x315   : > { %7710 = vmatpush1.bf16.msra.mxu1 %v11341_v34  ;;  %v11419_v34 = vld [vmem:[%s11892_s27 + $0xcc0] ss:$8 sps:$4 sm:$0xff]  }
 0x316   : > { %8407 = vmatpush1.bf16.msra.mxu0 %v11344_v19  ;;  %7720 = vmatprep.subr.bf16.mxu1 %v11349_v55  ;;  %v11422_v19 = vld [vmem:[%s11892_s27 + $0x1dc0] ss:$8 sps:$4 sm:$0xff]   ;;  %v11427_v55 = vld [vmem:[%s11892_s27 + $0xcd4] ss:$8 sps:$4 sm:$0xff]  }
 0x317   : > { %8417 = vmatprep.subr.bf16.mxu0 %v11352_v36  ;;  %v11430_v36 = vld [vmem:[%s11892_s27 + $0x1dd4] ss:$8 sps:$4 sm:$0xff]  }
 0x318   : > { %7712 = vmatmul.mubr.bf16.vlgmr.msra.gmra.mrb[0].mxu1 %v1530_v41  ;;  %v11428_v41 = vld [vmem:[%s11892_s27 + $0x1dd0] ss:$8 sps:$4 sm:$0xff]  }
 0x319   : > { %8409 = vmatmul.mubr.bf16.vlgmr.msra.gmra.mrb[0].mxu0 %v12919_v22  ;;  %7721 = vmatpush1.bf16.msra.mxu1 %v11347_v43  ;;  %v11433_v43 = vld [vmem:[%s11892_s27 + $0xce4] ss:$8 sps:$4 sm:$0xff]  }
 0x31a   : > { %8418 = vmatpush1.bf16.msra.mxu0 %v11350_v44  ;;  %7722 = vmatprep.subr.bf16.mxu1 %v11355_v45  ;;  %v11436_v44 = vld [vmem:[%s11892_s27 + $0x1de4] ss:$8 sps:$4 sm:$0xff]   ;;  %v1729_v45 = vcombine.high %v12813_v13, %v12813_v13  ;;  %v11440_v13 = vld [vmem:[%s11892_s27 + $0x1df0] ss:$8 sps:$4 sm:$0xff]  }
 0x31b   : > { %8419 = vmatprep.subr.bf16.mxu0 %v11358_v32  ;;  %7752 = vmatprep.mubr.bf16.mxu1 %v12926_v29  ;;  %v11431_v32 = vld [vmem:[%s11892_s27 + $0xce0] ss:$8 sps:$4 sm:$0xff]  }
 0x31c   : > { %8449 = vmatprep.mubr.bf16.mxu0 %v1776_v24  ;;  %v11434_v24 = vld [vmem:[%s11892_s27 + $0x1de0] ss:$8 sps:$4 sm:$0xff]  }
 0x31d   : > { %7723 = vmatpush1.bf16.msra.mxu1 %v11353_v42  ;;  %v11439_v42 = vld [vmem:[%s11892_s27 + $0xcf4] ss:$8 sps:$4 sm:$0xff]  }
 0x31e   : > { %8420 = vmatpush1.bf16.msra.mxu0 %v11356_v46  ;;  %7724 = vmatprep.subr.bf16.mxu1 %v11361_v48  ;;  %v11442_v46 = vld [vmem:[%s11892_s27 + $0x1df4] ss:$8 sps:$4 sm:$0xff]   ;;  %v12991_v48 = vrot.slane %v1729_v45, %v11944_v52  ;;  %v11509_v45 = vld [vmem:[%s11892_s27 + $0xdb0] ss:$8 sps:$4 sm:$0xff]  }
 0x31f   : > { %8421 = vmatprep.subr.bf16.mxu0 %v11364_v51  ;;  %v11437_v51 = vld [vmem:[%s11892_s27 + $0xcf0] ss:$8 sps:$4 sm:$0xff]  }
 0x321   : > { %7725 = vmatpush1.bf16.msra.mxu1 %v11359_v7  ;;  %v11445_v7 = vld [vmem:[%s11892_s27 + $0xd04] ss:$8 sps:$4 sm:$0xff]  }
 0x322   : > { %8422 = vmatpush1.bf16.msra.mxu0 %v11362_v54  ;;  %7726 = vmatprep.subr.bf16.mxu1 %v11367_v56  ;;  %v11448_v54 = vld [vmem:[%s11892_s27 + $0x1e04] ss:$8 sps:$4 sm:$0xff]   ;;  %v1745_v56 = vcombine.high %v12991_v48, %v12991_v48 }
 0x323   : > { %8423 = vmatprep.subr.bf16.mxu0 %v11370_v37  ;;  %v13001_v37 = vrot.slane %v12907_v33, %v11944_v52 }
 0x324   : > { %v13012_v33 = vrot.slane %v1745_v56, %v11944_v52  ;;  %v11524_v56 = vld [vmem:[%s11892_s27 + $0x1ed0] ss:$8 sps:$4 sm:$0xff]  }
 0x325   : > { %7727 = vmatpush1.bf16.msra.mxu1 %v11365_v35  ;;  %v1774_v35 = vcombine.high %v12919_v22, %v12919_v22  ;;  %v11449_v22 = vld [vmem:[%s11892_s27 + $0xd10] ss:$8 sps:$4 sm:$0xff]  }
 0x326   : > { %8424 = vmatpush1.bf16.msra.mxu0 %v11368_v26  ;;  %7728 = vmatprep.subr.bf16.mxu1 %v11373_v58  ;;  %v11443_v26 = vld [vmem:[%s11892_s27 + $0xd00] ss:$8 sps:$4 sm:$0xff]  }
 0x327   : > { %8425 = vmatprep.subr.bf16.mxu0 %v11376_v59  ;;  %v11446_v58 = vld [vmem:[%s11892_s27 + $0x1e00] ss:$8 sps:$4 sm:$0xff]   ;;  %v11451_v59 = vld [vmem:[%s11892_s27 + $0xd14] ss:$8 sps:$4 sm:$0xff]  }
 0x329   : > { %7729 = vmatpush1.bf16.msra.mxu1 %v11371_v18  ;;  %v11454_v18 = vld [vmem:[%s11892_s27 + $0x1e14] ss:$8 sps:$4 sm:$0xff]  }
 0x32a   : > { %8426 = vmatpush1.bf16.msra.mxu0 %v11374_v60  ;;  %7730 = vmatprep.subr.bf16.mxu1 %v11379_v61  ;;  %v1580_v60 = vcombine.high %v12926_v29, %v12926_v29  ;;  %v11452_v61 = vld [vmem:[%s11892_s27 + $0x1e10] ss:$8 sps:$4 sm:$0xff]   ;;  %v11460_v29 = vld [vmem:[%s11892_s27 + $0x1e24] ss:$8 sps:$4 sm:$0xff]  }
 0x32b   : > { %8427 = vmatprep.subr.bf16.mxu0 %v11382_v62  ;;  %v11457_v62 = vld [vmem:[%s11892_s27 + $0xd24] ss:$8 sps:$4 sm:$0xff]  }
 0x32d   : > { %7731 = vmatpush1.bf16.msra.mxu1 %v11377_v1  ;;  %v11455_v1 = vld [vmem:[%s11892_s27 + $0xd20] ss:$8 sps:$4 sm:$0xff]  }
 0x32e   : > { %8428 = vmatpush1.bf16.msra.mxu0 %v11380_v2  ;;  %7732 = vmatprep.subr.bf16.mxu1 %v11385_v5  ;;  %v11458_v2 = vld [vmem:[%s11892_s27 + $0x1e20] ss:$8 sps:$4 sm:$0xff]   ;;  %v11463_v5 = vld [vmem:[%s11892_s27 + $0xd34] ss:$8 sps:$4 sm:$0xff]  }
 0x32f   : > { %8429 = vmatprep.subr.bf16.mxu0 %v11388_v15  ;;  %v11466_v15 = vld [vmem:[%s11892_s27 + $0x1e34] ss:$8 sps:$4 sm:$0xff]  }
 0x331   : > { %7733 = vmatpush1.bf16.msra.mxu1 %v11383_v6  ;;  %v11461_v6 = vld [vmem:[%s11892_s27 + $0xd30] ss:$8 sps:$4 sm:$0xff]  }
 0x332   : > { %8430 = vmatpush1.bf16.msra.mxu0 %v11386_v39  ;;  %7734 = vmatprep.subr.bf16.mxu1 %v11391_v50  ;;  %v11464_v39 = vld [vmem:[%s11892_s27 + $0x1e30] ss:$8 sps:$4 sm:$0xff]   ;;  %v11469_v50 = vld [vmem:[%s11892_s27 + $0xd44] ss:$8 sps:$4 sm:$0xff]  }
 0x333   : > { %8431 = vmatprep.subr.bf16.mxu0 %v11394_v31  ;;  %v11472_v31 = vld [vmem:[%s11892_s27 + $0x1e44] ss:$8 sps:$4 sm:$0xff]  }
 0x335   : > { %7735 = vmatpush1.bf16.msra.mxu1 %v11389_v38  ;;  %v11467_v38 = vld [vmem:[%s11892_s27 + $0xd40] ss:$8 sps:$4 sm:$0xff]  }
 0x336   : > { %8432 = vmatpush1.bf16.msra.mxu0 %v11392_v57  ;;  %7736 = vmatprep.subr.bf16.mxu1 %v11397_v8  ;;  %v11470_v57 = vld [vmem:[%s11892_s27 + $0x1e40] ss:$8 sps:$4 sm:$0xff]   ;;  %v11475_v8 = vld [vmem:[%s11892_s27 + $0xd54] ss:$8 sps:$4 sm:$0xff]  }
 0x337   : > { %8433 = vmatprep.subr.bf16.mxu0 %v11400_v10  ;;  %v11478_v10 = vld [vmem:[%s11892_s27 + $0x1e54] ss:$8 sps:$4 sm:$0xff]  }
 0x339   : > { %7737 = vmatpush1.bf16.msra.mxu1 %v11395_v11  ;;  %v11473_v11 = vld [vmem:[%s11892_s27 + $0xd50] ss:$8 sps:$4 sm:$0xff]  }
 0x33a   : > { %8434 = vmatpush1.bf16.msra.mxu0 %v11398_v14  ;;  %7738 = vmatprep.subr.bf16.mxu1 %v11403_v17  ;;  %v11476_v14 = vld [vmem:[%s11892_s27 + $0x1e50] ss:$8 sps:$4 sm:$0xff]   ;;  %v11481_v17 = vld [vmem:[%s11892_s27 + $0xd64] ss:$8 sps:$4 sm:$0xff]  }
 0x33b   : > { %8435 = vmatprep.subr.bf16.mxu0 %v11406_v0  ;;  %v11484_v0 = vld [vmem:[%s11892_s27 + $0x1e64] ss:$8 sps:$4 sm:$0xff]  }
 0x33d   : > { %7739 = vmatpush1.bf16.msra.mxu1 %v11401_v63  ;;  %v11479_v63 = vld [vmem:[%s11892_s27 + $0xd60] ss:$8 sps:$4 sm:$0xff]  }
 0x33e   : > { %8436 = vmatpush1.bf16.msra.mxu0 %v11404_v3  ;;  %7740 = vmatprep.subr.bf16.mxu1 %v11409_v20  ;;  %v11482_v3 = vld [vmem:[%s11892_s27 + $0x1e60] ss:$8 sps:$4 sm:$0xff]   ;;  %v11487_v20 = vld [vmem:[%s11892_s27 + $0xd74] ss:$8 sps:$4 sm:$0xff]  }
 0x33f   : > { %8437 = vmatprep.subr.bf16.mxu0 %v11412_v21  ;;  %v11490_v21 = vld [vmem:[%s11892_s27 + $0x1e74] ss:$8 sps:$4 sm:$0xff]  }
 0x341   : > { %7741 = vmatpush1.bf16.msra.mxu1 %v11407_v25  ;;  %v11485_v25 = vld [vmem:[%s11892_s27 + $0xd70] ss:$8 sps:$4 sm:$0xff]  }
 0x342   : > { %8438 = vmatpush1.bf16.msra.mxu0 %v11410_v23  ;;  %7742 = vmatprep.subr.bf16.mxu1 %v11415_v27  ;;  %v11488_v23 = vld [vmem:[%s11892_s27 + $0x1e70] ss:$8 sps:$4 sm:$0xff]   ;;  %v11493_v27 = vld [vmem:[%s11892_s27 + $0xd84] ss:$8 sps:$4 sm:$0xff]  }
 0x343   : > { %8439 = vmatprep.subr.bf16.mxu0 %v11418_v28  ;;  %v11496_v28 = vld [vmem:[%s11892_s27 + $0x1e84] ss:$8 sps:$4 sm:$0xff]  }
 0x345   : > { %7743 = vmatpush1.bf16.msra.mxu1 %v11413_v9  ;;  %v11491_v9 = vld [vmem:[%s11892_s27 + $0xd80] ss:$8 sps:$4 sm:$0xff]  }
 0x346   : > { %8440 = vmatpush1.bf16.msra.mxu0 %v11416_v49  ;;  %7744 = vmatprep.subr.bf16.mxu1 %v11421_v53  ;;  %v11494_v49 = vld [vmem:[%s11892_s27 + $0x1e80] ss:$8 sps:$4 sm:$0xff]   ;;  %v11499_v53 = vld [vmem:[%s11892_s27 + $0xd94] ss:$8 sps:$4 sm:$0xff]  }
 0x347   : > { %8441 = vmatprep.subr.bf16.mxu0 %v11424_v12  ;;  %v11502_v12 = vld [vmem:[%s11892_s27 + $0x1e94] ss:$8 sps:$4 sm:$0xff]  }
 0x349   : > { %7745 = vmatpush1.bf16.msra.mxu1 %v11419_v34  ;;  %v11497_v34 = vld [vmem:[%s11892_s27 + $0xd90] ss:$8 sps:$4 sm:$0xff]  }
 0x34a   : > { %8442 = vmatpush1.bf16.msra.mxu0 %v11422_v19  ;;  %7746 = vmatprep.subr.bf16.mxu1 %v11427_v55  ;;  %v11500_v19 = vld [vmem:[%s11892_s27 + $0x1e90] ss:$8 sps:$4 sm:$0xff]   ;;  %v11505_v55 = vld [vmem:[%s11892_s27 + $0xda4] ss:$8 sps:$4 sm:$0xff]  }
 0x34b   : > { %8443 = vmatprep.subr.bf16.mxu0 %v11430_v36  ;;  %v11508_v36 = vld [vmem:[%s11892_s27 + $0x1ea4] ss:$8 sps:$4 sm:$0xff]  }
 0x34d   : > { %7747 = vmatpush1.bf16.msra.mxu1 %v11425_v40  ;;  %v11503_v40 = vld [vmem:[%s11892_s27 + $0xda0] ss:$8 sps:$4 sm:$0xff]  }
 0x34e   : > { %8444 = vmatpush1.bf16.msra.mxu0 %v11428_v41  ;;  %7748 = vmatprep.subr.bf16.mxu1 %v11433_v43  ;;  %v11506_v41 = vld [vmem:[%s11892_s27 + $0x1ea0] ss:$8 sps:$4 sm:$0xff]   ;;  %v11511_v43 = vld [vmem:[%s11892_s27 + $0xdb4] ss:$8 sps:$4 sm:$0xff]  }
 0x34f   : > { %8445 = vmatprep.subr.bf16.mxu0 %v11436_v44  ;;  %v11514_v44 = vld [vmem:[%s11892_s27 + $0x1eb4] ss:$8 sps:$4 sm:$0xff]  }
 0x351   : > { %7749 = vmatpush1.bf16.msra.mxu1 %v11431_v32  ;;  %v11512_v32 = vld [vmem:[%s11892_s27 + $0x1eb0] ss:$8 sps:$4 sm:$0xff]  }
 0x352   : > { %8446 = vmatpush1.bf16.msra.mxu0 %v11434_v24  ;;  %7750 = vmatprep.subr.bf16.mxu1 %v11439_v42  ;;  %v11517_v24 = vld [vmem:[%s11892_s27 + $0xdc4] ss:$8 sps:$4 sm:$0xff]  }
 0x353   : > { %8447 = vmatprep.subr.bf16.mxu0 %v11442_v46  ;;  %v11520_v42 = vld [vmem:[%s11892_s27 + $0x1ec4] ss:$8 sps:$4 sm:$0xff]   ;;  %v11515_v46 = vld [vmem:[%s11892_s27 + $0xdc0] ss:$8 sps:$4 sm:$0xff]  }
 0x355   : > { %7751 = vmatpush1.bf16.msra.mxu1 %v11437_v51  ;;  %v11518_v51 = vld [vmem:[%s11892_s27 + $0x1ec0] ss:$8 sps:$4 sm:$0xff]  }
 0x356   : > { %8448 = vmatpush1.bf16.msra.mxu0 %v11440_v13  ;;  %7761 = vmatprep.subr.bf16.mxu1 %v11445_v7  ;;  %v11523_v13 = vld [vmem:[%s11892_s27 + $0xdd4] ss:$8 sps:$4 sm:$0xff]  }
 0x357   : > { %8458 = vmatprep.subr.bf16.mxu0 %v11448_v54  ;;  %v11526_v7 = vld [vmem:[%s11892_s27 + $0x1ed4] ss:$8 sps:$4 sm:$0xff]   ;;  %v11521_v54 = vld [vmem:[%s11892_s27 + $0xdd0] ss:$8 sps:$4 sm:$0xff]  }
 0x358   : > { %7753 = vmatmul.mubr.bf16.vlgmr.msra.gmra.mrb[0].mxu1 %v13001_v37 }
 0x359   : > { %8450 = vmatmul.mubr.bf16.vlgmr.msra.gmra.mrb[0].mxu0 %v1774_v35  ;;  %7762 = vmatpush1.bf16.msra.mxu1 %v11443_v26  ;;  %v11529_v35 = vld [vmem:[%s11892_s27 + $0xde4] ss:$8 sps:$4 sm:$0xff]  }
 0x35a   : > { %8459 = vmatpush1.bf16.msra.mxu0 %v11446_v58  ;;  %7763 = vmatprep.subr.bf16.mxu1 %v11451_v59  ;;  %v11532_v26 = vld [vmem:[%s11892_s27 + $0x1ee4] ss:$8 sps:$4 sm:$0xff]   ;;  %v1533_v58 = vcombine.high %v12899_v30, %v12899_v30  ;;  %v11527_v59 = vld [vmem:[%s11892_s27 + $0xde0] ss:$8 sps:$4 sm:$0xff]   ;;  %v11536_v30 = vld [vmem:[%s11892_s27 + $0x1ef0] ss:$8 sps:$4 sm:$0xff]  }
 0x35b   : > { %8460 = vmatprep.subr.bf16.mxu0 %v11454_v18  ;;  %7793 = vmatprep.mubr.bf16.mxu1 %v1580_v60  ;;  %v11530_v18 = vld [vmem:[%s11892_s27 + $0x1ee0] ss:$8 sps:$4 sm:$0xff]   ;;  %v11535_v60 = vld [vmem:[%s11892_s27 + $0xdf4] ss:$8 sps:$4 sm:$0xff]  }
 0x35c   : > { %8490 = vmatprep.mubr.bf16.mxu0 %v13012_v33 }
 0x35d   : > { %7764 = vmatpush1.bf16.msra.mxu1 %v11449_v22  ;;  %v11538_v22 = vld [vmem:[%s11892_s27 + $0x1ef4] ss:$8 sps:$4 sm:$0xff]  }
 0x35e   : > { %8461 = vmatpush1.bf16.msra.mxu0 %v11452_v61  ;;  %7765 = vmatprep.subr.bf16.mxu1 %v11457_v62  ;;  %v13075_v61 = vrot.slane %v1533_v58, %v11944_v52  ;;  %v11533_v62 = vld [vmem:[%s11892_s27 + $0xdf0] ss:$8 sps:$4 sm:$0xff]  }
 0x35f   : > { %8462 = vmatprep.subr.bf16.mxu0 %v11460_v29  ;;  %v11541_v29 = vld [vmem:[%s11892_s27 + $0xe04] ss:$8 sps:$4 sm:$0xff]   ;;  %v11609_v58 = vld [vmem:[%s11892_s27 + $0x1fb0] ss:$8 sps:$4 sm:$0xff]  }
 0x361   : > { %7766 = vmatpush1.bf16.msra.mxu1 %v11455_v1  ;;  %v11545_v1 = vld [vmem:[%s11892_s27 + $0x1f04] ss:$8 sps:$4 sm:$0xff]  }
 0x362   : > { %8463 = vmatpush1.bf16.msra.mxu0 %v11458_v2  ;;  %7767 = vmatprep.subr.bf16.mxu1 %v11463_v5  ;;  %v1549_v2 = vcombine.high %v13075_v61, %v13075_v61  ;;  %v1578_v5 = vcombine.high %v13001_v37, %v13001_v37  ;;  %v1777_v37 = vcombine.high %v13012_v33, %v13012_v33  ;;  %v11552_v33 = vld [vmem:[%s11892_s27 + $0xe20] ss:$8 sps:$4 sm:$0xff]  }
 0x363   : > { %8464 = vmatprep.subr.bf16.mxu0 %v11466_v15  ;;  %v13087_v15 = vrot.slane %v12991_v48, %v11944_v52  ;;  %v11546_v48 = vld [vmem:[%s11892_s27 + $0xe10] ss:$8 sps:$4 sm:$0xff]  }
 0x365   : > { %7768 = vmatpush1.bf16.msra.mxu1 %v11461_v6  ;;  %v11539_v6 = vld [vmem:[%s11892_s27 + $0xe00] ss:$8 sps:$4 sm:$0xff]  }
 0x366   : > { %8465 = vmatpush1.bf16.msra.mxu0 %v11464_v39  ;;  %7769 = vmatprep.subr.bf16.mxu1 %v11469_v50  ;;  %v11543_v39 = vld [vmem:[%s11892_s27 + $0x1f00] ss:$8 sps:$4 sm:$0xff]   ;;  %v11548_v50 = vld [vmem:[%s11892_s27 + $0xe14] ss:$8 sps:$4 sm:$0xff]  }
 0x367   : > { %8466 = vmatprep.subr.bf16.mxu0 %v11472_v31  ;;  %v11551_v31 = vld [vmem:[%s11892_s27 + $0x1f14] ss:$8 sps:$4 sm:$0xff]  }
 0x369   : > { %7770 = vmatpush1.bf16.msra.mxu1 %v11467_v38  ;;  %v13094_v38 = vrot.slane %v1549_v2, %v11944_v52  ;;  %v11626_v2 = vld [vmem:[%s11892_s27 + $0xee4] ss:$8 sps:$4 sm:$0xff]  }
 0x36a   : > { %8467 = vmatpush1.bf16.msra.mxu0 %v11470_v57  ;;  %7771 = vmatprep.subr.bf16.mxu1 %v11475_v8  ;;  %v11549_v57 = vld [vmem:[%s11892_s27 + $0x1f10] ss:$8 sps:$4 sm:$0xff]   ;;  %v11554_v8 = vld [vmem:[%s11892_s27 + $0xe24] ss:$8 sps:$4 sm:$0xff]  }
 0x36b   : > { %8468 = vmatprep.subr.bf16.mxu0 %v11478_v10  ;;  %v11557_v10 = vld [vmem:[%s11892_s27 + $0x1f24] ss:$8 sps:$4 sm:$0xff]  }
 0x36d   : > { %7772 = vmatpush1.bf16.msra.mxu1 %v11473_v11  ;;  %v11555_v11 = vld [vmem:[%s11892_s27 + $0x1f20] ss:$8 sps:$4 sm:$0xff]  }
 0x36e   : > { %8469 = vmatpush1.bf16.msra.mxu0 %v11476_v14  ;;  %7773 = vmatprep.subr.bf16.mxu1 %v11481_v17  ;;  %v11560_v14 = vld [vmem:[%s11892_s27 + $0xe34] ss:$8 sps:$4 sm:$0xff]  }
 0x36f   : > { %8470 = vmatprep.subr.bf16.mxu0 %v11484_v0  ;;  %v11563_v17 = vld [vmem:[%s11892_s27 + $0x1f34] ss:$8 sps:$4 sm:$0xff]   ;;  %v11558_v0 = vld [vmem:[%s11892_s27 + $0xe30] ss:$8 sps:$4 sm:$0xff]  }
 0x371   : > { %7774 = vmatpush1.bf16.msra.mxu1 %v11479_v63  ;;  %v11561_v63 = vld [vmem:[%s11892_s27 + $0x1f30] ss:$8 sps:$4 sm:$0xff]  }
 0x372   : > { %8471 = vmatpush1.bf16.msra.mxu0 %v11482_v3  ;;  %7775 = vmatprep.subr.bf16.mxu1 %v11487_v20  ;;  %v11566_v3 = vld [vmem:[%s11892_s27 + $0xe44] ss:$8 sps:$4 sm:$0xff]  }
 0x373   : > { %8472 = vmatprep.subr.bf16.mxu0 %v11490_v21  ;;  %v11569_v20 = vld [vmem:[%s11892_s27 + $0x1f44] ss:$8 sps:$4 sm:$0xff]   ;;  %v11564_v21 = vld [vmem:[%s11892_s27 + $0xe40] ss:$8 sps:$4 sm:$0xff]  }
 0x375   : > { %7776 = vmatpush1.bf16.msra.mxu1 %v11485_v25  ;;  %v11567_v25 = vld [vmem:[%s11892_s27 + $0x1f40] ss:$8 sps:$4 sm:$0xff]  }
 0x376   : > { %8473 = vmatpush1.bf16.msra.mxu0 %v11488_v23  ;;  %7777 = vmatprep.subr.bf16.mxu1 %v11493_v27  ;;  %v11572_v23 = vld [vmem:[%s11892_s27 + $0xe54] ss:$8 sps:$4 sm:$0xff]  }
 0x377   : > { %8474 = vmatprep.subr.bf16.mxu0 %v11496_v28  ;;  %v11575_v27 = vld [vmem:[%s11892_s27 + $0x1f54] ss:$8 sps:$4 sm:$0xff]   ;;  %v11570_v28 = vld [vmem:[%s11892_s27 + $0xe50] ss:$8 sps:$4 sm:$0xff]  }
 0x379   : > { %7778 = vmatpush1.bf16.msra.mxu1 %v11491_v9  ;;  %v11573_v9 = vld [vmem:[%s11892_s27 + $0x1f50] ss:$8 sps:$4 sm:$0xff]  }
 0x37a   : > { %8475 = vmatpush1.bf16.msra.mxu0 %v11494_v49  ;;  %7779 = vmatprep.subr.bf16.mxu1 %v11499_v53  ;;  %v11578_v49 = vld [vmem:[%s11892_s27 + $0xe64] ss:$8 sps:$4 sm:$0xff]  }
 0x37b   : > { %8476 = vmatprep.subr.bf16.mxu0 %v11502_v12  ;;  %v11581_v53 = vld [vmem:[%s11892_s27 + $0x1f64] ss:$8 sps:$4 sm:$0xff]   ;;  %v11576_v12 = vld [vmem:[%s11892_s27 + $0xe60] ss:$8 sps:$4 sm:$0xff]  }
 0x37d   : > { %7780 = vmatpush1.bf16.msra.mxu1 %v11497_v34  ;;  %v11579_v34 = vld [vmem:[%s11892_s27 + $0x1f60] ss:$8 sps:$4 sm:$0xff]  }
 0x37e   : > { %8477 = vmatpush1.bf16.msra.mxu0 %v11500_v19  ;;  %7781 = vmatprep.subr.bf16.mxu1 %v11505_v55  ;;  %v11584_v19 = vld [vmem:[%s11892_s27 + $0xe74] ss:$8 sps:$4 sm:$0xff]  }
 0x37f   : > { %8478 = vmatprep.subr.bf16.mxu0 %v11508_v36  ;;  %v11587_v55 = vld [vmem:[%s11892_s27 + $0x1f74] ss:$8 sps:$4 sm:$0xff]   ;;  %v11582_v36 = vld [vmem:[%s11892_s27 + $0xe70] ss:$8 sps:$4 sm:$0xff]  }
 0x381   : > { %7782 = vmatpush1.bf16.msra.mxu1 %v11503_v40  ;;  %v11585_v40 = vld [vmem:[%s11892_s27 + $0x1f70] ss:$8 sps:$4 sm:$0xff]  }
 0x382   : > { %8479 = vmatpush1.bf16.msra.mxu0 %v11506_v41  ;;  %7783 = vmatprep.subr.bf16.mxu1 %v11511_v43  ;;  %v11590_v41 = vld [vmem:[%s11892_s27 + $0xe84] ss:$8 sps:$4 sm:$0xff]  }
 0x383   : > { %8480 = vmatprep.subr.bf16.mxu0 %v11514_v44  ;;  %v11593_v43 = vld [vmem:[%s11892_s27 + $0x1f84] ss:$8 sps:$4 sm:$0xff]   ;;  %v11588_v44 = vld [vmem:[%s11892_s27 + $0xe80] ss:$8 sps:$4 sm:$0xff]  }
 0x385   : > { %7784 = vmatpush1.bf16.msra.mxu1 %v11509_v45  ;;  %v11591_v45 = vld [vmem:[%s11892_s27 + $0x1f80] ss:$8 sps:$4 sm:$0xff]  }
 0x386   : > { %8481 = vmatpush1.bf16.msra.mxu0 %v11512_v32  ;;  %7785 = vmatprep.subr.bf16.mxu1 %v11517_v24  ;;  %v11596_v32 = vld [vmem:[%s11892_s27 + $0xe94] ss:$8 sps:$4 sm:$0xff]  }
 0x387   : > { %8482 = vmatprep.subr.bf16.mxu0 %v11520_v42  ;;  %v11599_v24 = vld [vmem:[%s11892_s27 + $0x1f94] ss:$8 sps:$4 sm:$0xff]   ;;  %v11594_v42 = vld [vmem:[%s11892_s27 + $0xe90] ss:$8 sps:$4 sm:$0xff]  }
 0x389   : > { %7786 = vmatpush1.bf16.msra.mxu1 %v11515_v46  ;;  %v11597_v46 = vld [vmem:[%s11892_s27 + $0x1f90] ss:$8 sps:$4 sm:$0xff]  }
 0x38a   : > { %8483 = vmatpush1.bf16.msra.mxu0 %v11518_v51  ;;  %7787 = vmatprep.subr.bf16.mxu1 %v11523_v13  ;;  %v11602_v51 = vld [vmem:[%s11892_s27 + $0xea4] ss:$8 sps:$4 sm:$0xff]  }
 0x38b   : > { %8484 = vmatprep.subr.bf16.mxu0 %v11526_v7  ;;  %v11605_v13 = vld [vmem:[%s11892_s27 + $0x1fa4] ss:$8 sps:$4 sm:$0xff]   ;;  %v11600_v7 = vld [vmem:[%s11892_s27 + $0xea0] ss:$8 sps:$4 sm:$0xff]  }
 0x38d   : > { %7788 = vmatpush1.bf16.msra.mxu1 %v11521_v54  ;;  %v11603_v54 = vld [vmem:[%s11892_s27 + $0x1fa0] ss:$8 sps:$4 sm:$0xff]  }
 0x38e   : > { %8485 = vmatpush1.bf16.msra.mxu0 %v11524_v56  ;;  %7789 = vmatprep.subr.bf16.mxu1 %v11529_v35  ;;  %v11608_v56 = vld [vmem:[%s11892_s27 + $0xeb4] ss:$8 sps:$4 sm:$0xff]  }
 0x38f   : > { %8486 = vmatprep.subr.bf16.mxu0 %v11532_v26  ;;  %v11611_v35 = vld [vmem:[%s11892_s27 + $0x1fb4] ss:$8 sps:$4 sm:$0xff]   ;;  %v11606_v26 = vld [vmem:[%s11892_s27 + $0xeb0] ss:$8 sps:$4 sm:$0xff]  }
 0x391   : > { %7790 = vmatpush1.bf16.msra.mxu1 %v11527_v59  ;;  %v11614_v59 = vld [vmem:[%s11892_s27 + $0xec4] ss:$8 sps:$4 sm:$0xff]  }
 0x392   : > { %8487 = vmatpush1.bf16.msra.mxu0 %v11530_v18  ;;  %7791 = vmatprep.subr.bf16.mxu1 %v11535_v60  ;;  %v11617_v18 = vld [vmem:[%s11892_s27 + $0x1fc4] ss:$8 sps:$4 sm:$0xff]   ;;  %v11612_v60 = vld [vmem:[%s11892_s27 + $0xec0] ss:$8 sps:$4 sm:$0xff]  }
 0x393   : > { %8488 = vmatprep.subr.bf16.mxu0 %v11538_v22  ;;  %v11615_v22 = vld [vmem:[%s11892_s27 + $0x1fc0] ss:$8 sps:$4 sm:$0xff]  }
 0x395   : > { %7792 = vmatpush1.bf16.msra.mxu1 %v11533_v62  ;;  %v11620_v62 = vld [vmem:[%s11892_s27 + $0xed4] ss:$8 sps:$4 sm:$0xff]  }
 0x396   : > { %8489 = vmatpush1.bf16.msra.mxu0 %v11536_v30  ;;  %7802 = vmatprep.subr.bf16.mxu1 %v11541_v29  ;;  %v11623_v30 = vld [vmem:[%s11892_s27 + $0x1fd4] ss:$8 sps:$4 sm:$0xff]   ;;  %v11618_v29 = vld [vmem:[%s11892_s27 + $0xed0] ss:$8 sps:$4 sm:$0xff]  }
 0x397   : > { %8499 = vmatprep.subr.bf16.mxu0 %v11545_v1  ;;  %v11621_v1 = vld [vmem:[%s11892_s27 + $0x1fd0] ss:$8 sps:$4 sm:$0xff]  }
 0x398   : > { %7794 = vmatmul.mubr.bf16.vlgmr.msra.gmra.mrb[0].mxu1 %v1578_v5  ;;  %v11629_v5 = vld [vmem:[%s11892_s27 + $0x1fe4] ss:$8 sps:$4 sm:$0xff]  }
 0x399   : > { %8491 = vmatmul.mubr.bf16.vlgmr.msra.gmra.mrb[0].mxu0 %v13087_v15  ;;  %7803 = vmatpush1.bf16.msra.mxu1 %v11539_v6  ;;  %v11624_v6 = vld [vmem:[%s11892_s27 + $0xee0] ss:$8 sps:$4 sm:$0xff]  }
 0x39a   : > { %8500 = vmatpush1.bf16.msra.mxu0 %v11543_v39  ;;  %7804 = vmatprep.subr.bf16.mxu1 %v11548_v50  ;;  %v11627_v39 = vld [vmem:[%s11892_s27 + $0x1fe0] ss:$8 sps:$4 sm:$0xff]   ;;  %v11632_v50 = vld [vmem:[%s11892_s27 + $0xef4] ss:$8 sps:$4 sm:$0xff]  }
 0x39b   : > { %8501 = vmatprep.subr.bf16.mxu0 %v11551_v31  ;;  %7834 = vmatprep.mubr.bf16.mxu1 %v13094_v38  ;;  %v11635_v31 = vld [vmem:[%s11892_s27 + $0x1ff4] ss:$8 sps:$4 sm:$0xff]  }
 0x39c   : > { %8531 = vmatprep.mubr.bf16.mxu0 %v1777_v37  ;;  %v13157_v37 = vld.sshfl [vmem:[%s11887_s23 + $0x40] sm:$0x13 pattern:$0x75316420] }
 0x39d   : > { %7805 = vmatpush1.bf16.msra.mxu1 %v11546_v48  ;;  %v11630_v48 = vld [vmem:[%s11892_s27 + $0xef0] ss:$8 sps:$4 sm:$0xff]  }
 0x39e   : > { %8502 = vmatpush1.bf16.msra.mxu0 %v11549_v57  ;;  %7806 = vmatprep.subr.bf16.mxu1 %v11554_v8  ;;  %v11633_v57 = vld [vmem:[%s11892_s27 + $0x1ff0] ss:$8 sps:$4 sm:$0xff]   ;;  %v11639_v8 = vld [vmem:[%s11892_s27 + $0xf04] ss:$8 sps:$4 sm:$0xff]  }
 0x39f   : > { %8503 = vmatprep.subr.bf16.mxu0 %v11557_v10  ;;  %v11642_v10 = vld [vmem:[%s11892_s27 + $0x2004] ss:$8 sps:$4 sm:$0xff]  }
 0x3a1   : > { %7807 = vmatpush1.bf16.msra.mxu1 %v11552_v33  ;;  %v1785_v33 = vcombine.high %v13157_v37, %v13157_v37 }
 0x3a2   : > { %8504 = vmatpush1.bf16.msra.mxu0 %v11555_v11  ;;  %7808 = vmatprep.subr.bf16.mxu1 %v11560_v14  ;;  %v13167_v11 = vrot.slane %v13075_v61, %v11944_v52  ;;  %v1775_v14 = vcombine.high %v13087_v15, %v13087_v15  ;;  %v11643_v15 = vld [vmem:[%s11892_s27 + $0xf10] ss:$8 sps:$4 sm:$0xff]  }
 0x3a3   : > { %8505 = vmatprep.subr.bf16.mxu0 %v11563_v17  ;;  %v11637_v17 = vld [vmem:[%s11892_s27 + $0xf00] ss:$8 sps:$4 sm:$0xff]   ;;  %v1799_v61 = vrot.slane %v1785_v33, %v11944_v52  ;;  %v11723_v33 = vld [vmem:[%s11892_s27 + $0xfe4] ss:$8 sps:$4 sm:$0xff]  }
 0x3a5   : > { %7809 = vmatpush1.bf16.msra.mxu1 %v11558_v0  ;;  %v11640_v0 = vld [vmem:[%s11892_s27 + $0x2000] ss:$8 sps:$4 sm:$0xff]  }
 0x3a6   : > { %8506 = vmatpush1.bf16.msra.mxu0 %v11561_v63  ;;  %7810 = vmatprep.subr.bf16.mxu1 %v11566_v3  ;;  %v11645_v63 = vld [vmem:[%s11892_s27 + $0xf14] ss:$8 sps:$4 sm:$0xff]  }
 0x3a7   : > { %8507 = vmatprep.subr.bf16.mxu0 %v11569_v20  ;;  %v11648_v3 = vld [vmem:[%s11892_s27 + $0x2014] ss:$8 sps:$4 sm:$0xff]   ;;  %v1581_v20 = vcombine.high %v13094_v38, %v13094_v38  ;;  %v11649_v38 = vld [vmem:[%s11892_s27 + $0xf20] ss:$8 sps:$4 sm:$0xff]  }
 0x3a9   : > { %7811 = vmatpush1.bf16.msra.mxu1 %v11564_v21  ;;  %v11646_v21 = vld [vmem:[%s11892_s27 + $0x2010] ss:$8 sps:$4 sm:$0xff]  }
 0x3aa   : > { %8508 = vmatpush1.bf16.msra.mxu0 %v11567_v25  ;;  %7812 = vmatprep.subr.bf16.mxu1 %v11572_v23  ;;  %v11651_v25 = vld [vmem:[%s11892_s27 + $0xf24] ss:$8 sps:$4 sm:$0xff]  }
 0x3ab   : > { %8509 = vmatprep.subr.bf16.mxu0 %v11575_v27  ;;  %v11654_v23 = vld [vmem:[%s11892_s27 + $0x2024] ss:$8 sps:$4 sm:$0xff]   ;;  %v11652_v27 = vld [vmem:[%s11892_s27 + $0x2020] ss:$8 sps:$4 sm:$0xff]  }
 0x3ad   : > { %7813 = vmatpush1.bf16.msra.mxu1 %v11570_v28  ;;  %v11657_v28 = vld [vmem:[%s11892_s27 + $0xf34] ss:$8 sps:$4 sm:$0xff]  }
 0x3ae   : > { %8510 = vmatpush1.bf16.msra.mxu0 %v11573_v9  ;;  %7814 = vmatprep.subr.bf16.mxu1 %v11578_v49  ;;  %v11660_v9 = vld [vmem:[%s11892_s27 + $0x2034] ss:$8 sps:$4 sm:$0xff]   ;;  %v11655_v49 = vld [vmem:[%s11892_s27 + $0xf30] ss:$8 sps:$4 sm:$0xff]  }
 0x3af   : > { %8511 = vmatprep.subr.bf16.mxu0 %v11581_v53  ;;  %v11658_v53 = vld [vmem:[%s11892_s27 + $0x2030] ss:$8 sps:$4 sm:$0xff]  }
 0x3b1   : > { %7815 = vmatpush1.bf16.msra.mxu1 %v11576_v12  ;;  %v11663_v12 = vld [vmem:[%s11892_s27 + $0xf44] ss:$8 sps:$4 sm:$0xff]  }
 0x3b2   : > { %8512 = vmatpush1.bf16.msra.mxu0 %v11579_v34  ;;  %7816 = vmatprep.subr.bf16.mxu1 %v11584_v19  ;;  %v11666_v34 = vld [vmem:[%s11892_s27 + $0x2044] ss:$8 sps:$4 sm:$0xff]   ;;  %v11661_v19 = vld [vmem:[%s11892_s27 + $0xf40] ss:$8 sps:$4 sm:$0xff]  }
 0x3b3   : > { %8513 = vmatprep.subr.bf16.mxu0 %v11587_v55  ;;  %v11664_v55 = vld [vmem:[%s11892_s27 + $0x2040] ss:$8 sps:$4 sm:$0xff]  }
 0x3b5   : > { %7817 = vmatpush1.bf16.msra.mxu1 %v11582_v36  ;;  %v11669_v36 = vld [vmem:[%s11892_s27 + $0xf54] ss:$8 sps:$4 sm:$0xff]  }
 0x3b6   : > { %8514 = vmatpush1.bf16.msra.mxu0 %v11585_v40  ;;  %7818 = vmatprep.subr.bf16.mxu1 %v11590_v41  ;;  %v11672_v40 = vld [vmem:[%s11892_s27 + $0x2054] ss:$8 sps:$4 sm:$0xff]   ;;  %v11667_v41 = vld [vmem:[%s11892_s27 + $0xf50] ss:$8 sps:$4 sm:$0xff]  }
 0x3b7   : > { %8515 = vmatprep.subr.bf16.mxu0 %v11593_v43  ;;  %v11670_v43 = vld [vmem:[%s11892_s27 + $0x2050] ss:$8 sps:$4 sm:$0xff]  }
 0x3b9   : > { %7819 = vmatpush1.bf16.msra.mxu1 %v11588_v44  ;;  %v11675_v44 = vld [vmem:[%s11892_s27 + $0xf64] ss:$8 sps:$4 sm:$0xff]  }
 0x3ba   : > { %8516 = vmatpush1.bf16.msra.mxu0 %v11591_v45  ;;  %7820 = vmatprep.subr.bf16.mxu1 %v11596_v32  ;;  %v11678_v45 = vld [vmem:[%s11892_s27 + $0x2064] ss:$8 sps:$4 sm:$0xff]   ;;  %v11673_v32 = vld [vmem:[%s11892_s27 + $0xf60] ss:$8 sps:$4 sm:$0xff]  }
 0x3bb   : > { %8517 = vmatprep.subr.bf16.mxu0 %v11599_v24  ;;  %v11676_v24 = vld [vmem:[%s11892_s27 + $0x2060] ss:$8 sps:$4 sm:$0xff]  }
 0x3bd   : > { %7821 = vmatpush1.bf16.msra.mxu1 %v11594_v42  ;;  %v11681_v42 = vld [vmem:[%s11892_s27 + $0xf74] ss:$8 sps:$4 sm:$0xff]  }
 0x3be   : > { %8518 = vmatpush1.bf16.msra.mxu0 %v11597_v46  ;;  %7822 = vmatprep.subr.bf16.mxu1 %v11602_v51  ;;  %v11684_v46 = vld [vmem:[%s11892_s27 + $0x2074] ss:$8 sps:$4 sm:$0xff]   ;;  %v11679_v51 = vld [vmem:[%s11892_s27 + $0xf70] ss:$8 sps:$4 sm:$0xff]  }
 0x3bf   : > { %8519 = vmatprep.subr.bf16.mxu0 %v11605_v13  ;;  %v11682_v13 = vld [vmem:[%s11892_s27 + $0x2070] ss:$8 sps:$4 sm:$0xff]  }
 0x3c1   : > { %7823 = vmatpush1.bf16.msra.mxu1 %v11600_v7  ;;  %v11687_v7 = vld [vmem:[%s11892_s27 + $0xf84] ss:$8 sps:$4 sm:$0xff]  }
 0x3c2   : > { %8520 = vmatpush1.bf16.msra.mxu0 %v11603_v54  ;;  %7824 = vmatprep.subr.bf16.mxu1 %v11608_v56  ;;  %v11690_v54 = vld [vmem:[%s11892_s27 + $0x2084] ss:$8 sps:$4 sm:$0xff]   ;;  %v11685_v56 = vld [vmem:[%s11892_s27 + $0xf80] ss:$8 sps:$4 sm:$0xff]  }
 0x3c3   : > { %8521 = vmatprep.subr.bf16.mxu0 %v11611_v35  ;;  %v11688_v35 = vld [vmem:[%s11892_s27 + $0x2080] ss:$8 sps:$4 sm:$0xff]  }
 0x3c5   : > { %7825 = vmatpush1.bf16.msra.mxu1 %v11606_v26  ;;  %v11693_v26 = vld [vmem:[%s11892_s27 + $0xf94] ss:$8 sps:$4 sm:$0xff]  }
 0x3c6   : > { %8522 = vmatpush1.bf16.msra.mxu0 %v11609_v58  ;;  %7826 = vmatprep.subr.bf16.mxu1 %v11614_v59  ;;  %v11696_v58 = vld [vmem:[%s11892_s27 + $0x2094] ss:$8 sps:$4 sm:$0xff]   ;;  %v11691_v59 = vld [vmem:[%s11892_s27 + $0xf90] ss:$8 sps:$4 sm:$0xff]  }
 0x3c7   : > { %8523 = vmatprep.subr.bf16.mxu0 %v11617_v18  ;;  %v11694_v18 = vld [vmem:[%s11892_s27 + $0x2090] ss:$8 sps:$4 sm:$0xff]  }
 0x3c9   : > { %7827 = vmatpush1.bf16.msra.mxu1 %v11612_v60  ;;  %v11699_v60 = vld [vmem:[%s11892_s27 + $0xfa4] ss:$8 sps:$4 sm:$0xff]  }
 0x3ca   : > { %8524 = vmatpush1.bf16.msra.mxu0 %v11615_v22  ;;  %7828 = vmatprep.subr.bf16.mxu1 %v11620_v62  ;;  %v11702_v22 = vld [vmem:[%s11892_s27 + $0x20a4] ss:$8 sps:$4 sm:$0xff]   ;;  %v11697_v62 = vld [vmem:[%s11892_s27 + $0xfa0] ss:$8 sps:$4 sm:$0xff]  }
 0x3cb   : > { %8525 = vmatprep.subr.bf16.mxu0 %v11623_v30  ;;  %v11700_v30 = vld [vmem:[%s11892_s27 + $0x20a0] ss:$8 sps:$4 sm:$0xff]  }
 0x3cd   : > { %7829 = vmatpush1.bf16.msra.mxu1 %v11618_v29  ;;  %v11705_v29 = vld [vmem:[%s11892_s27 + $0xfb4] ss:$8 sps:$4 sm:$0xff]  }
 0x3ce   : > { %8526 = vmatpush1.bf16.msra.mxu0 %v11621_v1  ;;  %7830 = vmatprep.subr.bf16.mxu1 %v11626_v2  ;;  %v11708_v1 = vld [vmem:[%s11892_s27 + $0x20b4] ss:$8 sps:$4 sm:$0xff]   ;;  %v11703_v2 = vld [vmem:[%s11892_s27 + $0xfb0] ss:$8 sps:$4 sm:$0xff]  }
 0x3cf   : > { %8527 = vmatprep.subr.bf16.mxu0 %v11629_v5  ;;  %v11706_v5 = vld [vmem:[%s11892_s27 + $0x20b0] ss:$8 sps:$4 sm:$0xff]  }
 0x3d1   : > { %7831 = vmatpush1.bf16.msra.mxu1 %v11624_v6  ;;  %v11711_v6 = vld [vmem:[%s11892_s27 + $0xfc4] ss:$8 sps:$4 sm:$0xff]  }
 0x3d2   : > { %8528 = vmatpush1.bf16.msra.mxu0 %v11627_v39  ;;  %7832 = vmatprep.subr.bf16.mxu1 %v11632_v50  ;;  %v11714_v39 = vld [vmem:[%s11892_s27 + $0x20c4] ss:$8 sps:$4 sm:$0xff]   ;;  %v11709_v50 = vld [vmem:[%s11892_s27 + $0xfc0] ss:$8 sps:$4 sm:$0xff]  }
 0x3d3   : > { %8529 = vmatprep.subr.bf16.mxu0 %v11635_v31  ;;  %v11712_v31 = vld [vmem:[%s11892_s27 + $0x20c0] ss:$8 sps:$4 sm:$0xff]  }
 0x3d5   : > { %7833 = vmatpush1.bf16.msra.mxu1 %v11630_v48  ;;  %v11717_v48 = vld [vmem:[%s11892_s27 + $0xfd4] ss:$8 sps:$4 sm:$0xff]  }
 0x3d6   : > { %8530 = vmatpush1.bf16.msra.mxu0 %v11633_v57  ;;  %7843 = vmatprep.subr.bf16.mxu1 %v11639_v8  ;;  %v11720_v57 = vld [vmem:[%s11892_s27 + $0x20d4] ss:$8 sps:$4 sm:$0xff]   ;;  %v11715_v8 = vld [vmem:[%s11892_s27 + $0xfd0] ss:$8 sps:$4 sm:$0xff]  }
 0x3d7   : > { %8540 = vmatprep.subr.bf16.mxu0 %v11642_v10  ;;  %v11718_v10 = vld [vmem:[%s11892_s27 + $0x20d0] ss:$8 sps:$4 sm:$0xff]  }
 0x3d8   : > { %7835 = vmatmul.mubr.bf16.vlgmr.msra.gmra.mrb[0].mxu1 %v13167_v11 }
 0x3d9   : > { %8532 = vmatmul.mubr.bf16.vlgmr.msra.gmra.mrb[0].mxu0 %v1775_v14  ;;  %7844 = vmatpush1.bf16.msra.mxu1 %v11637_v17  ;;  %v11726_v14 = vld [vmem:[%s11892_s27 + $0x20e4] ss:$8 sps:$4 sm:$0xff]   ;;  %v11721_v17 = vld [vmem:[%s11892_s27 + $0xfe0] ss:$8 sps:$4 sm:$0xff]  }
 0x3da   : > { %8541 = vmatpush1.bf16.msra.mxu0 %v11640_v0  ;;  %7845 = vmatprep.subr.bf16.mxu1 %v11645_v63  ;;  %v11724_v0 = vld [vmem:[%s11892_s27 + $0x20e0] ss:$8 sps:$4 sm:$0xff]   ;;  %v11729_v63 = vld [vmem:[%s11892_s27 + $0xff4] ss:$8 sps:$4 sm:$0xff]  }
 0x3db   : > { %8542 = vmatprep.subr.bf16.mxu0 %v11648_v3  ;;  %7875 = vmatprep.mubr.bf16.mxu1 %v1581_v20  ;;  %v11732_v3 = vld [vmem:[%s11892_s27 + $0x20f4] ss:$8 sps:$4 sm:$0xff]   ;;  %v11727_v20 = vld [vmem:[%s11892_s27 + $0xff0] ss:$8 sps:$4 sm:$0xff]  }
 0x3dc   : > { %8572 = vmatprep.mubr.bf16.mxu0 %v1799_v61  ;;  %v11730_v61 = vld [vmem:[%s11892_s27 + $0x20f0] ss:$8 sps:$4 sm:$0xff]  }
 0x3dd   : > { %7846 = vmatpush1.bf16.msra.mxu1 %v11643_v15  ;;  %v11735_v15 = vld [vmem:[%s11892_s27 + $0x1004] ss:$8 sps:$4 sm:$0xff]  }
 0x3de   : > { %8543 = vmatpush1.bf16.msra.mxu0 %v11646_v21  ;;  %7847 = vmatprep.subr.bf16.mxu1 %v11651_v25  ;;  %v11738_v21 = vld [vmem:[%s11892_s27 + $0x2104] ss:$8 sps:$4 sm:$0xff]   ;;  %v1579_v25 = vcombine.high %v13167_v11, %v13167_v11 }
 0x3df   : > { %8544 = vmatprep.subr.bf16.mxu0 %v11654_v23  ;;  %v13243_v23 = vrot.slane %v13157_v37, %v11944_v52  ;;  %v11739_v52 = vld [vmem:[%s11892_s27 + $0x1010] ss:$8 sps:$4 sm:$0xff]   ;;  %v11747_v11 = vld [vmem:[%s11892_s27 + $0x1024] ss:$8 sps:$4 sm:$0xff]  }
 0x3e0   : > { %v11742_v37 = vld [vmem:[%s11892_s27 + $0x2110] ss:$8 sps:$4 sm:$0xff]  }
 0x3e1   : > { %7848 = vmatpush1.bf16.msra.mxu1 %v11649_v38  ;;  %v11733_v38 = vld [vmem:[%s11892_s27 + $0x1000] ss:$8 sps:$4 sm:$0xff]  }
 0x3e2   : > { %8545 = vmatpush1.bf16.msra.mxu0 %v11652_v27  ;;  %7849 = vmatprep.subr.bf16.mxu1 %v11657_v28  ;;  %v11736_v27 = vld [vmem:[%s11892_s27 + $0x2100] ss:$8 sps:$4 sm:$0xff]   ;;  %v11741_v28 = vld [vmem:[%s11892_s27 + $0x1014] ss:$8 sps:$4 sm:$0xff]  }
 0x3e3   : > { %8546 = vmatprep.subr.bf16.mxu0 %v11660_v9  ;;  %v11744_v9 = vld [vmem:[%s11892_s27 + $0x2114] ss:$8 sps:$4 sm:$0xff]  }
 0x3e5   : > { %7850 = vmatpush1.bf16.msra.mxu1 %v11655_v49  ;;  %v11750_v49 = vld [vmem:[%s11892_s27 + $0x2124] ss:$8 sps:$4 sm:$0xff]  }
 0x3e6   : > { %8547 = vmatpush1.bf16.msra.mxu0 %v11658_v53  ;;  %7851 = vmatprep.subr.bf16.mxu1 %v11663_v12  ;;  %v11835_v53 = vmov 0   ;;  %v11745_v12 = vld [vmem:[%s11892_s27 + $0x1020] ss:$8 sps:$4 sm:$0xff]  }
 0x3e7   : > { %8548 = vmatprep.subr.bf16.mxu0 %v11666_v34  ;;  %v11748_v34 = vld [vmem:[%s11892_s27 + $0x2120] ss:$8 sps:$4 sm:$0xff]  }
 0x3e9   : > { %7852 = vmatpush1.bf16.msra.mxu1 %v11661_v19  ;;  %v11753_v19 = vld [vmem:[%s11892_s27 + $0x1034] ss:$8 sps:$4 sm:$0xff]  }
 0x3ea   : > { %8549 = vmatpush1.bf16.msra.mxu0 %v11664_v55  ;;  %7853 = vmatprep.subr.bf16.mxu1 %v11669_v36  ;;  %v11756_v55 = vld [vmem:[%s11892_s27 + $0x2134] ss:$8 sps:$4 sm:$0xff]   ;;  %v11751_v36 = vld [vmem:[%s11892_s27 + $0x1030] ss:$8 sps:$4 sm:$0xff]  }
 0x3eb   : > { %8550 = vmatprep.subr.bf16.mxu0 %v11672_v40  ;;  %v11754_v40 = vld [vmem:[%s11892_s27 + $0x2130] ss:$8 sps:$4 sm:$0xff]  }
 0x3ed   : > { %7854 = vmatpush1.bf16.msra.mxu1 %v11667_v41  ;;  %v11762_v41 = vld [vmem:[%s11892_s27 + $0x2144] ss:$8 sps:$4 sm:$0xff]  }
 0x3ee   : > { %8551 = vmatpush1.bf16.msra.mxu0 %v11670_v43  ;;  %7855 = vmatprep.subr.bf16.mxu1 %v11675_v44  ;;  %v11757_v43 = vld [vmem:[%s11892_s27 + $0x1040] ss:$8 sps:$4 sm:$0xff]  }
 0x3ef   : > { %8552 = vmatprep.subr.bf16.mxu0 %v11678_v45  ;;  %v11760_v44 = vld [vmem:[%s11892_s27 + $0x2140] ss:$8 sps:$4 sm:$0xff]   ;;  %v11765_v45 = vld [vmem:[%s11892_s27 + $0x1054] ss:$8 sps:$4 sm:$0xff]  }
 0x3f1   : > { %7856 = vmatpush1.bf16.msra.mxu1 %v11673_v32  ;;  %v11768_v32 = vld [vmem:[%s11892_s27 + $0x2154] ss:$8 sps:$4 sm:$0xff]  }
 0x3f2   : > { %8553 = vmatpush1.bf16.msra.mxu0 %v11676_v24  ;;  %7857 = vmatprep.subr.bf16.mxu1 %v11681_v42  ;;  %v11763_v24 = vld [vmem:[%s11892_s27 + $0x1050] ss:$8 sps:$4 sm:$0xff]  }
 0x3f3   : > { %8554 = vmatprep.subr.bf16.mxu0 %v11684_v46  ;;  %v11766_v42 = vld [vmem:[%s11892_s27 + $0x2150] ss:$8 sps:$4 sm:$0xff]   ;;  %v11771_v46 = vld [vmem:[%s11892_s27 + $0x1064] ss:$8 sps:$4 sm:$0xff]  }
 0x3f5   : > { %7858 = vmatpush1.bf16.msra.mxu1 %v11679_v51  ;;  %v11774_v51 = vld [vmem:[%s11892_s27 + $0x2164] ss:$8 sps:$4 sm:$0xff]  }
 0x3f6   : > { %8555 = vmatpush1.bf16.msra.mxu0 %v11682_v13  ;;  %7859 = vmatprep.subr.bf16.mxu1 %v11687_v7  ;;  %v11769_v13 = vld [vmem:[%s11892_s27 + $0x1060] ss:$8 sps:$4 sm:$0xff]  }
 0x3f7   : > { %8556 = vmatprep.subr.bf16.mxu0 %v11690_v54  ;;  %v11772_v7 = vld [vmem:[%s11892_s27 + $0x2160] ss:$8 sps:$4 sm:$0xff]   ;;  %v11777_v54 = vld [vmem:[%s11892_s27 + $0x1074] ss:$8 sps:$4 sm:$0xff]  }
 0x3f9   : > { %7860 = vmatpush1.bf16.msra.mxu1 %v11685_v56  ;;  %v11780_v56 = vld [vmem:[%s11892_s27 + $0x2174] ss:$8 sps:$4 sm:$0xff]  }
 0x3fa   : > { %8557 = vmatpush1.bf16.msra.mxu0 %v11688_v35  ;;  %7861 = vmatprep.subr.bf16.mxu1 %v11693_v26  ;;  %v11775_v35 = vld [vmem:[%s11892_s27 + $0x1070] ss:$8 sps:$4 sm:$0xff]  }
 0x3fb   : > { %8558 = vmatprep.subr.bf16.mxu0 %v11696_v58  ;;  %v11778_v26 = vld [vmem:[%s11892_s27 + $0x2170] ss:$8 sps:$4 sm:$0xff]   ;;  %v11783_v58 = vld [vmem:[%s11892_s27 + $0x1084] ss:$8 sps:$4 sm:$0xff]  }
 0x3fd   : > { %7862 = vmatpush1.bf16.msra.mxu1 %v11691_v59  ;;  %v1800_v59 = vcombine.high %v13243_v23, %v13243_v23 }
 0x3fe   : > { %8559 = vmatpush1.bf16.msra.mxu0 %v11694_v18  ;;  %7863 = vmatprep.subr.bf16.mxu1 %v11699_v60  ;;  %v11781_v18 = vld [vmem:[%s11892_s27 + $0x1080] ss:$8 sps:$4 sm:$0xff]   ;;  %v11786_v60 = vld [vmem:[%s11892_s27 + $0x1094] ss:$8 sps:$4 sm:$0xff]  }
 0x3ff   : > { %8560 = vmatprep.subr.bf16.mxu0 %v11702_v22  ;;  %v11784_v22 = vld [vmem:[%s11892_s27 + $0x1090] ss:$8 sps:$4 sm:$0xff]  }
 0x401   : > { %7864 = vmatpush1.bf16.msra.mxu1 %v11697_v62  ;;  %v11789_v62 = vld [vmem:[%s11892_s27 + $0x10a4] ss:$8 sps:$4 sm:$0xff]  }
 0x402   : > { %8561 = vmatpush1.bf16.msra.mxu0 %v11700_v30  ;;  %7865 = vmatprep.subr.bf16.mxu1 %v11705_v29  ;;  %v11787_v30 = vld [vmem:[%s11892_s27 + $0x10a0] ss:$8 sps:$4 sm:$0xff]   ;;  %v11792_v29 = vld [vmem:[%s11892_s27 + $0x10b4] ss:$8 sps:$4 sm:$0xff]  }
 0x403   : > { %8562 = vmatprep.subr.bf16.mxu0 %v11708_v1  ;;  %v11790_v1 = vld [vmem:[%s11892_s27 + $0x10b0] ss:$8 sps:$4 sm:$0xff]  }
 0x405   : > { %7866 = vmatpush1.bf16.msra.mxu1 %v11703_v2  ;;  %v11795_v2 = vld [vmem:[%s11892_s27 + $0x10c4] ss:$8 sps:$4 sm:$0xff]  }
 0x406   : > { %8563 = vmatpush1.bf16.msra.mxu0 %v11706_v5  ;;  %7867 = vmatprep.subr.bf16.mxu1 %v11711_v6  ;;  %v11793_v5 = vld [vmem:[%s11892_s27 + $0x10c0] ss:$8 sps:$4 sm:$0xff]   ;;  %v11798_v6 = vld [vmem:[%s11892_s27 + $0x10d4] ss:$8 sps:$4 sm:$0xff]  }
 0x407   : > { %8564 = vmatprep.subr.bf16.mxu0 %v11714_v39  ;;  %v11796_v39 = vld [vmem:[%s11892_s27 + $0x10d0] ss:$8 sps:$4 sm:$0xff]  }
 0x409   : > { %7868 = vmatpush1.bf16.msra.mxu1 %v11709_v50  ;;  %v11801_v50 = vld [vmem:[%s11892_s27 + $0x10e4] ss:$8 sps:$4 sm:$0xff]  }
 0x40a   : > { %8565 = vmatpush1.bf16.msra.mxu0 %v11712_v31  ;;  %7869 = vmatprep.subr.bf16.mxu1 %v11717_v48  ;;  %v11799_v31 = vld [vmem:[%s11892_s27 + $0x10e0] ss:$8 sps:$4 sm:$0xff]   ;;  %v11804_v48 = vld [vmem:[%s11892_s27 + $0x10f4] ss:$8 sps:$4 sm:$0xff]  }
 0x40b   : > { %8566 = vmatprep.subr.bf16.mxu0 %v11720_v57  ;;  %v11802_v57 = vld [vmem:[%s11892_s27 + $0x10f0] ss:$8 sps:$4 sm:$0xff]  }
 0x40d   : > { %7870 = vmatpush1.bf16.msra.mxu1 %v11715_v8 }
 0x40e   : > { %8567 = vmatpush1.bf16.msra.mxu0 %v11718_v10  ;;  %7871 = vmatprep.subr.bf16.mxu1 %v11723_v33 }
 0x40f   : > { %8568 = vmatprep.subr.bf16.mxu0 %v11726_v14 }
 0x411   : > { %7872 = vmatpush1.bf16.msra.mxu1 %v11721_v17  ;;  %v11836_v17 = vmov 1983009808  }
 0x412   : > { %8569 = vmatpush1.bf16.msra.mxu0 %v11724_v0  ;;  %7873 = vmatprep.subr.bf16.mxu1 %v11729_v63  ;;  %v8626_v0 = vunpack.c.l.s4 %v11836_v17  ;;  %v8674_v17 = vld [vmem:[%s13419_s3 + $0x68] sm:$0xff] (!%p9959_p7) }
 0x413   : > { %8570 = vmatprep.subr.bf16.mxu0 %v11732_v3 }
 0x414   : > { %v8627_v63 = vunpack.c.0.s8 %v8626_v0  ;;  %v8691_v0 = vld [vmem:[%s13419_s3 + $0xf0] sm:$0xff] (!%p9959_p7) }
 0x415   : > { %7874 = vmatpush1.bf16.msra.mxu1 %v11727_v20 }
 0x416   : > { %8571 = vmatpush1.bf16.msra.mxu0 %v11730_v61  ;;  %7884 = vmatprep.subr.bf16.mxu1 %v11735_v15 }
 0x417   : > { %8581 = vmatprep.subr.bf16.mxu0 %v11738_v21  ;;  %v13297_v21 = vsub.s32 %v8627_v63, %v11937_v47  ;;  %v8692_v63 = vld [vmem:[%s13419_s3 + $0xf8] sm:$0xff] (!%p9959_p7) }
 0x418   : > { %7876 = vmatmul.mubr.bf16.vlgmr.msra.gmra.mrb[0].mxu1 %v1579_v25 }
 0x419   : > { %8573 = vmatmul.mubr.bf16.vlgmr.msra.gmra.mrb[0].mxu0 %v13243_v23  ;;  %7885 = vmatpush1.bf16.msra.mxu1 %v11733_v38 }
 0x41a   : > { %8582 = vmatpush1.bf16.msra.mxu0 %v11736_v27  ;;  %7886 = vmatprep.subr.bf16.mxu1 %v11741_v28  ;;  %v295_v27 = vld [vmem:[#allocation2] sm:$0xf] }
 0x41b   : > { %8583 = vmatprep.subr.bf16.mxu0 %v11744_v9  ;;  %8613 = vmatprep.mubr.bf16.mxu0 %v11835_v53  ;;  %v8677_v9 = vld [vmem:[%s13419_s3 + $0x80] sm:$0xff] (!%p9959_p7)  ;;  %v8679_v53 = vld [vmem:[%s13419_s3 + $0x90] sm:$0xff] (!%p9959_p7) }
 0x41c   : > { %7916 = vmatprep.mubr.bf16.mxu1 %v11965_v4  ;;  %v11759_v4 = vld [vmem:[%s11892_s27 + $0x1044] ss:$8 sps:$4 sm:$0xff]  }
 0x41d   : > { %7887 = vmatpush1.bf16.msra.mxu1 %v11739_v52  ;;  %v8678_v52 = vld [vmem:[%s13419_s3 + $0x88] sm:$0xff] (!%p9959_p7) }
 0x41e   : > { %8584 = vmatpush1.bf16.msra.mxu0 %v11742_v37  ;;  %7888 = vmatprep.subr.bf16.mxu1 %v11747_v11  ;;  %v8661_v37 = vld [vmem:[%s13419_s3] sm:$0xff] (!%p9959_p7)  ;;  %v9999_v11 = vpack.c.bf16 (!%p9959_p7), %v8678_v52, %v8677_v9 }
 0x41f   : > { %8585 = vmatprep.subr.bf16.mxu0 %v11750_v49  ;;  %v8662_v49 = vld [vmem:[%s13419_s3 + $0x8] sm:$0xff] (!%p9959_p7) }
 0x421   : > { %7889 = vmatpush1.bf16.msra.mxu1 %v11745_v12  ;;  %v8680_v12 = vld [vmem:[%s13419_s3 + $0x98] sm:$0xff] (!%p9959_p7) }
 0x422   : > { %8586 = vmatpush1.bf16.msra.mxu0 %v11748_v34  ;;  %7890 = vmatprep.subr.bf16.mxu1 %v11753_v19  ;;  %v10001_v34 = vpack.c.bf16 (!%p9959_p7), %v8662_v49, %v8661_v37  ;;  %v10003_v19 = vpack.c.bf16 (!%p9959_p7), %v8680_v12, %v8679_v53 }
 0x423   : > { %8587 = vmatprep.subr.bf16.mxu0 %v11756_v55  ;;  %v8663_v55 = vld [vmem:[%s13419_s3 + $0x10] sm:$0xff] (!%p9959_p7) }
 0x425   : > { %7891 = vmatpush1.bf16.msra.mxu1 %v11751_v36  ;;  %v8664_v36 = vld [vmem:[%s13419_s3 + $0x18] sm:$0xff] (!%p9959_p7) }
 0x426   : > { %8588 = vmatpush1.bf16.msra.mxu0 %v11754_v40  ;;  %7892 = vmatprep.subr.bf16.mxu1 %v11759_v4  ;;  %v8681_v40 = vld [vmem:[%s13419_s3 + $0xa0] sm:$0xff] (!%p9959_p7)  ;;  %v8682_v4 = vld [vmem:[%s13419_s3 + $0xa8] sm:$0xff] (!%p9959_p7) }
 0x427   : > { %8589 = vmatprep.subr.bf16.mxu0 %v11762_v41  ;;  %v10005_v41 = vpack.c.bf16 (!%p9959_p7), %v8664_v36, %v8663_v55 }
 0x429   : > { %7893 = vmatpush1.bf16.msra.mxu1 %v11757_v43  ;;  %v10007_v43 = vpack.c.bf16 (!%p9959_p7), %v8682_v4, %v8681_v40 }
 0x42a   : > { %8590 = vmatpush1.bf16.msra.mxu0 %v11760_v44  ;;  %7894 = vmatprep.subr.bf16.mxu1 %v11765_v45  ;;  %v8665_v44 = vld [vmem:[%s13419_s3 + $0x20] sm:$0xff] (!%p9959_p7)  ;;  %v8666_v45 = vld [vmem:[%s13419_s3 + $0x28] sm:$0xff] (!%p9959_p7) }
 0x42b   : > { %8591 = vmatprep.subr.bf16.mxu0 %v11768_v32  ;;  %v8683_v32 = vld [vmem:[%s13419_s3 + $0xb0] sm:$0xff] (!%p9959_p7) }
 0x42d   : > { %7895 = vmatpush1.bf16.msra.mxu1 %v11763_v24  ;;  %v8684_v24 = vld [vmem:[%s13419_s3 + $0xb8] sm:$0xff] (!%p9959_p7) }
 0x42e   : > { %8592 = vmatpush1.bf16.msra.mxu0 %v11766_v42  ;;  %7896 = vmatprep.subr.bf16.mxu1 %v11771_v46  ;;  %v10009_v42 = vpack.c.bf16 (!%p9959_p7), %v8666_v45, %v8665_v44  ;;  %v8644_v46 = vsub.s32 (!%p9959_p7), 0, %v11937_v47 }
 0x42f   : > { %8593 = vmatprep.subr.bf16.mxu0 %v11774_v51  ;;  %v8648_v51 = vsub.s32 (!%p9959_p7), 1, %v11937_v47  ;;  %v8640_v47 = vld [vmem:[%s13418_s2] sm:$0x3] (!%p9959_p7) }
 0x431   : > { %7897 = vmatpush1.bf16.msra.mxu1 %v11769_v13  ;;  %v10011_v13 = vpack.c.bf16 (!%p9959_p7), %v8684_v24, %v8683_v32 }
 0x432   : > { %8594 = vmatpush1.bf16.msra.mxu0 %v11772_v7  ;;  %7898 = vmatprep.subr.bf16.mxu1 %v11777_v54  ;;  %v8667_v7 = vld [vmem:[%s13419_s3 + $0x30] sm:$0xff] (!%p9959_p7)  ;;  %v8668_v54 = vld [vmem:[%s13419_s3 + $0x38] sm:$0xff] (!%p9959_p7) }
 0x433   : > { %8595 = vmatprep.subr.bf16.mxu0 %v11780_v56  ;;  %v8685_v56 = vld [vmem:[%s13419_s3 + $0xc0] sm:$0xff] (!%p9959_p7) }
 0x435   : > { %7899 = vmatpush1.bf16.msra.mxu1 %v11775_v35  ;;  %v8686_v35 = vld [vmem:[%s13419_s3 + $0xc8] sm:$0xff] (!%p9959_p7) }
 0x436   : > { %8596 = vmatpush1.bf16.msra.mxu0 %v11778_v26  ;;  %7900 = vmatprep.subr.bf16.mxu1 %v11783_v58  ;;  %v10013_v26 = vpack.c.bf16 (!%p9959_p7), %v8668_v54, %v8667_v7  ;;  %v8645_v58 = vrot.slane (!%p9959_p7), %v8640_v47, %v8644_v46 }
 0x437   : > { %10000 = vmatprep.subr.bf16.mxu0 (!%p9959_p7), %v9999_v11 }
 0x439   : > { %8614 = vmatmul.mubr.bf16.vlgmr.msra.gmra.mrb[0].mxu0 %v1800_v59  ;;  %7901 = vmatpush1.bf16.msra.mxu1 %v11781_v18  ;;  %v8649_v59 = vrot.slane (!%p9959_p7), %v8640_v47, %v8648_v51  ;;  %v10015_v18 = vpack.c.bf16 (!%p9959_p7), %v8686_v35, %v8685_v56 }
 0x43a   : > { %7902 = vmatprep.subr.bf16.mxu1 %v11786_v60  ;;  %10002 = vmatpush3.bf16.msra.mxu0 (!%p9959_p7), %v10001_v34  ;;  %v8669_v60 = vld [vmem:[%s13419_s3 + $0x40] sm:$0xff] (!%p9959_p7) }
 0x43b   : > { %10004 = vmatprep.subr.bf16.mxu0 (!%p9959_p7), %v10003_v19 }
 0x43d   : > { %7903 = vmatpush1.bf16.msra.mxu1 %v11784_v22  ;;  %v8670_v22 = vld [vmem:[%s13419_s3 + $0x48] sm:$0xff] (!%p9959_p7) }
 0x43e   : > { %7904 = vmatprep.subr.bf16.mxu1 %v11789_v62  ;;  %10006 = vmatpush3.bf16.msra.mxu0 (!%p9959_p7), %v10005_v41  ;;  %v8687_v62 = vld [vmem:[%s13419_s3 + $0xd0] sm:$0xff] (!%p9959_p7) }
 0x43f   : > { %10008 = vmatprep.subr.bf16.mxu0 (!%p9959_p7), %v10007_v43 }
 0x441   : > { %7905 = vmatpush1.bf16.msra.mxu1 %v11787_v30  ;;  %v8688_v30 = vld [vmem:[%s13419_s3 + $0xd8] sm:$0xff] (!%p9959_p7) }
 0x442   : > { %7906 = vmatprep.subr.bf16.mxu1 %v11792_v29  ;;  %10010 = vmatpush3.bf16.msra.mxu0 (!%p9959_p7), %v10009_v42  ;;  %v8650_v29 = vcombine.low (!%p9959_p7), %v8645_v58, %v8649_v59 }
 0x443   : > { %10012 = vmatprep.subr.bf16.mxu0 (!%p9959_p7), %v10011_v13 }
 0x445   : > { %7907 = vmatpush1.bf16.msra.mxu1 %v11790_v1 }
 0x446   : > { %7908 = vmatprep.subr.bf16.mxu1 %v11795_v2  ;;  %10014 = vmatpush3.bf16.msra.mxu0 (!%p9959_p7), %v10013_v26  ;;  %v10017_v2 = vpack.c.bf16 (!%p9959_p7), %v8670_v22, %v8669_v60 }
 0x447   : > { %10016 = vmatprep.subr.bf16.mxu0 (!%p9959_p7), %v10015_v18 }
 0x449   : > { %7909 = vmatpush1.bf16.msra.mxu1 %v11793_v5  ;;  %v8657_v5 = vrot.slane (!%p9959_p7), %v8650_v29, %v13297_v21 }
 0x44a   : > { %7910 = vmatprep.subr.bf16.mxu1 %v11798_v6  ;;  %v10019_v6 = vpack.c.bf16 (!%p9959_p7), %v8688_v30, %v8687_v62  ;;  %10018 = vmatpush3.bf16.msra.mxu0 (!%p9959_p7), %v10017_v2 }
 0x44c   : > { %10020 = vmatprep.subr.bf16.mxu0 (!%p9959_p7), %v10019_v6 }
 0x44d   : > { %7911 = vmatpush1.bf16.msra.mxu1 %v11796_v39  ;;  %v8671_v39 = vld [vmem:[%s13419_s3 + $0x50] sm:$0xff] (!%p9959_p7) }
 0x44e   : > { %7912 = vmatprep.subr.bf16.mxu1 %v11801_v50  ;;  %v8672_v50 = vld [vmem:[%s13419_s3 + $0x58] sm:$0xff] (!%p9959_p7) }
 0x451   : > { %7913 = vmatpush1.bf16.msra.mxu1 %v11799_v31  ;;  %v8689_v31 = vld [vmem:[%s13419_s3 + $0xe0] sm:$0xff] (!%p9959_p7) }
 0x452   : > { %7914 = vmatprep.subr.bf16.mxu1 %v11804_v48  ;;  %v8690_v48 = vld [vmem:[%s13419_s3 + $0xe8] sm:$0xff] (!%p9959_p7) }
 0x455   : > { %7915 = vmatpush1.bf16.msra.mxu1 %v11802_v57 }
 0x458   : > { %7917 = vmatmul.mubr.bf16.vlgmr.msra.gmra.mrb[0].mxu1 %v11982_v16 }
 0x50c   : > { %v8615_v8 = vpop.f32.mrb[0].mxu0 }
 0x50d   : > { %v8617_v10 = vpop.f32.mrb[1].mxu0 }
 0x50e   : > { %v8619_v33 = vpop.f32.mrb[2].mxu0 }
 0x50f   : > { %v8620_v14 = vpop.f32.mrb[3].mxu0  ;;  %v10023_v33 = vpack.c.bf16 (!%p9959_p7), %v8690_v48, %v8689_v31 }
 0x510   : > { %v8673_v14 = vld [vmem:[%s13419_s3 + $0x60] sm:$0xff] (!%p9959_p7) }
 0x52b   : > { %v7918_v3 = vpop.f32.mrb[0].mxu1 }
 0x52c   : > { %v10031_v20 = vadd.f32 %v8615_v8, %v7918_v3  ;;  %v7920_v61 = vpop.f32.mrb[1].mxu1  ;;  %v10021_v8 = vpack.c.bf16 (!%p9959_p7), %v8672_v50, %v8671_v39 }
 0x52d   : > { %v10032_v15 = vadd.f32 %v8617_v10, %v7920_v61  ;;  %v7922_v25 = vpop.f32.mrb[2].mxu1 }
 0x52e   : > { %v7923_v23 = vpop.f32.mrb[3].mxu1  ;;  %10022 = vmatpush3.bf16.msra.mxu0 (!%p9959_p7), %v10021_v8  ;;  %v8675_v25 = vld [vmem:[%s13419_s3 + $0x70] sm:$0xff] (!%p9959_p7) }
 0x52f   : > { %v8624_v38 = vcombine.low %v10031_v20, %v10032_v15  ;;  %8638 = sbr.rel (%p9959_p7) target bundleno = 1566 (0x61e), region = 44  ;;  %v10025_v20 = vpack.c.bf16 (!%p9959_p7), %v8674_v17, %v8673_v14  ;;  %10024 = vmatprep.subr.bf16.mxu0 (!%p9959_p7), %v10023_v33  ;;  %v10027_v15 = vpack.c.bf16 (!%p9959_p7), %v8692_v63, %v8691_v0  ;;  %v8676_v23 = vld [vmem:[%s13419_s3 + $0x78] sm:$0xff] (!%p9959_p7) }
 0x531   : > { %v8631_v16 = vrot.slane %v8624_v38, %v13297_v21  ;;  %v10029_v38 = vpack.c.bf16 (!%p9959_p7), %v8676_v23, %v8675_v25 }
 0x532   : > { %10026 = vmatpush3.bf16.msra.mxu0 (!%p9959_p7), %v10025_v20 }
 0x533   : > { %v8633_v28 = vadd.f32 %v8631_v16, %v295_v27  ;;  %10028 = vmatprep.subr.bf16.mxu0 (!%p9959_p7), %v10027_v15 }
 0x535   : > { %8634 = vst [vmem:[#allocation2] sm:$0xf] %v8633_v28 }
 0x536   : > { %10030 = vmatpush3.bf16.msra.mxu0 %v10029_v38 }
 0x53c   : > { %v8639_v1 = vld [vmem:[#allocation2] sm:$0xf] }
 0x53d   : > { %v8659_v57 = vadd.f32 %v8657_v5, %v8639_v1 }
 0x53f   : > { %v8660_v10 = vmax.f32 %v8659_v57, 0.0 }
 0x541   : > { %v8700_v3 = vrot.slane %v8660_v10, %v13297_v21 }
 0x543   : > { %v8701_v61 = vcombine.high %v8700_v3, %v8700_v3 }
 0x545   : > { %8768 = vmatprep.mubr.f32.mxu0 %v8701_v61 }
 0x546   : > { %8769 = vmatmul.mubr.f32.vlgmr.msra.gmra.mrb[0].mxu0 %v8700_v3 }
 0x619   : > { %v9996_v21 = vpop.f32.mrb[0].mxu0 }
 0x61a   : > { %v9997_v27 = vpop.f32.mrb[1].mxu0 }
 0x61b   : > { %v9998_v16 = vadd.f32 %v9997_v27, %v9996_v21 }
 0x61d   : > { %8775 = vst.msk [vmem:[%s13420_s4] sm:$0x3] %vm8774_vm0, %v9998_v16 }
 0x61e PF: > { %s14_s17 = sadd.s32 1, %s11831_s17   ;;  %s13421_s15 = smov %s11827_s16 }
 0x61f   : > { %p11_p8 = scmp.ge.s32.totalorder %s14_s17, 4   ;;  %s13422_s16 = smov %s13424_s18 }
 0x621   :  { %13 = sbr.rel (!%p11_p8) target bundleno = 2 (0x2), region = 83 }

</bundles_post_ra>
